<compile_context>
chip_gen: v7x
topology: tpu7x:2x2x1
jax: 0.10.0
libtpu: 0.0.40
codegen_flags: <defaults>
</compile_context>

<pallas_src>
import jax
import jax.numpy as jnp
import numpy as np
from jax.experimental import pallas as pl
from jax.experimental.pallas import tpu as pltpu

_LANES = 128
_EPS = 1e-5


def _round_up(x, m):
    return (x + m - 1) // m * m


def _largest_divisor_leq(n, cap):
    d = max(1, min(n, cap))
    while n % d:
        d -= 1
    return d


def _detect_vmem_limit():
    """Scoped-VMEM limit ~= half of physical VMEM (64 MiB v5e/v6e, 32 MiB v7x);
    conservative 32 MiB fallback if the hardware query is unavailable."""
    cap = None
    try:
        info = pltpu.get_tpu_info()
        for name in ("vmem_capacity_bytes", "vmem_size_bytes", "vmem_bytes"):
            cap = getattr(info, name, None)
            if cap:
                break
    except Exception:
        cap = None
    if not cap:
        return 32 * 1024 * 1024
    return int(min(96 * 1024 * 1024, max(32 * 1024 * 1024, cap // 2)))


_VMEM_LIMIT = _detect_vmem_limit()
# Fatter row tiles amortize the ~0.35us per-grid-step overhead on v5e/v6e
# (128 MiB physical VMEM); stay at 512 MXU rows on v7x (64 MiB per core).
_MAX_CONV_TILE_ROWS = 1024 if _VMEM_LIMIT >= 64 * 1024 * 1024 else 512
_MAX_BN_TILE_PIX = 2048


def _pick_conv_row_tile(H, W, N):
    th = _largest_divisor_leq(H, max(1, _MAX_CONV_TILE_ROWS // W))
    # Guarantee >= 2 "parallel" grid steps so both v7x TensorCores get work.
    while N * (H // th) < 2 and th > 1:
        th = _largest_divisor_leq(H, th - 1)
    return th


def _pick_bn_row_tile(H, W):
    for th in range(H, 0, -1):
        if H % th == 0 and th * W <= _MAX_BN_TILE_PIX and (th * W) % _LANES == 0:
            return th
    return H   # full-image tile: block dims equal the full array dims -> legal


# ---------------------------------------------------------------------------
# Pallas kernels
# ---------------------------------------------------------------------------
def _conv_epilogue(cols_ref, w_ref, b_ref, y_ref, stats_ref):
    """One K=9*Cip MXU matmul + bias + ReLU + BN partial statistics."""
    TH, W, Cop = y_ref.shape[1], y_ref.shape[2], y_ref.shape[3]
    y = jnp.dot(cols_ref[...], w_ref[...], preferred_element_type=jnp.float32)
    y = jnp.maximum(y + b_ref[...], 0.0)                    # f32 epilogue
    y_ref[0] = y.reshape(TH, W, Cop).astype(y_ref.dtype)
    s = jnp.sum(y, axis=0, keepdims=True)
    ss = jnp.sum(y * y, axis=0, keepdims=True)
    stats_ref[0, 0, :, :] = jnp.concatenate([s, ss], axis=0)


def conv3x3_relu_stats_kernel(xp_ref, w_ref, b_ref, y_ref, stats_ref, cols_ref):
    """Conv3x3 + bias + ReLU (+BN stats) for one (batch n, row-tile t) step.

    xp_ref:   (1, H+2, W+2, Cip) bf16 zero-padded NHWC image (resident over t)
    w_ref:    (9*Cip, Cop)       bf16 conv weights, tap-major
    b_ref:    (1, Cop)           f32  conv bias
    y_ref:    (1, TH, W, Cop)    bf16 ReLU(conv) output row tile
    stats_ref:(1, 1, 2, Cop)     f32  [sum, sum^2] over this tile
    cols_ref: (TH*W, 9*Cip)      bf16 im2col scratch
    """
    TH, W = y_ref.shape[1], y_ref.shape[2]
    Cip = xp_ref.shape[3]
    row0 = pl.multiple_of(pl.program_id(1) * TH, TH)
    for dy in range(3):
        for dx in range(3):
            tap = dy * 3 + dx
            win = xp_ref[0, pl.ds(row0 + dy, TH), pl.ds(dx, W), :]
            cols_ref[:, tap * Cip:(tap + 1) * Cip] = win.reshape(TH * W, Cip)
    _conv_epilogue(cols_ref, w_ref, b_ref, y_ref, stats_ref)


def conv3x3_bn_relu_stats_kernel(xp_ref, w_ref, b_ref, scale_ref, shift_ref,
                                 y_ref, stats_ref, cols_ref, slab_ref):
    """Same as above, with the *previous* BatchNorm's apply fused into the
    input read.  The scale/shift/interior-mask work is hoisted: one bf16 slab
    (TH+2, W+2, Cip) is built per grid step; the im2col loop only copies it.
    """
    TH, W = y_ref.shape[1], y_ref.shape[2]
    H = xp_ref.shape[1] - 2
    Cip = xp_ref.shape[3]
    row0 = pl.multiple_of(pl.program_id(1) * TH, TH)

    # --- hoisted BN apply (once per pixel per step, not per tap) ------------
    win = xp_ref[0, pl.ds(row0, TH + 2), :, :].astype(jnp.float32)
    r = jax.lax.broadcasted_iota(jnp.int32, (TH + 2, W + 2, 1), 0) + row0
    c = jax.lax.broadcasted_iota(jnp.int32, (TH + 2, W + 2, 1), 1)
    # The shift only touches real (interior) pixels; the conv's zero padding
    # must stay exactly zero.  scale * 0 is already 0 on the halo.
    interior = ((r >= 1) & (r <= H) & (c >= 1) & (c <= W)).astype(jnp.float32)
    slab_ref[...] = (win * scale_ref[...]
                     + shift_ref[...] * interior).astype(jnp.bfloat16)

    for dy in range(3):
        for dx in range(3):
            tap = dy * 3 + dx
            cols_ref[:, tap * Cip:(tap + 1) * Cip] = (
                slab_ref[dy:dy + TH, dx:dx + W, :].reshape(TH * W, Cip))
    _conv_epilogue(cols_ref, w_ref, b_ref, y_ref, stats_ref)


def bn_transpose_kernel(x_ref, scale_ref, shift_ref, o_ref):
    """BN2 apply + channel slice (Cop->Cout) + NHWC->NCHW transpose, fused.

    x_ref: (1, TH, W, Cop) bf16 ; scale/shift: (1, Cop) f32
    o_ref: (1, Cout, TH*W) f32  (lane-dense: TH*W is a multiple of 128
                                 or equals the full H*W dim)
    """
    TH, W, Cop = x_ref.shape[1], x_ref.shape[2], x_ref.shape[3]
    Cout = o_ref.shape[1]
    z = x_ref[0].reshape(TH * W, Cop).astype(jnp.float32)
    z = z * scale_ref[...] + shift_ref[...]
    zt = jnp.transpose(z)                       # (Cop, TH*W), lane-dense
    o_ref[0] = zt[:Cout, :]                     # drop padded channels


# ---------------------------------------------------------------------------
# Wrappers
# ---------------------------------------------------------------------------
def _conv3x3_relu_stats(xp, w, b, scale=None, shift=None):
    """xp: (N, H+2, W+2, Cip) bf16 zero-padded NHWC. Returns (y bf16, stats f32).

    If scale/shift are given, the previous BN's affine apply is fused into the
    input read (hoisted slab); otherwise the specialized affine-free kernel is
    used (conv1)."""
    N, Hp, Wp, Cip = xp.shape
    H, W = Hp - 2, Wp - 2
    Cop = w.shape[-1]
    TH = _pick_conv_row_tile(H, W, N)
    HT = H // TH
    fuse_bn = scale is not None

    in_specs = [
        pl.BlockSpec((1, Hp, Wp, Cip), lambda n, t: (n, 0, 0, 0)),
        pl.BlockSpec((9 * Cip, Cop), lambda n, t: (0, 0)),
        pl.BlockSpec((1, Cop), lambda n, t: (0, 0)),
    ]
    args = [xp, w, b]
    scratch = [pltpu.VMEM((TH * W, 9 * Cip), jnp.bfloat16)]      # im2col
    kernel = conv3x3_relu_stats_kernel
    if fuse_bn:
        in_specs += [pl.BlockSpec((1, Cip), lambda n, t: (0, 0)),
                     pl.BlockSpec((1, Cip), lambda n, t: (0, 0))]
        args += [scale, shift]
        scratch.append(pltpu.VMEM((TH + 2, W + 2, Cip), jnp.bfloat16))  # slab
        kernel = conv3x3_bn_relu_stats_kernel

    flops = 2 * N * H * W * 9 * Cip * Cop
    bytes_accessed = (xp.size * 2 + w.size * 2 + b.size * 4
                      + (2 * Cip * 4 if fuse_bn else 0)
                      + N * H * W * Cop * 2 + N * HT * 2 * Cop * 4)

    y, stats = pl.pallas_call(
        kernel,
        out_shape=(
            jax.ShapeDtypeStruct((N, H, W, Cop), jnp.bfloat16),
            jax.ShapeDtypeStruct((N, HT, 2, Cop), jnp.float32),
        ),
        grid=(N, HT),
        in_specs=in_specs,
        out_specs=(
            pl.BlockSpec((1, TH, W, Cop), lambda n, t: (n, t, 0, 0)),
            pl.BlockSpec((1, 1, 2, Cop), lambda n, t: (n, t, 0, 0)),
        ),
        scratch_shapes=scratch,
        compiler_params=pltpu.CompilerParams(
            dimension_semantics=("parallel", "parallel"),
            vmem_limit_bytes=_VMEM_LIMIT,
        ),
        cost_estimate=pl.CostEstimate(
            flops=flops, transcendentals=0, bytes_accessed=bytes_accessed),
    )(*args)
    return y, stats


def _bn_apply_nchw(y2, scale, shift, cout):
    """Fused BN2 apply + channel slice + NHWC->NCHW; returns (N, Cout, H*W) f32."""
    N, H, W, Cop = y2.shape
    TH = _pick_bn_row_tile(H, W)
    HT = H // TH
    return pl.pallas_call(
        bn_transpose_kernel,
        out_shape=jax.ShapeDtypeStruct((N, cout, H * W), jnp.float32),
        grid=(N, HT),
        in_specs=[
            pl.BlockSpec((1, TH, W, Cop), lambda n, t: (n, t, 0, 0)),
            pl.BlockSpec((1, Cop), lambda n, t: (0, 0)),
            pl.BlockSpec((1, Cop), lambda n, t: (0, 0)),
        ],
        out_specs=pl.BlockSpec((1, cout, TH * W), lambda n, t: (n, 0, t)),
        compiler_params=pltpu.CompilerParams(
            dimension_semantics=("parallel", "parallel"),
            vmem_limit_bytes=_VMEM_LIMIT,
        ),
    )(y2, scale, shift)


def _bn_scale_shift(stats, gamma_p, beta_p, count):
    """Fold batch mean/var + affine into per-channel scale/shift, shape (1, C)."""
    s = jnp.sum(stats[:, :, 0, :], axis=(0, 1))
    ss = jnp.sum(stats[:, :, 1, :], axis=(0, 1))
    mean = s / count
    var = ss / count - mean * mean          # biased variance (training-mode BN)
    scale = gamma_p * jax.lax.rsqrt(var + _EPS)
    shift = beta_p - mean * scale
    return scale.reshape(1, -1), shift.reshape(1, -1)


def _prep_conv(w_oihw, bias, cin_p, cout_p):
    cout, cin, kh, kw = w_oihw.shape
    w = jnp.transpose(w_oihw, (2, 3, 1, 0))                  # (3, 3, Cin, Cout)
    w = jnp.pad(w, ((0, 0), (0, 0), (0, cin_p - cin), (0, cout_p - cout)))
    w = w.reshape(kh * kw * cin_p, cout_p).astype(jnp.bfloat16)   # tap-major K
    b = jnp.pad(bias, (0, cout_p - cout)).reshape(1, cout_p).astype(jnp.float32)
    return w, b


@jax.jit
def double_conv(x_nchw, params):
    N, Cin, H, W = x_nchw.shape
    Cout = params["w1"].shape[0]
    Cip = _round_up(Cin, _LANES)
    Cop = _round_up(Cout, _LANES)
    count = N * H * W

    # NCHW -> NHWC, lane-dense channel pad, 3x3 zero halo; bf16 DMA footprint.
    x = jnp.transpose(x_nchw, (0, 2, 3, 1))
    xp = jnp.pad(x, ((0, 0), (1, 1), (1, 1), (0, Cip - Cin))).astype(jnp.bfloat16)

    w1, b1 = _prep_conv(params["w1"], params["b1"], Cip, Cop)
    w2, b2 = _prep_conv(params["w2"], params["b2"], Cop, Cop)
    g1 = jnp.pad(params["g1"], (0, Cop - Cout))
    be1 = jnp.pad(params["beta1"], (0, Cop - Cout))
    g2 = jnp.pad(params["g2"], (0, Cop - Cout))
    be2 = jnp.pad(params["beta2"], (0, Cop - Cout))

    # conv1 + ReLU (specialized, no affine path); BN1 stats fused in epilogue.
    y1, st1 = _conv3x3_relu_stats(xp, w1, b1)
    sc1, sh1 = _bn_scale_shift(st1, g1, be1, count)

    # conv2 + ReLU with BN1 apply fused (hoisted slab); BN2 stats fused.
    # TODO(synk): drop this halo pad by reading unpadded y1 with clamped rows.
    y1p = jnp.pad(y1, ((0, 0), (1, 1), (1, 1), (0, 0)))      # bf16 zero halo
    y2, st2 = _conv3x3_relu_stats(y1p, w2, b2, sc1, sh1)
    sc2, sh2 = _bn_scale_shift(st2, g2, be2, count)

    # BN2 apply + channel slice + NHWC->NCHW in one lane-dense Pallas pass.
    out = _bn_apply_nchw(y2, sc2, sh2, Cout)                 # (N, Cout, H*W)
    return out.reshape(N, Cout, H, W)                        # free reshape


# ---------------------------------------------------------------------------
# Pure-JAX f32 reference (for correctness check)
# ---------------------------------------------------------------------------
def reference(x, params):
    def conv(x, w, b):
        y = jax.lax.conv_general_dilated(
            x, w, (1, 1), "SAME", dimension_numbers=("NCHW", "OIHW", "NCHW"))
        return y + b[None, :, None, None]

    def bn(x, g, be):
        mean = jnp.mean(x, axis=(0, 2, 3), keepdims=True)
        var = jnp.mean((x - mean) ** 2, axis=(0, 2, 3), keepdims=True)
        return (x - mean) * jax.lax.rsqrt(var + _EPS) * g[None, :, None, None] \
            + be[None, :, None, None]

    y = bn(jax.nn.relu(conv(x, params["w1"], params["b1"])), params["g1"], params["beta1"])
    y = bn(jax.nn.relu(conv(y, params["w2"], params["b2"])), params["g2"], params["beta2"])
    return y


def _make_params(key, cin, cout):
    k = jax.random.split(key, 8)
    return {
        "w1": jax.random.normal(k[0], (cout, cin, 3, 3), jnp.float32) * 0.1,
        "b1": jax.random.normal(k[1], (cout,), jnp.float32) * 0.1,
        "g1": 1.0 + 0.1 * jax.random.normal(k[2], (cout,), jnp.float32),
        "beta1": 0.1 * jax.random.normal(k[3], (cout,), jnp.float32),
        "w2": jax.random.normal(k[4], (cout, cout, 3, 3), jnp.float32) * 0.1,
        "b2": jax.random.normal(k[5], (cout,), jnp.float32) * 0.1,
        "g2": 1.0 + 0.1 * jax.random.normal(k[6], (cout,), jnp.float32),
        "beta2": 0.1 * jax.random.normal(k[7], (cout,), jnp.float32),
    }


if __name__ == "__main__":
    def run_case(key, n, cin, cout, h, w):
        kx, kp = jax.random.split(key)
        x = jax.random.normal(kx, (n, cin, h, w), jnp.float32)
        params = _make_params(kp, cin, cout)
        out = jax.block_until_ready(double_conv(x, params))
        ref = jax.block_until_ready(reference(x, params))
        assert out.shape == (n, cout, h, w)
        # bf16 MXU operands with f32 accumulation: tolerance loosened vs f32 ref.
        np.testing.assert_allclose(np.asarray(out), np.asarray(ref),
                                   atol=5e-2, rtol=5e-2)

    key = jax.random.PRNGKey(0)
    k1, k2 = jax.random.split(key)
    run_case(k1, 2, 4, 8, 16, 16)   # primary toy config
    run_case(k2, 2, 4, 8, 64, 32)   # exercises multi-row-tile conv grid
    print("KERNEL_OK")
</pallas_src>

<mosaic_0001>
module attributes {stable_mosaic.version = 11 : i64} {
  func.func @conv3x3_relu_stats_kernel(%arg0: i32, %arg1: i32, %arg2: memref<1x18x18x128xbf16, #tpu.memory_space<vmem>>, %arg3: memref<1152x128xbf16, #tpu.memory_space<vmem>>, %arg4: memref<1x128xf32, #tpu.memory_space<vmem>>, %arg5: memref<1x16x16x128xbf16, #tpu.memory_space<vmem>>, %arg6: memref<1x1x2x128xf32, #tpu.memory_space<vmem>>, %arg7: memref<256x1152xbf16, #tpu.memory_space<vmem>>) attributes {dimension_semantics = [#tpu.dimension_semantics<parallel>, #tpu.dimension_semantics<parallel>], iteration_bounds = array<i64: 2, 1>, scalar_prefetch = 0 : i64, scratch_operands = 1 : i64, tpu.core_type = #tpu.core_type<tc>, window_params = [{transform_indices = @transform_0, window_bounds = array<i64: 1, 18, 18, 128>}, {pipeline_mode = #tpu.pipeline_mode<synchronous>, transform_indices = @transform_1, window_bounds = array<i64: 1152, 128>}, {pipeline_mode = #tpu.pipeline_mode<synchronous>, transform_indices = @transform_2, window_bounds = array<i64: 1, 128>}, {transform_indices = @transform_3, window_bounds = array<i64: 1, 16, 16, 128>}, {transform_indices = @transform_4, window_bounds = array<i64: 1, 1, 2, 128>}]} {
    %c16_i32 = arith.constant 16 : i32
    %0 = arith.muli %arg1, %c16_i32 : i32
    %1 = tpu.assume_multiple %0, 16 : i32
    %c0_i32 = arith.constant 0 : i32
    %2 = arith.addi %1, %c0_i32 : i32
    %c0 = arith.constant 0 : index
    %3 = arith.index_cast %2 : i32 to index
    %c0_0 = arith.constant 0 : index
    %c0_1 = arith.constant 0 : index
    %4 = vector.load %arg2[%c0, %3, %c0_0, %c0_1] : memref<1x18x18x128xbf16, #tpu.memory_space<vmem>>, vector<1x16x16x128xbf16>
    %5 = vector.shape_cast %4 : vector<1x16x16x128xbf16> to vector<16x16x128xbf16>
    %6 = vector.shape_cast %5 : vector<16x16x128xbf16> to vector<256x128xbf16>
    %c0_2 = arith.constant 0 : index
    %c0_3 = arith.constant 0 : index
    %7 = vector.load %arg7[%c0_2, %c0_3] : memref<256x1152xbf16, #tpu.memory_space<vmem>>, vector<256x128xbf16>
    tpu.vector_store %arg7[%c0_2, %c0_3], %6 {strides = array<i32>} : memref<256x1152xbf16, #tpu.memory_space<vmem>>, vector<256x128xbf16>,
    %c0_i32_4 = arith.constant 0 : i32
    %8 = arith.addi %1, %c0_i32_4 : i32
    %c0_5 = arith.constant 0 : index
    %9 = arith.index_cast %8 : i32 to index
    %c1 = arith.constant 1 : index
    %c0_6 = arith.constant 0 : index
    %10 = vector.load %arg2[%c0_5, %9, %c1, %c0_6] : memref<1x18x18x128xbf16, #tpu.memory_space<vmem>>, vector<1x16x16x128xbf16>
    %11 = vector.shape_cast %10 : vector<1x16x16x128xbf16> to vector<16x16x128xbf16>
    %12 = vector.shape_cast %11 : vector<16x16x128xbf16> to vector<256x128xbf16>
    %c0_7 = arith.constant 0 : index
    %c128 = arith.constant 128 : index
    %13 = vector.load %arg7[%c0_7, %c128] : memref<256x1152xbf16, #tpu.memory_space<vmem>>, vector<256x128xbf16>
    tpu.vector_store %arg7[%c0_7, %c128], %12 {strides = array<i32>} : memref<256x1152xbf16, #tpu.memory_space<vmem>>, vector<256x128xbf16>,
    %c0_i32_8 = arith.constant 0 : i32
    %14 = arith.addi %1, %c0_i32_8 : i32
    %c0_9 = arith.constant 0 : index
    %15 = arith.index_cast %14 : i32 to index
    %c2 = arith.constant 2 : index
    %c0_10 = arith.constant 0 : index
    %16 = vector.load %arg2[%c0_9, %15, %c2, %c0_10] : memref<1x18x18x128xbf16, #tpu.memory_space<vmem>>, vector<1x16x16x128xbf16>
    %17 = vector.shape_cast %16 : vector<1x16x16x128xbf16> to vector<16x16x128xbf16>
    %18 = vector.shape_cast %17 : vector<16x16x128xbf16> to vector<256x128xbf16>
    %c0_11 = arith.constant 0 : index
    %c256 = arith.constant 256 : index
    %19 = vector.load %arg7[%c0_11, %c256] : memref<256x1152xbf16, #tpu.memory_space<vmem>>, vector<256x128xbf16>
    tpu.vector_store %arg7[%c0_11, %c256], %18 {strides = array<i32>} : memref<256x1152xbf16, #tpu.memory_space<vmem>>, vector<256x128xbf16>,
    %c1_i32 = arith.constant 1 : i32
    %20 = arith.addi %1, %c1_i32 : i32
    %c0_12 = arith.constant 0 : index
    %21 = arith.index_cast %20 : i32 to index
    %c0_13 = arith.constant 0 : index
    %c0_14 = arith.constant 0 : index
    %22 = vector.load %arg2[%c0_12, %21, %c0_13, %c0_14] : memref<1x18x18x128xbf16, #tpu.memory_space<vmem>>, vector<1x16x16x128xbf16>
    %23 = vector.shape_cast %22 : vector<1x16x16x128xbf16> to vector<16x16x128xbf16>
    %24 = vector.shape_cast %23 : vector<16x16x128xbf16> to vector<256x128xbf16>
    %c0_15 = arith.constant 0 : index
    %c384 = arith.constant 384 : index
    %25 = vector.load %arg7[%c0_15, %c384] : memref<256x1152xbf16, #tpu.memory_space<vmem>>, vector<256x128xbf16>
    tpu.vector_store %arg7[%c0_15, %c384], %24 {strides = array<i32>} : memref<256x1152xbf16, #tpu.memory_space<vmem>>, vector<256x128xbf16>,
    %c1_i32_16 = arith.constant 1 : i32
    %26 = arith.addi %1, %c1_i32_16 : i32
    %c0_17 = arith.constant 0 : index
    %27 = arith.index_cast %26 : i32 to index
    %c1_18 = arith.constant 1 : index
    %c0_19 = arith.constant 0 : index
    %28 = vector.load %arg2[%c0_17, %27, %c1_18, %c0_19] : memref<1x18x18x128xbf16, #tpu.memory_space<vmem>>, vector<1x16x16x128xbf16>
    %29 = vector.shape_cast %28 : vector<1x16x16x128xbf16> to vector<16x16x128xbf16>
    %30 = vector.shape_cast %29 : vector<16x16x128xbf16> to vector<256x128xbf16>
    %c0_20 = arith.constant 0 : index
    %c512 = arith.constant 512 : index
    %31 = vector.load %arg7[%c0_20, %c512] : memref<256x1152xbf16, #tpu.memory_space<vmem>>, vector<256x128xbf16>
    tpu.vector_store %arg7[%c0_20, %c512], %30 {strides = array<i32>} : memref<256x1152xbf16, #tpu.memory_space<vmem>>, vector<256x128xbf16>,
    %c1_i32_21 = arith.constant 1 : i32
    %32 = arith.addi %1, %c1_i32_21 : i32
    %c0_22 = arith.constant 0 : index
    %33 = arith.index_cast %32 : i32 to index
    %c2_23 = arith.constant 2 : index
    %c0_24 = arith.constant 0 : index
    %34 = vector.load %arg2[%c0_22, %33, %c2_23, %c0_24] : memref<1x18x18x128xbf16, #tpu.memory_space<vmem>>, vector<1x16x16x128xbf16>
    %35 = vector.shape_cast %34 : vector<1x16x16x128xbf16> to vector<16x16x128xbf16>
    %36 = vector.shape_cast %35 : vector<16x16x128xbf16> to vector<256x128xbf16>
    %c0_25 = arith.constant 0 : index
    %c640 = arith.constant 640 : index
    %37 = vector.load %arg7[%c0_25, %c640] : memref<256x1152xbf16, #tpu.memory_space<vmem>>, vector<256x128xbf16>
    tpu.vector_store %arg7[%c0_25, %c640], %36 {strides = array<i32>} : memref<256x1152xbf16, #tpu.memory_space<vmem>>, vector<256x128xbf16>,
    %c2_i32 = arith.constant 2 : i32
    %38 = arith.addi %1, %c2_i32 : i32
    %c0_26 = arith.constant 0 : index
    %39 = arith.index_cast %38 : i32 to index
    %c0_27 = arith.constant 0 : index
    %c0_28 = arith.constant 0 : index
    %40 = vector.load %arg2[%c0_26, %39, %c0_27, %c0_28] : memref<1x18x18x128xbf16, #tpu.memory_space<vmem>>, vector<1x16x16x128xbf16>
    %41 = vector.shape_cast %40 : vector<1x16x16x128xbf16> to vector<16x16x128xbf16>
    %42 = vector.shape_cast %41 : vector<16x16x128xbf16> to vector<256x128xbf16>
    %c0_29 = arith.constant 0 : index
    %c768 = arith.constant 768 : index
    %43 = vector.load %arg7[%c0_29, %c768] : memref<256x1152xbf16, #tpu.memory_space<vmem>>, vector<256x128xbf16>
    tpu.vector_store %arg7[%c0_29, %c768], %42 {strides = array<i32>} : memref<256x1152xbf16, #tpu.memory_space<vmem>>, vector<256x128xbf16>,
    %c2_i32_30 = arith.constant 2 : i32
    %44 = arith.addi %1, %c2_i32_30 : i32
    %c0_31 = arith.constant 0 : index
    %45 = arith.index_cast %44 : i32 to index
    %c1_32 = arith.constant 1 : index
    %c0_33 = arith.constant 0 : index
    %46 = vector.load %arg2[%c0_31, %45, %c1_32, %c0_33] : memref<1x18x18x128xbf16, #tpu.memory_space<vmem>>, vector<1x16x16x128xbf16>
    %47 = vector.shape_cast %46 : vector<1x16x16x128xbf16> to vector<16x16x128xbf16>
    %48 = vector.shape_cast %47 : vector<16x16x128xbf16> to vector<256x128xbf16>
    %c0_34 = arith.constant 0 : index
    %c896 = arith.constant 896 : index
    %49 = vector.load %arg7[%c0_34, %c896] : memref<256x1152xbf16, #tpu.memory_space<vmem>>, vector<256x128xbf16>
    tpu.vector_store %arg7[%c0_34, %c896], %48 {strides = array<i32>} : memref<256x1152xbf16, #tpu.memory_space<vmem>>, vector<256x128xbf16>,
    %c2_i32_35 = arith.constant 2 : i32
    %50 = arith.addi %1, %c2_i32_35 : i32
    %c0_36 = arith.constant 0 : index
    %51 = arith.index_cast %50 : i32 to index
    %c2_37 = arith.constant 2 : index
    %c0_38 = arith.constant 0 : index
    %52 = vector.load %arg2[%c0_36, %51, %c2_37, %c0_38] : memref<1x18x18x128xbf16, #tpu.memory_space<vmem>>, vector<1x16x16x128xbf16>
    %53 = vector.shape_cast %52 : vector<1x16x16x128xbf16> to vector<16x16x128xbf16>
    %54 = vector.shape_cast %53 : vector<16x16x128xbf16> to vector<256x128xbf16>
    %c0_39 = arith.constant 0 : index
    %c1024 = arith.constant 1024 : index
    %55 = vector.load %arg7[%c0_39, %c1024] : memref<256x1152xbf16, #tpu.memory_space<vmem>>, vector<256x128xbf16>
    tpu.vector_store %arg7[%c0_39, %c1024], %54 {strides = array<i32>} : memref<256x1152xbf16, #tpu.memory_space<vmem>>, vector<256x128xbf16>,
    %c0_40 = arith.constant 0 : index
    %c0_41 = arith.constant 0 : index
    %56 = vector.load %arg7[%c0_40, %c0_41] : memref<256x1152xbf16, #tpu.memory_space<vmem>>, vector<256x1152xbf16>
    %c0_42 = arith.constant 0 : index
    %c0_43 = arith.constant 0 : index
    %57 = vector.load %arg3[%c0_42, %c0_43] : memref<1152x128xbf16, #tpu.memory_space<vmem>>, vector<1152x128xbf16>
    %cst = arith.constant dense<0.000000e+00> : vector<256x128xf32>
    %58 = tpu.matmul %56, %57, %cst {dimension_numbers = #tpu.dot_dimension_numbers<[1], [0], [0], [1], [0, 0, 1, 1], [], []>} : vector<256x1152xbf16>, vector<1152x128xbf16>, vector<256x128xf32> -> vector<256x128xf32>
    %c0_44 = arith.constant 0 : index
    %c0_45 = arith.constant 0 : index
    %59 = vector.load %arg4[%c0_44, %c0_45] : memref<1x128xf32, #tpu.memory_space<vmem>>, vector<1x128xf32>
    %60 = vector.broadcast %59 : vector<1x128xf32> to vector<256x128xf32>
    %61 = arith.addf %58, %60 : vector<256x128xf32>
    %cst_46 = arith.constant 0.000000e+00 : f32
    %62 = vector.broadcast %cst_46 : f32 to vector<256x128xf32>
    %63 = arith.maximumf %61, %62 : vector<256x128xf32>
    %64 = vector.shape_cast %63 : vector<256x128xf32> to vector<16x16x128xf32>
    %65 = arith.truncf %64 : vector<16x16x128xf32> to vector<16x16x128xbf16>
    %c0_47 = arith.constant 0 : index
    %c0_48 = arith.constant 0 : index
    %c0_49 = arith.constant 0 : index
    %c0_50 = arith.constant 0 : index
    %66 = vector.load %arg5[%c0_47, %c0_48, %c0_49, %c0_50] : memref<1x16x16x128xbf16, #tpu.memory_space<vmem>>, vector<1x16x16x128xbf16>
    %67 = vector.shape_cast %66 : vector<1x16x16x128xbf16> to vector<16x16x128xbf16>
    %68 = vector.shape_cast %65 : vector<16x16x128xbf16> to vector<1x16x16x128xbf16>
    tpu.vector_store %arg5[%c0_47, %c0_48, %c0_49, %c0_50], %68 {strides = array<i32>} : memref<1x16x16x128xbf16, #tpu.memory_space<vmem>>, vector<1x16x16x128xbf16>,
    %cst_51 = arith.constant dense<0.000000e+00> : vector<128xf32>
    %69 = vector.multi_reduction <add>, %63, %cst_51 [0] : vector<256x128xf32> to vector<128xf32>
    %70 = vector.shape_cast %69 : vector<128xf32> to vector<1x128xf32>
    %71 = arith.mulf %63, %63 : vector<256x128xf32>
    %cst_52 = arith.constant dense<0.000000e+00> : vector<128xf32>
    %72 = vector.multi_reduction <add>, %71, %cst_52 [0] : vector<256x128xf32> to vector<128xf32>
    %73 = vector.shape_cast %72 : vector<128xf32> to vector<1x128xf32>
    %74 = tpu.concatenate %70, %73 in 0 : vector<1x128xf32>, vector<1x128xf32> -> vector<2x128xf32>
    %c0_53 = arith.constant 0 : index
    %c0_54 = arith.constant 0 : index
    %c0_55 = arith.constant 0 : index
    %c0_56 = arith.constant 0 : index
    %75 = vector.load %arg6[%c0_53, %c0_54, %c0_55, %c0_56] : memref<1x1x2x128xf32, #tpu.memory_space<vmem>>, vector<1x1x2x128xf32>
    %76 = vector.shape_cast %75 : vector<1x1x2x128xf32> to vector<2x128xf32>
    %77 = vector.shape_cast %74 : vector<2x128xf32> to vector<1x1x2x128xf32>
    tpu.vector_store %arg6[%c0_53, %c0_54, %c0_55, %c0_56], %77 {strides = array<i32>} : memref<1x1x2x128xf32, #tpu.memory_space<vmem>>, vector<1x1x2x128xf32>,
    return
  }
  func.func @transform_0(%arg0: i32, %arg1: i32) -> (i32, i32, i32, i32) {
    %c0_i32 = arith.constant 0 : i32
    %c0_i32_0 = arith.constant 0 : i32
    %c0_i32_1 = arith.constant 0 : i32
    %c0_i32_2 = arith.constant 0 : i32
    return %arg0, %c0_i32, %c0_i32_0, %c0_i32_1 : i32, i32, i32, i32
  }
  func.func @transform_1(%arg0: i32, %arg1: i32) -> (i32, i32) {
    %c0_i32 = arith.constant 0 : i32
    %c0_i32_0 = arith.constant 0 : i32
    %c0_i32_1 = arith.constant 0 : i32
    return %c0_i32, %c0_i32_0 : i32, i32
  }
  func.func @transform_2(%arg0: i32, %arg1: i32) -> (i32, i32) {
    %c0_i32 = arith.constant 0 : i32
    %c0_i32_0 = arith.constant 0 : i32
    %c0_i32_1 = arith.constant 0 : i32
    return %c0_i32, %c0_i32_0 : i32, i32
  }
  func.func @transform_3(%arg0: i32, %arg1: i32) -> (i32, i32, i32, i32) {
    %c0_i32 = arith.constant 0 : i32
    %c0_i32_0 = arith.constant 0 : i32
    %c0_i32_1 = arith.constant 0 : i32
    return %arg0, %arg1, %c0_i32, %c0_i32_0 : i32, i32, i32, i32
  }
  func.func @transform_4(%arg0: i32, %arg1: i32) -> (i32, i32, i32, i32) {
    %c0_i32 = arith.constant 0 : i32
    %c0_i32_0 = arith.constant 0 : i32
    %c0_i32_1 = arith.constant 0 : i32
    return %arg0, %arg1, %c0_i32, %c0_i32_0 : i32, i32, i32, i32
  }
}

module attributes {stable_mosaic.version = 11 : i64} {
  func.func @bn_transpose_kernel(%arg0: i32, %arg1: i32, %arg2: memref<1x16x16x128xbf16, #tpu.memory_space<vmem>>, %arg3: memref<1x128xf32, #tpu.memory_space<vmem>>, %arg4: memref<1x128xf32, #tpu.memory_space<vmem>>, %arg5: memref<1x8x256xf32, #tpu.memory_space<vmem>>) attributes {dimension_semantics = [#tpu.dimension_semantics<parallel>, #tpu.dimension_semantics<parallel>], iteration_bounds = array<i64: 2, 1>, scalar_prefetch = 0 : i64, scratch_operands = 0 : i64, tpu.core_type = #tpu.core_type<tc>, window_params = [{transform_indices = @transform_0, window_bounds = array<i64: 1, 16, 16, 128>}, {pipeline_mode = #tpu.pipeline_mode<synchronous>, transform_indices = @transform_1, window_bounds = array<i64: 1, 128>}, {pipeline_mode = #tpu.pipeline_mode<synchronous>, transform_indices = @transform_2, window_bounds = array<i64: 1, 128>}, {transform_indices = @transform_3, window_bounds = array<i64: 1, 8, 256>}]} {
    %c0 = arith.constant 0 : index
    %c0_0 = arith.constant 0 : index
    %c0_1 = arith.constant 0 : index
    %c0_2 = arith.constant 0 : index
    %0 = vector.load %arg2[%c0, %c0_0, %c0_1, %c0_2] : memref<1x16x16x128xbf16, #tpu.memory_space<vmem>>, vector<1x16x16x128xbf16>
    %1 = vector.shape_cast %0 : vector<1x16x16x128xbf16> to vector<16x16x128xbf16>
    %2 = vector.shape_cast %1 : vector<16x16x128xbf16> to vector<256x128xbf16>
    %3 = arith.extf %2 : vector<256x128xbf16> to vector<256x128xf32>
    %c0_3 = arith.constant 0 : index
    %c0_4 = arith.constant 0 : index
    %4 = vector.load %arg3[%c0_3, %c0_4] : memref<1x128xf32, #tpu.memory_space<vmem>>, vector<1x128xf32>
    %5 = vector.broadcast %4 : vector<1x128xf32> to vector<256x128xf32>
    %6 = arith.mulf %3, %5 : vector<256x128xf32>
    %c0_5 = arith.constant 0 : index
    %c0_6 = arith.constant 0 : index
    %7 = vector.load %arg4[%c0_5, %c0_6] : memref<1x128xf32, #tpu.memory_space<vmem>>, vector<1x128xf32>
    %8 = vector.broadcast %7 : vector<1x128xf32> to vector<256x128xf32>
    %9 = arith.addf %6, %8 : vector<256x128xf32>
    %10 = tpu.transpose %9, [1, 0] : vector<256x128xf32> -> vector<128x256xf32>
    %11 = vector.extract_strided_slice %10 {offsets = [0, 0], sizes = [8, 256], strides = [1, 1]} : vector<128x256xf32> to vector<8x256xf32>
    %c0_7 = arith.constant 0 : index
    %c0_8 = arith.constant 0 : index
    %c0_9 = arith.constant 0 : index
    %12 = vector.load %arg5[%c0_7, %c0_8, %c0_9] : memref<1x8x256xf32, #tpu.memory_space<vmem>>, vector<1x8x256xf32>
    %13 = vector.shape_cast %12 : vector<1x8x256xf32> to vector<8x256xf32>
    %14 = vector.shape_cast %11 : vector<8x256xf32> to vector<1x8x256xf32>
    tpu.vector_store %arg5[%c0_7, %c0_8, %c0_9], %14 {strides = array<i32>} : memref<1x8x256xf32, #tpu.memory_space<vmem>>, vector<1x8x256xf32>,
    return
  }
  func.func @transform_0(%arg0: i32, %arg1: i32) -> (i32, i32, i32, i32) {
    %c0_i32 = arith.constant 0 : i32
    %c0_i32_0 = arith.constant 0 : i32
    %c0_i32_1 = arith.constant 0 : i32
    return %arg0, %arg1, %c0_i32, %c0_i32_0 : i32, i32, i32, i32
  }
  func.func @transform_1(%arg0: i32, %arg1: i32) -> (i32, i32) {
    %c0_i32 = arith.constant 0 : i32
    %c0_i32_0 = arith.constant 0 : i32
    %c0_i32_1 = arith.constant 0 : i32
    return %c0_i32, %c0_i32_0 : i32, i32
  }
  func.func @transform_2(%arg0: i32, %arg1: i32) -> (i32, i32) {
    %c0_i32 = arith.constant 0 : i32
    %c0_i32_0 = arith.constant 0 : i32
    %c0_i32_1 = arith.constant 0 : i32
    return %c0_i32, %c0_i32_0 : i32, i32
  }
  func.func @transform_3(%arg0: i32, %arg1: i32) -> (i32, i32, i32) {
    %c0_i32 = arith.constant 0 : i32
    %c0_i32_0 = arith.constant 0 : i32
    return %arg0, %c0_i32, %arg1 : i32, i32, i32
  }
}

module attributes {stable_mosaic.version = 11 : i64} {
  func.func @conv3x3_bn_relu_stats_kernel(%arg0: i32, %arg1: i32, %arg2: memref<1x18x18x128xbf16, #tpu.memory_space<vmem>>, %arg3: memref<1152x128xbf16, #tpu.memory_space<vmem>>, %arg4: memref<1x128xf32, #tpu.memory_space<vmem>>, %arg5: memref<1x128xf32, #tpu.memory_space<vmem>>, %arg6: memref<1x128xf32, #tpu.memory_space<vmem>>, %arg7: memref<1x16x16x128xbf16, #tpu.memory_space<vmem>>, %arg8: memref<1x1x2x128xf32, #tpu.memory_space<vmem>>, %arg9: memref<256x1152xbf16, #tpu.memory_space<vmem>>, %arg10: memref<18x18x128xbf16, #tpu.memory_space<vmem>>) attributes {dimension_semantics = [#tpu.dimension_semantics<parallel>, #tpu.dimension_semantics<parallel>], iteration_bounds = array<i64: 2, 1>, scalar_prefetch = 0 : i64, scratch_operands = 2 : i64, tpu.core_type = #tpu.core_type<tc>, window_params = [{transform_indices = @transform_0, window_bounds = array<i64: 1, 18, 18, 128>}, {pipeline_mode = #tpu.pipeline_mode<synchronous>, transform_indices = @transform_1, window_bounds = array<i64: 1152, 128>}, {pipeline_mode = #tpu.pipeline_mode<synchronous>, transform_indices = @transform_2, window_bounds = array<i64: 1, 128>}, {pipeline_mode = #tpu.pipeline_mode<synchronous>, transform_indices = @transform_3, window_bounds = array<i64: 1, 128>}, {pipeline_mode = #tpu.pipeline_mode<synchronous>, transform_indices = @transform_4, window_bounds = array<i64: 1, 128>}, {transform_indices = @transform_5, window_bounds = array<i64: 1, 16, 16, 128>}, {transform_indices = @transform_6, window_bounds = array<i64: 1, 1, 2, 128>}]} {
    %c16_i32 = arith.constant 16 : i32
    %0 = arith.muli %arg1, %c16_i32 : i32
    %1 = tpu.assume_multiple %0, 16 : i32
    %c0 = arith.constant 0 : index
    %2 = arith.index_cast %1 : i32 to index
    %c0_0 = arith.constant 0 : index
    %c0_1 = arith.constant 0 : index
    %3 = vector.load %arg2[%c0, %2, %c0_0, %c0_1] : memref<1x18x18x128xbf16, #tpu.memory_space<vmem>>, vector<1x18x18x128xbf16>
    %4 = vector.shape_cast %3 : vector<1x18x18x128xbf16> to vector<18x18x128xbf16>
    %5 = arith.extf %4 : vector<18x18x128xbf16> to vector<18x18x128xf32>
    %6 = tpu.iota {dimensions = array<i32: 0>} : vector<18x18x1xi32>
    %7 = vector.broadcast %1 : i32 to vector<18x18x1xi32>
    %8 = arith.addi %6, %7 : vector<18x18x1xi32>
    %9 = tpu.iota {dimensions = array<i32: 1>} : vector<18x18x1xi32>
    %c1_i32 = arith.constant 1 : i32
    %10 = vector.broadcast %c1_i32 : i32 to vector<18x18x1xi32>
    %11 = arith.cmpi sge, %8, %10 : vector<18x18x1xi32>
    %c16_i32_2 = arith.constant 16 : i32
    %12 = vector.broadcast %c16_i32_2 : i32 to vector<18x18x1xi32>
    %13 = arith.cmpi sle, %8, %12 : vector<18x18x1xi32>
    %14 = arith.andi %11, %13 : vector<18x18x1xi1>
    %c1_i32_3 = arith.constant 1 : i32
    %15 = vector.broadcast %c1_i32_3 : i32 to vector<18x18x1xi32>
    %16 = arith.cmpi sge, %9, %15 : vector<18x18x1xi32>
    %17 = arith.andi %14, %16 : vector<18x18x1xi1>
    %c16_i32_4 = arith.constant 16 : i32
    %18 = vector.broadcast %c16_i32_4 : i32 to vector<18x18x1xi32>
    %19 = arith.cmpi sle, %9, %18 : vector<18x18x1xi32>
    %20 = arith.andi %17, %19 : vector<18x18x1xi1>
    %21 = arith.extui %20 : vector<18x18x1xi1> to vector<18x18x1xi32>
    %22 = arith.sitofp %21 : vector<18x18x1xi32> to vector<18x18x1xf32>
    %c0_5 = arith.constant 0 : index
    %c0_6 = arith.constant 0 : index
    %23 = vector.load %arg5[%c0_5, %c0_6] : memref<1x128xf32, #tpu.memory_space<vmem>>, vector<1x128xf32>
    %24 = vector.shape_cast %23 : vector<1x128xf32> to vector<1x1x128xf32>
    %25 = vector.broadcast %24 : vector<1x1x128xf32> to vector<18x18x128xf32>
    %26 = arith.mulf %5, %25 : vector<18x18x128xf32>
    %c0_7 = arith.constant 0 : index
    %c0_8 = arith.constant 0 : index
    %27 = vector.load %arg6[%c0_7, %c0_8] : memref<1x128xf32, #tpu.memory_space<vmem>>, vector<1x128xf32>
    %28 = vector.shape_cast %27 : vector<1x128xf32> to vector<1x1x128xf32>
    %29 = vector.broadcast %28 : vector<1x1x128xf32> to vector<18x18x128xf32>
    %30 = vector.broadcast %22 : vector<18x18x1xf32> to vector<18x18x128xf32>
    %31 = arith.mulf %29, %30 : vector<18x18x128xf32>
    %32 = arith.addf %26, %31 : vector<18x18x128xf32>
    %33 = arith.truncf %32 : vector<18x18x128xf32> to vector<18x18x128xbf16>
    %c0_9 = arith.constant 0 : index
    %c0_10 = arith.constant 0 : index
    %c0_11 = arith.constant 0 : index
    %34 = vector.load %arg10[%c0_9, %c0_10, %c0_11] : memref<18x18x128xbf16, #tpu.memory_space<vmem>>, vector<18x18x128xbf16>
    tpu.vector_store %arg10[%c0_9, %c0_10, %c0_11], %33 {strides = array<i32>} : memref<18x18x128xbf16, #tpu.memory_space<vmem>>, vector<18x18x128xbf16>,
    %c0_12 = arith.constant 0 : index
    %c0_13 = arith.constant 0 : index
    %c0_14 = arith.constant 0 : index
    %35 = vector.load %arg10[%c0_12, %c0_13, %c0_14] : memref<18x18x128xbf16, #tpu.memory_space<vmem>>, vector<16x16x128xbf16>
    %36 = vector.shape_cast %35 : vector<16x16x128xbf16> to vector<256x128xbf16>
    %c0_15 = arith.constant 0 : index
    %c0_16 = arith.constant 0 : index
    %37 = vector.load %arg9[%c0_15, %c0_16] : memref<256x1152xbf16, #tpu.memory_space<vmem>>, vector<256x128xbf16>
    tpu.vector_store %arg9[%c0_15, %c0_16], %36 {strides = array<i32>} : memref<256x1152xbf16, #tpu.memory_space<vmem>>, vector<256x128xbf16>,
    %c0_17 = arith.constant 0 : index
    %c1 = arith.constant 1 : index
    %c0_18 = arith.constant 0 : index
    %38 = vector.load %arg10[%c0_17, %c1, %c0_18] : memref<18x18x128xbf16, #tpu.memory_space<vmem>>, vector<16x16x128xbf16>
    %39 = vector.shape_cast %38 : vector<16x16x128xbf16> to vector<256x128xbf16>
    %c0_19 = arith.constant 0 : index
    %c128 = arith.constant 128 : index
    %40 = vector.load %arg9[%c0_19, %c128] : memref<256x1152xbf16, #tpu.memory_space<vmem>>, vector<256x128xbf16>
    tpu.vector_store %arg9[%c0_19, %c128], %39 {strides = array<i32>} : memref<256x1152xbf16, #tpu.memory_space<vmem>>, vector<256x128xbf16>,
    %c0_20 = arith.constant 0 : index
    %c2 = arith.constant 2 : index
    %c0_21 = arith.constant 0 : index
    %41 = vector.load %arg10[%c0_20, %c2, %c0_21] : memref<18x18x128xbf16, #tpu.memory_space<vmem>>, vector<16x16x128xbf16>
    %42 = vector.shape_cast %41 : vector<16x16x128xbf16> to vector<256x128xbf16>
    %c0_22 = arith.constant 0 : index
    %c256 = arith.constant 256 : index
    %43 = vector.load %arg9[%c0_22, %c256] : memref<256x1152xbf16, #tpu.memory_space<vmem>>, vector<256x128xbf16>
    tpu.vector_store %arg9[%c0_22, %c256], %42 {strides = array<i32>} : memref<256x1152xbf16, #tpu.memory_space<vmem>>, vector<256x128xbf16>,
    %c1_23 = arith.constant 1 : index
    %c0_24 = arith.constant 0 : index
    %c0_25 = arith.constant 0 : index
    %44 = vector.load %arg10[%c1_23, %c0_24, %c0_25] : memref<18x18x128xbf16, #tpu.memory_space<vmem>>, vector<16x16x128xbf16>
    %45 = vector.shape_cast %44 : vector<16x16x128xbf16> to vector<256x128xbf16>
    %c0_26 = arith.constant 0 : index
    %c384 = arith.constant 384 : index
    %46 = vector.load %arg9[%c0_26, %c384] : memref<256x1152xbf16, #tpu.memory_space<vmem>>, vector<256x128xbf16>
    tpu.vector_store %arg9[%c0_26, %c384], %45 {strides = array<i32>} : memref<256x1152xbf16, #tpu.memory_space<vmem>>, vector<256x128xbf16>,
    %c1_27 = arith.constant 1 : index
    %c1_28 = arith.constant 1 : index
    %c0_29 = arith.constant 0 : index
    %47 = vector.load %arg10[%c1_27, %c1_28, %c0_29] : memref<18x18x128xbf16, #tpu.memory_space<vmem>>, vector<16x16x128xbf16>
    %48 = vector.shape_cast %47 : vector<16x16x128xbf16> to vector<256x128xbf16>
    %c0_30 = arith.constant 0 : index
    %c512 = arith.constant 512 : index
    %49 = vector.load %arg9[%c0_30, %c512] : memref<256x1152xbf16, #tpu.memory_space<vmem>>, vector<256x128xbf16>
    tpu.vector_store %arg9[%c0_30, %c512], %48 {strides = array<i32>} : memref<256x1152xbf16, #tpu.memory_space<vmem>>, vector<256x128xbf16>,
    %c1_31 = arith.constant 1 : index
    %c2_32 = arith.constant 2 : index
    %c0_33 = arith.constant 0 : index
    %50 = vector.load %arg10[%c1_31, %c2_32, %c0_33] : memref<18x18x128xbf16, #tpu.memory_space<vmem>>, vector<16x16x128xbf16>
    %51 = vector.shape_cast %50 : vector<16x16x128xbf16> to vector<256x128xbf16>
    %c0_34 = arith.constant 0 : index
    %c640 = arith.constant 640 : index
    %52 = vector.load %arg9[%c0_34, %c640] : memref<256x1152xbf16, #tpu.memory_space<vmem>>, vector<256x128xbf16>
    tpu.vector_store %arg9[%c0_34, %c640], %51 {strides = array<i32>} : memref<256x1152xbf16, #tpu.memory_space<vmem>>, vector<256x128xbf16>,
    %c2_35 = arith.constant 2 : index
    %c0_36 = arith.constant 0 : index
    %c0_37 = arith.constant 0 : index
    %53 = vector.load %arg10[%c2_35, %c0_36, %c0_37] : memref<18x18x128xbf16, #tpu.memory_space<vmem>>, vector<16x16x128xbf16>
    %54 = vector.shape_cast %53 : vector<16x16x128xbf16> to vector<256x128xbf16>
    %c0_38 = arith.constant 0 : index
    %c768 = arith.constant 768 : index
    %55 = vector.load %arg9[%c0_38, %c768] : memref<256x1152xbf16, #tpu.memory_space<vmem>>, vector<256x128xbf16>
    tpu.vector_store %arg9[%c0_38, %c768], %54 {strides = array<i32>} : memref<256x1152xbf16, #tpu.memory_space<vmem>>, vector<256x128xbf16>,
    %c2_39 = arith.constant 2 : index
    %c1_40 = arith.constant 1 : index
    %c0_41 = arith.constant 0 : index
    %56 = vector.load %arg10[%c2_39, %c1_40, %c0_41] : memref<18x18x128xbf16, #tpu.memory_space<vmem>>, vector<16x16x128xbf16>
    %57 = vector.shape_cast %56 : vector<16x16x128xbf16> to vector<256x128xbf16>
    %c0_42 = arith.constant 0 : index
    %c896 = arith.constant 896 : index
    %58 = vector.load %arg9[%c0_42, %c896] : memref<256x1152xbf16, #tpu.memory_space<vmem>>, vector<256x128xbf16>
    tpu.vector_store %arg9[%c0_42, %c896], %57 {strides = array<i32>} : memref<256x1152xbf16, #tpu.memory_space<vmem>>, vector<256x128xbf16>,
    %c2_43 = arith.constant 2 : index
    %c2_44 = arith.constant 2 : index
    %c0_45 = arith.constant 0 : index
    %59 = vector.load %arg10[%c2_43, %c2_44, %c0_45] : memref<18x18x128xbf16, #tpu.memory_space<vmem>>, vector<16x16x128xbf16>
    %60 = vector.shape_cast %59 : vector<16x16x128xbf16> to vector<256x128xbf16>
    %c0_46 = arith.constant 0 : index
    %c1024 = arith.constant 1024 : index
    %61 = vector.load %arg9[%c0_46, %c1024] : memref<256x1152xbf16, #tpu.memory_space<vmem>>, vector<256x128xbf16>
    tpu.vector_store %arg9[%c0_46, %c1024], %60 {strides = array<i32>} : memref<256x1152xbf16, #tpu.memory_space<vmem>>, vector<256x128xbf16>,
    %c0_47 = arith.constant 0 : index
    %c0_48 = arith.constant 0 : index
    %62 = vector.load %arg9[%c0_47, %c0_48] : memref<256x1152xbf16, #tpu.memory_space<vmem>>, vector<256x1152xbf16>
    %c0_49 = arith.constant 0 : index
    %c0_50 = arith.constant 0 : index
    %63 = vector.load %arg3[%c0_49, %c0_50] : memref<1152x128xbf16, #tpu.memory_space<vmem>>, vector<1152x128xbf16>
    %cst = arith.constant dense<0.000000e+00> : vector<256x128xf32>
    %64 = tpu.matmul %62, %63, %cst {dimension_numbers = #tpu.dot_dimension_numbers<[1], [0], [0], [1], [0, 0, 1, 1], [], []>} : vector<256x1152xbf16>, vector<1152x128xbf16>, vector<256x128xf32> -> vector<256x128xf32>
    %c0_51 = arith.constant 0 : index
    %c0_52 = arith.constant 0 : index
    %65 = vector.load %arg4[%c0_51, %c0_52] : memref<1x128xf32, #tpu.memory_space<vmem>>, vector<1x128xf32>
    %66 = vector.broadcast %65 : vector<1x128xf32> to vector<256x128xf32>
    %67 = arith.addf %64, %66 : vector<256x128xf32>
    %cst_53 = arith.constant 0.000000e+00 : f32
    %68 = vector.broadcast %cst_53 : f32 to vector<256x128xf32>
    %69 = arith.maximumf %67, %68 : vector<256x128xf32>
    %70 = vector.shape_cast %69 : vector<256x128xf32> to vector<16x16x128xf32>
    %71 = arith.truncf %70 : vector<16x16x128xf32> to vector<16x16x128xbf16>
    %c0_54 = arith.constant 0 : index
    %c0_55 = arith.constant 0 : index
    %c0_56 = arith.constant 0 : index
    %c0_57 = arith.constant 0 : index
    %72 = vector.load %arg7[%c0_54, %c0_55, %c0_56, %c0_57] : memref<1x16x16x128xbf16, #tpu.memory_space<vmem>>, vector<1x16x16x128xbf16>
    %73 = vector.shape_cast %72 : vector<1x16x16x128xbf16> to vector<16x16x128xbf16>
    %74 = vector.shape_cast %71 : vector<16x16x128xbf16> to vector<1x16x16x128xbf16>
    tpu.vector_store %arg7[%c0_54, %c0_55, %c0_56, %c0_57], %74 {strides = array<i32>} : memref<1x16x16x128xbf16, #tpu.memory_space<vmem>>, vector<1x16x16x128xbf16>,
    %cst_58 = arith.constant dense<0.000000e+00> : vector<128xf32>
    %75 = vector.multi_reduction <add>, %69, %cst_58 [0] : vector<256x128xf32> to vector<128xf32>
    %76 = vector.shape_cast %75 : vector<128xf32> to vector<1x128xf32>
    %77 = arith.mulf %69, %69 : vector<256x128xf32>
    %cst_59 = arith.constant dense<0.000000e+00> : vector<128xf32>
    %78 = vector.multi_reduction <add>, %77, %cst_59 [0] : vector<256x128xf32> to vector<128xf32>
    %79 = vector.shape_cast %78 : vector<128xf32> to vector<1x128xf32>
    %80 = tpu.concatenate %76, %79 in 0 : vector<1x128xf32>, vector<1x128xf32> -> vector<2x128xf32>
    %c0_60 = arith.constant 0 : index
    %c0_61 = arith.constant 0 : index
    %c0_62 = arith.constant 0 : index
    %c0_63 = arith.constant 0 : index
    %81 = vector.load %arg8[%c0_60, %c0_61, %c0_62, %c0_63] : memref<1x1x2x128xf32, #tpu.memory_space<vmem>>, vector<1x1x2x128xf32>
    %82 = vector.shape_cast %81 : vector<1x1x2x128xf32> to vector<2x128xf32>
    %83 = vector.shape_cast %80 : vector<2x128xf32> to vector<1x1x2x128xf32>
    tpu.vector_store %arg8[%c0_60, %c0_61, %c0_62, %c0_63], %83 {strides = array<i32>} : memref<1x1x2x128xf32, #tpu.memory_space<vmem>>, vector<1x1x2x128xf32>,
    return
  }
  func.func @transform_0(%arg0: i32, %arg1: i32) -> (i32, i32, i32, i32) {
    %c0_i32 = arith.constant 0 : i32
    %c0_i32_0 = arith.constant 0 : i32
    %c0_i32_1 = arith.constant 0 : i32
    %c0_i32_2 = arith.constant 0 : i32
    return %arg0, %c0_i32, %c0_i32_0, %c0_i32_1 : i32, i32, i32, i32
  }
  func.func @transform_1(%arg0: i32, %arg1: i32) -> (i32, i32) {
    %c0_i32 = arith.constant 0 : i32
    %c0_i32_0 = arith.constant 0 : i32
    %c0_i32_1 = arith.constant 0 : i32
    return %c0_i32, %c0_i32_0 : i32, i32
  }
  func.func @transform_2(%arg0: i32, %arg1: i32) -> (i32, i32) {
    %c0_i32 = arith.constant 0 : i32
    %c0_i32_0 = arith.constant 0 : i32
    %c0_i32_1 = arith.constant 0 : i32
    return %c0_i32, %c0_i32_0 : i32, i32
  }
  func.func @transform_3(%arg0: i32, %arg1: i32) -> (i32, i32) {
    %c0_i32 = arith.constant 0 : i32
    %c0_i32_0 = arith.constant 0 : i32
    %c0_i32_1 = arith.constant 0 : i32
    return %c0_i32, %c0_i32_0 : i32, i32
  }
  func.func @transform_4(%arg0: i32, %arg1: i32) -> (i32, i32) {
    %c0_i32 = arith.constant 0 : i32
    %c0_i32_0 = arith.constant 0 : i32
    %c0_i32_1 = arith.constant 0 : i32
    return %c0_i32, %c0_i32_0 : i32, i32
  }
  func.func @transform_5(%arg0: i32, %arg1: i32) -> (i32, i32, i32, i32) {
    %c0_i32 = arith.constant 0 : i32
    %c0_i32_0 = arith.constant 0 : i32
    %c0_i32_1 = arith.constant 0 : i32
    return %arg0, %arg1, %c0_i32, %c0_i32_0 : i32, i32, i32, i32
  }
  func.func @transform_6(%arg0: i32, %arg1: i32) -> (i32, i32, i32, i32) {
    %c0_i32 = arith.constant 0 : i32
    %c0_i32_0 = arith.constant 0 : i32
    %c0_i32_1 = arith.constant 0 : i32
    return %arg0, %arg1, %c0_i32, %c0_i32_0 : i32, i32, i32, i32
  }
}

</mosaic_0001>

<bundles_post_ra>
// kernel: double_conv.5
= control target key start
LH: loop header
LB: loop body
LE: loop exit
PB: predicated region body
PF: predicated region fallthrough
CT: control target
= control target key end

     0   :  { %s673_s12 = smov 0   ;;  %s675_s13 = smov 0   ;;  %s802_s0 = inlined_call_operand.vmem [shape: bf16[2,16,16,128], index: 0, kind: input, shape index: {}]   ;;  %s803_s1 = inlined_call_operand.vmem [shape: f32[1,128], index: 1, kind: input, shape index: {}]   ;;  %s804_s2 = inlined_call_operand.vmem [shape: f32[1,128], index: 2, kind: input, shape index: {}]   ;;  %s805_s3 = inlined_call_operand.vmem [shape: f32[2,8,256], index: 3, kind: output, shape index: {}]  }
   0x1   :  { %s677_s14 = smov 0  }
   0x2 LB: > { %s25_s15 = sadd.s32 1, %s647_s13  ;;  %p515_p0 = scmp.ge.s32.totalorder %s651_s14, 1  ;;  %s651_s14 = sphi %s677_s14, %s13_s14   ;;  %s647_s13 = sphi %s675_s13, %s807_s13   ;;  %s643_s12 = sphi %s673_s12, %s806_s12  }
   0x3   : > { %p27_p1 = scmp.ge.s32.totalorder %s25_s15, 2  ;;  %p159_p2 = scmp.lt.s32.totalorder %s651_s14, 3 }
   0x5   : > { %s809_s15 = smov (%p27_p1, %s25_s15), 0  ;;  %p160_p3 = pnand %p515_p0, %p159_p2 }
   0x6   : > { %p193_p4 = scmp.lt.s32.totalorder (!%p160_p3), %s643_s12, 1  ;;  %v702_v0 = vld [vmem:[%s803_s1] ss:$0 sm:$0xff] (!%p160_p3) }
   0x7   : > { %163 = sbr.rel (%p160_p3) target bundleno = 155 (0x9b), region = 32  ;;  %v711_v9 = vld [vmem:[%s804_s2] ss:$0 sm:$0xff] (!%p160_p3) }
   0xe   : > { %s811_s12 = smov (!%p193_p4, %s643_s12), 1 }
   0xf   : > { %s524_s16 = sshll.u32 %s811_s12, 7  ;;  %s525_s24 = sshll.u32 %s811_s12, 4 }
  0x10   : > { %s697_s19 = scalar_lea.vmem %s802_s0, %s524_s16  ;;  %s211_s27 = scalar_lea.vmem %s805_s3, %s525_s24 }
  0x11   : > { %v597_v1 = vld [vmem:[%s697_s19 + $0x40] sm:$0xff]   ;;  %v598_v3 = vld [vmem:[%s697_s19 + $0x48] sm:$0xff]   ;;  %v599_v24 = vld [vmem:[%s697_s19 + $0x50] sm:$0xff]  }
  0x12   : > { %v527_v2 = vld [vmem:[%s697_s19] sm:$0xff]   ;;  %v560_v4 = vunpack.c.l.bf16 %v597_v1  ;;  %v561_v6 = vunpack.c.h.bf16 %v597_v1  ;;  %v590_v8 = vld [vmem:[%s697_s19 + $0x8] sm:$0xff]   ;;  %v564_v10 = vunpack.c.l.bf16 %v598_v3  ;;  %v565_v19 = vunpack.c.h.bf16 %v598_v3  ;;  %v591_v25 = vld [vmem:[%s697_s19 + $0x10] sm:$0xff]  }
  0x13   : > { %v528_v5 = vunpack.c.l.bf16 %v527_v2  ;;  %v529_v7 = vunpack.c.h.bf16 %v527_v2  ;;  %v532_v11 = vunpack.c.l.bf16 %v590_v8  ;;  %v533_v20 = vunpack.c.h.bf16 %v590_v8  ;;  %v600_v38 = vld [vmem:[%s697_s19 + $0x58] sm:$0xff]   ;;  %v601_v52 = vld [vmem:[%s697_s19 + $0x60] sm:$0xff]   ;;  %v602_v3 = vld [vmem:[%s697_s19 + $0x68] sm:$0xff]  }
  0x14   : > { %v300_v12 = vmul.f32 %v560_v4, %v702_v0  ;;  %v301_v14 = vmul.f32 %v561_v6, %v702_v0  ;;  %v302_v18 = vmul.f32 %v564_v10, %v702_v0  ;;  %v303_v26 = vmul.f32 %v565_v19, %v702_v0  ;;  %v592_v39 = vld [vmem:[%s697_s19 + $0x18] sm:$0xff]   ;;  %v593_v53 = vld [vmem:[%s697_s19 + $0x20] sm:$0xff]   ;;  %v594_v4 = vld [vmem:[%s697_s19 + $0x28] sm:$0xff]  }
  0x15   : > { %v284_v13 = vmul.f32 %v528_v5, %v702_v0  ;;  %v285_v15 = vmul.f32 %v529_v7, %v702_v0  ;;  %v286_v23 = vmul.f32 %v532_v11, %v702_v0  ;;  %v287_v27 = vmul.f32 %v533_v20, %v702_v0  ;;  %v595_v19 = vld [vmem:[%s697_s19 + $0x30] sm:$0xff]  }
  0x16   : > { %v339_v16 = vadd.f32 %v711_v9, %v300_v12  ;;  %v340_v21 = vadd.f32 %v711_v9, %v301_v14  ;;  %v341_v28 = vadd.f32 %v711_v9, %v302_v18  ;;  %v568_v30 = vunpack.c.l.bf16 %v599_v24  ;;  %v603_v18 = vld [vmem:[%s697_s19 + $0x70] sm:$0xff]  }
  0x17   : > { %v323_v17 = vadd.f32 %v711_v9, %v284_v13  ;;  %v324_v22 = vadd.f32 %v711_v9, %v285_v15  ;;  %v325_v29 = vadd.f32 %v711_v9, %v286_v23  ;;  %v536_v31 = vunpack.c.l.bf16 %v591_v25 }
  0x18   : > { %387 = vxpose.xlu1.b32.start [1/16] (narrow) %v339_v16, 8  ;;  %v342_v32 = vadd.f32 %v711_v9, %v303_v26  ;;  %v569_v33 = vunpack.c.h.bf16 %v599_v24  ;;  %v326_v34 = vadd.f32 %v711_v9, %v287_v27  ;;  %v304_v35 = vmul.f32 %v568_v30, %v702_v0 }
  0x19   : > { %355 = vxpose.xlu0.b32.start [1/16] (narrow) %v323_v17, 8  ;;  %v288_v36 = vmul.f32 %v536_v31, %v702_v0  ;;  %v537_v37 = vunpack.c.h.bf16 %v591_v25  ;;  %v572_v41 = vunpack.c.l.bf16 %v600_v38  ;;  %v540_v45 = vunpack.c.l.bf16 %v592_v39 }
  0x1a   : > { %v305_v40 = vmul.f32 %v569_v33, %v702_v0  ;;  %v343_v42 = vadd.f32 %v711_v9, %v304_v35  ;;  %v573_v47 = vunpack.c.h.bf16 %v600_v38  ;;  %v541_v51 = vunpack.c.h.bf16 %v592_v39  ;;  %v596_v33 = vld [vmem:[%s697_s19 + $0x38] sm:$0xff]  }
  0x1b   : > { %v327_v43 = vadd.f32 %v711_v9, %v288_v36  ;;  %v289_v44 = vmul.f32 %v537_v37, %v702_v0  ;;  %v306_v46 = vmul.f32 %v572_v41, %v702_v0  ;;  %v290_v50 = vmul.f32 %v540_v45, %v702_v0 }
  0x1c   : > { %388 = vxpose.xlu1.b32.cont [2/16] (narrow) %v340_v21, 8  ;;  %v344_v48 = vadd.f32 %v711_v9, %v305_v40  ;;  %v307_v54 = vmul.f32 %v573_v47, %v702_v0  ;;  %v576_v55 = vunpack.c.l.bf16 %v601_v52  ;;  %v291_v58 = vmul.f32 %v541_v51, %v702_v0 }
  0x1d   : > { %356 = vxpose.xlu0.b32.cont [2/16] (narrow) %v324_v22, 8  ;;  %v328_v49 = vadd.f32 %v711_v9, %v289_v44  ;;  %v345_v56 = vadd.f32 %v711_v9, %v306_v46  ;;  %v329_v57 = vadd.f32 %v711_v9, %v290_v50  ;;  %v544_v59 = vunpack.c.l.bf16 %v593_v53 }
  0x1e   : > { %v346_v60 = vadd.f32 %v711_v9, %v307_v54  ;;  %v308_v61 = vmul.f32 %v576_v55, %v702_v0  ;;  %v330_v62 = vadd.f32 %v711_v9, %v291_v58  ;;  %v577_v1 = vunpack.c.h.bf16 %v601_v52 }
  0x1f   : > { %v292_v63 = vmul.f32 %v544_v59, %v702_v0  ;;  %v545_v2 = vunpack.c.h.bf16 %v593_v53  ;;  %v580_v6 = vunpack.c.l.bf16 %v602_v3  ;;  %v548_v11 = vunpack.c.l.bf16 %v594_v4 }
  0x20   : > { %389 = vxpose.xlu1.b32.cont [3/16] (narrow) %v341_v28, 8  ;;  %v347_v5 = vadd.f32 %v711_v9, %v308_v61  ;;  %v309_v8 = vmul.f32 %v577_v1, %v702_v0  ;;  %v581_v13 = vunpack.c.h.bf16 %v602_v3  ;;  %v549_v17 = vunpack.c.h.bf16 %v594_v4 }
  0x21   : > { %357 = vxpose.xlu0.b32.cont [3/16] (narrow) %v325_v29, 8  ;;  %v331_v7 = vadd.f32 %v711_v9, %v292_v63  ;;  %v293_v10 = vmul.f32 %v545_v2, %v702_v0  ;;  %v310_v12 = vmul.f32 %v580_v6, %v702_v0  ;;  %v294_v16 = vmul.f32 %v548_v11, %v702_v0 }
  0x22   : > { %v348_v14 = vadd.f32 %v711_v9, %v309_v8  ;;  %v311_v20 = vmul.f32 %v581_v13, %v702_v0  ;;  %v584_v21 = vunpack.c.l.bf16 %v603_v18  ;;  %v295_v24 = vmul.f32 %v549_v17, %v702_v0 }
  0x23   : > { %v332_v15 = vadd.f32 %v711_v9, %v293_v10  ;;  %v349_v22 = vadd.f32 %v711_v9, %v310_v12  ;;  %v333_v23 = vadd.f32 %v711_v9, %v294_v16  ;;  %v552_v25 = vunpack.c.l.bf16 %v595_v19 }
  0x24   : > { %390 = vxpose.xlu1.b32.cont [4/16] (narrow) %v342_v32, 8  ;;  %v350_v26 = vadd.f32 %v711_v9, %v311_v20  ;;  %v312_v27 = vmul.f32 %v584_v21, %v702_v0  ;;  %v334_v28 = vadd.f32 %v711_v9, %v295_v24  ;;  %v585_v30 = vunpack.c.h.bf16 %v603_v18  ;;  %v604_v32 = vld [vmem:[%s697_s19 + $0x78] sm:$0xff]  }
  0x25   : > { %358 = vxpose.xlu0.b32.cont [4/16] (narrow) %v326_v34, 8  ;;  %v296_v29 = vmul.f32 %v552_v25, %v702_v0  ;;  %v553_v31 = vunpack.c.h.bf16 %v595_v19  ;;  %v588_v35 = vunpack.c.l.bf16 %v604_v32  ;;  %v556_v39 = vunpack.c.l.bf16 %v596_v33 }
  0x26   : > { %v351_v34 = vadd.f32 %v711_v9, %v312_v27  ;;  %v313_v37 = vmul.f32 %v585_v30, %v702_v0  ;;  %v589_v41 = vunpack.c.h.bf16 %v604_v32  ;;  %v557_v45 = vunpack.c.h.bf16 %v596_v33 }
  0x27   : > { %v335_v36 = vadd.f32 %v711_v9, %v296_v29  ;;  %v297_v38 = vmul.f32 %v553_v31, %v702_v0  ;;  %v314_v40 = vmul.f32 %v588_v35, %v702_v0  ;;  %v298_v44 = vmul.f32 %v556_v39, %v702_v0 }
  0x28   : > { %391 = vxpose.xlu1.b32.cont [5/16] (narrow) %v343_v42, 8  ;;  %v352_v42 = vadd.f32 %v711_v9, %v313_v37  ;;  %v315_v46 = vmul.f32 %v589_v41, %v702_v0 }
  0x29   : > { %359 = vxpose.xlu0.b32.cont [5/16] (narrow) %v327_v43, 8  ;;  %v336_v43 = vadd.f32 %v711_v9, %v297_v38  ;;  %v353_v47 = vadd.f32 %v711_v9, %v314_v40 }
  0x2a   : > { %v354_v50 = vadd.f32 %v711_v9, %v315_v46 }
  0x2c   : > { %392 = vxpose.xlu1.b32.cont [6/16] (narrow) %v344_v48, 8  ;;  %v337_v48 = vadd.f32 %v711_v9, %v298_v44 }
  0x2d   : > { %360 = vxpose.xlu0.b32.cont [6/16] (narrow) %v328_v49, 8  ;;  %v299_v49 = vmul.f32 %v557_v45, %v702_v0 }
  0x2f   : > { %v338_v51 = vadd.f32 %v711_v9, %v299_v49 }
  0x30   : > { %393 = vxpose.xlu1.b32.cont [7/16] (narrow) %v345_v56, 8 }
  0x31   : > { %361 = vxpose.xlu0.b32.cont [7/16] (narrow) %v329_v57, 8 }
  0x34   : > { %394 = vxpose.xlu1.b32.cont [8/16] (narrow) %v346_v60, 8 }
  0x35   : > { %362 = vxpose.xlu0.b32.cont [8/16] (narrow) %v330_v62, 8 }
  0x38   : > { %395 = vxpose.xlu1.b32.cont [9/16] (narrow) %v347_v5, 8 }
  0x39   : > { %363 = vxpose.xlu0.b32.cont [9/16] (narrow) %v331_v7, 8 }
  0x3c   : > { %396 = vxpose.xlu1.b32.cont [10/16] (narrow) %v348_v14, 8 }
  0x3d   : > { %364 = vxpose.xlu0.b32.cont [10/16] (narrow) %v332_v15, 8 }
  0x40   : > { %397 = vxpose.xlu1.b32.cont [11/16] (narrow) %v349_v22, 8 }
  0x41   : > { %365 = vxpose.xlu0.b32.cont [11/16] (narrow) %v333_v23, 8 }
  0x44   : > { %398 = vxpose.xlu1.b32.cont [12/16] (narrow) %v350_v26, 8 }
  0x45   : > { %366 = vxpose.xlu0.b32.cont [12/16] (narrow) %v334_v28, 8 }
  0x48   : > { %399 = vxpose.xlu1.b32.cont [13/16] (narrow) %v351_v34, 8 }
  0x49   : > { %367 = vxpose.xlu0.b32.cont [13/16] (narrow) %v335_v36, 8 }
  0x4c   : > { %400 = vxpose.xlu1.b32.cont [14/16] (narrow) %v352_v42, 8 }
  0x4d   : > { %368 = vxpose.xlu0.b32.cont [14/16] (narrow) %v336_v43, 8 }
  0x50   : > { %401 = vxpose.xlu1.b32.cont [15/16] (narrow) %v353_v47, 8 }
  0x51   : > { %369 = vxpose.xlu0.b32.cont [15/16] (narrow) %v337_v48, 8 }
  0x54   : > { %402 = vxpose.xlu1.b32.end [16/16] (narrow) %v354_v50, 8 }
  0x55   : > { %370 = vxpose.xlu0.b32.end [16/16] (narrow) %v338_v51, 8 }
  0x98   : > { %v403_v52 = vpop.trf.xlu1 }
  0x99   : > { %v371_v53 = vpop.trf.xlu0  ;;  %420 = vst [vmem:[%s211_s27 + $0x8] sm:$0xff] %v403_v52 }
  0x9a   : > { %419 = vst [vmem:[%s211_s27] sm:$0xff] %v371_v53 }
  0x9b PF: > { %s13_s14 = sadd.s32 1, %s651_s14   ;;  %s806_s12 = smov %s647_s13 }
  0x9c   : > { %p10_p5 = scmp.ge.s32.totalorder %s13_s14, 4   ;;  %s807_s13 = smov %s809_s15 }
  0x9e   :  { %12 = sbr.rel (!%p10_p5) target bundleno = 2 (0x2), region = 62 }

// kernel: double_conv.3
= control target key start
LH: loop header
LB: loop body
LE: loop exit
PB: predicated region body
PF: predicated region fallthrough
CT: control target
= control target key end

     0   :  { %s6487_s15 = smov 0   ;;  %s6489_s16 = smov 0   ;;  %s8210_s0 = inlined_call_operand.vmem [shape: bf16[2,18,18,128], index: 0, kind: input, shape index: {}]   ;;  %s8211_s1 = inlined_call_operand.vmem [shape: bf16[1152,128], index: 1, kind: input, shape index: {}]   ;;  %s8212_s2 = inlined_call_operand.vmem [shape: f32[1,128], index: 2, kind: input, shape index: {}]   ;;  %s8213_s3 = inlined_call_operand.vmem [shape: bf16[2,16,16,128], index: 3, kind: output, shape index: {0}]   ;;  %s8214_s4 = inlined_call_operand.vmem [shape: f32[2,1,2,128], index: 4, kind: output, shape index: {1}]  }
   0x1   :  { %s6491_s17 = smov 0  }
   0x2 LB: > { %s27_s18 = sadd.s32 1, %s6456_s16  ;;  %p5068_p0 = scmp.ge.s32.totalorder %s6460_s17, 1  ;;  %s6460_s17 = sphi %s6491_s17, %s15_s17   ;;  %s6456_s16 = sphi %s6489_s16, %s8262_s16   ;;  %s6452_s15 = sphi %s6487_s15, %s8261_s15  }
   0x3   : > { %p29_p1 = scmp.ge.s32.totalorder %s27_s18, 2  ;;  %p181_p2 = scmp.lt.s32.totalorder %s6460_s17, 3 }
   0x5   : > { %s8264_s18 = smov (%p29_p1, %s27_s18), 0  ;;  %p182_p3 = pnand %p5068_p0, %p181_p2 }
   0x7   : > { %185 = sbr.rel (%p182_p3) target bundleno = 604 (0x25c), region = 32 }
   0xe   : > { %v6317_v0 = vld [vmem:[%s8211_s1 + $0x40] sm:$0xff]   ;;  %p219_p4 = scmp.lt.s32.totalorder %s6452_s15, 1  ;;  %v6319_v2 = vld [vmem:[%s8211_s1 + $0x48] sm:$0xff]   ;;  %v6321_v4 = vld [vmem:[%s8211_s1 + $0x50] sm:$0xff]   ;;  %vm439_vm0 = vsmask.f32 3328 }
   0xf   : > { %v6318_v1 = vld [vmem:[%s8211_s1] sm:$0xff]   ;;  %5756 = vmatprep.subr.bf16.mxu0 %v6317_v0  ;;  %6276 = vmatprep.subr.bf16.mxu1 %v6317_v0  ;;  %v6320_v3 = vld [vmem:[%s8211_s1 + $0x8] sm:$0xff]   ;;  %v6322_v5 = vld [vmem:[%s8211_s1 + $0x10] sm:$0xff]   ;;  %vm440_vm1 = vsmask.f32 7440  ;;  %vm1002_vm3 = vcmask 1042432  }
  0x10   : > { %5757 = vmatpush3.bf16.msra.mxu0 %v6318_v1  ;;  %6284 = vmatpush3.bf16.msra.mxu1 %v6318_v1  ;;  %s8266_s15 = smov (!%p219_p4, %s6452_s15), 1  ;;  %v6323_v6 = vld [vmem:[%s8211_s1 + $0x58] sm:$0xff]   ;;  %v6325_v8 = vld [vmem:[%s8211_s1 + $0x60] sm:$0xff]   ;;  %v6327_v10 = vld [vmem:[%s8211_s1 + $0x68] sm:$0xff]   ;;  %vm1003_vm4 = vcmask 1046532   ;;  %vm4923_vm6 = vcmask 1040384  }
  0x11   : > { %5758 = vmatprep.subr.bf16.mxu0 %v6319_v2  ;;  %6277 = vmatprep.subr.bf16.mxu1 %v6319_v2  ;;  %s6292_s7 = smul.u32 216, %s8266_s15  ;;  %v6324_v7 = vld [vmem:[%s8211_s1 + $0x18] sm:$0xff]   ;;  %v6326_v9 = vld [vmem:[%s8211_s1 + $0x20] sm:$0xff]   ;;  %v6328_v14 = vld [vmem:[%s8211_s1 + $0x28] sm:$0xff]   ;;  %s5628_s22 = sshll.u32 %s8266_s15, 7 }
  0x12   : > { %v6329_v17 = vld [vmem:[%s8211_s1 + $0x70] sm:$0xff]   ;;  %vm6563_vm2 = vmor %vm439_vm0, %vm440_vm1  ;;  %v6331_v43 = vld [vmem:[%s8211_s1 + $0x78] sm:$0xff]   ;;  %s8136_s25 = scalar_lea.vmem %s8213_s3, %s5628_s22  ;;  %s5072_s26 = sshll.u32 %s8266_s15, 1 }
  0x13   : > { %s6538_s14 = scalar_lea.vmem %s8210_s0, %s6292_s7  ;;  %v6330_v30 = vld [vmem:[%s8211_s1 + $0x30] sm:$0xff]   ;;  %v6332_v49 = vld [vmem:[%s8211_s1 + $0x38] sm:$0xff]   ;;  %v6335_v54 = vld [vmem:[%s8211_s1 + $0xc0] sm:$0xff]   ;;  %s241_s29 = scalar_lea.vmem %s8214_s4, %s5072_s26 }
  0x14   : > { %5759 = vmatpush3.bf16.msra.mxu0 %v6320_v3  ;;  %6285 = vmatpush3.bf16.msra.mxu1 %v6320_v3  ;;  %v391_v11 = vld [vmem:[%s6538_s14] sm:$0xf]  ;;  %v392_v12 = vld [vmem:[%s6538_s14 + $0x4] sm:$0xf]  ;;  %v393_v13 = vld [vmem:[%s6538_s14 + $0x8] sm:$0x1] }
  0x15   : > { %5760 = vmatprep.subr.bf16.mxu0 %v6321_v4  ;;  %6278 = vmatprep.subr.bf16.mxu1 %v6321_v4  ;;  %v443_v15 = vshrl.u32 %v391_v11, 16  ;;  %v446_v16 = vshll.u32 %v391_v11, 16  ;;  %v452_v18 = vshll.u32 %v392_v12, 16  ;;  %v456_v19 = vshrl.u32 %v392_v12, 16  ;;  %v427_v21 = vld [vmem:[%s6538_s14 + $0x90] sm:$0xf]  ;;  %vm6703_vm5 = vmor %vm1002_vm3, %vm1003_vm4 }
  0x16   : > { %v462_v20 = vshll.u32 %v393_v13, 16  ;;  %v428_v24 = vld [vmem:[%s6538_s14 + $0x94] sm:$0xf]  ;;  %v429_v25 = vld [vmem:[%s6538_s14 + $0x98] sm:$0x1]  ;;  %v731_v29 = vshrl.u32 %v427_v21, 16 }
  0x17   : > { %v445_v22 = vrot.slane %v443_v15, 4  ;;  %v448_v23 = vrot.slane %v446_v16, 5  ;;  %v454_v26 = vrot.slane %v452_v18, 5  ;;  %v458_v27 = vrot.slane %v456_v19, 4  ;;  %v6336_v55 = vld [vmem:[%s8211_s1 + $0x140] sm:$0xff]   ;;  %v6334_v57 = vld [vmem:[%s6538_s14 + $0x90] sm:$0xff]  }
  0x18   : > { %5761 = vmatpush3.bf16.msra.mxu0 %v6322_v5  ;;  %6286 = vmatpush3.bf16.msra.mxu1 %v6322_v5  ;;  %v464_v28 = vrot.slane %v462_v20, 5  ;;  %v734_v32 = vshll.u32 %v427_v21, 16  ;;  %v740_v33 = vshll.u32 %v428_v24, 16  ;;  %v744_v34 = vshrl.u32 %v428_v24, 16  ;;  %v6333_v56 = vld [vmem:[%s6538_s14] sm:$0xff]   ;;  %v6339_v4 = vld [vmem:[%s8211_s1 + $0xc8] sm:$0xff]  }
  0x19   : > { %5762 = vmatprep.subr.bf16.mxu0 %v6323_v6  ;;  %6279 = vmatprep.subr.bf16.mxu1 %v6323_v6  ;;  %v449_v31 = vor.u32 %v448_v23, %v445_v22  ;;  %v459_v36 = vor.u32 %v458_v27, %v454_v26  ;;  %v733_v37 = vrot.slane %v731_v29, 4  ;;  %v750_v38 = vshll.u32 %v429_v25, 16  ;;  %v6337_v60 = vld [vmem:[%s8211_s1 + $0x80] sm:$0xff]   ;;  %v394_v62 = vld [vmem:[%s6538_s14 + $0xc] sm:$0xf] }
  0x1a   : > { %v736_v40 = vrot.slane %v734_v32, 5  ;;  %v742_v41 = vrot.slane %v740_v33, 5  ;;  %v746_v42 = vrot.slane %v744_v34, 4  ;;  %v6338_v61 = vld [vmem:[%s8211_s1 + $0x100] sm:$0xff]   ;;  %v395_v0 = vld [vmem:[%s6538_s14 + $0x10] sm:$0xf] }
  0x1b   : > { %v450_v39 = vrot.slane %v449_v31, 4  ;;  %v460_v44 = vrot.slane %v459_v36, 4  ;;  %v752_v45 = vrot.slane %v750_v38, 5  ;;  %v396_v1 = vld [vmem:[%s6538_s14 + $0x14] sm:$0x1]  ;;  %v467_v2 = vshrl.u32 %v394_v62, 16 }
  0x1c   : > { %5763 = vmatpush3.bf16.msra.mxu0 %v6324_v7  ;;  %6287 = vmatpush3.bf16.msra.mxu1 %v6324_v7  ;;  %v737_v47 = vor.u32 %v736_v40, %v733_v37  ;;  %v747_v48 = vor.u32 %v746_v42, %v742_v41  ;;  %v470_v3 = vshll.u32 %v394_v62, 16  ;;  %v476_v5 = vshll.u32 %v395_v0, 16  ;;  %v431_v11 = vld [vmem:[%s6538_s14 + $0xa0] sm:$0xf]  ;;  %v432_v12 = vld [vmem:[%s6538_s14 + $0xa4] sm:$0x1] }
  0x1d   : > { %5764 = vmatprep.subr.bf16.mxu0 %v6325_v8  ;;  %6280 = vmatprep.subr.bf16.mxu1 %v6325_v8  ;;  %v455_v46 = vsel %vm6563_vm2, %v450_v39, %v454_v26  ;;  %v465_v50 = vsel %vm6563_vm2, %v460_v44, %v464_v28  ;;  %v480_v6 = vshrl.u32 %v395_v0, 16  ;;  %v486_v7 = vshll.u32 %v396_v1, 16  ;;  %v430_v8 = vld [vmem:[%s6538_s14 + $0x9c] sm:$0xf]  ;;  %v6341_v31 = vld [vmem:[%s6538_s14 + $0xc] sm:$0xff]  }
  0x1e   : > { %v5089_v51 = vcombine.low %v455_v46, %v465_v50  ;;  %v738_v52 = vrot.slane %v737_v47, 4  ;;  %v748_v53 = vrot.slane %v747_v48, 4  ;;  %v478_v13 = vrot.slane %v476_v5, 5  ;;  %v6343_v32 = vld [vmem:[%s8211_s1 + $0xd0] sm:$0xff]   ;;  %v6342_v42 = vld [vmem:[%s6538_s14 + $0x9c] sm:$0xff]   ;;  %v6346_v44 = vld [vmem:[%s8211_s1 + $0x148] sm:$0xff]  }
  0x1f   : > { %v488_v15 = vrot.slane %v486_v7, 5  ;;  %v755_v16 = vshrl.u32 %v430_v8, 16  ;;  %v758_v19 = vshll.u32 %v430_v8, 16  ;;  %v764_v20 = vshll.u32 %v431_v11, 16  ;;  %v6344_v38 = vld [vmem:[%s8211_s1 + $0x90] sm:$0xff]   ;;  %v6348_v48 = vld [vmem:[%s8211_s1 + $0x108] sm:$0xff]  }
  0x20   : > { %5765 = vmatpush3.bf16.msra.mxu0 %v6326_v9  ;;  %6288 = vmatpush3.bf16.msra.mxu1 %v6326_v9  ;;  %v743_v58 = vsel %vm6563_vm2, %v738_v52, %v742_v41  ;;  %v753_v59 = vsel %vm6563_vm2, %v748_v53, %v752_v45  ;;  %v469_v9 = vrot.slane %v467_v2, 4  ;;  %v768_v21 = vshrl.u32 %v431_v11, 16  ;;  %v6347_v45 = vld [vmem:[%s8211_s1 + $0x98] sm:$0xff]   ;;  %v399_v52 = vld [vmem:[%s6538_s14 + $0x20] sm:$0x1] }
  0x21   : > { %5766 = vmatprep.subr.bf16.mxu0 %v6327_v10  ;;  %6281 = vmatprep.subr.bf16.mxu1 %v6327_v10  ;;  %v5101_v63 = vcombine.low %v743_v58, %v753_v59  ;;  %v472_v10 = vrot.slane %v470_v3, 5  ;;  %v757_v23 = vrot.slane %v755_v16, 4  ;;  %v774_v24 = vshll.u32 %v432_v12, 16  ;;  %v433_v58 = vld [vmem:[%s6538_s14 + $0xa8] sm:$0xf]  ;;  %v6349_v16 = vld [vmem:[%s6538_s14 + $0x18] sm:$0xff]  }
  0x22   : > { %3852 = vmatprep.mubr.bf16.mxu0 %v5089_v51  ;;  %v760_v26 = vrot.slane %v758_v19, 5  ;;  %v766_v27 = vrot.slane %v764_v20, 5  ;;  %v770_v28 = vrot.slane %v768_v21, 4  ;;  %v398_v51 = vld [vmem:[%s6538_s14 + $0x1c] sm:$0xf]  ;;  %v779_v2 = vshrl.u32 %v433_v58, 16 }
  0x23   : > { %3948 = vmatprep.mubr.bf16.mxu1 %v5101_v63  ;;  %v473_v18 = vor.u32 %v472_v10, %v469_v9  ;;  %v435_v62 = vld [vmem:[%s6538_s14 + $0xb0] sm:$0x1] }
  0x24   : > { %5767 = vmatpush3.bf16.msra.mxu0 %v6328_v14  ;;  %6289 = vmatpush3.bf16.msra.mxu1 %v6328_v14  ;;  %v482_v14 = vrot.slane %v480_v6, 4  ;;  %v761_v34 = vor.u32 %v760_v26, %v757_v23  ;;  %v771_v36 = vor.u32 %v770_v28, %v766_v27  ;;  %v781_v8 = vrot.slane %v779_v2, 4  ;;  %v6353_v23 = vld [vmem:[%s8211_s1 + $0xe8] sm:$0xff]   ;;  %v6358_v2 = vld [vmem:[%s8211_s1 + $0x150] sm:$0xff]  }
  0x25   : > { %5768 = vmatprep.subr.bf16.mxu0 %v6329_v17  ;;  %6282 = vmatprep.subr.bf16.mxu1 %v6329_v17  ;;  %v6340_v17 = vld [vmem:[%s8211_s1 + $0x88] sm:$0xff]   ;;  %v474_v25 = vrot.slane %v473_v18, 4  ;;  %v798_v9 = vshll.u32 %v435_v62, 16  ;;  %v6352_v18 = vld [vmem:[%s8211_s1 + $0xa0] sm:$0xff]  }
  0x26   : > { %v483_v22 = vor.u32 %v482_v14, %v478_v13  ;;  %v762_v40 = vrot.slane %v761_v34, 4  ;;  %v772_v41 = vrot.slane %v771_v36, 4  ;;  %v6354_v28 = vld [vmem:[%s8211_s1 + $0xa8] sm:$0xff]  }
  0x27   : > { %v479_v33 = vsel %vm6563_vm2, %v474_v25, %v478_v13 }
  0x28   : > { %5769 = vmatpush3.bf16.msra.mxu0 %v6330_v30  ;;  %6290 = vmatpush3.bf16.msra.mxu1 %v6330_v30  ;;  %v484_v29 = vrot.slane %v483_v22, 4  ;;  %v776_v30 = vrot.slane %v774_v24, 5  ;;  %v767_v46 = vsel %vm6563_vm2, %v762_v40, %v766_v27  ;;  %v6350_v27 = vld [vmem:[%s6538_s14 + $0xa8] sm:$0xff]  }
  0x29   : > { %5770 = vmatprep.subr.bf16.mxu0 %v6331_v43  ;;  %6283 = vmatprep.subr.bf16.mxu1 %v6331_v43  ;;  %v6345_v43 = vld [vmem:[%s8211_s1 + $0xd8] sm:$0xff]  }
  0x2a   : > { %v489_v37 = vsel %vm6563_vm2, %v484_v29, %v488_v15  ;;  %v777_v47 = vsel %vm6563_vm2, %v772_v41, %v776_v30  ;;  %v800_v15 = vrot.slane %v798_v9, 5  ;;  %v400_v29 = vld [vmem:[%s6538_s14 + $0x24] sm:$0xf]  ;;  %v401_v30 = vld [vmem:[%s6538_s14 + $0x28] sm:$0xf] }
  0x2b   : > { %v5090_v39 = vcombine.low %v479_v33, %v489_v37  ;;  %v5102_v50 = vcombine.low %v767_v46, %v777_v47  ;;  %v515_v34 = vshrl.u32 %v400_v29, 16  ;;  %v518_v36 = vshll.u32 %v400_v29, 16  ;;  %v436_v37 = vld [vmem:[%s6538_s14 + $0xb4] sm:$0xf] }
  0x2c   : > { %5771 = vmatpush3.bf16.msra.mxu0 %v6332_v49  ;;  %6291 = vmatpush3.bf16.msra.mxu1 %v6332_v49  ;;  %v397_v49 = vld [vmem:[%s6538_s14 + $0x18] sm:$0xf]  ;;  %v524_v40 = vshll.u32 %v401_v30, 16  ;;  %v528_v41 = vshrl.u32 %v401_v30, 16  ;;  %v803_v46 = vshrl.u32 %v436_v37, 16  ;;  %v806_v47 = vshll.u32 %v436_v37, 16 }
  0x2d   : > { %5868 = vmatprep.subr.bf16.mxu1 %v6335_v54  ;;  %5980 = vmatprep.subr.bf16.mxu0 %v6336_v55  ;;  %v491_v53 = vshrl.u32 %v397_v49, 16  ;;  %v494_v54 = vshll.u32 %v397_v49, 16  ;;  %v500_v55 = vshll.u32 %v398_v51, 16 }
  0x2e   : > { %v530_v49 = vrot.slane %v528_v41, 4  ;;  %v6365_v41 = vld [vmem:[%s8211_s1 + $0x1c0] sm:$0xff]  }
  0x2f   : > { %3853 = vmatmul.mubr.bf16.vlgmr.msra.gmra.mrb[0].mxu0 %v6333_v56  ;;  %3949 = vmatmul.mubr.bf16.vlgmr.msra.gmra.mrb[0].mxu1 %v6334_v57  ;;  %v504_v56 = vshrl.u32 %v398_v51, 16  ;;  %v510_v57 = vshll.u32 %v399_v52, 16  ;;  %v493_v59 = vrot.slane %v491_v53, 4  ;;  %v502_v63 = vrot.slane %v500_v55, 5 }
  0x30   : > { %5869 = vmatpush3.bf16.msra.mxu1 %v6337_v60  ;;  %5981 = vmatpush3.bf16.msra.mxu0 %v6338_v61  ;;  %v496_v60 = vrot.slane %v494_v54, 5  ;;  %v434_v61 = vld [vmem:[%s6538_s14 + $0xac] sm:$0xf]  ;;  %v805_v53 = vrot.slane %v803_v46, 4  ;;  %v808_v54 = vrot.slane %v806_v47, 5  ;;  %v6366_v47 = vld [vmem:[%s8211_s1 + $0x180] sm:$0xff]  }
  0x31   : > { %5870 = vmatprep.subr.bf16.mxu1 %v6339_v4  ;;  %3860 = vmatprep.mubr.bf16.mxu0 %v5090_v39  ;;  %v506_v0 = vrot.slane %v504_v56, 4  ;;  %v512_v1 = vrot.slane %v510_v57, 5  ;;  %v782_v4 = vshll.u32 %v433_v58, 16  ;;  %v788_v5 = vshll.u32 %v434_v61, 16  ;;  %v6357_v56 = vld [vmem:[%s8211_s1 + $0xf0] sm:$0xff]  }
  0x32   : > { %5982 = vmatprep.subr.bf16.mxu0 %v6346_v44  ;;  %3956 = vmatprep.mubr.bf16.mxu1 %v5102_v50  ;;  %v497_v3 = vor.u32 %v496_v60, %v493_v59  ;;  %v792_v6 = vshrl.u32 %v434_v61, 16  ;;  %v517_v44 = vrot.slane %v515_v34, 4  ;;  %v809_v61 = vor.u32 %v808_v54, %v805_v53  ;;  %v907_v34 = vld [vmem:[%s6538_s14 + $0x4] sm:$0xf]  ;;  %v406_v53 = vld [vmem:[%s6538_s14 + $0x3c] sm:$0xf] }
  0x33   : > { %v507_v7 = vor.u32 %v506_v0, %v502_v63  ;;  %v784_v11 = vrot.slane %v782_v4, 5  ;;  %v790_v12 = vrot.slane %v788_v5, 5 }
  0x34   : > { %5871 = vmatpush3.bf16.msra.mxu1 %v6340_v17  ;;  %5983 = vmatpush3.bf16.msra.mxu0 %v6348_v48  ;;  %v498_v10 = vrot.slane %v497_v3, 4  ;;  %v794_v13 = vrot.slane %v792_v6, 4  ;;  %v6351_v17 = vld [vmem:[%s8211_s1 + $0xe0] sm:$0xff]   ;;  %v526_v48 = vrot.slane %v524_v40, 5  ;;  %v6359_v3 = vld [vmem:[%s8211_s1 + $0xb0] sm:$0xff]   ;;  %v810_v5 = vrot.slane %v809_v61, 4 }
  0x35   : > { %5872 = vmatprep.subr.bf16.mxu1 %v6343_v32  ;;  %v508_v14 = vrot.slane %v507_v7, 4  ;;  %v785_v20 = vor.u32 %v784_v11, %v781_v8  ;;  %v6360_v7 = vld [vmem:[%s8211_s1 + $0x110] sm:$0xff]   ;;  %5984 = vmatprep.subr.bf16.mxu0 %v6358_v2 }
  0x36   : > { %v503_v19 = vsel %vm6563_vm2, %v498_v10, %v502_v63  ;;  %v795_v21 = vor.u32 %v794_v13, %v790_v12  ;;  %v531_v57 = vor.u32 %v530_v49, %v526_v48  ;;  %v6361_v13 = vld [vmem:[%s8211_s1 + $0xf8] sm:$0xff]  }
  0x37   : > { %3861 = vmatmul.mubr.bf16.gmra.mrb[4].mxu0 %v6341_v31  ;;  %3957 = vmatmul.mubr.bf16.gmra.mrb[4].mxu1 %v6342_v42  ;;  %v513_v22 = vsel %vm6563_vm2, %v508_v14, %v512_v1  ;;  %v786_v25 = vrot.slane %v785_v20, 4  ;;  %v402_v31 = vld [vmem:[%s6538_s14 + $0x2c] sm:$0x1]  ;;  %v6355_v1 = vld [vmem:[%s6538_s14 + $0x24] sm:$0xff]   ;;  %v6362_v14 = vld [vmem:[%s8211_s1 + $0xb8] sm:$0xff]  }
  0x38   : > { %5873 = vmatpush3.bf16.msra.mxu1 %v6344_v38  ;;  %v5091_v24 = vcombine.low %v503_v19, %v513_v22  ;;  %v796_v26 = vrot.slane %v795_v21, 4  ;;  %v437_v38 = vld [vmem:[%s6538_s14 + $0xb8] sm:$0xf]  ;;  %v534_v42 = vshll.u32 %v402_v31, 16  ;;  %v532_v63 = vrot.slane %v531_v57, 4  ;;  %5985 = vmatpush3.bf16.msra.mxu0 %v6360_v7 }
  0x39   : > { %5874 = vmatprep.subr.bf16.mxu1 %v6345_v43  ;;  %v791_v32 = vsel %vm6563_vm2, %v786_v25, %v790_v12  ;;  %v438_v43 = vld [vmem:[%s6538_s14 + $0xbc] sm:$0x1]  ;;  %v812_v51 = vshll.u32 %v437_v38, 16  ;;  %v816_v55 = vshrl.u32 %v437_v38, 16  ;;  %v6356_v12 = vld [vmem:[%s6538_s14 + $0xb4] sm:$0xff]   ;;  %v6363_v25 = vld [vmem:[%s6538_s14 + $0xc] sm:$0xff]  }
  0x3a   : > { %3868 = vmatprep.mubr.bf16.mxu0 %v5091_v24  ;;  %v801_v33 = vsel %vm6563_vm2, %v796_v26, %v800_v15  ;;  %v536_v50 = vrot.slane %v534_v42, 5  ;;  %v822_v59 = vshll.u32 %v438_v43, 16  ;;  %v403_v15 = vld [vmem:[%s6538_s14 + $0x30] sm:$0xf]  ;;  %v6367_v49 = vld [vmem:[%s8211_s1 + $0x158] sm:$0xff]  }
  0x3b   : > { %v5103_v39 = vcombine.low %v791_v32, %v801_v33  ;;  %v814_v58 = vrot.slane %v812_v51, 5  ;;  %v818_v62 = vrot.slane %v816_v55, 4  ;;  %v539_v19 = vshrl.u32 %v403_v15, 16  ;;  %v906_v33 = vld [vmem:[%s6538_s14] sm:$0xe]  ;;  %5986 = vmatprep.subr.bf16.mxu0 %v6367_v49 }
  0x3c   : > { %5875 = vmatpush3.bf16.msra.mxu1 %v6347_v45  ;;  %v520_v45 = vrot.slane %v518_v36, 5  ;;  %v824_v0 = vrot.slane %v822_v59, 5  ;;  %v537_v8 = vsel %vm6563_vm2, %v532_v63, %v536_v50  ;;  %v542_v20 = vshll.u32 %v403_v15, 16  ;;  %v908_v36 = vld [vmem:[%s6538_s14 + $0x8] sm:$0x1]  ;;  %v6369_v63 = vld [vmem:[%s6538_s14 + $0x18] sm:$0xff]  }
  0x3d   : > { %5876 = vmatprep.subr.bf16.mxu1 %v6351_v17  ;;  %3964 = vmatprep.mubr.bf16.mxu1 %v5103_v39  ;;  %v819_v6 = vor.u32 %v818_v62, %v814_v58  ;;  %v815_v10 = vsel %vm6563_vm2, %v810_v5, %v814_v58  ;;  %v404_v17 = vld [vmem:[%s6538_s14 + $0x34] sm:$0xf]  ;;  %v541_v26 = vrot.slane %v539_v19, 4  ;;  %v5105_v38 = vrot.slane %v906_v33, 9  ;;  %v408_v57 = vld [vmem:[%s6538_s14 + $0x44] sm:$0x1] }
  0x3e   : > { %v521_v52 = vor.u32 %v520_v45, %v517_v44  ;;  %v548_v22 = vshll.u32 %v404_v17, 16  ;;  %v1007_v39 = vrot.slane %v907_v34, 5  ;;  %v1010_v40 = vrot.slane %v908_v36, 5  ;;  %v6364_v44 = vld [vmem:[%s6538_s14 + $0x30] sm:$0xff]   ;;  %v410_v15 = vld [vmem:[%s6538_s14 + $0x4c] sm:$0xf] }
  0x3f   : > { %3869 = vmatmul.mubr.bf16.gmra.mrb[8].mxu0 %v6349_v16  ;;  %3965 = vmatmul.mubr.bf16.gmra.mrb[8].mxu1 %v6350_v27  ;;  %v820_v11 = vrot.slane %v819_v6, 4  ;;  %v544_v27 = vrot.slane %v542_v20, 5  ;;  %v563_v58 = vshrl.u32 %v406_v53, 16  ;;  %v566_v59 = vshll.u32 %v406_v53, 16  ;;  %v909_v6 = vld [vmem:[%s6538_s14 + $0xc] sm:$0xe] }
  0x40   : > { %5877 = vmatpush3.bf16.msra.mxu1 %v6352_v18  ;;  %v522_v60 = vrot.slane %v521_v52, 4  ;;  %v405_v18 = vld [vmem:[%s6538_s14 + $0x38] sm:$0x1]  ;;  %v1008_v45 = vsel %vm6703_vm5, %v5105_v38, %v1007_v39  ;;  %v1009_v46 = vrot.slane %v1007_v39, 4  ;;  %v582_v62 = vshll.u32 %v408_v57, 16  ;;  %v6370_v19 = vld [vmem:[%s6538_s14 + $0x3c] sm:$0xff]  }
  0x41   : > { %5878 = vmatprep.subr.bf16.mxu1 %v6353_v23  ;;  %v825_v16 = vsel %vm6563_vm2, %v820_v11, %v824_v0  ;;  %v552_v23 = vshrl.u32 %v404_v17, 16  ;;  %v558_v24 = vshll.u32 %v405_v18, 16  ;;  %v545_v32 = vor.u32 %v544_v27, %v541_v26  ;;  %v6368_v52 = vld [vmem:[%s8211_s1 + $0x118] sm:$0xff]   ;;  %v910_v7 = vld [vmem:[%s6538_s14 + $0x10] sm:$0xf]  ;;  %v6375_v49 = vld [vmem:[%s8211_s1 + $0x120] sm:$0xff]  }
  0x42   : > { %v527_v4 = vsel %vm6563_vm2, %v522_v60, %v526_v48  ;;  %v5104_v21 = vcombine.low %v815_v10, %v825_v16  ;;  %v1011_v51 = vsel %vm6703_vm5, %v1009_v46, %v1010_v40  ;;  %5987 = vmatpush3.bf16.msra.mxu0 %v6368_v52  ;;  %v565_v0 = vrot.slane %v563_v58, 4  ;;  %v411_v16 = vld [vmem:[%s6538_s14 + $0x50] sm:$0x1]  ;;  %v912_v39 = vld [vmem:[%s6538_s14 + $0x18] sm:$0xe]  ;;  %v6374_v46 = vld [vmem:[%s8211_s1 + $0x1c8] sm:$0xff]  }
  0x43   : > { %v5092_v9 = vcombine.low %v527_v4, %v537_v8  ;;  %v554_v29 = vrot.slane %v552_v23, 4  ;;  %v560_v30 = vrot.slane %v558_v24, 5  ;;  %v546_v42 = vrot.slane %v545_v32, 4  ;;  %v911_v8 = vld [vmem:[%s6538_s14 + $0x14] sm:$0x1]  ;;  %v6371_v23 = vld [vmem:[%s6538_s14 + $0x24] sm:$0xff]  }
  0x44   : > { %5879 = vmatpush3.bf16.msra.mxu1 %v6354_v28  ;;  %3972 = vmatprep.mubr.bf16.mxu1 %v5104_v21  ;;  %v550_v28 = vrot.slane %v548_v22, 5  ;;  %v5121_v55 = vcombine.low %v1008_v45, %v1011_v51  ;;  %v584_v4 = vrot.slane %v582_v62, 5  ;;  %v5106_v10 = vrot.slane %v909_v6, 9  ;;  %v913_v40 = vld [vmem:[%s6538_s14 + $0x1c] sm:$0xf] }
  0x45   : > { %5880 = vmatprep.subr.bf16.mxu1 %v6357_v56  ;;  %3876 = vmatprep.mubr.bf16.mxu0 %v5092_v9  ;;  %v407_v56 = vld [vmem:[%s6538_s14 + $0x40] sm:$0xf]  ;;  %v1014_v11 = vrot.slane %v910_v7, 5  ;;  %v596_v26 = vshll.u32 %v410_v15, 16  ;;  %v600_v27 = vshrl.u32 %v410_v15, 16  ;;  %v606_v33 = vshll.u32 %v411_v16, 16 }
  0x46   : > { %v555_v37 = vor.u32 %v554_v29, %v550_v28  ;;  %v551_v48 = vsel %vm6563_vm2, %v546_v42, %v550_v28  ;;  %v572_v60 = vshll.u32 %v407_v56, 16  ;;  %v576_v61 = vshrl.u32 %v407_v56, 16  ;;  %v6373_v28 = vld [vmem:[%s8211_s1 + $0x160] sm:$0xff]   ;;  %v6372_v56 = vld [vmem:[%s6538_s14 + $0x48] sm:$0xff]   ;;  %v412_v58 = vld [vmem:[%s6538_s14 + $0x54] sm:$0xf] }
  0x47   : > { %3877 = vmatmul.mubr.bf16.gmra.mrb[12].mxu0 %v6355_v1  ;;  %3973 = vmatmul.mubr.bf16.gmra.mrb[12].mxu1 %v6356_v12  ;;  %v568_v1 = vrot.slane %v566_v59, 5  ;;  %v1017_v12 = vrot.slane %v911_v8, 5  ;;  %v1015_v20 = vsel %vm6703_vm5, %v5106_v10, %v1014_v11  ;;  %v1016_v21 = vrot.slane %v1014_v11, 4  ;;  %v414_v62 = vld [vmem:[%s6538_s14 + $0x5c] sm:$0x1] }
  0x48   : > { %5881 = vmatpush3.bf16.msra.mxu1 %v6359_v3  ;;  %4013 = vmatprep.mubr.bf16.mxu1 %v6363_v25  ;;  %v556_v43 = vrot.slane %v555_v37, 4  ;;  %v574_v2 = vrot.slane %v572_v60, 5  ;;  %v578_v3 = vrot.slane %v576_v61, 4  ;;  %v598_v37 = vrot.slane %v596_v26, 5  ;;  %v413_v61 = vld [vmem:[%s6538_s14 + $0x58] sm:$0xf] }
  0x49   : > { %5882 = vmatprep.subr.bf16.mxu1 %v6361_v13  ;;  %v569_v5 = vor.u32 %v568_v1, %v565_v0  ;;  %v409_v13 = vld [vmem:[%s6538_s14 + $0x48] sm:$0xf]  ;;  %v602_v38 = vrot.slane %v600_v27, 4  ;;  %5988 = vmatprep.subr.bf16.mxu0 %v6373_v28  ;;  %v608_v42 = vrot.slane %v606_v33, 5  ;;  %v1021_v45 = vrot.slane %v913_v40, 5 }
  0x4a   : > { %v561_v50 = vsel %vm6563_vm2, %v556_v43, %v560_v30  ;;  %v579_v9 = vor.u32 %v578_v3, %v574_v2  ;;  %v587_v17 = vshrl.u32 %v409_v13, 16  ;;  %v590_v22 = vshll.u32 %v409_v13, 16  ;;  %v914_v43 = vld [vmem:[%s6538_s14 + $0x20] sm:$0x1]  ;;  %5989 = vmatpush3.bf16.msra.mxu0 %v6375_v49  ;;  %v916_v13 = vld [vmem:[%s6538_s14 + $0x28] sm:$0xf] }
  0x4b   : > { %v5093_v54 = vcombine.low %v551_v48, %v561_v50  ;;  %v1018_v30 = vsel %vm6703_vm5, %v1016_v21, %v1017_v12  ;;  %v1024_v48 = vrot.slane %v914_v43, 5  ;;  %v1023_v52 = vrot.slane %v1021_v45, 4  ;;  %v915_v12 = vld [vmem:[%s6538_s14 + $0x24] sm:$0xe]  ;;  %v6380_v21 = vld [vmem:[%s8211_s1 + $0x128] sm:$0xff]  }
  0x4c   : > { %5883 = vmatpush3.bf16.msra.mxu1 %v6362_v14  ;;  %v570_v14 = vrot.slane %v569_v5, 4  ;;  %v580_v18 = vrot.slane %v579_v9, 4  ;;  %v589_v25 = vrot.slane %v587_v17, 4  ;;  %v592_v32 = vrot.slane %v590_v22, 5  ;;  %v6377_v5 = vld [vmem:[%s6538_s14 + $0x30] sm:$0xff]  }
  0x4d   : > { %6092 = vmatprep.subr.bf16.mxu1 %v6365_v41  ;;  %3884 = vmatprep.mubr.bf16.mxu0 %v5093_v54  ;;  %v5122_v36 = vcombine.low %v1015_v20, %v1018_v30  ;;  %v6376_v54 = vld [vmem:[%s8211_s1 + $0x188] sm:$0xff]   ;;  %v1025_v57 = vsel %vm6703_vm5, %v1023_v52, %v1024_v48  ;;  %v614_v0 = vshll.u32 %v412_v58, 16  ;;  %v624_v3 = vshrl.u32 %v413_v61, 16  ;;  %v415_v26 = vld [vmem:[%s6538_s14 + $0x60] sm:$0xf] }
  0x4e   : > { %v575_v24 = vsel %vm6563_vm2, %v570_v14, %v574_v2  ;;  %v585_v29 = vsel %vm6563_vm2, %v580_v18, %v584_v4  ;;  %v593_v41 = vor.u32 %v592_v32, %v589_v25  ;;  %v620_v2 = vshll.u32 %v413_v61, 16  ;;  %v917_v14 = vld [vmem:[%s6538_s14 + $0x2c] sm:$0x1]  ;;  %v416_v28 = vld [vmem:[%s6538_s14 + $0x64] sm:$0xf] }
  0x4f   : > { %4014 = vmatmul.mubr.bf16.vlgmr.msra.gmra.mrb[16].mxu1 %v5121_v55  ;;  %3885 = vmatmul.mubr.bf16.gmra.mrb[16].mxu0 %v6364_v44  ;;  %v5094_v34 = vcombine.low %v575_v24, %v585_v29  ;;  %v5107_v44 = vrot.slane %v912_v39, 9  ;;  %v630_v4 = vshll.u32 %v414_v62, 16  ;;  %v616_v7 = vrot.slane %v614_v0, 5  ;;  %v417_v29 = vld [vmem:[%s6538_s14 + $0x68] sm:$0x1] }
  0x50   : > { %6093 = vmatpush3.bf16.msra.mxu1 %v6366_v47  ;;  %4021 = vmatprep.mubr.bf16.mxu1 %v6369_v63  ;;  %v603_v47 = vor.u32 %v602_v38, %v598_v37  ;;  %v594_v50 = vrot.slane %v593_v41, 4  ;;  %v611_v63 = vshrl.u32 %v412_v58, 16  ;;  %v622_v8 = vrot.slane %v620_v2, 5  ;;  %v918_v48 = vld [vmem:[%s6538_s14 + $0x30] sm:$0xe] }
  0x51   : > { %3892 = vmatprep.mubr.bf16.mxu0 %v5094_v34  ;;  %v1022_v51 = vsel %vm6703_vm5, %v5107_v44, %v1021_v45  ;;  %6094 = vmatprep.subr.bf16.mxu1 %v6374_v46  ;;  %v626_v9 = vrot.slane %v624_v3, 4  ;;  %v632_v10 = vrot.slane %v630_v4, 5  ;;  %v5108_v16 = vrot.slane %v915_v12, 9  ;;  %v6383_v46 = vld [vmem:[%s8211_s1 + $0x1d0] sm:$0xff]   ;;  %v418_v62 = vld [vmem:[%s6538_s14 + $0x6c] sm:$0xf] }
  0x52   : > { %v604_v53 = vrot.slane %v603_v47, 4  ;;  %v599_v55 = vsel %vm6563_vm2, %v594_v50, %v598_v37  ;;  %v5123_v60 = vcombine.low %v1022_v51, %v1025_v57  ;;  %v613_v6 = vrot.slane %v611_v63, 4  ;;  %v919_v49 = vld [vmem:[%s6538_s14 + $0x34] sm:$0xf]  ;;  %v920_v50 = vld [vmem:[%s6538_s14 + $0x38] sm:$0x1] }
  0x53   : > { %v627_v15 = vor.u32 %v626_v9, %v622_v8  ;;  %v1028_v17 = vrot.slane %v916_v13, 5  ;;  %v1031_v18 = vrot.slane %v917_v14, 5  ;;  %v635_v30 = vshrl.u32 %v415_v26, 16  ;;  %v419_v0 = vld [vmem:[%s6538_s14 + $0x70] sm:$0xf]  ;;  %v6385_v12 = vld [vmem:[%s6538_s14 + $0x48] sm:$0xff]  }
  0x54   : > { %v609_v59 = vsel %vm6563_vm2, %v604_v53, %v608_v42  ;;  %6095 = vmatpush3.bf16.msra.mxu1 %v6376_v54  ;;  %v617_v11 = vor.u32 %v616_v7, %v613_v6  ;;  %v638_v32 = vshll.u32 %v415_v26, 16  ;;  %v648_v37 = vshrl.u32 %v416_v28, 16  ;;  %v6381_v42 = vld [vmem:[%s6538_s14 + $0x3c] sm:$0xff]  }
  0x55   : > { %v5095_v1 = vcombine.low %v599_v55, %v609_v59  ;;  %v628_v22 = vrot.slane %v627_v15, 4  ;;  %v1029_v24 = vsel %vm6703_vm5, %v5108_v16, %v1028_v17  ;;  %v1030_v25 = vrot.slane %v1028_v17, 4  ;;  %v6384_v55 = vld [vmem:[%s8211_s1 + $0x190] sm:$0xff]   ;;  %6096 = vmatprep.subr.bf16.mxu1 %v6383_v46  ;;  %v6382_v59 = vld [vmem:[%s6538_s14 + $0x60] sm:$0xff]  }
  0x56   : > { %v618_v20 = vrot.slane %v617_v11, 4  ;;  %v637_v40 = vrot.slane %v635_v30, 4  ;;  %v640_v41 = vrot.slane %v638_v32, 5  ;;  %v650_v44 = vrot.slane %v648_v37, 4  ;;  %v6387_v16 = vld [vmem:[%s8211_s1 + $0x170] sm:$0xff]  }
  0x57   : > { %4022 = vmatmul.mubr.bf16.gmra.mrb[20].mxu1 %v5122_v36  ;;  %3893 = vmatmul.mubr.bf16.gmra.mrb[20].mxu0 %v6370_v19  ;;  %v6379_v19 = vld [vmem:[%s8211_s1 + $0x168] sm:$0xff]   ;;  %v633_v33 = vsel %vm6563_vm2, %v628_v22, %v632_v10  ;;  %v1032_v34 = vsel %vm6703_vm5, %v1030_v25, %v1031_v18  ;;  %v644_v36 = vshll.u32 %v416_v28, 16  ;;  %v654_v45 = vshll.u32 %v417_v29, 16  ;;  %v921_v18 = vld [vmem:[%s6538_s14 + $0x3c] sm:$0xe]  ;;  %v6388_v25 = vld [vmem:[%s8211_s1 + $0x130] sm:$0xff]  }
  0x58   : > { %4029 = vmatprep.mubr.bf16.mxu1 %v6371_v23  ;;  %3900 = vmatprep.mubr.bf16.mxu0 %v5095_v1  ;;  %v6378_v23 = vld [vmem:[%s6538_s14 + $0x54] sm:$0xff]   ;;  %v623_v27 = vsel %vm6563_vm2, %v618_v20, %v622_v8  ;;  %v5124_v39 = vcombine.low %v1029_v24, %v1032_v34  ;;  %v641_v47 = vor.u32 %v640_v41, %v637_v40  ;;  %v5109_v53 = vrot.slane %v918_v48, 9  ;;  %v923_v20 = vld [vmem:[%s6538_s14 + $0x44] sm:$0x1]  ;;  %v6386_v29 = vld [vmem:[%s6538_s14 + $0x6c] sm:$0xff]  }
  0x59   : > { %5990 = vmatprep.subr.bf16.mxu0 %v6379_v19  ;;  %v5096_v38 = vcombine.low %v623_v27, %v633_v33  ;;  %v646_v43 = vrot.slane %v644_v36, 5  ;;  %v656_v52 = vrot.slane %v654_v45, 5  ;;  %v1035_v54 = vrot.slane %v919_v49, 5  ;;  %6097 = vmatpush3.bf16.msra.mxu1 %v6384_v55  ;;  %v420_v1 = vld [vmem:[%s6538_s14 + $0x74] sm:$0x1] }
  0x5a   : > { %5991 = vmatpush3.bf16.msra.mxu0 %v6380_v21  ;;  %v1038_v57 = vrot.slane %v920_v50, 5  ;;  %v659_v2 = vshrl.u32 %v418_v62, 16  ;;  %v662_v3 = vshll.u32 %v418_v62, 16  ;;  %v668_v6 = vshll.u32 %v419_v0, 16  ;;  %v922_v19 = vld [vmem:[%s6538_s14 + $0x40] sm:$0xf] }
  0x5b   : > { %v651_v51 = vor.u32 %v650_v44, %v646_v43  ;;  %v1037_v61 = vrot.slane %v1035_v54, 4  ;;  %v672_v7 = vshrl.u32 %v419_v0, 16  ;;  %v678_v15 = vshll.u32 %v420_v1, 16  ;;  %5992 = vmatprep.subr.bf16.mxu0 %v6387_v16  ;;  %v421_v33 = vld [vmem:[%s6538_s14 + $0x78] sm:$0xf] }
  0x5c   : > { %v661_v10 = vrot.slane %v659_v2, 4  ;;  %v664_v11 = vrot.slane %v662_v3, 5  ;;  %v670_v13 = vrot.slane %v668_v6, 5  ;;  %v1042_v24 = vrot.slane %v922_v19, 5  ;;  %v422_v36 = vld [vmem:[%s6538_s14 + $0x7c] sm:$0xf] }
  0x5d   : > { %v652_v58 = vrot.slane %v651_v51, 4  ;;  %v674_v14 = vrot.slane %v672_v7, 4  ;;  %v680_v22 = vrot.slane %v678_v15, 5  ;;  %v1045_v27 = vrot.slane %v923_v20, 5  ;;  %v423_v37 = vld [vmem:[%s6538_s14 + $0x80] sm:$0x1] }
  0x5e   : > { %v665_v17 = vor.u32 %v664_v11, %v661_v10  ;;  %v1044_v32 = vrot.slane %v1042_v24, 4  ;;  %5993 = vmatpush3.bf16.msra.mxu0 %v6388_v25  ;;  %v6389_v48 = vld [vmem:[%s6538_s14 + $0x54] sm:$0xff]   ;;  %v702_v51 = vshll.u32 %v423_v37, 16  ;;  %v925_v55 = vld [vmem:[%s6538_s14 + $0x4c] sm:$0xf]  ;;  %v6395_v19 = vld [vmem:[%s6538_s14 + $0x60] sm:$0xff]  }
  0x5f   : > { %4030 = vmatmul.mubr.bf16.gmra.mrb[24].mxu1 %v5123_v60  ;;  %3901 = vmatmul.mubr.bf16.gmra.mrb[24].mxu0 %v6372_v56  ;;  %v642_v56 = vrot.slane %v641_v47, 4  ;;  %v1036_v60 = vsel %vm6703_vm5, %v5109_v53, %v1035_v54  ;;  %v657_v4 = vsel %vm6563_vm2, %v652_v58, %v656_v52  ;;  %v675_v21 = vor.u32 %v674_v14, %v670_v13  ;;  %v6391_v52 = vld [vmem:[%s8211_s1 + $0x1d8] sm:$0xff]   ;;  %v924_v54 = vld [vmem:[%s6538_s14 + $0x48] sm:$0xe]  ;;  %v6398_v37 = vld [vmem:[%s8211_s1 + $0x1e0] sm:$0xff]  }
  0x60   : > { %4037 = vmatprep.mubr.bf16.mxu1 %v6377_v5  ;;  %3908 = vmatprep.mubr.bf16.mxu0 %v5096_v38  ;;  %v1039_v5 = vsel %vm6703_vm5, %v1037_v61, %v1038_v57  ;;  %v666_v26 = vrot.slane %v665_v17, 4  ;;  %v683_v38 = vshrl.u32 %v421_v33, 16  ;;  %v1046_v41 = vsel %vm6703_vm5, %v1044_v32, %v1045_v27  ;;  %v6392_v61 = vld [vmem:[%s8211_s1 + $0x198] sm:$0xff]  }
  0x61   : > { %v647_v63 = vsel %vm6563_vm2, %v642_v56, %v646_v43  ;;  %v5125_v9 = vcombine.low %v1036_v60, %v1039_v5  ;;  %v676_v28 = vrot.slane %v675_v21, 4  ;;  %v696_v43 = vshrl.u32 %v422_v36, 16  ;;  %v926_v56 = vld [vmem:[%s6538_s14 + $0x50] sm:$0x1]  ;;  %6098 = vmatprep.subr.bf16.mxu1 %v6391_v52  ;;  %v6390_v1 = vld [vmem:[%s6538_s14 + $0x78] sm:$0xff]  }
  0x62   : > { %v5097_v8 = vcombine.low %v647_v63, %v657_v4  ;;  %v671_v34 = vsel %vm6563_vm2, %v666_v26, %v670_v13  ;;  %v685_v46 = vrot.slane %v683_v38, 4  ;;  %v704_v58 = vrot.slane %v702_v51, 5  ;;  %6099 = vmatpush3.bf16.msra.mxu1 %v6392_v61  ;;  %v6393_v5 = vld [vmem:[%s8211_s1 + $0x178] sm:$0xff]   ;;  %v426_v13 = vld [vmem:[%s6538_s14 + $0x8c] sm:$0x1] }
  0x63   : > { %v681_v40 = vsel %vm6563_vm2, %v676_v28, %v680_v22  ;;  %v698_v50 = vrot.slane %v696_v43, 4  ;;  %v1049_v60 = vrot.slane %v925_v55, 5  ;;  %v1052_v63 = vrot.slane %v926_v56, 5  ;;  %5994 = vmatprep.subr.bf16.mxu0 %v6393_v5  ;;  %v927_v26 = vld [vmem:[%s6538_s14 + $0x54] sm:$0xe]  ;;  %6100 = vmatprep.subr.bf16.mxu1 %v6398_v37  ;;  %v6400_v56 = vld [vmem:[%s8211_s1 + $0x1a0] sm:$0xff]  }
  0x64   : > { %v5098_v44 = vcombine.low %v671_v34, %v681_v40  ;;  %v928_v27 = vld [vmem:[%s6538_s14 + $0x58] sm:$0xf]  ;;  %v929_v28 = vld [vmem:[%s6538_s14 + $0x5c] sm:$0x1]  ;;  %v5250_v43 = vld [vmem:[%s6538_s14 + $0x10] sm:$0xf] }
  0x65   : > { %v1051_v3 = vrot.slane %v1049_v60, 4  ;;  %v1056_v32 = vrot.slane %v928_v27, 5  ;;  %v5185_v61 = vld [vmem:[%s6538_s14 + $0xc] sm:$0xf] }
  0x66   : > { %6101 = vmatpush3.bf16.msra.mxu1 %v6400_v56  ;;  %v6404_v56 = vld [vmem:[%s8211_s1 + $0x208] sm:$0xff]  }
  0x67   : > { %4038 = vmatmul.mubr.bf16.gmra.mrb[28].mxu1 %v5124_v39  ;;  %3909 = vmatmul.mubr.bf16.gmra.mrb[28].mxu0 %v6378_v23  ;;  %v5110_v23 = vrot.slane %v921_v18, 9  ;;  %v686_v39 = vshll.u32 %v421_v33, 16  ;;  %v1053_v7 = vsel %vm6703_vm5, %v1051_v3, %v1052_v63  ;;  %v726_v18 = vshll.u32 %v426_v13, 16 }
  0x68   : > { %4045 = vmatprep.mubr.bf16.mxu1 %v6381_v42  ;;  %3916 = vmatprep.mubr.bf16.mxu0 %v5097_v8  ;;  %v692_v42 = vshll.u32 %v422_v36, 16  ;;  %v6394_v8 = vld [vmem:[%s8211_s1 + $0x138] sm:$0xff]   ;;  %v1059_v33 = vrot.slane %v929_v28, 5  ;;  %v5249_v36 = vld [vmem:[%s6538_s14 + $0xc] sm:$0xe]  ;;  %v1397_v3 = vshll.u32 %v5185_v61, 16 }
  0x69   : > { %v1043_v30 = vsel %vm6703_vm5, %v5110_v23, %v1042_v24  ;;  %v688_v47 = vrot.slane %v686_v39, 5  ;;  %5995 = vmatpush3.bf16.msra.mxu0 %v6394_v8  ;;  %v728_v24 = vrot.slane %v726_v18, 5  ;;  %v6396_v39 = vld [vmem:[%s6538_s14 + $0x84] sm:$0xff]  }
  0x6a   : > { %v5126_v45 = vcombine.low %v1043_v30, %v1046_v41  ;;  %v694_v49 = vrot.slane %v692_v42, 5  ;;  %v5112_v30 = vrot.slane %v927_v26, 9  ;;  %v1058_v41 = vrot.slane %v1056_v32, 4  ;;  %v6397_v42 = vld [vmem:[%s6538_s14 + $0x6c] sm:$0xff]  }
  0x6b   : > { %v689_v53 = vor.u32 %v688_v47, %v685_v46  ;;  %v5297_v46 = vrot.slane %v5249_v36, 9  ;;  %v1955_v47 = vrot.slane %v5250_v43, 5  ;;  %v933_v26 = vld [vmem:[%s6538_s14 + $0x6c] sm:$0xe]  ;;  %v935_v36 = vld [vmem:[%s6538_s14 + $0x74] sm:$0x1] }
  0x6c   : > { %v699_v57 = vor.u32 %v698_v50, %v694_v49  ;;  %v1057_v40 = vsel %vm6703_vm5, %v5112_v30, %v1056_v32  ;;  %v6892_v50 = vld [vmem:[%s8211_s1 + $0x200] sm:$0xff]   ;;  %v1060_v52 = vsel %vm6703_vm5, %v1058_v41, %v1059_v33  ;;  %v934_v30 = vld [vmem:[%s6538_s14 + $0x70] sm:$0xf]  ;;  %v5114_v32 = vrot.slane %v933_v26, 9 }
  0x6d   : > { %v690_v62 = vrot.slane %v689_v53, 4  ;;  %v931_v53 = vld [vmem:[%s6538_s14 + $0x64] sm:$0xf]  ;;  %6228 = vmatprep.subr.bf16.mxu0 %v6892_v50  ;;  %v1070_v37 = vrot.slane %v934_v30, 5  ;;  %v1073_v41 = vrot.slane %v935_v36, 5 }
  0x6e   : > { %v700_v0 = vrot.slane %v699_v57, 4  ;;  %v1063_v63 = vrot.slane %v931_v53, 5  ;;  %v5190_v43 = vld [vmem:[%s6538_s14 + $0x20] sm:$0x1] }
  0x6f   : > { %4046 = vmatmul.mubr.bf16.gmra.mrb[32].mxu1 %v5125_v9  ;;  %3917 = vmatmul.mubr.bf16.gmra.mrb[32].mxu0 %v6382_v59  ;;  %v5111_v59 = vrot.slane %v924_v54, 9  ;;  %v695_v4 = vsel %vm6563_vm2, %v690_v62, %v694_v49  ;;  %v424_v9 = vld [vmem:[%s6538_s14 + $0x84] sm:$0xf]  ;;  %v930_v49 = vld [vmem:[%s6538_s14 + $0x60] sm:$0xe] }
  0x70   : > { %4053 = vmatprep.mubr.bf16.mxu1 %v6385_v12  ;;  %3924 = vmatprep.mubr.bf16.mxu0 %v5098_v44  ;;  %v705_v6 = vsel %vm6563_vm2, %v700_v0, %v704_v58  ;;  %v425_v12 = vld [vmem:[%s6538_s14 + $0x88] sm:$0xf]  ;;  %v707_v14 = vshrl.u32 %v424_v9, 16  ;;  %v710_v15 = vshll.u32 %v424_v9, 16  ;;  %v5251_v44 = vld [vmem:[%s6538_s14 + $0x14] sm:$0x1]  ;;  %v5128_v58 = vcombine.low %v1057_v40, %v1060_v52 }
  0x71   : > { %v1050_v2 = vsel %vm6703_vm5, %v5111_v59, %v1049_v60  ;;  %v5099_v10 = vcombine.low %v695_v4, %v705_v6  ;;  %v716_v16 = vshll.u32 %v425_v12, 16  ;;  %v720_v17 = vshrl.u32 %v425_v12, 16  ;;  %v932_v54 = vld [vmem:[%s6538_s14 + $0x68] sm:$0x1]  ;;  %v5186_v62 = vld [vmem:[%s6538_s14 + $0x10] sm:$0xf] }
  0x72   : > { %v5127_v11 = vcombine.low %v1050_v2, %v1053_v7  ;;  %v709_v20 = vrot.slane %v707_v14, 4  ;;  %v712_v21 = vrot.slane %v710_v15, 5  ;;  %v5113_v55 = vrot.slane %v930_v49, 9  ;;  %v6403_v49 = vld [vmem:[%s8211_s1 + $0x1e8] sm:$0xff]  }
  0x73   : > { %v718_v22 = vrot.slane %v716_v16, 5  ;;  %v722_v23 = vrot.slane %v720_v17, 4  ;;  %v1956_v59 = vsel %vm6703_vm5, %v5297_v46, %v1955_v47  ;;  %v1957_v60 = vrot.slane %v1955_v47, 4  ;;  %v6401_v17 = vld [vmem:[%s6538_s14 + $0x78] sm:$0xff]   ;;  %6102 = vmatprep.subr.bf16.mxu1 %v6403_v49 }
  0x74   : > { %v713_v25 = vor.u32 %v712_v21, %v709_v20  ;;  %v1066_v0 = vrot.slane %v932_v54, 5  ;;  %v1394_v2 = vshrl.u32 %v5185_v61, 16  ;;  %v1403_v5 = vshll.u32 %v5186_v62, 16  ;;  %v5252_v21 = vld [vmem:[%s6538_s14 + $0x18] sm:$0xe] }
  0x75   : > { %v1407_v6 = vshrl.u32 %v5186_v62, 16  ;;  %v1064_v9 = vsel %vm6703_vm5, %v5113_v55, %v1063_v63  ;;  %v1399_v12 = vrot.slane %v1397_v3, 5  ;;  %v1071_v47 = vsel %vm6703_vm5, %v5114_v32, %v1070_v37  ;;  %v5255_v55 = vld [vmem:[%s6538_s14 + $0x24] sm:$0xe]  ;;  %v5256_v61 = vld [vmem:[%s6538_s14 + $0x28] sm:$0xf] }
  0x76   : > { %v714_v34 = vrot.slane %v713_v25, 4  ;;  %v1405_v13 = vrot.slane %v1403_v5, 5  ;;  %v5257_v62 = vld [vmem:[%s6538_s14 + $0x2c] sm:$0x1]  ;;  %v936_v3 = vld [vmem:[%s6538_s14 + $0x78] sm:$0xe] }
  0x77   : > { %4054 = vmatmul.mubr.bf16.gmra.mrb[36].mxu1 %v5126_v45  ;;  %3925 = vmatmul.mubr.bf16.gmra.mrb[36].mxu0 %v6386_v29  ;;  %v723_v29 = vor.u32 %v722_v23, %v718_v22  ;;  %v1409_v14 = vrot.slane %v1407_v6, 4  ;;  %v5254_v23 = vld [vmem:[%s6538_s14 + $0x20] sm:$0x1]  ;;  %v6408_v32 = vld [vmem:[%s8211_s1 + $0x1f0] sm:$0xff]  }
  0x78   : > { %4061 = vmatprep.mubr.bf16.mxu1 %v6389_v48  ;;  %3932 = vmatprep.mubr.bf16.mxu0 %v5099_v10  ;;  %v719_v45 = vsel %vm6563_vm2, %v714_v34, %v718_v22  ;;  %v1958_v48 = vrot.slane %v5251_v44, 5  ;;  %v1065_v10 = vrot.slane %v1063_v63, 4  ;;  %v5253_v22 = vld [vmem:[%s6538_s14 + $0x1c] sm:$0xf] }
  0x79   : > { %v724_v38 = vrot.slane %v723_v29, 4  ;;  %v1410_v20 = vor.u32 %v1409_v14, %v1405_v13  ;;  %v1962_v25 = vrot.slane %v5253_v22, 5  ;;  %v1965_v29 = vrot.slane %v5254_v23, 5 }
  0x7a   : > { %v1959_v4 = vsel %vm6703_vm5, %v1957_v60, %v1958_v48  ;;  %v1067_v16 = vsel %vm6703_vm5, %v1065_v10, %v1066_v0  ;;  %v1072_v48 = vrot.slane %v1070_v37, 4  ;;  %v6402_v60 = vld [vmem:[%s6538_s14 + $0x84] sm:$0xff]   ;;  %v938_v10 = vld [vmem:[%s6538_s14 + $0x80] sm:$0x1] }
  0x7b   : > { %v729_v51 = vsel %vm6563_vm2, %v724_v38, %v728_v24  ;;  %v5313_v8 = vcombine.low %v1956_v59, %v1959_v4  ;;  %v5129_v18 = vcombine.low %v1064_v9, %v1067_v16  ;;  %v5298_v24 = vrot.slane %v5252_v21, 9  ;;  %v5188_v38 = vld [vmem:[%s6538_s14 + $0x18] sm:$0xf]  ;;  %v6405_v4 = vld [vmem:[%s8211_s1 + $0x1a8] sm:$0xff]   ;;  %v937_v9 = vld [vmem:[%s6538_s14 + $0x7c] sm:$0xf] }
  0x7c   : > { %v5100_v57 = vcombine.low %v719_v45, %v729_v51  ;;  %v1411_v28 = vrot.slane %v1410_v20, 4  ;;  %v1964_v34 = vrot.slane %v1962_v25, 4  ;;  %v1418_v44 = vshrl.u32 %v5188_v38, 16  ;;  %6103 = vmatpush3.bf16.msra.mxu1 %v6405_v4  ;;  %v6409_v4 = vld [vmem:[%s8211_s1 + $0x210] sm:$0xff]  }
  0x7d   : > { %v1963_v33 = vsel %vm6703_vm5, %v5298_v24, %v1962_v25  ;;  %v1421_v53 = vshll.u32 %v5188_v38, 16  ;;  %v1437_v59 = vshll.u32 %v5190_v43, 16  ;;  %v6406_v38 = vld [vmem:[%s6538_s14 + $0x90] sm:$0xff]   ;;  %6104 = vmatprep.subr.bf16.mxu1 %v6408_v32  ;;  %v944_v32 = vld [vmem:[%s6538_s14 + $0x98] sm:$0x1] }
  0x7e   : > { %v1966_v46 = vsel %vm6703_vm5, %v1964_v34, %v1965_v29  ;;  %v1420_v52 = vrot.slane %v1418_v44, 4  ;;  %v5258_v44 = vld [vmem:[%s6538_s14 + $0x30] sm:$0xe] }
  0x7f   : > { %4062 = vmatmul.mubr.bf16.gmra.mrb[40].mxu1 %v5127_v11  ;;  %3933 = vmatmul.mubr.bf16.gmra.mrb[40].mxu0 %v6390_v1  ;;  %v5187_v1 = vld [vmem:[%s6538_s14 + $0x14] sm:$0x1]  ;;  %v1396_v11 = vrot.slane %v1394_v2, 4  ;;  %v5314_v51 = vcombine.low %v1963_v33, %v1966_v46  ;;  %v1423_v0 = vrot.slane %v1421_v53, 5  ;;  %v5299_v2 = vrot.slane %v5255_v55, 9 }
  0x80   : > { %4069 = vmatprep.mubr.bf16.mxu1 %v6395_v19  ;;  %3940 = vmatprep.mubr.bf16.mxu0 %v5100_v57  ;;  %v1413_v7 = vshll.u32 %v5187_v1, 16  ;;  %v1074_v57 = vsel %vm6703_vm5, %v1072_v48, %v1073_v41  ;;  %v1439_v6 = vrot.slane %v1437_v59, 5  ;;  %v5260_v46 = vld [vmem:[%s6538_s14 + $0x38] sm:$0x1]  ;;  %v5300_v49 = vrot.slane %v5258_v44, 9 }
  0x81   : > { %v1400_v19 = vor.u32 %v1399_v12, %v1396_v11  ;;  %v5130_v63 = vcombine.low %v1071_v47, %v1074_v57  ;;  %v5115_v11 = vrot.slane %v936_v3, 9  ;;  %v1077_v12 = vrot.slane %v937_v9, 5  ;;  %v940_v55 = vld [vmem:[%s6538_s14 + $0x88] sm:$0xf]  ;;  %v6410_v9 = vld [vmem:[%s8211_s1 + $0x1b0] sm:$0xff]  }
  0x82   : > { %v1415_v15 = vrot.slane %v1413_v7, 5  ;;  %v1969_v7 = vrot.slane %v5256_v61, 5  ;;  %v5194_v61 = vld [vmem:[%s6538_s14 + $0x30] sm:$0xf]  ;;  %6105 = vmatpush3.bf16.msra.mxu1 %v6410_v9  ;;  %v5199_v44 = vld [vmem:[%s6538_s14 + $0x44] sm:$0x1] }
  0x83   : > { %v1401_v27 = vrot.slane %v1400_v19, 4  ;;  %v5193_v19 = vld [vmem:[%s6538_s14 + $0x2c] sm:$0x1]  ;;  %v1078_v21 = vsel %vm6703_vm5, %v5115_v11, %v1077_v12  ;;  %v1079_v22 = vrot.slane %v1077_v12, 4  ;;  %v1466_v3 = vshrl.u32 %v5194_v61, 16 }
  0x84   : > { %v1416_v40 = vsel %vm6563_vm2, %v1411_v28, %v1415_v15  ;;  %v1970_v15 = vsel %vm6703_vm5, %v5299_v2, %v1969_v7  ;;  %v1971_v16 = vrot.slane %v1969_v7, 4  ;;  %v5196_v2 = vld [vmem:[%s6538_s14 + $0x38] sm:$0x1]  ;;  %v1469_v7 = vshll.u32 %v5194_v61, 16 }
  0x85   : > { %v1468_v12 = vrot.slane %v1466_v3, 4 }
  0x87   : > { %4070 = vmatmul.mubr.bf16.gmra.mrb[44].mxu1 %v5128_v58  ;;  %3941 = vmatmul.mubr.bf16.gmra.mrb[44].mxu0 %v6396_v39  ;;  %v1406_v39 = vsel %vm6563_vm2, %v1401_v27, %v1405_v13  ;;  %v5191_v13 = vld [vmem:[%s6538_s14 + $0x24] sm:$0xf] }
  0x88   : > { %4077 = vmatprep.mubr.bf16.mxu1 %v6397_v42  ;;  %4174 = vmatprep.mubr.bf16.mxu0 %v5313_v8  ;;  %v5189_v42 = vld [vmem:[%s6538_s14 + $0x1c] sm:$0xf]  ;;  %v5233_v45 = vcombine.low %v1406_v39, %v1416_v40  ;;  %v1972_v8 = vrot.slane %v5257_v62, 5  ;;  %v1442_v23 = vshrl.u32 %v5191_v13, 16  ;;  %v1445_v26 = vshll.u32 %v5191_v13, 16 }
  0x89   : > { %v1427_v54 = vshll.u32 %v5189_v42, 16  ;;  %v1431_v58 = vshrl.u32 %v5189_v42, 16  ;;  %v1461_v42 = vshll.u32 %v5193_v19, 16  ;;  %v5195_v62 = vld [vmem:[%s6538_s14 + $0x34] sm:$0xf] }
  0x8a   : > { %v1973_v25 = vsel %vm6703_vm5, %v1971_v16, %v1972_v8  ;;  %v1444_v30 = vrot.slane %v1442_v23, 4  ;;  %v1447_v36 = vrot.slane %v1445_v26, 5  ;;  %v1475_v8 = vshll.u32 %v5195_v62, 16  ;;  %v5261_v13 = vld [vmem:[%s6538_s14 + $0x3c] sm:$0xe] }
  0x8b   : > { %v1429_v1 = vrot.slane %v1427_v54, 5  ;;  %v1433_v5 = vrot.slane %v1431_v58, 4  ;;  %v5315_v34 = vcombine.low %v1970_v15, %v1973_v25  ;;  %v1463_v48 = vrot.slane %v1461_v42, 5  ;;  %v5262_v19 = vld [vmem:[%s6538_s14 + $0x40] sm:$0xf] }
  0x8c   : > { %v1448_v43 = vor.u32 %v1447_v36, %v1444_v30  ;;  %v1979_v54 = vrot.slane %v5260_v46, 5  ;;  %v1471_v15 = vrot.slane %v1469_v7, 5  ;;  %v1477_v16 = vrot.slane %v1475_v8, 5  ;;  %v5263_v23 = vld [vmem:[%s6538_s14 + $0x44] sm:$0x1] }
  0x8d   : > { %v1434_v14 = vor.u32 %v1433_v5, %v1429_v1  ;;  %v942_v25 = vld [vmem:[%s6538_s14 + $0x90] sm:$0xe]  ;;  %v943_v30 = vld [vmem:[%s6538_s14 + $0x94] sm:$0xf] }
  0x8e   : > { %v1449_v53 = vrot.slane %v1448_v43, 4  ;;  %v5117_v36 = vrot.slane %v942_v25, 9  ;;  %v5198_v43 = vld [vmem:[%s6538_s14 + $0x40] sm:$0xf]  ;;  %v5201_v25 = vld [vmem:[%s6538_s14 + $0x4c] sm:$0xf] }
  0x8f   : > { %4078 = vmatmul.mubr.bf16.gmra.mrb[48].mxu1 %v5129_v18  ;;  %4175 = vmatmul.mubr.bf16.vlgmr.msra.gmra.mrb[48].mxu0 %v5233_v45  ;;  %v5192_v18 = vld [vmem:[%s6538_s14 + $0x28] sm:$0xf]  ;;  %v1435_v24 = vrot.slane %v1434_v14, 4  ;;  %v5259_v45 = vld [vmem:[%s6538_s14 + $0x34] sm:$0xf] }
  0x90   : > { %4085 = vmatprep.mubr.bf16.mxu1 %v6401_v17  ;;  %6229 = vmatpush3.bf16.msra.mxu0 %v6892_v50  ;;  %v1424_v50 = vor.u32 %v1423_v0, %v1420_v52  ;;  %v1080_v17 = vrot.slane %v938_v10, 5  ;;  %v1451_v27 = vshll.u32 %v5192_v18, 16  ;;  %v1455_v41 = vshrl.u32 %v5192_v18, 16  ;;  %v939_v52 = vld [vmem:[%s6538_s14 + $0x84] sm:$0xe]  ;;  %v6407_v18 = vld [vmem:[%s6538_s14 + $0x9c] sm:$0xff]  }
  0x91   : > { %4182 = vmatprep.mubr.bf16.mxu0 %v5314_v51  ;;  %6230 = vmatprep.subr.bf16.mxu0 %v6404_v56  ;;  %v1440_v33 = vsel %vm6563_vm2, %v1435_v24, %v1439_v6  ;;  %v1976_v51 = vrot.slane %v5259_v45, 5  ;;  %v1084_v0 = vrot.slane %v940_v55, 5  ;;  %v5301_v24 = vrot.slane %v5261_v13, 9 }
  0x92   : > { %v1425_v20 = vrot.slane %v1424_v50, 4  ;;  %v1081_v29 = vsel %vm6703_vm5, %v1079_v22, %v1080_v17  ;;  %v1453_v37 = vrot.slane %v1451_v27, 5  ;;  %v1457_v47 = vrot.slane %v1455_v41, 4 }
  0x93   : > { %v5131_v40 = vcombine.low %v1078_v21, %v1081_v29  ;;  %v1977_v58 = vsel %vm6703_vm5, %v5300_v49, %v1976_v51  ;;  %v1978_v59 = vrot.slane %v1976_v51, 4  ;;  %v1086_v11 = vrot.slane %v1084_v0, 4 }
  0x94   : > { %6231 = vmatpush3.bf16.msra.mxu0 %v6404_v56  ;;  %v1430_v28 = vsel %vm6563_vm2, %v1425_v20, %v1429_v1  ;;  %v941_v56 = vld [vmem:[%s6538_s14 + $0x8c] sm:$0x1]  ;;  %v1458_v57 = vor.u32 %v1457_v47, %v1453_v37  ;;  %v1479_v17 = vshrl.u32 %v5195_v62, 16  ;;  %v1485_v22 = vshll.u32 %v5196_v2, 16  ;;  %v5264_v2 = vld [vmem:[%s6538_s14 + $0x48] sm:$0xe] }
  0x95   : > { %v5234_v39 = vcombine.low %v1430_v28, %v1440_v33  ;;  %v1087_v1 = vrot.slane %v941_v56, 5  ;;  %v1980_v6 = vsel %vm6703_vm5, %v1978_v59, %v1979_v54  ;;  %6232 = vmatprep.subr.bf16.mxu0 %v6409_v4  ;;  %v1472_v27 = vor.u32 %v1471_v15, %v1468_v12  ;;  %v947_v15 = vld [vmem:[%s6538_s14 + $0xa4] sm:$0x1] }
  0x96   : > { %v1459_v5 = vrot.slane %v1458_v57, 4  ;;  %v5316_v50 = vcombine.low %v1977_v58, %v1980_v6  ;;  %v1481_v28 = vrot.slane %v1479_v17, 4  ;;  %v1983_v29 = vrot.slane %v5262_v19, 5  ;;  %v6411_v58 = vld [vmem:[%s6538_s14 + $0xa8] sm:$0xff]   ;;  %v5266_v6 = vld [vmem:[%s6538_s14 + $0x50] sm:$0x1] }
  0x97   : > { %4086 = vmatmul.mubr.bf16.gmra.mrb[52].mxu1 %v5130_v63  ;;  %4183 = vmatmul.mubr.bf16.gmra.mrb[52].mxu0 %v5234_v39  ;;  %v1454_v63 = vsel %vm6563_vm2, %v1449_v53, %v1453_v37  ;;  %v1088_v21 = vsel %vm6703_vm5, %v1086_v11, %v1087_v1  ;;  %v1487_v33 = vrot.slane %v1485_v22, 5  ;;  %v1091_v37 = vrot.slane %v943_v30, 5  ;;  %v6413_v11 = vld [vmem:[%s8211_s1 + $0x1f8] sm:$0xff]  }
  0x98   : > { %4093 = vmatprep.mubr.bf16.mxu1 %v6402_v60  ;;  %4190 = vmatprep.mubr.bf16.mxu0 %v5315_v34  ;;  %v5116_v60 = vrot.slane %v939_v52, 9  ;;  %v1464_v14 = vsel %vm6563_vm2, %v1459_v5, %v1463_v48  ;;  %v1986_v34 = vrot.slane %v5263_v23, 5  ;;  %v1473_v39 = vrot.slane %v1472_v27, 4  ;;  %v5265_v5 = vld [vmem:[%s6538_s14 + $0x4c] sm:$0xf]  ;;  %v6414_v22 = vld [vmem:[%s8211_s1 + $0x218] sm:$0xff]  }
  0x99   : > { %6233 = vmatpush3.bf16.msra.mxu0 %v6409_v4  ;;  %v5235_v20 = vcombine.low %v1454_v63, %v1464_v14  ;;  %v1984_v41 = vsel %vm6703_vm5, %v5301_v24, %v1983_v29  ;;  %v1985_v42 = vrot.slane %v1983_v29, 4  ;;  %v1092_v45 = vsel %vm6703_vm5, %v5117_v36, %v1091_v37  ;;  %v946_v14 = vld [vmem:[%s6538_s14 + $0xa0] sm:$0xf]  ;;  %6106 = vmatprep.subr.bf16.mxu1 %v6413_v11 }
  0x9a   : > { %v1085_v10 = vsel %vm6703_vm5, %v5116_v60, %v1084_v0  ;;  %v1093_v46 = vrot.slane %v1091_v37, 4  ;;  %v1094_v47 = vrot.slane %v944_v32, 5  ;;  %v1478_v49 = vsel %vm6563_vm2, %v1473_v39, %v1477_v16  ;;  %6234 = vmatprep.subr.bf16.mxu0 %v6414_v22  ;;  %v5267_v39 = vld [vmem:[%s6538_s14 + $0x54] sm:$0xe] }
  0x9b   : > { %v5132_v26 = vcombine.low %v1085_v10, %v1088_v21  ;;  %v1987_v52 = vsel %vm6703_vm5, %v1985_v42, %v1986_v34  ;;  %v1499_v57 = vshll.u32 %v5198_v43, 16  ;;  %v1503_v62 = vshrl.u32 %v5198_v43, 16  ;;  %v945_v10 = vld [vmem:[%s6538_s14 + $0x9c] sm:$0xe]  ;;  %v5200_v21 = vld [vmem:[%s6538_s14 + $0x48] sm:$0xf] }
  0x9c   : > { %v5317_v54 = vcombine.low %v1984_v41, %v1987_v52  ;;  %v1095_v55 = vsel %vm6703_vm5, %v1093_v46, %v1094_v47  ;;  %v1509_v1 = vshll.u32 %v5199_v44, 16  ;;  %v5302_v7 = vrot.slane %v5264_v2, 9  ;;  %v948_v46 = vld [vmem:[%s6538_s14 + $0xa8] sm:$0xe]  ;;  %v949_v52 = vld [vmem:[%s6538_s14 + $0xac] sm:$0xf] }
  0x9d   : > { %v5133_v60 = vcombine.low %v1092_v45, %v1095_v55  ;;  %v1501_v0 = vrot.slane %v1499_v57, 5  ;;  %v1505_v4 = vrot.slane %v1503_v62, 4  ;;  %v1990_v9 = vrot.slane %v5265_v5, 5  ;;  %6235 = vmatpush3.bf16.msra.mxu0 %v6414_v22  ;;  %v5269_v45 = vld [vmem:[%s6538_s14 + $0x5c] sm:$0x1] }
  0x9e   : > { %v1511_v8 = vrot.slane %v1509_v1, 5  ;;  %v1098_v19 = vrot.slane %v946_v14, 5  ;;  %v1514_v27 = vshrl.u32 %v5200_v21, 16  ;;  %v1517_v32 = vshll.u32 %v5200_v21, 16  ;;  %v5205_v5 = vld [vmem:[%s6538_s14 + $0x5c] sm:$0x1] }
  0x9f   : > { %4094 = vmatmul.mubr.bf16.gmra.mrb[56].mxu1 %v5131_v40  ;;  %4191 = vmatmul.mubr.bf16.gmra.mrb[56].mxu0 %v5235_v20  ;;  %v1482_v40 = vor.u32 %v1481_v28, %v1477_v16  ;;  %v1506_v13 = vor.u32 %v1505_v4, %v1501_v0  ;;  %v5118_v16 = vrot.slane %v945_v10, 9  ;;  %v1991_v17 = vsel %vm6703_vm5, %v5302_v7, %v1990_v9  ;;  %v5204_v4 = vld [vmem:[%s6538_s14 + $0x58] sm:$0xf] }
  0xa0   : > { %4101 = vmatprep.mubr.bf16.mxu1 %v6406_v38  ;;  %v5197_v38 = vld [vmem:[%s6538_s14 + $0x3c] sm:$0xf]  ;;  %4198 = vmatprep.mubr.bf16.mxu0 %v5316_v50  ;;  %v1993_v50 = vrot.slane %v5266_v6, 5  ;;  %v1101_v20 = vrot.slane %v947_v15, 5  ;;  %v1100_v30 = vrot.slane %v1098_v19, 4  ;;  %v1516_v37 = vrot.slane %v1514_v27, 4 }
  0xa1   : > { %v1490_v48 = vshrl.u32 %v5197_v38, 16  ;;  %v1483_v51 = vrot.slane %v1482_v40, 4  ;;  %v1493_v53 = vshll.u32 %v5197_v38, 16  ;;  %v1507_v24 = vrot.slane %v1506_v13, 4  ;;  %v5268_v40 = vld [vmem:[%s6538_s14 + $0x58] sm:$0xf] }
  0xa2   : > { %v1099_v29 = vsel %vm6703_vm5, %v5118_v16, %v1098_v19  ;;  %v1523_v38 = vshll.u32 %v5201_v25, 16  ;;  %v1102_v42 = vsel %vm6703_vm5, %v1100_v30, %v1101_v20  ;;  %v1519_v43 = vrot.slane %v1517_v32, 5  ;;  %v6416_v13 = vld [vmem:[%s6538_s14 + $0xc0] sm:$0xff]  }
  0xa3   : > { %v1492_v56 = vrot.slane %v1490_v48, 4  ;;  %v1488_v59 = vsel %vm6563_vm2, %v1483_v51, %v1487_v33  ;;  %v1495_v61 = vrot.slane %v1493_v53, 5  ;;  %v6412_v33 = vld [vmem:[%s6538_s14 + $0xb4] sm:$0xff]   ;;  %v1512_v34 = vsel %vm6563_vm2, %v1507_v24, %v1511_v8 }
  0xa4   : > { %v5236_v63 = vcombine.low %v1478_v49, %v1488_v59  ;;  %v1527_v44 = vshrl.u32 %v5201_v25, 16  ;;  %v5134_v47 = vcombine.low %v1099_v29, %v1102_v42  ;;  %v1525_v48 = vrot.slane %v1523_v38, 5  ;;  %v6415_v53 = vld [vmem:[%s8211_s1 + $0x1b8] sm:$0xff]   ;;  %v5270_v25 = vld [vmem:[%s6538_s14 + $0x60] sm:$0xe] }
  0xa5   : > { %v1496_v3 = vor.u32 %v1495_v61, %v1492_v56  ;;  %v5303_v51 = vrot.slane %v5267_v39, 9  ;;  %v1997_v56 = vrot.slane %v5268_v40, 5  ;;  %v2000_v57 = vrot.slane %v5269_v45, 5  ;;  %6107 = vmatpush3.bf16.msra.mxu1 %v6415_v53  ;;  %v5272_v29 = vld [vmem:[%s6538_s14 + $0x68] sm:$0x1] }
  0xa6   : > { %v1529_v55 = vrot.slane %v1527_v44, 4  ;;  %v1105_v61 = vrot.slane %v949_v52, 5  ;;  %v1551_v21 = vshrl.u32 %v5204_v4, 16  ;;  %v1557_v24 = vshll.u32 %v5205_v5, 16  ;;  %v952_v39 = vld [vmem:[%s6538_s14 + $0xb8] sm:$0xf] }
  0xa7   : > { %4102 = vmatmul.mubr.bf16.gmra.mrb[60].mxu1 %v5132_v26  ;;  %4199 = vmatmul.mubr.bf16.gmra.mrb[60].mxu0 %v5236_v63  ;;  %v1497_v12 = vrot.slane %v1496_v3, 4  ;;  %v5202_v26 = vld [vmem:[%s6538_s14 + $0x50] sm:$0x1]  ;;  %v5203_v63 = vld [vmem:[%s6538_s14 + $0x54] sm:$0xf]  ;;  %v1998_v2 = vsel %vm6703_vm5, %v5303_v51, %v1997_v56  ;;  %v1999_v3 = vrot.slane %v1997_v56, 4 }
  0xa8   : > { %4109 = vmatprep.mubr.bf16.mxu1 %v6407_v18  ;;  %4206 = vmatprep.mubr.bf16.mxu0 %v5317_v54  ;;  %v1992_v18 = vrot.slane %v1990_v9, 4  ;;  %v1533_v49 = vshll.u32 %v5202_v26, 16  ;;  %v1520_v54 = vor.u32 %v1519_v43, %v1516_v37  ;;  %v1530_v1 = vor.u32 %v1529_v55, %v1525_v48  ;;  %v6418_v26 = vld [vmem:[%s8211_s1 + $0x220] sm:$0xff]   ;;  %v953_v40 = vld [vmem:[%s6538_s14 + $0xbc] sm:$0x1] }
  0xa9   : > { %v1502_v23 = vsel %vm6563_vm2, %v1497_v12, %v1501_v0  ;;  %v1107_v7 = vrot.slane %v1105_v61, 4  ;;  %v1538_v8 = vshrl.u32 %v5203_v63, 16  ;;  %v1541_v9 = vshll.u32 %v5203_v63, 16  ;;  %6236 = vmatprep.subr.bf16.mxu0 %v6418_v26  ;;  %v5208_v51 = vld [vmem:[%s6538_s14 + $0x68] sm:$0x1] }
  0xaa   : > { %v1994_v28 = vsel %vm6703_vm5, %v1992_v18, %v1993_v50  ;;  %v5237_v41 = vcombine.low %v1502_v23, %v1512_v34  ;;  %v1535_v59 = vrot.slane %v1533_v49, 5  ;;  %v1521_v0 = vrot.slane %v1520_v54, 4  ;;  %6237 = vmatpush3.bf16.msra.mxu0 %v6418_v26 }
  0xab   : > { %v5318_v36 = vcombine.low %v1991_v17, %v1994_v28  ;;  %v1531_v10 = vrot.slane %v1530_v1, 4  ;;  %v2001_v11 = vsel %vm6703_vm5, %v1999_v3, %v2000_v57  ;;  %v1547_v12 = vshll.u32 %v5204_v4, 16  ;;  %v5271_v28 = vld [vmem:[%s6538_s14 + $0x64] sm:$0xf]  ;;  %v5377_v1 = vld [vmem:[%s6538_s14 + $0x18] sm:$0xf] }
  0xac   : > { %v1526_v50 = vsel %vm6563_vm2, %v1521_v0, %v1525_v48  ;;  %v5319_v14 = vcombine.low %v1998_v2, %v2001_v11  ;;  %v1540_v16 = vrot.slane %v1538_v8, 4  ;;  %v1543_v17 = vrot.slane %v1541_v9, 5  ;;  %v5275_v0 = vld [vmem:[%s6538_s14 + $0x74] sm:$0x1] }
  0xad   : > { %v1536_v18 = vsel %vm6563_vm2, %v1531_v10, %v1535_v59  ;;  %v1549_v20 = vrot.slane %v1547_v12, 5  ;;  %v1553_v27 = vrot.slane %v1551_v21, 4  ;;  %v5304_v30 = vrot.slane %v5270_v25, 9  ;;  %v5274_v59 = vld [vmem:[%s6538_s14 + $0x70] sm:$0xf] }
  0xae   : > { %v5238_v22 = vcombine.low %v1526_v50, %v1536_v18  ;;  %v1544_v23 = vor.u32 %v1543_v17, %v1540_v16  ;;  %v2007_v34 = vrot.slane %v5272_v29, 5  ;;  %v1559_v38 = vrot.slane %v1557_v24, 5  ;;  %v5379_v10 = vld [vmem:[%s6538_s14 + $0x20] sm:$0x1] }
  0xaf   : > { %4110 = vmatmul.mubr.bf16.gmra.mrb[64].mxu1 %v5133_v60  ;;  %4207 = vmatmul.mubr.bf16.gmra.mrb[64].mxu0 %v5237_v41  ;;  %v5119_v60 = vrot.slane %v948_v46, 9  ;;  %v1554_v37 = vor.u32 %v1553_v27, %v1549_v20  ;;  %v1112_v45 = vrot.slane %v952_v39, 5  ;;  %v5206_v46 = vld [vmem:[%s6538_s14 + $0x60] sm:$0xf]  ;;  %v1115_v49 = vrot.slane %v953_v40, 5 }
  0xb0   : > { %4117 = vmatprep.mubr.bf16.mxu1 %v6411_v58  ;;  %v950_v58 = vld [vmem:[%s6538_s14 + $0xb0] sm:$0x1]  ;;  %4214 = vmatprep.mubr.bf16.mxu0 %v5318_v36  ;;  %v1545_v32 = vrot.slane %v1544_v23, 4  ;;  %v951_v36 = vld [vmem:[%s6538_s14 + $0xb4] sm:$0xe]  ;;  %v1562_v52 = vshrl.u32 %v5206_v46, 16 }
  0xb1   : > { %v1108_v62 = vrot.slane %v950_v58, 5  ;;  %v1106_v6 = vsel %vm6703_vm5, %v5119_v60, %v1105_v61  ;;  %v5120_v41 = vrot.slane %v951_v36, 9  ;;  %v1555_v48 = vrot.slane %v1554_v37, 4  ;;  %v5273_v58 = vld [vmem:[%s6538_s14 + $0x6c] sm:$0xe] }
  0xb2   : > { %v1550_v42 = vsel %vm6563_vm2, %v1545_v32, %v1549_v20  ;;  %v1565_v53 = vshll.u32 %v5206_v46, 16  ;;  %v1114_v56 = vrot.slane %v1112_v45, 4  ;;  %v1581_v9 = vshll.u32 %v5208_v51, 16  ;;  %v5210_v20 = vld [vmem:[%s6538_s14 + $0x70] sm:$0xf] }
  0xb3   : > { %v1109_v15 = vsel %vm6703_vm5, %v1107_v7, %v1108_v62  ;;  %v1113_v55 = vsel %vm6703_vm5, %v5120_v41, %v1112_v45  ;;  %v1560_v60 = vsel %vm6563_vm2, %v1555_v48, %v1559_v38  ;;  %v1564_v62 = vrot.slane %v1562_v52, 4  ;;  %v5211_v39 = vld [vmem:[%s6538_s14 + $0x74] sm:$0x1]  ;;  %v5276_v41 = vld [vmem:[%s6538_s14 + $0x78] sm:$0xe] }
  0xb4   : > { %v5135_v19 = vcombine.low %v1106_v6, %v1109_v15  ;;  %v1567_v63 = vrot.slane %v1565_v53, 5  ;;  %v5239_v2 = vcombine.low %v1550_v42, %v1560_v60  ;;  %v1116_v3 = vsel %vm6703_vm5, %v1114_v56, %v1115_v49  ;;  %v5378_v6 = vld [vmem:[%s6538_s14 + $0x1c] sm:$0xf]  ;;  %v5209_v15 = vld [vmem:[%s6538_s14 + $0x6c] sm:$0xf] }
  0xb5   : > { %v5136_v7 = vcombine.low %v1113_v55, %v1116_v3  ;;  %v5305_v50 = vrot.slane %v5273_v58, 9  ;;  %v2011_v12 = vrot.slane %v5274_v59, 5  ;;  %v1583_v17 = vrot.slane %v1581_v9, 5  ;;  %v5277_v46 = vld [vmem:[%s6538_s14 + $0x7c] sm:$0xf] }
  0xb6   : > { %v1568_v8 = vor.u32 %v1567_v63, %v1564_v62  ;;  %v2345_v18 = vshll.u32 %v5377_v1, 16  ;;  %v2361_v32 = vshll.u32 %v5379_v10, 16  ;;  %v1589_v40 = vshll.u32 %v5209_v15, 16  ;;  %v5278_v52 = vld [vmem:[%s6538_s14 + $0x80] sm:$0x1] }
  0xb7   : > { %4118 = vmatmul.mubr.bf16.gmra.mrb[68].mxu1 %v5134_v47  ;;  %4215 = vmatmul.mubr.bf16.gmra.mrb[68].mxu0 %v5238_v22  ;;  %v5207_v47 = vld [vmem:[%s6538_s14 + $0x64] sm:$0xf]  ;;  %v2012_v22 = vsel %vm6703_vm5, %v5305_v50, %v2011_v12  ;;  %v2013_v23 = vrot.slane %v2011_v12, 4  ;;  %v1595_v45 = vshll.u32 %v5210_v20, 16  ;;  %v1599_v55 = vshrl.u32 %v5210_v20, 16 }
  0xb8   : > { %4125 = vmatprep.mubr.bf16.mxu1 %v6412_v33  ;;  %v2004_v33 = vrot.slane %v5271_v28, 5  ;;  %4222 = vmatprep.mubr.bf16.mxu0 %v5319_v14  ;;  %v1571_v57 = vshll.u32 %v5207_v47, 16  ;;  %v1575_v5 = vshrl.u32 %v5207_v47, 16  ;;  %v2342_v14 = vshrl.u32 %v5377_v1, 16  ;;  %v5380_v53 = vld [vmem:[%s6538_s14 + $0x24] sm:$0xf] }
  0xb9   : > { %v1569_v16 = vrot.slane %v1568_v8, 4  ;;  %v2347_v26 = vrot.slane %v2345_v18, 5  ;;  %v2355_v28 = vshrl.u32 %v5378_v6, 16  ;;  %v1591_v51 = vrot.slane %v1589_v40, 5  ;;  %v5381_v63 = vld [vmem:[%s6538_s14 + $0x28] sm:$0xf] }
  0xba   : > { %v2005_v43 = vsel %vm6703_vm5, %v5304_v30, %v2004_v33  ;;  %v2006_v44 = vrot.slane %v2004_v33, 4  ;;  %v1573_v4 = vrot.slane %v1571_v57, 5  ;;  %v1577_v11 = vrot.slane %v1575_v5, 4  ;;  %v5382_v8 = vld [vmem:[%s6538_s14 + $0x2c] sm:$0x1] }
  0xbb   : > { %v2344_v24 = vrot.slane %v2342_v14, 4  ;;  %v1586_v33 = vshrl.u32 %v5209_v15, 16  ;;  %v2357_v38 = vrot.slane %v2355_v28, 4  ;;  %v1605_v56 = vshll.u32 %v5211_v39, 16  ;;  %v5212_v12 = vld [vmem:[%s6538_s14 + $0x78] sm:$0xf] }
  0xbc   : > { %v2008_v54 = vsel %vm6703_vm5, %v2006_v44, %v2007_v34  ;;  %v1578_v21 = vor.u32 %v1577_v11, %v1573_v4  ;;  %v1574_v25 = vsel %vm6563_vm2, %v1569_v16, %v1573_v4  ;;  %v6421_v34 = vld [vmem:[%s8211_s1 + $0x228] sm:$0xff]   ;;  %v5306_v57 = vrot.slane %v5276_v41, 9  ;;  %v5383_v40 = vld [vmem:[%s6538_s14 + $0x30] sm:$0xf] }
  0xbd   : > { %v5320_v61 = vcombine.low %v2005_v43, %v2008_v54  ;;  %v2348_v37 = vor.u32 %v2347_v26, %v2344_v24  ;;  %v2363_v43 = vrot.slane %v2361_v32, 5  ;;  %v1588_v44 = vrot.slane %v1586_v33, 4  ;;  %6238 = vmatprep.subr.bf16.mxu0 %v6421_v34  ;;  %v5280_v33 = vld [vmem:[%s6538_s14 + $0x88] sm:$0xf] }
  0xbe   : > { %v1579_v29 = vrot.slane %v1578_v21, 4  ;;  %6239 = vmatpush3.bf16.msra.mxu0 %v6421_v34  ;;  %v1597_v54 = vrot.slane %v1595_v45, 5  ;;  %v2018_v62 = vrot.slane %v5277_v46, 5  ;;  %v1607_v1 = vrot.slane %v1605_v56, 5  ;;  %v5281_v34 = vld [vmem:[%s6538_s14 + $0x8c] sm:$0x1] }
  0xbf   : > { %4126 = vmatmul.mubr.bf16.gmra.mrb[72].mxu1 %v5135_v19  ;;  %4223 = vmatmul.mubr.bf16.gmra.mrb[72].mxu0 %v5239_v2  ;;  %v2351_v19 = vshll.u32 %v5378_v6, 16  ;;  %v2349_v48 = vrot.slane %v2348_v37, 4  ;;  %v1592_v60 = vor.u32 %v1591_v51, %v1588_v44  ;;  %v2021_v2 = vrot.slane %v5278_v52, 5 }
  0xc0   : > { %4133 = vmatprep.mubr.bf16.mxu1 %v6416_v13  ;;  %v2014_v13 = vrot.slane %v5275_v0, 5  ;;  %4230 = vmatprep.mubr.bf16.mxu0 %v5320_v61  ;;  %v1584_v42 = vsel %vm6563_vm2, %v1579_v29, %v1583_v17  ;;  %v6417_v61 = vld [vmem:[%s6538_s14 + $0x18] sm:$0xff]   ;;  %v1601_v0 = vrot.slane %v1599_v55, 4  ;;  %v2366_v3 = vshrl.u32 %v5380_v53, 16  ;;  %v5384_v55 = vld [vmem:[%s6538_s14 + $0x34] sm:$0xf] }
  0xc1   : > { %v2353_v27 = vrot.slane %v2351_v19, 5  ;;  %v5240_v47 = vcombine.low %v1574_v25, %v1584_v42  ;;  %v1593_v5 = vrot.slane %v1592_v60, 4  ;;  %v2019_v6 = vsel %vm6703_vm5, %v5306_v57, %v2018_v62  ;;  %v5213_v17 = vld [vmem:[%s6538_s14 + $0x7c] sm:$0xf] }
  0xc2   : > { %v2015_v30 = vsel %vm6703_vm5, %v2013_v23, %v2014_v13  ;;  %v1602_v50 = vor.u32 %v1601_v0, %v1597_v54  ;;  %v2368_v10 = vrot.slane %v2366_v3, 4  ;;  %v2369_v11 = vshll.u32 %v5380_v53, 16 }
  0xc3   : > { %v5321_v36 = vcombine.low %v2012_v22, %v2015_v30  ;;  %v2358_v49 = vor.u32 %v2357_v38, %v2353_v27  ;;  %v2354_v58 = vsel %vm6563_vm2, %v2349_v48, %v2353_v27  ;;  %v1598_v13 = vsel %vm6563_vm2, %v1593_v5, %v1597_v54  ;;  %v5214_v22 = vld [vmem:[%s6538_s14 + $0x80] sm:$0x1]  ;;  %v5279_v27 = vld [vmem:[%s6538_s14 + $0x84] sm:$0xe] }
  0xc4   : > { %v2375_v15 = vshll.u32 %v5381_v63, 16  ;;  %v2379_v16 = vshrl.u32 %v5381_v63, 16  ;;  %v1603_v18 = vrot.slane %v1602_v50, 4  ;;  %v2371_v20 = vrot.slane %v2369_v11, 5  ;;  %v5385_v63 = vld [vmem:[%s6538_s14 + $0x38] sm:$0x1] }
  0xc5   : > { %v2359_v59 = vrot.slane %v2358_v49, 4  ;;  %v2385_v21 = vshll.u32 %v5382_v8, 16  ;;  %v1610_v25 = vshrl.u32 %v5212_v12, 16  ;;  %v1613_v26 = vshll.u32 %v5212_v12, 16  ;;  %v6424_v49 = vld [vmem:[%s8211_s1 + $0x230] sm:$0xff]  }
  0xc6   : > { %v2377_v23 = vrot.slane %v2375_v15, 5  ;;  %v2381_v24 = vrot.slane %v2379_v16, 4  ;;  %v1608_v28 = vsel %vm6563_vm2, %v1603_v18, %v1607_v1  ;;  %v2372_v29 = vor.u32 %v2371_v20, %v2368_v10  ;;  %6240 = vmatprep.subr.bf16.mxu0 %v6424_v49  ;;  %v5217_v11 = vld [vmem:[%s6538_s14 + $0x8c] sm:$0x1]  ;;  %v5282_v12 = vld [vmem:[%s6538_s14 + $0x90] sm:$0xe] }
  0xc7   : > { %4134 = vmatmul.mubr.bf16.gmra.mrb[76].mxu1 %v5136_v7  ;;  %4231 = vmatmul.mubr.bf16.gmra.mrb[76].mxu0 %v5240_v47  ;;  %v2364_v4 = vsel %vm6563_vm2, %v2359_v59, %v2363_v43  ;;  %v2020_v7 = vrot.slane %v2018_v62, 4  ;;  %v2387_v30 = vrot.slane %v2385_v21, 5  ;;  %v1619_v32 = vshll.u32 %v5213_v17, 16 }
  0xc8   : > { %4238 = vmatprep.mubr.bf16.mxu0 %v5321_v36  ;;  %v5425_v9 = vcombine.low %v2354_v58, %v2364_v4  ;;  %v5241_v36 = vcombine.low %v1598_v13, %v1608_v28  ;;  %v2382_v37 = vor.u32 %v2381_v24, %v2377_v23  ;;  %v1612_v38 = vrot.slane %v1610_v25, 4  ;;  %v6419_v58 = vld [vmem:[%s6538_s14 + $0x24] sm:$0xff]   ;;  %6241 = vmatpush3.bf16.msra.mxu0 %v6424_v49  ;;  %v5218_v49 = vld [vmem:[%s6538_s14 + $0x90] sm:$0xf] }
  0xc9   : > { %v2022_v14 = vsel %vm6703_vm5, %v2020_v7, %v2021_v2  ;;  %v1615_v39 = vrot.slane %v1613_v26, 5  ;;  %v2373_v41 = vrot.slane %v2372_v29, 4  ;;  %v1621_v42 = vrot.slane %v1619_v32, 5  ;;  %v5215_v2 = vld [vmem:[%s6538_s14 + $0x84] sm:$0xf] }
  0xca   : > { %4335 = vmatprep.mubr.bf16.mxu1 %v5425_v9  ;;  %v5322_v19 = vcombine.low %v2019_v6, %v2022_v14  ;;  %v1623_v43 = vshrl.u32 %v5213_v17, 16  ;;  %v1629_v44 = vshll.u32 %v5214_v22, 16  ;;  %v2383_v45 = vrot.slane %v2382_v37, 4  ;;  %v5216_v7 = vld [vmem:[%s6538_s14 + $0x88] sm:$0xf] }
  0xcb   : > { %v1616_v46 = vor.u32 %v1615_v39, %v1612_v38  ;;  %v5307_v47 = vrot.slane %v5279_v27, 9  ;;  %v2025_v48 = vrot.slane %v5280_v33, 5  ;;  %v2378_v51 = vsel %vm6563_vm2, %v2373_v41, %v2377_v23  ;;  %v5283_v17 = vld [vmem:[%s6538_s14 + $0x94] sm:$0xf]  ;;  %v5284_v26 = vld [vmem:[%s6538_s14 + $0x98] sm:$0x1] }
  0xcc   : > { %v1625_v52 = vrot.slane %v1623_v43, 4  ;;  %v1631_v53 = vrot.slane %v1629_v44, 5  ;;  %v2028_v54 = vrot.slane %v5281_v34, 5  ;;  %v2388_v56 = vsel %vm6563_vm2, %v2383_v45, %v2387_v30  ;;  %v5386_v37 = vld [vmem:[%s6538_s14 + $0x3c] sm:$0xf]  ;;  %v6420_v41 = vld [vmem:[%s6538_s14 + $0x30] sm:$0xff]  }
  0xcd   : > { %v1617_v57 = vrot.slane %v1616_v46, 4  ;;  %v2026_v59 = vsel %vm6703_vm5, %v5307_v47, %v2025_v48  ;;  %v2027_v60 = vrot.slane %v2025_v48, 4  ;;  %v2390_v0 = vshrl.u32 %v5383_v40, 16  ;;  %v5387_v43 = vld [vmem:[%s6538_s14 + $0x40] sm:$0xf] }
  0xce   : > { %v1626_v62 = vor.u32 %v1625_v52, %v1621_v42  ;;  %v2393_v1 = vshll.u32 %v5383_v40, 16  ;;  %v2399_v5 = vshll.u32 %v5384_v55, 16  ;;  %v2403_v6 = vshrl.u32 %v5384_v55, 16  ;;  %v5388_v48 = vld [vmem:[%s6538_s14 + $0x44] sm:$0x1] }
  0xcf   : > { %4336 = vmatmul.mubr.bf16.vlgmr.msra.gmra.mrb[80].mxu1 %v6417_v61  ;;  %4239 = vmatmul.mubr.bf16.gmra.mrb[80].mxu0 %v5241_v36  ;;  %v5426_v61 = vcombine.low %v2378_v51, %v2388_v56  ;;  %v1622_v3 = vsel %vm6563_vm2, %v1617_v57, %v1621_v42  ;;  %v2029_v4 = vsel %vm6703_vm5, %v2027_v60, %v2028_v54  ;;  %v2392_v50 = vrot.slane %v2390_v0, 4  ;;  %v5219_v55 = vld [vmem:[%s6538_s14 + $0x94] sm:$0xf]  ;;  %v6427_v60 = vld [vmem:[%s8211_s1 + $0x238] sm:$0xff]  }
  0xd0   : > { %4246 = vmatprep.mubr.bf16.mxu0 %v5322_v19  ;;  %v1627_v8 = vrot.slane %v1626_v62, 4  ;;  %v5323_v9 = vcombine.low %v2026_v59, %v2029_v4  ;;  %v2395_v10 = vrot.slane %v2393_v1, 5  ;;  %v2401_v13 = vrot.slane %v2399_v5, 5  ;;  %v5220_v5 = vld [vmem:[%s6538_s14 + $0x98] sm:$0x1]  ;;  %6242 = vmatprep.subr.bf16.mxu0 %v6427_v60 }
  0xd1   : > { %4343 = vmatprep.mubr.bf16.mxu1 %v5426_v61  ;;  %v2405_v14 = vrot.slane %v2403_v6, 4  ;;  %v2409_v15 = vshll.u32 %v5385_v63, 16  ;;  %v1634_v16 = vshrl.u32 %v5215_v2, 16  ;;  %v1637_v20 = vshll.u32 %v5215_v2, 16  ;;  %6243 = vmatpush3.bf16.msra.mxu0 %v6427_v60 }
  0xd2   : > { %v1632_v18 = vsel %vm6563_vm2, %v1627_v8, %v1631_v53  ;;  %v2396_v19 = vor.u32 %v2395_v10, %v2392_v50  ;;  %v1643_v21 = vshll.u32 %v5216_v7, 16  ;;  %v1647_v30 = vshrl.u32 %v5216_v7, 16  ;;  %v5285_v50 = vld [vmem:[%s6538_s14 + $0x9c] sm:$0xe] }
  0xd3   : > { %v5242_v22 = vcombine.low %v1622_v3, %v1632_v18  ;;  %v2406_v23 = vor.u32 %v2405_v14, %v2401_v13  ;;  %v2411_v24 = vrot.slane %v2409_v15, 5  ;;  %v1636_v25 = vrot.slane %v1634_v16, 4  ;;  %v5286_v14 = vld [vmem:[%s6538_s14 + $0xa0] sm:$0xf]  ;;  %v5287_v15 = vld [vmem:[%s6538_s14 + $0xa4] sm:$0x1] }
  0xd4   : > { %v2397_v27 = vrot.slane %v2396_v19, 4  ;;  %v1639_v28 = vrot.slane %v1637_v20, 5  ;;  %v1645_v29 = vrot.slane %v1643_v21, 5  ;;  %v1653_v33 = vshll.u32 %v5217_v11, 16  ;;  %v5389_v20 = vld [vmem:[%s6538_s14 + $0x48] sm:$0xf] }
  0xd5   : > { %v2407_v32 = vrot.slane %v2406_v23, 4  ;;  %v5308_v34 = vrot.slane %v5282_v12, 9  ;;  %v2032_v36 = vrot.slane %v5283_v17, 5  ;;  %v1649_v40 = vrot.slane %v1647_v30, 4  ;;  %v5390_v30 = vld [vmem:[%s6538_s14 + $0x4c] sm:$0xf] }
  0xd6   : > { %v2402_v38 = vsel %vm6563_vm2, %v2397_v27, %v2401_v13  ;;  %v1640_v39 = vor.u32 %v1639_v28, %v1636_v25  ;;  %v2035_v42 = vrot.slane %v5284_v26, 5  ;;  %v1655_v45 = vrot.slane %v1653_v33, 5  ;;  %v6422_v27 = vld [vmem:[%s6538_s14 + $0x3c] sm:$0xff]  }
  0xd7   : > { %4344 = vmatmul.mubr.bf16.gmra.mrb[84].mxu1 %v6419_v58  ;;  %4247 = vmatmul.mubr.bf16.gmra.mrb[84].mxu0 %v5242_v22  ;;  %v2412_v44 = vsel %vm6563_vm2, %v2407_v32, %v2411_v24  ;;  %v2033_v46 = vsel %vm6703_vm5, %v5308_v34, %v2032_v36  ;;  %v2034_v47 = vrot.slane %v2032_v36, 4  ;;  %v1650_v53 = vor.u32 %v1649_v40, %v1645_v29  ;;  %v5391_v36 = vld [vmem:[%s6538_s14 + $0x50] sm:$0x1] }
  0xd8   : > { %4254 = vmatprep.mubr.bf16.mxu0 %v5323_v9  ;;  %v5427_v51 = vcombine.low %v2402_v38, %v2412_v44  ;;  %v1641_v52 = vrot.slane %v1640_v39, 4  ;;  %v2414_v54 = vshrl.u32 %v5386_v37, 16  ;;  %v2417_v57 = vshll.u32 %v5386_v37, 16  ;;  %v5221_v38 = vld [vmem:[%s6538_s14 + $0x9c] sm:$0xf] }
  0xd9   : > { %v2036_v56 = vsel %vm6703_vm5, %v2034_v47, %v2035_v42  ;;  %v2423_v58 = vshll.u32 %v5387_v43, 16  ;;  %v2427_v59 = vshrl.u32 %v5387_v43, 16  ;;  %v1651_v62 = vrot.slane %v1650_v53, 4  ;;  %v5222_v53 = vld [vmem:[%s6538_s14 + $0xa0] sm:$0xf] }
  0xda   : > { %4351 = vmatprep.mubr.bf16.mxu1 %v5427_v51  ;;  %v1646_v61 = vsel %vm6563_vm2, %v1641_v52, %v1645_v29  ;;  %v5324_v63 = vcombine.low %v2033_v46, %v2036_v56  ;;  %v2416_v0 = vrot.slane %v2414_v54, 4  ;;  %v2419_v1 = vrot.slane %v2417_v57, 5 }
  0xdb   : > { %v2425_v2 = vrot.slane %v2423_v58, 5  ;;  %v2429_v3 = vrot.slane %v2427_v59, 4  ;;  %v2433_v4 = vshll.u32 %v5388_v48, 16  ;;  %v1656_v6 = vsel %vm6563_vm2, %v1651_v62, %v1655_v45  ;;  %v5223_v58 = vld [vmem:[%s6538_s14 + $0xa4] sm:$0x1] }
  0xdc   : > { %v1658_v7 = vshrl.u32 %v5218_v49, 16  ;;  %v1661_v8 = vshll.u32 %v5218_v49, 16  ;;  %v1667_v9 = vshll.u32 %v5219_v55, 16  ;;  %v5243_v10 = vcombine.low %v1646_v61, %v1656_v6 }
  0xdd   : > { %v2420_v11 = vor.u32 %v2419_v1, %v2416_v0  ;;  %v2430_v12 = vor.u32 %v2429_v3, %v2425_v2  ;;  %v2435_v13 = vrot.slane %v2433_v4, 5  ;;  %v1671_v19 = vshrl.u32 %v5219_v55, 16  ;;  %v5288_v1 = vld [vmem:[%s6538_s14 + $0xa8] sm:$0xe] }
  0xde   : > { %v1660_v16 = vrot.slane %v1658_v7, 4  ;;  %v1663_v17 = vrot.slane %v1661_v8, 5  ;;  %v1669_v18 = vrot.slane %v1667_v9, 5  ;;  %v1677_v23 = vshll.u32 %v5220_v5, 16  ;;  %v5290_v7 = vld [vmem:[%s6538_s14 + $0xb0] sm:$0x1] }
  0xdf   : > { %4352 = vmatmul.mubr.bf16.gmra.mrb[88].mxu1 %v6420_v41  ;;  %4255 = vmatmul.mubr.bf16.gmra.mrb[88].mxu0 %v5243_v10  ;;  %v2421_v21 = vrot.slane %v2420_v11, 4  ;;  %v2431_v22 = vrot.slane %v2430_v12, 4  ;;  %v5309_v24 = vrot.slane %v5285_v50, 9  ;;  %v1673_v26 = vrot.slane %v1671_v19, 4  ;;  %v5392_v11 = vld [vmem:[%s6538_s14 + $0x54] sm:$0xf] }
  0xe0   : > { %4262 = vmatprep.mubr.bf16.mxu0 %v5324_v63  ;;  %v1664_v25 = vor.u32 %v1663_v17, %v1660_v16  ;;  %v2039_v28 = vrot.slane %v5286_v14, 5  ;;  %v2042_v29 = vrot.slane %v5287_v15, 5  ;;  %v1679_v34 = vrot.slane %v1677_v23, 5  ;;  %v5393_v17 = vld [vmem:[%s6538_s14 + $0x58] sm:$0xf] }
  0xe1   : > { %v2426_v32 = vsel %vm6563_vm2, %v2421_v21, %v2425_v2  ;;  %v2436_v33 = vsel %vm6563_vm2, %v2431_v22, %v2435_v13  ;;  %v2438_v37 = vshrl.u32 %v5389_v20, 16  ;;  %v1674_v41 = vor.u32 %v1673_v26, %v1669_v18  ;;  %v5289_v2 = vld [vmem:[%s6538_s14 + $0xac] sm:$0xf] }
  0xe2   : > { %v5428_v39 = vcombine.low %v2426_v32, %v2436_v33  ;;  %v1665_v40 = vrot.slane %v1664_v25, 4  ;;  %v2040_v42 = vsel %vm6703_vm5, %v5309_v24, %v2039_v28  ;;  %v2041_v44 = vrot.slane %v2039_v28, 4  ;;  %v6423_v22 = vld [vmem:[%s6538_s14 + $0x48] sm:$0xff]  }
  0xe3   : > { %v2440_v45 = vrot.slane %v2438_v37, 4  ;;  %v2441_v46 = vshll.u32 %v5389_v20, 16  ;;  %v2447_v47 = vshll.u32 %v5390_v30, 16  ;;  %v1675_v49 = vrot.slane %v1674_v41, 4 }
  0xe4   : > { %4359 = vmatprep.mubr.bf16.mxu1 %v5428_v39  ;;  %v1670_v48 = vsel %vm6563_vm2, %v1665_v40, %v1669_v18  ;;  %v2451_v51 = vshrl.u32 %v5390_v30, 16  ;;  %v2457_v52 = vshll.u32 %v5391_v36, 16  ;;  %v2043_v55 = vsel %vm6703_vm5, %v2041_v44, %v2042_v29 }
  0xe5   : > { %v2443_v56 = vrot.slane %v2441_v46, 5  ;;  %v2449_v57 = vrot.slane %v2447_v47, 5  ;;  %v1682_v59 = vshrl.u32 %v5221_v38, 16  ;;  %v1680_v61 = vsel %vm6563_vm2, %v1675_v49, %v1679_v34  ;;  %v5224_v34 = vld [vmem:[%s6538_s14 + $0xa8] sm:$0xf] }
  0xe6   : > { %v5325_v62 = vcombine.low %v2040_v42, %v2043_v55  ;;  %v2453_v63 = vrot.slane %v2451_v51, 4  ;;  %v2459_v0 = vrot.slane %v2457_v52, 5  ;;  %v5244_v3 = vcombine.low %v1670_v48, %v1680_v61  ;;  %v5225_v47 = vld [vmem:[%s6538_s14 + $0xac] sm:$0xf] }
  0xe7   : > { %4360 = vmatmul.mubr.bf16.gmra.mrb[92].mxu1 %v6422_v27  ;;  %v2444_v4 = vor.u32 %v2443_v56, %v2440_v45  ;;  %v1684_v5 = vrot.slane %v1682_v59, 4  ;;  %v1685_v6 = vshll.u32 %v5221_v38, 16  ;;  %v1691_v9 = vshll.u32 %v5222_v53, 16  ;;  %v5394_v27 = vld [vmem:[%s6538_s14 + $0x5c] sm:$0x1] }
  0xe8   : > { %v2454_v8 = vor.u32 %v2453_v63, %v2449_v57  ;;  %v1695_v50 = vshrl.u32 %v5222_v53, 16  ;;  %v1701_v10 = vshll.u32 %v5223_v58, 16  ;;  %4263 = vmatmul.mubr.bf16.gmra.mrb[92].mxu0 %v5244_v3  ;;  %v5310_v15 = vrot.slane %v5288_v1, 9  ;;  %v5226_v58 = vld [vmem:[%s6538_s14 + $0xb0] sm:$0x1] }
  0xe9   : > { %v2445_v13 = vrot.slane %v2444_v4, 4  ;;  %v1687_v14 = vrot.slane %v1685_v6, 5  ;;  %v2046_v16 = vrot.slane %v5289_v2, 5  ;;  %4270 = vmatprep.mubr.bf16.mxu0 %v5325_v62  ;;  %v1693_v19 = vrot.slane %v1691_v9, 5  ;;  %v5291_v2 = vld [vmem:[%s6538_s14 + $0xb4] sm:$0xe] }
  0xea   : > { %v2455_v18 = vrot.slane %v2454_v8, 4  ;;  %v1697_v20 = vrot.slane %v1695_v50, 4  ;;  %v1703_v21 = vrot.slane %v1701_v10, 5  ;;  %v2049_v32 = vrot.slane %v5290_v7, 5  ;;  %v5292_v3 = vld [vmem:[%s6538_s14 + $0xb8] sm:$0xf] }
  0xeb   : > { %v2450_v23 = vsel %vm6563_vm2, %v2445_v13, %v2449_v57  ;;  %v1688_v24 = vor.u32 %v1687_v14, %v1684_v5  ;;  %v2047_v25 = vsel %vm6703_vm5, %v5310_v15, %v2046_v16  ;;  %v2048_v26 = vrot.slane %v2046_v16, 4  ;;  %v5293_v8 = vld [vmem:[%s6538_s14 + $0xbc] sm:$0x1]  ;;  %v5395_v14 = vld [vmem:[%s6538_s14 + $0x60] sm:$0xf] }
  0xec   : > { %v2460_v29 = vsel %vm6563_vm2, %v2455_v18, %v2459_v0  ;;  %v1698_v30 = vor.u32 %v1697_v20, %v1693_v19  ;;  %v2462_v33 = vshrl.u32 %v5392_v11, 16  ;;  %v2465_v38 = vshll.u32 %v5392_v11, 16 }
  0xed   : > { %v5429_v36 = vcombine.low %v2450_v23, %v2460_v29  ;;  %v1689_v37 = vrot.slane %v1688_v24, 4  ;;  %v2471_v39 = vshll.u32 %v5393_v17, 16  ;;  %v2050_v44 = vsel %vm6703_vm5, %v2048_v26, %v2049_v32  ;;  %v5397_v24 = vld [vmem:[%s6538_s14 + $0x68] sm:$0x1]  ;;  %v5227_v32 = vld [vmem:[%s6538_s14 + $0xb4] sm:$0xf] }
  0xee   : > { %v1699_v42 = vrot.slane %v1698_v30, 4  ;;  %v2464_v45 = vrot.slane %v2462_v33, 4  ;;  %v2475_v46 = vshrl.u32 %v5393_v17, 16  ;;  %v5326_v51 = vcombine.low %v2047_v25, %v2050_v44 }
  0xef   : > { %4367 = vmatprep.mubr.bf16.mxu1 %v5429_v36  ;;  %v1694_v49 = vsel %vm6563_vm2, %v1689_v37, %v1693_v19  ;;  %v2467_v52 = vrot.slane %v2465_v38, 5  ;;  %v2473_v53 = vrot.slane %v2471_v39, 5  ;;  %v2481_v57 = vshll.u32 %v5394_v27, 16  ;;  %v5396_v19 = vld [vmem:[%s6538_s14 + $0x64] sm:$0xf]  ;;  %v6425_v27 = vld [vmem:[%s6538_s14 + $0x54] sm:$0xff]  }
  0xf0   : > { %v1704_v55 = vsel %vm6563_vm2, %v1699_v42, %v1703_v21  ;;  %4368 = vmatmul.mubr.bf16.gmra.mrb[96].mxu1 %v6423_v22  ;;  %v2477_v56 = vrot.slane %v2475_v46, 4  ;;  %v1706_v59 = vshrl.u32 %v5224_v34, 16  ;;  %v1709_v0 = vshll.u32 %v5224_v34, 16 }
  0xf1   : > { %v5245_v62 = vcombine.low %v1694_v49, %v1704_v55  ;;  %v2468_v63 = vor.u32 %v2467_v52, %v2464_v45  ;;  %v1715_v1 = vshll.u32 %v5225_v47, 16  ;;  %v2483_v5 = vrot.slane %v2481_v57, 5 }
  0xf2   : > { %v2478_v4 = vor.u32 %v2477_v56, %v2473_v53  ;;  %v1708_v6 = vrot.slane %v1706_v59, 4  ;;  %v1719_v7 = vshrl.u32 %v5225_v47, 16  ;;  %v1711_v10 = vrot.slane %v1709_v0, 5 }
  0xf3   : > { %4271 = vmatmul.mubr.bf16.gmra.mrb[96].mxu0 %v5245_v62  ;;  %v2469_v50 = vrot.slane %v2468_v63, 4  ;;  %v1717_v11 = vrot.slane %v1715_v1, 5  ;;  %v1725_v13 = vshll.u32 %v5226_v58, 16  ;;  %v5311_v17 = vrot.slane %v5291_v2, 9  ;;  %v5228_v58 = vld [vmem:[%s6538_s14 + $0xb8] sm:$0xf] }
  0xf4   : > { %4278 = vmatprep.mubr.bf16.mxu0 %v5326_v51  ;;  %v2479_v15 = vrot.slane %v2478_v4, 4  ;;  %v1721_v16 = vrot.slane %v1719_v7, 4  ;;  %v2053_v18 = vrot.slane %v5292_v3, 5  ;;  %v1712_v21 = vor.u32 %v1711_v10, %v1708_v6  ;;  %v5229_v1 = vld [vmem:[%s6538_s14 + $0xbc] sm:$0x1] }
  0xf5   : > { %v2474_v20 = vsel %vm6563_vm2, %v2469_v50, %v2473_v53  ;;  %v1727_v22 = vrot.slane %v1725_v13, 5  ;;  %v2056_v23 = vrot.slane %v5293_v8, 5  ;;  %v2486_v38 = vshrl.u32 %v5395_v14, 16 }
  0xf6   : > { %v2484_v25 = vsel %vm6563_vm2, %v2479_v15, %v2483_v5  ;;  %v1722_v26 = vor.u32 %v1721_v16, %v1717_v11  ;;  %v2054_v29 = vsel %vm6703_vm5, %v5311_v17, %v2053_v18  ;;  %v2055_v30 = vrot.slane %v2053_v18, 4 }
  0xf7   : > { %v5430_v36 = vcombine.low %v2474_v20, %v2484_v25  ;;  %v1713_v37 = vrot.slane %v1712_v21, 4  ;;  %v2489_v39 = vshll.u32 %v5395_v14, 16  ;;  %v2495_v47 = vshll.u32 %v5396_v19, 16  ;;  %v5294_v21 = vld [vmem:[%s6538_s14 + $0xc0] sm:$0xe] }
  0xf8   : > { %v1723_v45 = vrot.slane %v1722_v26, 4  ;;  %v2057_v46 = vsel %vm6703_vm5, %v2055_v30, %v2056_v23  ;;  %v2499_v49 = vshrl.u32 %v5396_v19, 16  ;;  %v2488_v56 = vrot.slane %v2486_v38, 4  ;;  %v5295_v26 = vld [vmem:[%s6538_s14 + $0xc4] sm:$0xf] }
  0xf9   : > { %4375 = vmatprep.mubr.bf16.mxu1 %v5430_v36  ;;  %v1718_v53 = vsel %vm6563_vm2, %v1713_v37, %v1717_v11  ;;  %v5327_v55 = vcombine.low %v2054_v29, %v2057_v46  ;;  %v2491_v57 = vrot.slane %v2489_v39, 5  ;;  %v2497_v62 = vrot.slane %v2495_v47, 5  ;;  %v5398_v37 = vld [vmem:[%s6538_s14 + $0x6c] sm:$0xf] }
  0xfa   : > { %v1728_v59 = vsel %vm6563_vm2, %v1723_v45, %v1727_v22  ;;  %4376 = vmatmul.mubr.bf16.gmra.mrb[100].mxu1 %v6425_v27  ;;  %v2501_v63 = vrot.slane %v2499_v49, 4  ;;  %v2505_v0 = vshll.u32 %v5397_v24, 16  ;;  %v1730_v5 = vshrl.u32 %v5227_v32, 16  ;;  %v5296_v27 = vld [vmem:[%s6538_s14 + $0xc8] sm:$0x1] }
  0xfb   : > { %v5246_v3 = vcombine.low %v1718_v53, %v1728_v59  ;;  %v2492_v4 = vor.u32 %v2491_v57, %v2488_v56  ;;  %v1733_v6 = vshll.u32 %v5227_v32, 16  ;;  %v1739_v50 = vshll.u32 %v5228_v58, 16  ;;  %v6426_v32 = vld [vmem:[%s6538_s14 + $0x60] sm:$0xff]   ;;  %v5399_v53 = vld [vmem:[%s6538_s14 + $0x70] sm:$0xf] }
  0xfc   : > { %v2502_v7 = vor.u32 %v2501_v63, %v2497_v62  ;;  %v2507_v8 = vrot.slane %v2505_v0, 5  ;;  %v1743_v10 = vshrl.u32 %v5228_v58, 16  ;;  %v1732_v14 = vrot.slane %v1730_v5, 4  ;;  %v5400_v57 = vld [vmem:[%s6538_s14 + $0x74] sm:$0x1] }
  0xfd   : > { %4279 = vmatmul.mubr.bf16.gmra.mrb[100].mxu0 %v5246_v3  ;;  %v2493_v13 = vrot.slane %v2492_v4, 4  ;;  %v1735_v15 = vrot.slane %v1733_v6, 5  ;;  %v1749_v16 = vshll.u32 %v5229_v1, 16  ;;  %v1741_v18 = vrot.slane %v1739_v50, 5  ;;  %v5230_v59 = vld [vmem:[%s6538_s14 + $0xc0] sm:$0xf] }
  0xfe   : > { %4286 = vmatprep.mubr.bf16.mxu0 %v5327_v55  ;;  %v2503_v17 = vrot.slane %v2502_v7, 4  ;;  %v1745_v19 = vrot.slane %v1743_v10, 4  ;;  %v2063_v56 = vrot.slane %v5296_v27, 5  ;;  %v2510_v58 = vshrl.u32 %v5398_v37, 16  ;;  %v5231_v5 = vld [vmem:[%s6538_s14 + $0xc4] sm:$0xf] }
  0xff   : > { %v2498_v23 = vsel %vm6563_vm2, %v2493_v13, %v2497_v62  ;;  %v1736_v24 = vor.u32 %v1735_v15, %v1732_v14  ;;  %v2513_v63 = vshll.u32 %v5398_v37, 16  ;;  %v2519_v3 = vshll.u32 %v5399_v53, 16  ;;  %v5232_v10 = vld [vmem:[%s6538_s14 + $0xc8] sm:$0x1] }
 0x100   : > { %v2508_v30 = vsel %vm6563_vm2, %v2503_v17, %v2507_v8  ;;  %v2512_v1 = vrot.slane %v2510_v58, 4  ;;  %v2523_v4 = vshrl.u32 %v5399_v53, 16  ;;  %v2529_v50 = vshll.u32 %v5400_v57, 16 }
 0x101   : > { %v1737_v39 = vrot.slane %v1736_v24, 4  ;;  %v2515_v8 = vrot.slane %v2513_v63, 5  ;;  %v1754_v13 = vshrl.u32 %v5230_v59, 16  ;;  %v1773_v37 = vshll.u32 %v5232_v10, 16 }
 0x102   : > { %v7206_v43 = vpop.f32.mrb[0].mxu0  ;;  %v7211_v54 = vpop.f32.mrb[0].mxu1  ;;  %v2525_v17 = vrot.slane %v2523_v4, 4  ;;  %v5442_v4 = vld [vmem:[%s6538_s14 + $0x1c] sm:$0xf] }
 0x103   : > { %v7216_v60 = vpop.f32.mrb[1].mxu0  ;;  %v7224_v12 = vpop.f32.mrb[1].mxu1  ;;  %v1742_v55 = vsel %vm6563_vm2, %v1737_v39, %v1741_v18  ;;  %v1756_v24 = vrot.slane %v1754_v13, 4 }
 0x104   : > { %v7233_v28 = vpop.f32.mrb[2].mxu0  ;;  %v7238_v40 = vpop.f32.mrb[2].mxu1  ;;  %v7296_v20 = vadd.f32 %v7216_v60, %v7206_v43  ;;  %v7305_v25 = vadd.f32 %v7224_v12, %v7211_v54  ;;  %v1746_v43 = vor.u32 %v1745_v19, %v1741_v18  ;;  %v1751_v60 = vrot.slane %v1749_v16, 5 }
 0x105   : > { %v7240_v41 = vpop.f32.mrb[3].mxu0  ;;  %v7245_v48 = vpop.f32.mrb[3].mxu1  ;;  %v5431_v12 = vcombine.low %v2498_v23, %v2508_v30  ;;  %v2521_v16 = vrot.slane %v2519_v3, 5  ;;  %v1757_v18 = vshll.u32 %v5230_v59, 16  ;;  %v2531_v23 = vrot.slane %v2529_v50, 5 }
 0x106   : > { %8219 = vst [vmem:[#allocation3_spill] sm:$0xff] %v7305_v25  ;;  %v7316_v36 = vadd.f32 %v7240_v41, %v7233_v28  ;;  %v7325_v45 = vadd.f32 %v7245_v48, %v7238_v40  ;;  %v1747_v49 = vrot.slane %v1746_v43, 4  ;;  %v5312_v28 = vrot.slane %v5294_v21, 9  ;;  %v5401_v59 = vld [vmem:[%s6538_s14 + $0x78] sm:$0xf] }
 0x107   : > { %v2060_v41 = vrot.slane %v5295_v26, 5  ;;  %4383 = vmatprep.mubr.bf16.mxu1 %v5431_v12  ;;  %v2516_v21 = vor.u32 %v2515_v8, %v2512_v1  ;;  %v1763_v26 = vshll.u32 %v5231_v5, 16  ;;  %v2526_v43 = vor.u32 %v2525_v17, %v2521_v16  ;;  %v6428_v1 = vld [vmem:[%s6538_s14 + $0x6c] sm:$0xff]  }
 0x108   : > { %8220 = vst [vmem:[#allocation4_spill] sm:$0xff] %v7325_v45  ;;  %v1752_v40 = vsel %vm6563_vm2, %v1747_v49, %v1751_v60  ;;  %4384 = vmatmul.mubr.bf16.gmra.mrb[104].mxu1 %v6426_v32  ;;  %v1759_v60 = vrot.slane %v1757_v18, 5  ;;  %v1767_v32 = vshrl.u32 %v5231_v5, 16  ;;  %v2537_v8 = vshll.u32 %v5401_v59, 16 }
 0x109   : > { %v2061_v48 = vsel %vm6703_vm5, %v5312_v28, %v2060_v41  ;;  %v2062_v62 = vrot.slane %v2060_v41, 4  ;;  %v5247_v0 = vcombine.low %v1742_v55, %v1752_v40  ;;  %v2517_v49 = vrot.slane %v2516_v21, 4  ;;  %v5402_v40 = vld [vmem:[%s6538_s14 + $0x7c] sm:$0xf] }
 0x10a   : > { %v7252_v61 = vpop.f32.mrb[4].mxu0  ;;  %v7257_v9 = vpop.f32.mrb[4].mxu1  ;;  %v1765_v28 = vrot.slane %v1763_v26, 5  ;;  %v1760_v57 = vor.u32 %v1759_v60, %v1756_v24  ;;  %v1769_v58 = vrot.slane %v1767_v32, 4  ;;  %v2543_v13 = vshll.u32 %v5402_v40, 16 }
 0x10b   : > { %v7270_v33 = vpop.f32.mrb[5].mxu0  ;;  %v7272_v34 = vpop.f32.mrb[5].mxu1  ;;  %v2064_v7 = vsel %vm6703_vm5, %v2062_v62, %v2063_v56  ;;  %4287 = vmatmul.mubr.bf16.gmra.mrb[104].mxu0 %v5247_v0  ;;  %v2527_v56 = vrot.slane %v2526_v43, 4  ;;  %v2539_v18 = vrot.slane %v2537_v8, 5  ;;  %v2547_v21 = vshrl.u32 %v5402_v40, 16 }
 0x10c   : > { %v7274_v42 = vpop.f32.mrb[6].mxu0  ;;  %v7276_v44 = vpop.f32.mrb[6].mxu1  ;;  %v5328_v15 = vcombine.low %v2061_v48, %v2064_v7  ;;  %v7360_v41 = vadd.f32 %v7270_v33, %v7252_v61  ;;  %v7364_v53 = vadd.f32 %v7272_v34, %v7257_v9  ;;  %v2522_v48 = vsel %vm6563_vm2, %v2517_v49, %v2521_v16  ;;  %v5403_v9 = vld [vmem:[%s6538_s14 + $0x80] sm:$0x1]  ;;  %v5441_v34 = vld [vmem:[%s6538_s14 + $0x18] sm:$0xe] }
 0x10d   : > { %v7280_v51 = vpop.f32.mrb[7].mxu0  ;;  %v7282_v52 = vpop.f32.mrb[7].mxu1  ;;  %v1775_v61 = vrot.slane %v1773_v37, 5  ;;  %v2532_v62 = vsel %vm6563_vm2, %v2527_v56, %v2531_v23  ;;  %v1761_v63 = vrot.slane %v1760_v57, 4  ;;  %v1770_v0 = vor.u32 %v1769_v58, %v1765_v28  ;;  %v5446_v16 = vld [vmem:[%s6538_s14 + $0x2c] sm:$0x1] }
 0x10e   : > { %4294 = vmatprep.mubr.bf16.mxu0 %v5328_v15  ;;  %8221 = vst [vmem:[#allocation5_spill] sm:$0xff] %v7364_v53  ;;  %v7374_v33 = vadd.f32 %v7280_v51, %v7274_v42  ;;  %v7383_v3 = vadd.f32 %v7282_v52, %v7276_v44  ;;  %v5432_v5 = vcombine.low %v2522_v48, %v2532_v62  ;;  %v2534_v7 = vshrl.u32 %v5401_v59, 16  ;;  %v5443_v42 = vld [vmem:[%s6538_s14 + $0x20] sm:$0x1]  ;;  %v5444_v51 = vld [vmem:[%s6538_s14 + $0x24] sm:$0xe] }
 0x10f   : > { %v1766_v50 = vsel %vm6563_vm2, %v1761_v63, %v1765_v28  ;;  %v1771_v10 = vrot.slane %v1770_v0, 4  ;;  %v5445_v15 = vld [vmem:[%s6538_s14 + $0x28] sm:$0xf]  ;;  %v2553_v23 = vshll.u32 %v5403_v9, 16  ;;  %v2545_v26 = vrot.slane %v2543_v13, 5 }
 0x110   : > { %8222 = vst [vmem:[#allocation6_spill] sm:$0xff] %v7383_v3  ;;  %4391 = vmatprep.mubr.bf16.mxu1 %v5432_v5  ;;  %v2536_v17 = vrot.slane %v2534_v7, 4  ;;  %v5489_v43 = vrot.slane %v5441_v34, 9  ;;  %v2903_v60 = vrot.slane %v5442_v4, 5  ;;  %v2549_v56 = vrot.slane %v2547_v21, 4 }
 0x111   : > { %v1776_v24 = vsel %vm6563_vm2, %v1771_v10, %v1775_v61  ;;  %4392 = vmatmul.mubr.bf16.gmra.mrb[108].mxu1 %v6428_v1  ;;  %v2555_v57 = vrot.slane %v2553_v23, 5  ;;  %v2906_v61 = vrot.slane %v5443_v42, 5  ;;  %v5490_v9 = vrot.slane %v5444_v51, 9  ;;  %v5404_v51 = vld [vmem:[%s6538_s14 + $0x84] sm:$0xf] }
 0x112   : > { %v7290_v2 = vpop.f32.mrb[8].mxu0  ;;  %v7292_v11 = vpop.f32.mrb[8].mxu1  ;;  %v5248_v49 = vcombine.low %v1766_v50, %v1776_v24  ;;  %v2540_v28 = vor.u32 %v2539_v18, %v2536_v17  ;;  %v2904_v40 = vsel %vm6703_vm5, %v5489_v43, %v2903_v60  ;;  %v2905_v48 = vrot.slane %v2903_v60, 4  ;;  %v5405_v50 = vld [vmem:[%s6538_s14 + $0x88] sm:$0xf] }
 0x113   : > { %v7299_v22 = vpop.f32.mrb[9].mxu0  ;;  %v7309_v29 = vpop.f32.mrb[9].mxu1  ;;  %v2550_v0 = vor.u32 %v2549_v56, %v2545_v26  ;;  %v2910_v1 = vrot.slane %v5445_v15, 5  ;;  %v2913_v4 = vrot.slane %v5446_v16, 5  ;;  %v5406_v16 = vld [vmem:[%s6538_s14 + $0x8c] sm:$0x1] }
 0x114   : > { %v7319_v38 = vpop.f32.mrb[10].mxu0  ;;  %v7321_v54 = vpop.f32.mrb[10].mxu1  ;;  %4295 = vmatmul.mubr.bf16.gmra.mrb[108].mxu0 %v5248_v49  ;;  %v2541_v63 = vrot.slane %v2540_v28, 4  ;;  %v2907_v5 = vsel %vm6703_vm5, %v2905_v48, %v2906_v61  ;;  %v7416_v7 = vadd.f32 %v7299_v22, %v7290_v2  ;;  %v7420_v8 = vadd.f32 %v7309_v29, %v7292_v11  ;;  %v5447_v2 = vld [vmem:[%s6538_s14 + $0x30] sm:$0xe]  ;;  %v6429_v22 = vld [vmem:[%s6538_s14 + $0x78] sm:$0xff]  }
 0x115   : > { %v7327_v46 = vpop.f32.mrb[11].mxu0  ;;  %v7329_v47 = vpop.f32.mrb[11].mxu1  ;;  %v2551_v13 = vrot.slane %v2550_v0, 4  ;;  %v5505_v15 = vcombine.low %v2904_v40, %v2907_v5  ;;  %v2911_v11 = vsel %vm6703_vm5, %v5490_v9, %v2910_v1  ;;  %v2912_v29 = vrot.slane %v2910_v1, 4  ;;  %v5448_v17 = vld [vmem:[%s6538_s14 + $0x34] sm:$0xf] }
 0x116   : > { %8223 = vst [vmem:[#allocation7_spill] sm:$0xff] %v7420_v8  ;;  %v7424_v42 = vadd.f32 %v7327_v46, %v7319_v38  ;;  %v2546_v10 = vsel %vm6563_vm2, %v2541_v63, %v2545_v26  ;;  %v7440_v46 = vadd.f32 %v7329_v47, %v7321_v54  ;;  %v2558_v18 = vshrl.u32 %v5404_v51, 16  ;;  %v5449_v23 = vld [vmem:[%s6538_s14 + $0x38] sm:$0x1]  ;;  %v5450_v24 = vld [vmem:[%s6538_s14 + $0x3c] sm:$0xe] }
 0x117   : > { %v2556_v38 = vsel %vm6563_vm2, %v2551_v13, %v2555_v57  ;;  %6244 = vmatprep.mubr.bf16.mxu0 %v5505_v15  ;;  %v2561_v21 = vshll.u32 %v5404_v51, 16  ;;  %v2914_v43 = vsel %vm6703_vm5, %v2912_v29, %v2913_v4  ;;  %v2567_v60 = vshll.u32 %v5405_v50, 16  ;;  %v5451_v28 = vld [vmem:[%s6538_s14 + $0x40] sm:$0xf]  ;;  %v5452_v61 = vld [vmem:[%s6538_s14 + $0x44] sm:$0x1] }
 0x118   : > { %8224 = vst [vmem:[#allocation8_spill] sm:$0xff] %v7440_v46  ;;  %v5433_v26 = vcombine.low %v2546_v10, %v2556_v38  ;;  %v2571_v49 = vshrl.u32 %v5405_v50, 16  ;;  %v5506_v57 = vcombine.low %v2911_v11, %v2914_v43  ;;  %v2560_v40 = vrot.slane %v2558_v18, 4  ;;  %v5464_v8 = vld [vmem:[%s6538_s14 + $0x74] sm:$0x1] }
 0x119   : > { %v2563_v48 = vrot.slane %v2561_v21, 5  ;;  %v2569_v47 = vrot.slane %v2567_v60, 5  ;;  %v2577_v0 = vshll.u32 %v5406_v16, 16  ;;  %v5491_v1 = vrot.slane %v5447_v2, 9  ;;  %v7465_v16 = vld [vmem:[%s8212_s2] ss:$0 sm:$0xff] }
 0x11a   : > { %v7341_v6 = vpop.f32.mrb[12].mxu0  ;;  %v7348_v19 = vpop.f32.mrb[12].mxu1  ;;  %4399 = vmatprep.mubr.bf16.mxu1 %v5433_v26  ;;  %v2573_v63 = vrot.slane %v2571_v49, 4  ;;  %v2917_v50 = vrot.slane %v5448_v17, 5  ;;  %v2920_v10 = vrot.slane %v5449_v23, 5  ;;  %v5492_v13 = vrot.slane %v5450_v24, 9 }
 0x11b   : > { %v7346_v14 = vpop.f32.mrb[13].mxu0  ;;  %v7350_v27 = vpop.f32.mrb[13].mxu1  ;;  %4400 = vmatmul.mubr.bf16.gmra.mrb[112].mxu1 %v6429_v22  ;;  %v2564_v51 = vor.u32 %v2563_v48, %v2560_v40  ;;  %v2579_v29 = vrot.slane %v2577_v0, 5  ;;  %v2924_v38 = vrot.slane %v5451_v28, 5  ;;  %v2927_v22 = vrot.slane %v5452_v61, 5 }
 0x11c   : > { %v7352_v30 = vpop.f32.mrb[14].mxu0  ;;  %v7354_v12 = vpop.f32.mrb[14].mxu1  ;;  %6245 = vmatmul.mubr.bf16.vlgmr.msra.gmra.mrb[112].mxu0 %v5506_v57  ;;  %v2574_v2 = vor.u32 %v2573_v63, %v2569_v47  ;;  %v2918_v21 = vsel %vm6703_vm5, %v5491_v1, %v2917_v50  ;;  %v2919_v23 = vrot.slane %v2917_v50, 4  ;;  %v7473_v24 = vadd.f32 %v7346_v14, %v7341_v6  ;;  %v5407_v26 = vld [vmem:[%s6538_s14 + $0x90] sm:$0xf] }
 0x11d   : > { %v7356_v39 = vpop.f32.mrb[15].mxu0  ;;  %v7366_v55 = vpop.f32.mrb[15].mxu1  ;;  %v2565_v17 = vrot.slane %v2564_v51, 4  ;;  %v2925_v60 = vsel %vm6703_vm5, %v5492_v13, %v2924_v38  ;;  %v2926_v49 = vrot.slane %v2924_v38, 4  ;;  %v7480_v28 = vadd.f32 %v7350_v27, %v7348_v19  ;;  %v5408_v57 = vld [vmem:[%s6538_s14 + $0x94] sm:$0xf] }
 0x11e   : > { %v2575_v43 = vrot.slane %v2574_v2, 4  ;;  %v7485_v40 = vadd.f32 %v7296_v20, %v7465_v16  ;;  %v2921_v14 = vsel %vm6703_vm5, %v2919_v23, %v2920_v10  ;;  %v7493_v48 = vadd.f32 %v7356_v39, %v7352_v30  ;;  %v5409_v61 = vld [vmem:[%s6538_s14 + $0x98] sm:$0x1]  ;;  %v5453_v19 = vld [vmem:[%s6538_s14 + $0x48] sm:$0xe] }
 0x11f   : > { %8225 = vst [vmem:[#allocation9_spill] sm:$0xff] %v7480_v28  ;;  %v2570_v6 = vsel %vm6563_vm2, %v2565_v17, %v2569_v47  ;;  %v7499_v27 = vadd.f32 %v7316_v36, %v7465_v16  ;;  %v5507_v63 = vcombine.low %v2918_v21, %v2921_v14  ;;  %v6430_v47 = vld [vmem:[%s6538_s14 + $0x84] sm:$0xff]   ;;  %v2928_v0 = vsel %vm6703_vm5, %v2926_v49, %v2927_v22  ;;  %v5454_v1 = vld [vmem:[%s6538_s14 + $0x4c] sm:$0xf]  ;;  %v5455_v51 = vld [vmem:[%s6538_s14 + $0x50] sm:$0x1] }
 0x120   : > { %v2580_v20 = vsel %vm6563_vm2, %v2575_v43, %v2579_v29  ;;  %v7512_v39 = vadd.f32 %v7360_v41, %v7465_v16  ;;  %v5508_v36 = vcombine.low %v2925_v60, %v2928_v0  ;;  %v7516_v10 = vadd.f32 %v7366_v55, %v7354_v12  ;;  %v5456_v13 = vld [vmem:[%s6538_s14 + $0x54] sm:$0xe]  ;;  %v5457_v2 = vld [vmem:[%s6538_s14 + $0x58] sm:$0xf]  ;;  %v5458_v43 = vld [vmem:[%s6538_s14 + $0x5c] sm:$0x1] }
 0x121   : > { %v5434_v50 = vcombine.low %v2570_v6, %v2580_v20  ;;  %6248 = vmatprep.mubr.bf16.mxu0 %v5507_v63  ;;  %v2582_v22 = vshrl.u32 %v5407_v26, 16  ;;  %v2585_v17 = vshll.u32 %v5407_v26, 16  ;;  %v2591_v21 = vshll.u32 %v5408_v57, 16 }
 0x122   : > { %v7392_v44 = vpop.f32.mrb[16].mxu0  ;;  %v7394_v52 = vpop.f32.mrb[16].mxu1  ;;  %8226 = vst [vmem:[#allocation10_spill] sm:$0xff] %v7516_v10  ;;  %v2595_v23 = vshrl.u32 %v5408_v57, 16  ;;  %v7531_v12 = vadd.f32 %v7374_v33, %v7465_v16  ;;  %v2601_v55 = vshll.u32 %v5409_v61, 16  ;;  %v5493_v60 = vrot.slane %v5453_v19, 9 }
 0x123   : > { %v7398_v32 = vpop.f32.mrb[17].mxu0  ;;  %v7400_v37 = vpop.f32.mrb[17].mxu1  ;;  %4407 = vmatprep.mubr.bf16.mxu1 %v5434_v50  ;;  %v2931_v6 = vrot.slane %v5454_v1, 5  ;;  %v2584_v57 = vrot.slane %v2582_v22, 4  ;;  %v2587_v20 = vrot.slane %v2585_v17, 5  ;;  %v2593_v63 = vrot.slane %v2591_v21, 5 }
 0x124   : > { %v7402_v58 = vpop.f32.mrb[18].mxu0  ;;  %v7404_v59 = vpop.f32.mrb[18].mxu1  ;;  %6249 = vmatmul.mubr.bf16.gmra.mrb[116].mxu0 %v5508_v36  ;;  %4408 = vmatmul.mubr.bf16.gmra.mrb[116].mxu1 %v6430_v47  ;;  %v2597_v0 = vrot.slane %v2595_v23, 4  ;;  %v2603_v33 = vrot.slane %v2601_v55, 5  ;;  %v2934_v19 = vrot.slane %v5455_v51, 5  ;;  %v5494_v28 = vrot.slane %v5456_v13, 9 }
 0x125   : > { %v7408_v34 = vpop.f32.mrb[19].mxu0  ;;  %v7410_v62 = vpop.f32.mrb[19].mxu1  ;;  %v2932_v50 = vsel %vm6703_vm5, %v5493_v60, %v2931_v6  ;;  %v2933_v61 = vrot.slane %v2931_v6, 4  ;;  %v2588_v1 = vor.u32 %v2587_v20, %v2584_v57  ;;  %v2938_v46 = vrot.slane %v5457_v2, 5  ;;  %v5410_v47 = vld [vmem:[%s6538_s14 + $0x9c] sm:$0xf] }
 0x126   : > { %v2598_v36 = vor.u32 %v2597_v0, %v2593_v63  ;;  %v2941_v17 = vrot.slane %v5458_v43, 5  ;;  %v7546_v21 = vadd.f32 %v7398_v32, %v7392_v44  ;;  %v5886_v23 = vadd.f32 %v7400_v37, %v7394_v52  ;;  %v5411_v55 = vld [vmem:[%s6538_s14 + $0xa0] sm:$0xf]  ;;  %v5412_v6 = vld [vmem:[%s6538_s14 + $0xa4] sm:$0x1] }
 0x127   : > { %v2935_v22 = vsel %vm6703_vm5, %v2933_v61, %v2934_v19  ;;  %v7553_v51 = vadd.f32 %v7416_v7, %v7465_v16  ;;  %v2589_v13 = vrot.slane %v2588_v1, 4  ;;  %v5459_v57 = vld [vmem:[%s6538_s14 + $0x60] sm:$0xe]  ;;  %v2939_v43 = vsel %vm6703_vm5, %v5494_v28, %v2938_v46  ;;  %v5460_v37 = vld [vmem:[%s6538_s14 + $0x64] sm:$0xf] }
 0x128   : > { %v2599_v2 = vrot.slane %v2598_v36, 4  ;;  %v5509_v60 = vcombine.low %v2932_v50, %v2935_v22  ;;  %v2940_v44 = vrot.slane %v2938_v46, 4  ;;  %v7560_v32 = vadd.f32 %v5886_v23, %v7485_v40  ;;  %v6431_v46 = vld [vmem:[%s6538_s14 + $0x90] sm:$0xff]   ;;  %v5462_v36 = vld [vmem:[%s6538_s14 + $0x6c] sm:$0xe] }
 0x129   : > { %v7564_v52 = vadd.f32 %v7408_v34, %v7402_v58  ;;  %v2594_v0 = vsel %vm6563_vm2, %v2589_v13, %v2593_v63  ;;  %v5889_v40 = vadd.f32 %v7410_v62, %v7404_v59  ;;  %v2606_v58 = vshrl.u32 %v5410_v47, 16  ;;  %v5461_v34 = vld [vmem:[%s6538_s14 + $0x68] sm:$0x1] }
 0x12a   : > { %v7447_v56 = vpop.f32.mrb[20].mxu1  ;;  %v7450_v9 = vpop.f32.mrb[20].mxu0  ;;  %8227 = vst [vmem:[#allocation11_spill] sm:$0xff] %v7560_v32  ;;  %v2604_v28 = vsel %vm6563_vm2, %v2599_v2, %v2603_v33  ;;  %6252 = vmatprep.mubr.bf16.mxu0 %v5509_v60  ;;  %v7585_v19 = vadd.f32 %v7424_v42, %v7465_v16  ;;  %v2942_v33 = vsel %vm6703_vm5, %v2940_v44, %v2941_v17  ;;  %v2609_v1 = vshll.u32 %v5410_v47, 16  ;;  %v5463_v60 = vld [vmem:[%s6538_s14 + $0x70] sm:$0xf] }
 0x12b   : > { %v7452_v54 = vpop.f32.mrb[21].mxu1  ;;  %v7454_v5 = vpop.f32.mrb[21].mxu0  ;;  %v5435_v63 = vcombine.low %v2594_v0, %v2604_v28  ;;  %v5510_v62 = vcombine.low %v2939_v43, %v2942_v33  ;;  %v7595_v23 = vadd.f32 %v5889_v40, %v7499_v27  ;;  %v2608_v13 = vrot.slane %v2606_v58, 4 }
 0x12c   : > { %v7456_v4 = vpop.f32.mrb[22].mxu1  ;;  %v7458_v15 = vpop.f32.mrb[22].mxu0  ;;  %v2615_v2 = vshll.u32 %v5411_v55, 16  ;;  %v2611_v17 = vrot.slane %v2609_v1, 5  ;;  %v2619_v47 = vshrl.u32 %v5411_v55, 16  ;;  %v2625_v44 = vshll.u32 %v5412_v6, 16 }
 0x12d   : > { %v7460_v11 = vpop.f32.mrb[23].mxu1  ;;  %v7467_v18 = vpop.f32.mrb[23].mxu0  ;;  %8228 = vst [vmem:[#allocation12_spill] sm:$0xff] %v7595_v23  ;;  %4415 = vmatprep.mubr.bf16.mxu1 %v5435_v63  ;;  %v5495_v28 = vrot.slane %v5459_v57, 9  ;;  %6253 = vmatmul.mubr.bf16.gmra.mrb[120].mxu0 %v5510_v62  ;;  %v2945_v43 = vrot.slane %v5460_v37, 5  ;;  %v2948_v27 = vrot.slane %v5461_v34, 5 }
 0x12e   : > { %4416 = vmatmul.mubr.bf16.gmra.mrb[120].mxu1 %v6431_v46  ;;  %v2617_v3 = vrot.slane %v2615_v2, 5  ;;  %v5496_v40 = vrot.slane %v5462_v36, 9  ;;  %v2612_v58 = vor.u32 %v2611_v17, %v2608_v13  ;;  %v2621_v33 = vrot.slane %v2619_v47, 4  ;;  %v5413_v36 = vld [vmem:[%s6538_s14 + $0xa8] sm:$0xf] }
 0x12f   : > { %v2627_v53 = vrot.slane %v2625_v44, 5  ;;  %v2952_v45 = vrot.slane %v5463_v60, 5  ;;  %v2946_v55 = vsel %vm6703_vm5, %v5495_v28, %v2945_v43  ;;  %v2947_v6 = vrot.slane %v2945_v43, 4  ;;  %v5414_v62 = vld [vmem:[%s6538_s14 + $0xac] sm:$0xf] }
 0x130   : > { %v2955_v57 = vrot.slane %v5464_v8, 5  ;;  %v7607_v46 = vadd.f32 %v7454_v5, %v7450_v9  ;;  %v2613_v63 = vrot.slane %v2612_v58, 4  ;;  %v2622_v37 = vor.u32 %v2621_v33, %v2617_v3  ;;  %v5415_v2 = vld [vmem:[%s6538_s14 + $0xb0] sm:$0x1]  ;;  %v5468_v58 = vld [vmem:[%s6538_s14 + $0x84] sm:$0xe] }
 0x131   : > { %v2953_v34 = vsel %vm6703_vm5, %v5496_v40, %v2952_v45  ;;  %v2954_v1 = vrot.slane %v2952_v45, 4  ;;  %v7615_v13 = vadd.f32 %v7473_v24, %v7465_v16  ;;  %v2949_v8 = vsel %vm6703_vm5, %v2947_v6, %v2948_v27  ;;  %v5465_v45 = vld [vmem:[%s6538_s14 + $0x78] sm:$0xe]  ;;  %v5467_v40 = vld [vmem:[%s6538_s14 + $0x80] sm:$0x1] }
 0x132   : > { %v7508_v30 = vpop.f32.mrb[24].mxu1  ;;  %v7520_v29 = vpop.f32.mrb[24].mxu0  ;;  %v5892_v9 = vadd.f32 %v7452_v54, %v7447_v56  ;;  %v7623_v5 = vadd.f32 %v7467_v18, %v7458_v15  ;;  %v2618_v24 = vsel %vm6563_vm2, %v2613_v63, %v2617_v3  ;;  %v2623_v47 = vrot.slane %v2622_v37, 4  ;;  %v5466_v54 = vld [vmem:[%s6538_s14 + $0x7c] sm:$0xf] }
 0x133   : > { %v7522_v38 = vpop.f32.mrb[25].mxu1  ;;  %v7525_v41 = vpop.f32.mrb[25].mxu0  ;;  %v5511_v44 = vcombine.low %v2946_v55, %v2949_v8  ;;  %v2956_v56 = vsel %vm6703_vm5, %v2954_v1, %v2955_v57  ;;  %v7642_v28 = vadd.f32 %v7493_v48, %v7465_v16  ;;  %v5895_v3 = vadd.f32 %v7460_v11, %v7456_v4  ;;  %v6432_v48 = vld [vmem:[%s6538_s14 + $0x9c] sm:$0xff]  }
 0x134   : > { %v7527_v49 = vpop.f32.mrb[26].mxu1  ;;  %v7533_v14 = vpop.f32.mrb[26].mxu0  ;;  %v5512_v43 = vcombine.low %v2953_v34, %v2956_v56  ;;  %v7645_v27 = vadd.f32 %v5892_v9, %v7512_v39  ;;  %v2628_v6 = vsel %vm6563_vm2, %v2623_v47, %v2627_v53  ;;  %v2630_v57 = vshrl.u32 %v5413_v36, 16  ;;  %v5469_v9 = vld [vmem:[%s6538_s14 + $0x88] sm:$0xf] }
 0x135   : > { %v7535_v26 = vpop.f32.mrb[27].mxu1  ;;  %v7537_v10 = vpop.f32.mrb[27].mxu0  ;;  %6256 = vmatprep.mubr.bf16.mxu0 %v5511_v44  ;;  %v2633_v63 = vshll.u32 %v5413_v36, 16  ;;  %v2639_v39 = vshll.u32 %v5414_v62, 16  ;;  %v5436_v4 = vcombine.low %v2618_v24, %v2628_v6  ;;  %v7663_v11 = vadd.f32 %v5895_v3, %v7531_v12  ;;  %v5470_v56 = vld [vmem:[%s6538_s14 + $0x8c] sm:$0x1] }
 0x136   : > { %8229 = vst [vmem:[#allocation13_spill] sm:$0xff] %v7645_v27  ;;  %6257 = vmatmul.mubr.bf16.gmra.mrb[124].mxu0 %v5512_v43  ;;  %v2643_v1 = vshrl.u32 %v5414_v62, 16  ;;  %v2649_v8 = vshll.u32 %v5415_v2, 16  ;;  %v2632_v25 = vrot.slane %v2630_v57, 4  ;;  %v5497_v44 = vrot.slane %v5465_v45, 9 }
 0x137   : > { %8230 = vst [vmem:[#allocation14_spill] sm:$0xff] %v7663_v11  ;;  %v2635_v53 = vrot.slane %v2633_v63, 5  ;;  %v2641_v47 = vrot.slane %v2639_v39, 5  ;;  %4423 = vmatprep.mubr.bf16.mxu1 %v5436_v4  ;;  %v2959_v23 = vrot.slane %v5466_v54, 5  ;;  %v2962_v32 = vrot.slane %v5467_v40, 5 }
 0x138   : > { %v2645_v36 = vrot.slane %v2643_v1, 4  ;;  %v2651_v27 = vrot.slane %v2649_v8, 5  ;;  %4424 = vmatmul.mubr.bf16.gmra.mrb[124].mxu1 %v6432_v48  ;;  %v5498_v43 = vrot.slane %v5468_v58, 9  ;;  %v2966_v6 = vrot.slane %v5469_v9, 5  ;;  %v5416_v63 = vld [vmem:[%s6538_s14 + $0xb4] sm:$0xf] }
 0x139   : > { %v2636_v24 = vor.u32 %v2635_v53, %v2632_v25  ;;  %v2969_v12 = vrot.slane %v5470_v56, 5  ;;  %v2960_v2 = vsel %vm6703_vm5, %v5497_v44, %v2959_v23  ;;  %v2961_v45 = vrot.slane %v2959_v23, 4  ;;  %v6433_v1 = vld [vmem:[%s6538_s14 + $0xa8] sm:$0xff]  }
 0x13a   : > { %v7567_v7 = vpop.f32.mrb[28].mxu0  ;;  %v7569_v20 = vpop.f32.mrb[28].mxu1  ;;  %v2646_v62 = vor.u32 %v2645_v36, %v2641_v47  ;;  %v7673_v57 = vadd.f32 %v7525_v41, %v7520_v29  ;;  %v2967_v25 = vsel %vm6703_vm5, %v5498_v43, %v2966_v6  ;;  %v2968_v58 = vrot.slane %v2966_v6, 4  ;;  %v5472_v6 = vld [vmem:[%s6538_s14 + $0x94] sm:$0xf] }
 0x13b   : > { %v7579_v50 = vpop.f32.mrb[29].mxu0  ;;  %v7581_v61 = vpop.f32.mrb[29].mxu1  ;;  %v2637_v40 = vrot.slane %v2636_v24, 4  ;;  %v5898_v48 = vadd.f32 %v7522_v38, %v7508_v30  ;;  %v7688_v29 = vadd.f32 %v7546_v21, %v7465_v16  ;;  %v2963_v4 = vsel %vm6703_vm5, %v2961_v45, %v2962_v32  ;;  %v5417_v30 = vld [vmem:[%s6538_s14 + $0xb8] sm:$0xf] }
 0x13c   : > { %v7590_v22 = vpop.f32.mrb[30].mxu0  ;;  %v7592_v59 = vpop.f32.mrb[30].mxu1  ;;  %v2647_v41 = vrot.slane %v2646_v62, 4  ;;  %v7695_v8 = vadd.f32 %v7537_v10, %v7533_v14  ;;  %v5513_v56 = vcombine.low %v2960_v2, %v2963_v4  ;;  %v2970_v32 = vsel %vm6703_vm5, %v2968_v58, %v2969_v12  ;;  %v5418_v10 = vld [vmem:[%s6538_s14 + $0xbc] sm:$0x1] }
 0x13d   : > { %v7598_v42 = vpop.f32.mrb[31].mxu0  ;;  %v7600_v0 = vpop.f32.mrb[31].mxu1  ;;  %v2642_v21 = vsel %vm6563_vm2, %v2637_v40, %v2641_v47  ;;  %v7707_v53 = vadd.f32 %v5898_v48, %v7553_v51  ;;  %v5471_v14 = vld [vmem:[%s6538_s14 + $0x90] sm:$0xe]  ;;  %v7717_v24 = vadd.f32 %v7564_v52, %v7465_v16  ;;  %v5514_v43 = vcombine.low %v2967_v25, %v2970_v32  ;;  %v5473_v12 = vld [vmem:[%s6538_s14 + $0x98] sm:$0x1] }
 0x13e   : > { %v2652_v47 = vsel %vm6563_vm2, %v2647_v41, %v2651_v27  ;;  %v5901_v51 = vadd.f32 %v7535_v26, %v7527_v49  ;;  %v5474_v62 = vld [vmem:[%s6538_s14 + $0x9c] sm:$0xe]  ;;  %6260 = vmatprep.mubr.bf16.mxu0 %v5513_v56  ;;  %v2654_v45 = vshrl.u32 %v5416_v63, 16  ;;  %v2657_v40 = vshll.u32 %v5416_v63, 16  ;;  %v5475_v48 = vld [vmem:[%s6538_s14 + $0xa0] sm:$0xf] }
 0x13f   : > { %8231 = vst [vmem:[#allocation15_spill] sm:$0xff] %v7707_v53  ;;  %v5437_v2 = vcombine.low %v2642_v21, %v2652_v47  ;;  %v2663_v58 = vshll.u32 %v5417_v30, 16  ;;  %6261 = vmatmul.mubr.bf16.gmra.mrb[128].mxu0 %v5514_v43  ;;  %v2667_v4 = vshrl.u32 %v5417_v30, 16  ;;  %v2673_v27 = vshll.u32 %v5418_v10, 16  ;;  %v5476_v41 = vld [vmem:[%s6538_s14 + $0xa4] sm:$0x1] }
 0x140   : > { %v7728_v52 = vadd.f32 %v5901_v51, %v7585_v19  ;;  %v5499_v25 = vrot.slane %v5471_v14, 9  ;;  %v2656_v49 = vrot.slane %v2654_v45, 4  ;;  %v2659_v26 = vrot.slane %v2657_v40, 5 }
 0x141   : > { %4431 = vmatprep.mubr.bf16.mxu1 %v5437_v2  ;;  %v2665_v53 = vrot.slane %v2663_v58, 5  ;;  %v2973_v21 = vrot.slane %v5472_v6, 5  ;;  %v2669_v47 = vrot.slane %v2667_v4, 4  ;;  %v2675_v43 = vrot.slane %v2673_v27, 5 }
 0x142   : > { %v7627_v60 = vpop.f32.mrb[32].mxu0  ;;  %v7629_v17 = vpop.f32.mrb[32].mxu1  ;;  %8232 = vst [vmem:[#allocation16_spill] sm:$0xff] %v7728_v52  ;;  %4432 = vmatmul.mubr.bf16.gmra.mrb[128].mxu1 %v6433_v1  ;;  %v2976_v19 = vrot.slane %v5473_v12, 5  ;;  %v5500_v51 = vrot.slane %v5474_v62, 9  ;;  %v2660_v14 = vor.u32 %v2659_v26, %v2656_v49  ;;  %v2980_v6 = vrot.slane %v5475_v48, 5 }
 0x143   : > { %v7636_v15 = vpop.f32.mrb[33].mxu0  ;;  %v7638_v18 = vpop.f32.mrb[33].mxu1  ;;  %v2974_v2 = vsel %vm6703_vm5, %v5499_v25, %v2973_v21  ;;  %v2975_v45 = vrot.slane %v2973_v21, 4  ;;  %v2670_v1 = vor.u32 %v2669_v47, %v2665_v53  ;;  %v2983_v12 = vrot.slane %v5476_v41, 5  ;;  %v5419_v26 = vld [vmem:[%s6538_s14 + $0xc0] sm:$0xf] }
 0x144   : > { %v7651_v33 = vpop.f32.mrb[34].mxu0  ;;  %v7653_v55 = vpop.f32.mrb[34].mxu1  ;;  %v7749_v62 = vadd.f32 %v7579_v50, %v7567_v7  ;;  %v5904_v4 = vadd.f32 %v7581_v61, %v7569_v20  ;;  %v2661_v25 = vrot.slane %v2660_v14, 4  ;;  %v2981_v49 = vsel %vm6703_vm5, %v5500_v51, %v2980_v6  ;;  %v6434_v61 = vld [vmem:[%s6538_s14 + $0xb4] sm:$0xff]   ;;  %v5420_v47 = vld [vmem:[%s6538_s14 + $0xc4] sm:$0xf] }
 0x145   : > { %v7658_v37 = vpop.f32.mrb[35].mxu0  ;;  %v7660_v34 = vpop.f32.mrb[35].mxu1  ;;  %v2977_v48 = vsel %vm6703_vm5, %v2975_v45, %v2976_v19  ;;  %v2982_v41 = vrot.slane %v2980_v6, 4  ;;  %v7762_v7 = vadd.f32 %v7607_v46, %v7465_v16  ;;  %v2671_v50 = vrot.slane %v2670_v1, 4  ;;  %v5477_v45 = vld [vmem:[%s6538_s14 + $0xa8] sm:$0xe] }
 0x146   : > { %v5515_v20 = vcombine.low %v2974_v2, %v2977_v48  ;;  %v7766_v21 = vadd.f32 %v5904_v4, %v7615_v13  ;;  %v2666_v19 = vsel %vm6563_vm2, %v2661_v25, %v2665_v53  ;;  %v7775_v14 = vadd.f32 %v7598_v42, %v7590_v22  ;;  %v5421_v2 = vld [vmem:[%s6538_s14 + $0xc8] sm:$0x1]  ;;  %v5478_v13 = vld [vmem:[%s6538_s14 + $0xac] sm:$0xf]  ;;  %v5480_v25 = vld [vmem:[%s6538_s14 + $0xb4] sm:$0xe] }
 0x147   : > { %v2984_v51 = vsel %vm6703_vm5, %v2982_v41, %v2983_v12  ;;  %v5907_v46 = vadd.f32 %v7600_v0, %v7592_v59  ;;  %v2676_v6 = vsel %vm6563_vm2, %v2671_v50, %v2675_v43  ;;  %v2678_v1 = vshrl.u32 %v5419_v26, 16  ;;  %v5479_v12 = vld [vmem:[%s6538_s14 + $0xb0] sm:$0x1]  ;;  %v5481_v48 = vld [vmem:[%s6538_s14 + $0xb8] sm:$0xf] }
 0x148   : > { %8233 = vst [vmem:[#allocation17_spill] sm:$0xff] %v7766_v21  ;;  %6264 = vmatprep.mubr.bf16.mxu0 %v5515_v20  ;;  %v5516_v53 = vcombine.low %v2981_v49, %v2984_v51  ;;  %v2681_v4 = vshll.u32 %v5419_v26, 16  ;;  %v7788_v22 = vadd.f32 %v7623_v5, %v7465_v16  ;;  %v5438_v42 = vcombine.low %v2666_v19, %v2676_v6  ;;  %v5482_v41 = vld [vmem:[%s6538_s14 + $0xbc] sm:$0x1] }
 0x149   : > { %v7791_v59 = vadd.f32 %v5907_v46, %v7642_v28  ;;  %v2687_v0 = vshll.u32 %v5420_v47, 16  ;;  %v2680_v21 = vrot.slane %v2678_v1, 4  ;;  %v2691_v50 = vshrl.u32 %v5420_v47, 16 }
 0x14a   : > { %v7667_v3 = vpop.f32.mrb[36].mxu0  ;;  %v7675_v54 = vpop.f32.mrb[36].mxu1  ;;  %6265 = vmatmul.mubr.bf16.gmra.mrb[132].mxu0 %v5516_v53  ;;  %v2683_v43 = vrot.slane %v2681_v4, 5  ;;  %v2697_v49 = vshll.u32 %v5421_v2, 16  ;;  %4439 = vmatprep.mubr.bf16.mxu1 %v5438_v42  ;;  %v5501_v51 = vrot.slane %v5477_v45, 9  ;;  %v2987_v52 = vrot.slane %v5478_v13, 5 }
 0x14b   : > { %v7682_v39 = vpop.f32.mrb[37].mxu0  ;;  %v7684_v23 = vpop.f32.mrb[37].mxu1  ;;  %8234 = vst [vmem:[#allocation18_spill] sm:$0xff] %v7791_v59  ;;  %v2689_v26 = vrot.slane %v2687_v0, 5  ;;  %v2990_v5 = vrot.slane %v5479_v12, 5  ;;  %4440 = vmatmul.mubr.bf16.gmra.mrb[132].mxu1 %v6434_v61  ;;  %v2693_v46 = vrot.slane %v2691_v50, 4  ;;  %v5910_v0 = vadd.f32 %v7638_v18, %v7629_v17 }
 0x14c   : > { %v7698_v38 = vpop.f32.mrb[38].mxu0  ;;  %v7700_v9 = vpop.f32.mrb[38].mxu1  ;;  %v2684_v28 = vor.u32 %v2683_v43, %v2680_v21  ;;  %v2699_v6 = vrot.slane %v2697_v49, 5  ;;  %v5502_v53 = vrot.slane %v5480_v25, 9  ;;  %v2988_v2 = vsel %vm6703_vm5, %v5501_v51, %v2987_v52 }
 0x14d   : > { %v7711_v44 = vpop.f32.mrb[39].mxu0  ;;  %v7713_v36 = vpop.f32.mrb[39].mxu1  ;;  %v2989_v45 = vrot.slane %v2987_v52, 4  ;;  %v2994_v13 = vrot.slane %v5481_v48, 5  ;;  %v2997_v4 = vrot.slane %v5482_v41, 5  ;;  %v2694_v21 = vor.u32 %v2693_v46, %v2689_v26 }
 0x14e   : > { %v2685_v61 = vrot.slane %v2684_v28, 4  ;;  %v7813_v25 = vadd.f32 %v7636_v15, %v7627_v60  ;;  %v7825_v50 = vadd.f32 %v7658_v37, %v7651_v33  ;;  %v5422_v60 = vld [vmem:[%s6538_s14 + $0xcc] sm:$0xf]  ;;  %v5423_v15 = vld [vmem:[%s6538_s14 + $0xd0] sm:$0xf]  ;;  %v7831_v17 = vadd.f32 %v7673_v57, %v7465_v16 }
 0x14f   : > { %v2991_v52 = vsel %vm6703_vm5, %v2989_v45, %v2990_v5  ;;  %v2995_v48 = vsel %vm6703_vm5, %v5502_v53, %v2994_v13  ;;  %v2996_v41 = vrot.slane %v2994_v13, 4  ;;  %v2695_v49 = vrot.slane %v2694_v21, 4  ;;  %v5424_v5 = vld [vmem:[%s6538_s14 + $0xd4] sm:$0x1]  ;;  %v5483_v28 = vld [vmem:[%s6538_s14 + $0xc0] sm:$0xe] }
 0x150   : > { %v2690_v18 = vsel %vm6563_vm2, %v2685_v61, %v2689_v26  ;;  %v5517_v51 = vcombine.low %v2988_v2, %v2991_v52  ;;  %v7839_v46 = vadd.f32 %v7695_v8, %v7465_v16  ;;  %v7844_v37 = vadd.f32 %v5910_v0, %v7688_v29  ;;  %v5484_v26 = vld [vmem:[%s6538_s14 + $0xc4] sm:$0xf]  ;;  %v5485_v53 = vld [vmem:[%s6538_s14 + $0xc8] sm:$0x1]  ;;  %v5486_v2 = vld [vmem:[%s6538_s14 + $0xcc] sm:$0xe] }
 0x151   : > { %v2998_v33 = vsel %vm6703_vm5, %v2996_v41, %v2997_v4  ;;  %v5913_v57 = vadd.f32 %v7660_v34, %v7653_v55  ;;  %v2700_v45 = vsel %vm6563_vm2, %v2695_v49, %v2699_v6  ;;  %v6435_v13 = vld [vmem:[%s6538_s14 + $0xc0] sm:$0xff]   ;;  %v2702_v61 = vshrl.u32 %v5422_v60, 16  ;;  %v5487_v52 = vld [vmem:[%s6538_s14 + $0xd0] sm:$0xf]  ;;  %v5488_v41 = vld [vmem:[%s6538_s14 + $0xd4] sm:$0x1] }
 0x152   : > { %v7731_v32 = vpop.f32.mrb[40].mxu1  ;;  %v7733_v56 = vpop.f32.mrb[40].mxu0  ;;  %8236 = vst [vmem:[#allocation20_spill] sm:$0xff] %v7844_v37  ;;  %6268 = vmatprep.mubr.bf16.mxu0 %v5517_v51  ;;  %v5518_v8 = vcombine.low %v2995_v48, %v2998_v33  ;;  %v2705_v21 = vshll.u32 %v5422_v60, 16  ;;  %v5439_v29 = vcombine.low %v2690_v18, %v2700_v45  ;;  %v2711_v55 = vshll.u32 %v5423_v15, 16 }
 0x153   : > { %v7735_v63 = vpop.f32.mrb[41].mxu1  ;;  %v7737_v30 = vpop.f32.mrb[41].mxu0  ;;  %v7858_v0 = vadd.f32 %v5913_v57, %v7717_v24  ;;  %v2715_v34 = vshrl.u32 %v5423_v15, 16  ;;  %v2704_v59 = vrot.slane %v2702_v61, 4  ;;  %v2721_v49 = vshll.u32 %v5424_v5, 16 }
 0x154   : > { %v7739_v10 = vpop.f32.mrb[42].mxu1  ;;  %v7743_v40 = vpop.f32.mrb[42].mxu0  ;;  %6269 = vmatmul.mubr.bf16.gmra.mrb[136].mxu0 %v5518_v8  ;;  %v2707_v6 = vrot.slane %v2705_v21, 5  ;;  %v5503_v51 = vrot.slane %v5483_v28, 9  ;;  %4447 = vmatprep.mubr.bf16.mxu1 %v5439_v29  ;;  %v2713_v60 = vrot.slane %v2711_v55, 5  ;;  %v3004_v18 = vrot.slane %v5485_v53, 5 }
 0x155   : > { %v7745_v58 = vpop.f32.mrb[43].mxu1  ;;  %v7753_v27 = vpop.f32.mrb[43].mxu0  ;;  %8238 = vst [vmem:[#allocation22_spill] sm:$0xff] %v7858_v0  ;;  %v2717_v33 = vrot.slane %v2715_v34, 4  ;;  %4448 = vmatmul.mubr.bf16.gmra.mrb[136].mxu1 %v6435_v13  ;;  %v2723_v15 = vrot.slane %v2721_v49, 5  ;;  %v5504_v0 = vrot.slane %v5486_v2, 9  ;;  %v5916_v55 = vadd.f32 %v7684_v23, %v7675_v54 }
 0x156   : > { %v2708_v57 = vor.u32 %v2707_v6, %v2704_v59  ;;  %v3011_v61 = vrot.slane %v5488_v41, 5  ;;  %v5828_v59 = vadd.f32 %v7682_v39, %v7667_v3  ;;  %v3911_v34 = vadd.f32 %v7749_v62, %v7465_v16  ;;  %v6436_v23 = vld [vmem:[%s6538_s14 + $0xcc] sm:$0xff]  }
 0x157   : > { %v2718_v8 = vor.u32 %v2717_v33, %v2713_v60  ;;  %v3914_v41 = vadd.f32 %v7775_v14, %v7465_v16  ;;  %v5919_v49 = vadd.f32 %v7713_v36, %v7700_v9  ;;  %v5834_v31 = vadd.f32 %v7737_v30, %v7733_v56 }
 0x158   : > { %v2709_v29 = vrot.slane %v2708_v57, 4  ;;  %v5922_v14 = vadd.f32 %v7735_v63, %v7731_v32  ;;  %v5837_v35 = vadd.f32 %v7753_v27, %v7743_v40  ;;  %v3919_v56 = vadd.f32 %v7813_v25, %v7465_v16 }
 0x159   : > { %v2719_v2 = vrot.slane %v2718_v8, 4  ;;  %v7908_v32 = vadd.f32 %v5919_v49, %v7788_v22  ;;  %v8243_v8 = vld [vmem:[#allocation11_spill] sm:$0xff] }
 0x15a   : > { %v7795_v20 = vpop.f32.mrb[44].mxu1  ;;  %v7797_v11 = vpop.f32.mrb[44].mxu0  ;;  %v7911_v63 = vadd.f32 %v5922_v14, %v7831_v17 }
 0x15b   : > { %v7799_v19 = vpop.f32.mrb[45].mxu1  ;;  %v7801_v1 = vpop.f32.mrb[45].mxu0  ;;  %v2724_v54 = vsel %vm6563_vm2, %v2719_v2, %v2723_v15 }
 0x15c   : > { %v7803_v47 = vpop.f32.mrb[46].mxu1  ;;  %v7807_v12 = vpop.f32.mrb[46].mxu0  ;;  %v5928_v9 = vadd.f32 %v7799_v19, %v7795_v20 }
 0x15d   : > { %v7809_v42 = vpop.f32.mrb[47].mxu1  ;;  %v7817_v43 = vpop.f32.mrb[47].mxu0 }
 0x15e   : > { %8235 = vst [vmem:[#allocation19_spill] sm:$0xff] %v7809_v42  ;;  %v3008_v42 = vrot.slane %v5487_v52, 5  ;;  %v5843_v30 = vadd.f32 %v7817_v43, %v7807_v12 }
 0x160   : > { %v3010_v53 = vrot.slane %v3008_v42, 4 }
 0x162   : > { %v7855_v4 = vpop.f32.mrb[48].mxu1  ;;  %v5996_v45 = vpop.f32.mrb[48].mxu0  ;;  %v3012_v3 = vsel %vm6703_vm5, %v3010_v53, %v3011_v61  ;;  %v3935_v53 = vadd.f32 %v5834_v31, %v7465_v16 }
 0x163   : > { %8237 = vst [vmem:[#allocation21_spill] sm:$0xff] %v7855_v4  ;;  %v7861_v37 = vpop.f32.mrb[49].mxu1  ;;  %v3001_v4 = vrot.slane %v5484_v26, 5  ;;  %v3009_v26 = vsel %vm6703_vm5, %v5504_v0, %v3008_v42  ;;  %v2714_v42 = vsel %vm6563_vm2, %v2709_v29, %v2713_v60  ;;  %v5840_v60 = vadd.f32 %v7801_v1, %v7797_v11 }
 0x164   : > { %8239 = vst [vmem:[#allocation23_spill] sm:$0xff] %v7861_v37  ;;  %v7863_v48 = vpop.f32.mrb[50].mxu1  ;;  %v5997_v37 = vpop.f32.mrb[49].mxu0  ;;  %v5520_v6 = vcombine.low %v3009_v26, %v3012_v3  ;;  %v5440_v62 = vcombine.low %v2714_v42, %v2724_v54  ;;  %v3922_v11 = vadd.f32 %v7825_v50, %v7465_v16  ;;  %v8246_v42 = vld [vmem:[#allocation14_spill] sm:$0xff] }
 0x165   : > { %v5936_v24 = vpop.f32.mrb[51].mxu1  ;;  %v3002_v5 = vsel %vm6703_vm5, %v5503_v51, %v3001_v4  ;;  %v3003_v28 = vrot.slane %v3001_v4, 4  ;;  %v5999_v21 = vpop.f32.mrb[50].mxu0  ;;  %v5831_v4 = vadd.f32 %v7711_v44, %v7698_v38  ;;  %v7889_v38 = vadd.f32 %v5916_v55, %v7762_v7  ;;  %v8240_v22 = vld [vmem:[#allocation19_spill] sm:$0xff] }
 0x166   : > { %v6000_v13 = vpop.f32.mrb[51].mxu0  ;;  %v5925_v7 = vadd.f32 %v7745_v58, %v7739_v10  ;;  %4455 = vmatprep.mubr.bf16.mxu1 %v5440_v62  ;;  %v3927_v10 = vadd.f32 %v5828_v59, %v7465_v16  ;;  %v7921_v58 = vadd.f32 %v5928_v9, %v3911_v34  ;;  %v5931_v20 = vadd.f32 %v8240_v22, %v7803_v47  ;;  %v8245_v59 = vld [vmem:[#allocation13_spill] sm:$0xff]  ;;  %v8248_v22 = vld [vmem:[#allocation16_spill] sm:$0xff] }
 0x167   : > { %v3005_v52 = vsel %vm6703_vm5, %v3003_v28, %v3004_v18  ;;  %4456 = vmatmul.mubr.bf16.gmra.mrb[140].mxu1 %v6436_v23  ;;  %v3930_v27 = vadd.f32 %v5831_v4, %v7465_v16  ;;  %v5998_v12 = vadd.f32 %v5997_v37, %v5996_v45  ;;  %v5937_v50 = vadd.f32 %v5936_v24, %v7863_v48  ;;  %v8244_v37 = vld [vmem:[#allocation12_spill] sm:$0xff] }
 0x168   : > { %v5519_v0 = vcombine.low %v3002_v5, %v3005_v52  ;;  %v7919_v40 = vadd.f32 %v5925_v7, %v7839_v46  ;;  %v6001_v17 = vadd.f32 %v6000_v13, %v5999_v21  ;;  %v7929_v46 = vadd.f32 %v5931_v20, %v3914_v41 }
 0x169   : > { %v7934_v5 = vadd.f32 %v5998_v12, %v8243_v8  ;;  %v7936_v29 = vadd.f32 %v5937_v50, %v3922_v11  ;;  %v3938_v34 = vadd.f32 %v5837_v35, %v7465_v16  ;;  %v3943_v31 = vadd.f32 %v5840_v60, %v7465_v16  ;;  %v8247_v35 = vld [vmem:[#allocation15_spill] sm:$0xff]  ;;  %v8250_v8 = vld [vmem:[#allocation17_spill] sm:$0xff] }
 0x16a   : > { %v5938_v39 = vpop.f32.mrb[52].mxu1  ;;  %6272 = vmatprep.mubr.bf16.mxu0 %v5519_v0  ;;  %v8241_v19 = vld [vmem:[#allocation21_spill] sm:$0xff]  ;;  %v6002_v43 = vpop.f32.mrb[52].mxu0  ;;  %v7939_v45 = vadd.f32 %v6001_v17, %v8244_v37  ;;  %v3946_v11 = vadd.f32 %v5843_v30, %v7465_v16  ;;  %v8249_v17 = vld [vmem:[#allocation3_spill] sm:$0xff]  ;;  %v8251_v37 = vld [vmem:[#allocation4_spill] sm:$0xff] }
 0x16b   : > { %v5939_v44 = vpop.f32.mrb[53].mxu1  ;;  %6273 = vmatmul.mubr.bf16.gmra.mrb[140].mxu0 %v5520_v6  ;;  %v8242_v1 = vld [vmem:[#allocation23_spill] sm:$0xff]  ;;  %v6003_v18 = vpop.f32.mrb[53].mxu0 }
 0x16c   : > { %v5941_v51 = vpop.f32.mrb[54].mxu1  ;;  %v5934_v25 = vadd.f32 %v8242_v1, %v8241_v19  ;;  %v5940_v33 = vadd.f32 %v5939_v44, %v5938_v39  ;;  %v6004_v28 = vadd.f32 %v6003_v18, %v6002_v43  ;;  %v6005_v47 = vpop.f32.mrb[54].mxu0 }
 0x16d   : > { %v5942_v36 = vpop.f32.mrb[55].mxu1  ;;  %v6006_v21 = vpop.f32.mrb[55].mxu0 }
 0x16e   : > { %v5943_v57 = vadd.f32 %v5942_v36, %v5941_v51  ;;  %v7931_v15 = vadd.f32 %v5934_v25, %v3919_v56  ;;  %v7941_v48 = vadd.f32 %v5940_v33, %v3927_v10  ;;  %v7947_v13 = vadd.f32 %v6004_v28, %v8245_v59  ;;  %v8252_v59 = vld [vmem:[#allocation18_spill] sm:$0xff] }
 0x16f   : > { %v6007_v2 = vadd.f32 %v6006_v21, %v6005_v47  ;;  %v3951_v33 = vadd.f32 %v8249_v17, %v7465_v16  ;;  %v3954_v21 = vadd.f32 %v8251_v37, %v7465_v16 }
 0x170   : > { %v7943_v24 = vadd.f32 %v5943_v57, %v3930_v27 }
 0x171   : > { %v7951_v0 = vadd.f32 %v6007_v2, %v8246_v42 }
 0x172   : > { %v5944_v61 = vpop.f32.mrb[56].mxu1  ;;  %v6008_v54 = vpop.f32.mrb[56].mxu0 }
 0x173   : > { %v5945_v26 = vpop.f32.mrb[57].mxu1  ;;  %v6009_v23 = vpop.f32.mrb[57].mxu0 }
 0x174   : > { %v5946_v52 = vadd.f32 %v5945_v26, %v5944_v61  ;;  %v5947_v55 = vpop.f32.mrb[58].mxu1  ;;  %v6010_v44 = vadd.f32 %v6009_v23, %v6008_v54  ;;  %v6011_v62 = vpop.f32.mrb[58].mxu0  ;;  %v8253_v23 = vld [vmem:[#allocation5_spill] sm:$0xff] }
 0x175   : > { %v5948_v4 = vpop.f32.mrb[59].mxu1  ;;  %v6012_v14 = vpop.f32.mrb[59].mxu0 }
 0x176   : > { %v7953_v3 = vadd.f32 %v5946_v52, %v3935_v53  ;;  %v5949_v39 = vadd.f32 %v5948_v4, %v5947_v55  ;;  %v7959_v9 = vadd.f32 %v6010_v44, %v8247_v35  ;;  %v6013_v36 = vadd.f32 %v6012_v14, %v6011_v62  ;;  %v6437_v35 = vld [vmem:[%s8212_s2] ss:$0 sm:$0xff] }
 0x178   : > { %v7955_v41 = vadd.f32 %v5949_v39, %v3938_v34  ;;  %v7965_v20 = vadd.f32 %v6013_v36, %v8248_v22  ;;  %v8255_v36 = vld [vmem:[#allocation6_spill] sm:$0xff] }
 0x179   : > { %v8256_v22 = vld [vmem:[#allocation22_spill] sm:$0xff] }
 0x17a   : > { %v5950_v6 = vpop.f32.mrb[60].mxu1  ;;  %v6014_v1 = vpop.f32.mrb[60].mxu0 }
 0x17b   : > { %v5951_v49 = vpop.f32.mrb[61].mxu1  ;;  %v6015_v60 = vpop.f32.mrb[61].mxu0 }
 0x17c   : > { %v5952_v51 = vadd.f32 %v5951_v49, %v5950_v6  ;;  %v5953_v7 = vpop.f32.mrb[62].mxu1  ;;  %v6016_v12 = vadd.f32 %v6015_v60, %v6014_v1  ;;  %v6017_v43 = vpop.f32.mrb[62].mxu0  ;;  %v3959_v6 = vadd.f32 %v8253_v23, %v7465_v16 }
 0x17d   : > { %v5954_v56 = vpop.f32.mrb[63].mxu1  ;;  %v6018_v18 = vpop.f32.mrb[63].mxu0 }
 0x17e   : > { %v7962_v10 = vadd.f32 %v5952_v51, %v3943_v31  ;;  %v5955_v27 = vadd.f32 %v5954_v56, %v5953_v7  ;;  %v7972_v28 = vadd.f32 %v6016_v12, %v8250_v8  ;;  %v6019_v47 = vadd.f32 %v6018_v18, %v6017_v43  ;;  %v8254_v31 = vld [vmem:[#allocation20_spill] sm:$0xff] }
 0x17f   : > { %v3962_v56 = vadd.f32 %v6437_v35, %v8255_v36  ;;  %v8258_v8 = vld [vmem:[#allocation8_spill] sm:$0xff] }
 0x180   : > { %v7967_v19 = vadd.f32 %v5955_v27, %v3946_v11  ;;  %v7979_v2 = vadd.f32 %v6019_v47, %v8252_v59  ;;  %v3970_v47 = vadd.f32 %v6437_v35, %v8258_v8 }
 0x182   : > { %v5956_v25 = vpop.f32.mrb[64].mxu1  ;;  %v6020_v55 = vpop.f32.mrb[64].mxu0 }
 0x183   : > { %v5957_v50 = vpop.f32.mrb[65].mxu1  ;;  %v6021_v4 = vpop.f32.mrb[65].mxu0 }
 0x184   : > { %v5958_v57 = vadd.f32 %v5957_v50, %v5956_v25  ;;  %v5959_v30 = vpop.f32.mrb[66].mxu1  ;;  %v6022_v42 = vadd.f32 %v6021_v4, %v6020_v55  ;;  %v6023_v39 = vpop.f32.mrb[66].mxu0  ;;  %v8257_v50 = vld [vmem:[#allocation7_spill] sm:$0xff] }
 0x185   : > { %v5960_v61 = vpop.f32.mrb[67].mxu1  ;;  %v6024_v44 = vpop.f32.mrb[67].mxu0  ;;  %v3967_v17 = vadd.f32 %v6437_v35, %v8257_v50 }
 0x186   : > { %v7976_v26 = vadd.f32 %v5958_v57, %v3951_v33  ;;  %v5961_v53 = vadd.f32 %v5960_v61, %v5959_v30  ;;  %v7986_v14 = vadd.f32 %v6022_v42, %v8254_v31  ;;  %v6025_v51 = vadd.f32 %v6024_v44, %v6023_v39 }
 0x188   : > { %v7981_v52 = vadd.f32 %v5961_v53, %v3954_v21  ;;  %v7995_v1 = vadd.f32 %v6025_v51, %v8256_v22 }
 0x18a   : > { %v5962_v34 = vpop.f32.mrb[68].mxu1  ;;  %v6026_v60 = vpop.f32.mrb[68].mxu0 }
 0x18b   : > { %v5963_v54 = vpop.f32.mrb[69].mxu1  ;;  %v6027_v12 = vpop.f32.mrb[69].mxu0 }
 0x18c   : > { %v5964_v62 = vadd.f32 %v5963_v54, %v5962_v34  ;;  %v5965_v49 = vpop.f32.mrb[70].mxu1  ;;  %v6028_v33 = vadd.f32 %v6027_v12, %v6026_v60  ;;  %v6029_v18 = vpop.f32.mrb[70].mxu0 }
 0x18d   : > { %v5966_v7 = vpop.f32.mrb[71].mxu1  ;;  %v6030_v61 = vpop.f32.mrb[71].mxu0 }
 0x18e   : > { %v7992_v11 = vadd.f32 %v5964_v62, %v3959_v6  ;;  %v5967_v27 = vadd.f32 %v5966_v7, %v5965_v49  ;;  %v8002_v21 = vadd.f32 %v6028_v33, %v7889_v38  ;;  %v6031_v53 = vadd.f32 %v6030_v61, %v6029_v18  ;;  %v8259_v62 = vld [vmem:[#allocation9_spill] sm:$0xff] }
 0x18f   : > { %v3975_v49 = vadd.f32 %v6437_v35, %v8259_v62 }
 0x190   : > { %v7997_v16 = vadd.f32 %v5967_v27, %v3962_v56  ;;  %v8007_v4 = vadd.f32 %v6031_v53, %v7908_v32  ;;  %v8260_v32 = vld [vmem:[#allocation10_spill] sm:$0xff] }
 0x191   : > { %v3978_v27 = vadd.f32 %v6437_v35, %v8260_v32 }
 0x192   : > { %v5968_v25 = vpop.f32.mrb[72].mxu1  ;;  %v6032_v42 = vpop.f32.mrb[72].mxu0 }
 0x193   : > { %v5969_v43 = vpop.f32.mrb[73].mxu1  ;;  %v6033_v39 = vpop.f32.mrb[73].mxu0 }
 0x194   : > { %v5970_v57 = vadd.f32 %v5969_v43, %v5968_v25  ;;  %v5971_v30 = vpop.f32.mrb[74].mxu1  ;;  %v6034_v23 = vadd.f32 %v6033_v39, %v6032_v42  ;;  %v6035_v6 = vpop.f32.mrb[74].mxu0 }
 0x195   : > { %v5972_v37 = vpop.f32.mrb[75].mxu1  ;;  %v6036_v31 = vpop.f32.mrb[75].mxu0 }
 0x196   : > { %v8004_v59 = vadd.f32 %v5970_v57, %v3967_v17  ;;  %v5973_v55 = vadd.f32 %v5972_v37, %v5971_v30  ;;  %v8013_v7 = vadd.f32 %v6034_v23, %v7911_v63  ;;  %v6037_v36 = vadd.f32 %v6036_v31, %v6035_v6 }
 0x198   : > { %v8009_v34 = vadd.f32 %v5973_v55, %v3970_v47  ;;  %v8019_v25 = vadd.f32 %v6037_v36, %v7919_v40 }
 0x19a   : > { %v5974_v54 = vpop.f32.mrb[76].mxu1  ;;  %v6038_v43 = vpop.f32.mrb[76].mxu0 }
 0x19b   : > { %v5975_v44 = vpop.f32.mrb[77].mxu1  ;;  %v6039_v50 = vpop.f32.mrb[77].mxu0 }
 0x19c   : > { %v5976_v38 = vadd.f32 %v5975_v44, %v5974_v54  ;;  %v5977_v51 = vpop.f32.mrb[78].mxu1  ;;  %v6040_v17 = vadd.f32 %v6039_v50, %v6038_v43  ;;  %v6041_v33 = vpop.f32.mrb[78].mxu0 }
 0x19d   : > { %v5978_v56 = vpop.f32.mrb[79].mxu1  ;;  %v6042_v18 = vpop.f32.mrb[79].mxu0 }
 0x19e   : > { %v8016_v22 = vadd.f32 %v5976_v38, %v3975_v49  ;;  %v5979_v60 = vadd.f32 %v5978_v56, %v5977_v51  ;;  %v8024_v63 = vadd.f32 %v6040_v17, %v7921_v58  ;;  %v6043_v57 = vadd.f32 %v6042_v18, %v6041_v33 }
 0x1a0   : > { %v8021_v12 = vadd.f32 %v5979_v60, %v3978_v27  ;;  %v8027_v30 = vadd.f32 %v6043_v57, %v7929_v46 }
 0x1a2   : > { %v6108_v35 = vpop.f32.mrb[80].mxu1  ;;  %v6044_v37 = vpop.f32.mrb[80].mxu0 }
 0x1a3   : > { %v6109_v8 = vpop.f32.mrb[81].mxu1  ;;  %v6045_v42 = vpop.f32.mrb[81].mxu0 }
 0x1a4   : > { %v6110_v47 = vadd.f32 %v6109_v8, %v6108_v35  ;;  %v6111_v61 = vpop.f32.mrb[82].mxu1  ;;  %v6046_v39 = vadd.f32 %v6045_v42, %v6044_v37  ;;  %v6047_v54 = vpop.f32.mrb[82].mxu0 }
 0x1a5   : > { %v6112_v40 = vpop.f32.mrb[83].mxu1  ;;  %v6048_v23 = vpop.f32.mrb[83].mxu0 }
 0x1a6   : > { %v6113_v53 = vadd.f32 %v6112_v40, %v6111_v61  ;;  %v8030_v55 = vadd.f32 %v6110_v47, %v7934_v5  ;;  %v8036_v46 = vadd.f32 %v6046_v39, %v7931_v15  ;;  %v6049_v6 = vadd.f32 %v6048_v23, %v6047_v54 }
 0x1a8   : > { %v8033_v58 = vadd.f32 %v6113_v53, %v7939_v45  ;;  %v8039_v44 = vadd.f32 %v6049_v6, %v7936_v29 }
 0x1aa   : > { %v6114_v62 = vpop.f32.mrb[84].mxu1  ;;  %v6050_v51 = vpop.f32.mrb[84].mxu0 }
 0x1ab   : > { %v6115_v49 = vpop.f32.mrb[85].mxu1  ;;  %v6051_v45 = vpop.f32.mrb[85].mxu0 }
 0x1ac   : > { %v6116_v31 = vadd.f32 %v6115_v49, %v6114_v62  ;;  %v6117_v38 = vpop.f32.mrb[86].mxu1  ;;  %v6052_v32 = vadd.f32 %v6051_v45, %v6050_v51  ;;  %v6053_v27 = vpop.f32.mrb[86].mxu0 }
 0x1ad   : > { %v6118_v5 = vpop.f32.mrb[87].mxu1  ;;  %v6054_v60 = vpop.f32.mrb[87].mxu0 }
 0x1ae   : > { %v6119_v36 = vadd.f32 %v6118_v5, %v6117_v38  ;;  %v8042_v56 = vadd.f32 %v6116_v31, %v7947_v13  ;;  %v8048_v29 = vadd.f32 %v6052_v32, %v7941_v48  ;;  %v6055_v43 = vadd.f32 %v6054_v60, %v6053_v27 }
 0x1b0   : > { %v8045_v15 = vadd.f32 %v6119_v36, %v7951_v0  ;;  %v8051_v50 = vadd.f32 %v6055_v43, %v7943_v24 }
 0x1b2   : > { %v6120_v17 = vpop.f32.mrb[88].mxu1  ;;  %v6056_v35 = vpop.f32.mrb[88].mxu0 }
 0x1b3   : > { %v6121_v33 = vpop.f32.mrb[89].mxu1  ;;  %v6057_v0 = vpop.f32.mrb[89].mxu0 }
 0x1b4   : > { %v6122_v18 = vadd.f32 %v6121_v33, %v6120_v17  ;;  %v6123_v57 = vpop.f32.mrb[90].mxu1  ;;  %v6058_v61 = vadd.f32 %v6057_v0, %v6056_v35  ;;  %v6059_v40 = vpop.f32.mrb[90].mxu0 }
 0x1b5   : > { %v6124_v13 = vpop.f32.mrb[91].mxu1  ;;  %v6060_v37 = vpop.f32.mrb[91].mxu0 }
 0x1b6   : > { %v6125_v8 = vadd.f32 %v6124_v13, %v6123_v57  ;;  %v8054_v47 = vadd.f32 %v6122_v18, %v7959_v9  ;;  %v8060_v24 = vadd.f32 %v6058_v61, %v7953_v3  ;;  %v6061_v53 = vadd.f32 %v6060_v37, %v6059_v40 }
 0x1b8   : > { %v8057_v48 = vadd.f32 %v6125_v8, %v7965_v20  ;;  %v8063_v42 = vadd.f32 %v6061_v53, %v7955_v41 }
 0x1ba   : > { %v6126_v39 = vpop.f32.mrb[92].mxu1 }
 0x1bb   : > { %v6127_v54 = vpop.f32.mrb[93].mxu1  ;;  %v6062_v62 = vpop.f32.mrb[92].mxu0 }
 0x1bc   : > { %v6128_v23 = vadd.f32 %v6127_v54, %v6126_v39  ;;  %v6129_v6 = vpop.f32.mrb[94].mxu1  ;;  %v6063_v20 = vpop.f32.mrb[93].mxu0 }
 0x1bd   : > { %v6130_v9 = vpop.f32.mrb[95].mxu1  ;;  %v6064_v38 = vadd.f32 %v6063_v20, %v6062_v62  ;;  %v6065_v5 = vpop.f32.mrb[94].mxu0 }
 0x1be   : > { %v6131_v49 = vadd.f32 %v6130_v9, %v6129_v6  ;;  %v8066_v31 = vadd.f32 %v6128_v23, %v7972_v28  ;;  %v6066_v51 = vpop.f32.mrb[95].mxu0 }
 0x1bf   : > { %v8072_v41 = vadd.f32 %v6064_v38, %v7962_v10  ;;  %v6067_v36 = vadd.f32 %v6066_v51, %v6065_v5 }
 0x1c0   : > { %v8069_v3 = vadd.f32 %v6131_v49, %v7979_v2 }
 0x1c1   : > { %v8075_v45 = vadd.f32 %v6067_v36, %v7967_v19 }
 0x1c3   : > { %v6132_v32 = vpop.f32.mrb[96].mxu1 }
 0x1c4   : > { %v6133_v27 = vpop.f32.mrb[97].mxu1 }
 0x1c5   : > { %v6134_v60 = vadd.f32 %v6133_v27, %v6132_v32  ;;  %v6135_v43 = vpop.f32.mrb[98].mxu1 }
 0x1c6   : > { %v6068_v28 = vpop.f32.mrb[96].mxu0  ;;  %v6136_v17 = vpop.f32.mrb[99].mxu1 }
 0x1c7   : > { %v6069_v33 = vpop.f32.mrb[97].mxu0  ;;  %v6137_v18 = vadd.f32 %v6136_v17, %v6135_v43  ;;  %v8078_v57 = vadd.f32 %v6134_v60, %v7986_v14 }
 0x1c8   : > { %v6070_v2 = vadd.f32 %v6069_v33, %v6068_v28  ;;  %v6071_v13 = vpop.f32.mrb[98].mxu0 }
 0x1c9   : > { %v6072_v35 = vpop.f32.mrb[99].mxu0  ;;  %v8081_v10 = vadd.f32 %v6137_v18, %v7995_v1 }
 0x1ca   : > { %v8084_v19 = vadd.f32 %v6070_v2, %v7976_v26  ;;  %v6073_v8 = vadd.f32 %v6072_v35, %v6071_v13 }
 0x1cc   : > { %v8087_v0 = vadd.f32 %v6073_v8, %v7981_v52 }
 0x1cd   : > { %v6138_v61 = vpop.f32.mrb[100].mxu1 }
 0x1ce   : > { %v6139_v40 = vpop.f32.mrb[101].mxu1 }
 0x1cf   : > { %v6140_v37 = vadd.f32 %v6139_v40, %v6138_v61  ;;  %v6141_v53 = vpop.f32.mrb[102].mxu1 }
 0x1d0   : > { %v6074_v39 = vpop.f32.mrb[100].mxu0  ;;  %v6142_v14 = vpop.f32.mrb[103].mxu1 }
 0x1d1   : > { %v6075_v54 = vpop.f32.mrb[101].mxu0  ;;  %v6143_v23 = vadd.f32 %v6142_v14, %v6141_v53  ;;  %v8090_v6 = vadd.f32 %v6140_v37, %v8002_v21 }
 0x1d2   : > { %v6076_v1 = vadd.f32 %v6075_v54, %v6074_v39  ;;  %v6077_v9 = vpop.f32.mrb[102].mxu0 }
 0x1d3   : > { %v6078_v62 = vpop.f32.mrb[103].mxu0  ;;  %v8093_v26 = vadd.f32 %v6143_v23, %v8007_v4 }
 0x1d4   : > { %v8096_v52 = vadd.f32 %v6076_v1, %v7992_v11  ;;  %v6079_v49 = vadd.f32 %v6078_v62, %v6077_v9 }
 0x1d6   : > { %v8099_v20 = vadd.f32 %v6079_v49, %v7997_v16 }
 0x1db   : > { %v6144_v38 = vpop.f32.mrb[104].mxu1 }
 0x1dc   : > { %v6145_v5 = vpop.f32.mrb[105].mxu1 }
 0x1dd   : > { %v6146_v51 = vadd.f32 %v6145_v5, %v6144_v38  ;;  %v6147_v36 = vpop.f32.mrb[106].mxu1 }
 0x1de   : > { %v6080_v32 = vpop.f32.mrb[104].mxu0  ;;  %v6148_v21 = vpop.f32.mrb[107].mxu1 }
 0x1df   : > { %v6081_v27 = vpop.f32.mrb[105].mxu0  ;;  %v6149_v60 = vadd.f32 %v6148_v21, %v6147_v36  ;;  %v8102_v43 = vadd.f32 %v6146_v51, %v8013_v7 }
 0x1e0   : > { %v6082_v4 = vadd.f32 %v6081_v27, %v6080_v32  ;;  %v6083_v28 = vpop.f32.mrb[106].mxu0 }
 0x1e1   : > { %v6084_v17 = vpop.f32.mrb[107].mxu0  ;;  %v8105_v11 = vadd.f32 %v6149_v60, %v8019_v25 }
 0x1e2   : > { %v8108_v16 = vadd.f32 %v6082_v4, %v8004_v59  ;;  %v6085_v33 = vadd.f32 %v6084_v17, %v6083_v28 }
 0x1e4   : > { %v8111_v18 = vadd.f32 %v6085_v33, %v8009_v34  ;;  %v6150_v2 = vpop.f32.mrb[108].mxu1 }
 0x1e5   : > { %v6151_v13 = vpop.f32.mrb[109].mxu1 }
 0x1e6   : > { %v6152_v35 = vadd.f32 %v6151_v13, %v6150_v2  ;;  %v6153_v8 = vpop.f32.mrb[110].mxu1 }
 0x1e7   : > { %v6086_v61 = vpop.f32.mrb[108].mxu0  ;;  %v6154_v7 = vpop.f32.mrb[111].mxu1 }
 0x1e8   : > { %v6087_v40 = vpop.f32.mrb[109].mxu0  ;;  %v6155_v37 = vadd.f32 %v6154_v7, %v6153_v8  ;;  %v8114_v53 = vadd.f32 %v6152_v35, %v8024_v63 }
 0x1e9   : > { %v6088_v25 = vadd.f32 %v6087_v40, %v6086_v61  ;;  %v6089_v39 = vpop.f32.mrb[110].mxu0 }
 0x1ea   : > { %v6090_v59 = vpop.f32.mrb[111].mxu0  ;;  %v8117_v14 = vadd.f32 %v6155_v37, %v8027_v30 }
 0x1eb   : > { %v8120_v34 = vadd.f32 %v6088_v25, %v8016_v22  ;;  %v6091_v54 = vadd.f32 %v6090_v59, %v6089_v39 }
 0x1ed   : > { %v8123_v23 = vadd.f32 %v6091_v54, %v8021_v12 }
 0x1ee   : > { %v6156_v1 = vpop.f32.mrb[112].mxu1 }
 0x1ef   : > { %v6246_v9 = vpop.f32.mrb[112].mxu0  ;;  %v6157_v63 = vpop.f32.mrb[113].mxu1 }
 0x1f0   : > { %v4507_v62 = vadd.f32 %v6246_v9, %v8042_v56  ;;  %v4498_v49 = vpop.f32.mrb[113].mxu0  ;;  %v6158_v38 = vadd.f32 %v6157_v63, %v6156_v1  ;;  %v6159_v51 = vpop.f32.mrb[114].mxu1 }
 0x1f1   : > { %v4499_v5 = vadd.f32 %v4498_v49, %v8030_v55  ;;  %v6247_v36 = vpop.f32.mrb[114].mxu0  ;;  %v6160_v22 = vpop.f32.mrb[115].mxu1 }
 0x1f2   : > { %v4510_v30 = vadd.f32 %v6247_v36, %v8045_v15  ;;  %v4501_v32 = vpop.f32.mrb[115].mxu0  ;;  %v6161_v27 = vadd.f32 %v6160_v22, %v6159_v51  ;;  %v8131_v60 = vadd.f32 %v6158_v38, %v8036_v46  ;;  %v4627_v56 = vmax.f32 %v4507_v62, 0.0 }
 0x1f3   : > { %v4625_v21 = vmax.f32 %v4499_v5, 0.0  ;;  %v4502_v12 = vadd.f32 %v4501_v32, %v8033_v58 }
 0x1f4   : > { %v4628_v4 = vmax.f32 %v4510_v30, 0.0  ;;  %v8139_v15 = vadd.f32 %v6161_v27, %v8039_v44  ;;  %v4856_v61 = vmul.f32 %v4627_v56, %v4627_v56 }
 0x1f5   : > { %v4626_v55 = vmax.f32 %v4502_v12, 0.0  ;;  %v4854_v17 = vmul.f32 %v4625_v21, %v4625_v21 }
 0x1f6   : > { %v5669_v28 = vpack.c.bf16 %v4628_v4, %v4627_v56  ;;  %v4857_v39 = vmul.f32 %v4628_v4, %v4628_v4 }
 0x1f7   : > { %v5664_v33 = vpack.c.bf16 %v4626_v55, %v4625_v21  ;;  %v4817_v58 = vadd.f32 %v4626_v55, %v4625_v21  ;;  %v4855_v2 = vmul.f32 %v4626_v55, %v4626_v55  ;;  %v6250_v46 = vpop.f32.mrb[116].mxu0  ;;  %v6162_v13 = vpop.f32.mrb[116].mxu1 }
 0x1f8   : > { %5741 = vst [vmem:[%s8136_s25 + $0x8] sm:$0xff] %v5669_v28   ;;  %v4523_v35 = vadd.f32 %v6250_v46, %v8066_v31  ;;  %v4514_v8 = vpop.f32.mrb[117].mxu0  ;;  %v6163_v37 = vpop.f32.mrb[117].mxu1 }
 0x1f9   : > { %5665 = vst [vmem:[%s8136_s25] sm:$0xff] %v5664_v33   ;;  %v4818_v7 = vadd.f32 %v4817_v58, %v4627_v56  ;;  %v4886_v40 = vadd.f32 %v4855_v2, %v4854_v17  ;;  %v4515_v25 = vadd.f32 %v4514_v8, %v8054_v47  ;;  %v6251_v44 = vpop.f32.mrb[118].mxu0  ;;  %v6164_v59 = vadd.f32 %v6163_v37, %v6162_v13  ;;  %v6165_v54 = vpop.f32.mrb[118].mxu1 }
 0x1fa   : > { %v4526_v1 = vadd.f32 %v6251_v44, %v8069_v3  ;;  %v4517_v9 = vpop.f32.mrb[119].mxu0  ;;  %v6166_v38 = vpop.f32.mrb[119].mxu1  ;;  %v4631_v5 = vmax.f32 %v4523_v35, 0.0 }
 0x1fb   : > { %v4887_v62 = vadd.f32 %v4886_v40, %v4856_v61  ;;  %v4629_v63 = vmax.f32 %v4515_v25, 0.0  ;;  %v4819_v49 = vadd.f32 %v4818_v7, %v4628_v4  ;;  %v4518_v31 = vadd.f32 %v4517_v9, %v8057_v48 }
 0x1fc   : > { %v4632_v51 = vmax.f32 %v4526_v1, 0.0  ;;  %v6167_v36 = vadd.f32 %v6166_v38, %v6165_v54  ;;  %v8148_v47 = vadd.f32 %v6164_v59, %v8048_v29  ;;  %v4860_v48 = vmul.f32 %v4631_v5, %v4631_v5 }
 0x1fd   : > { %v4820_v30 = vadd.f32 %v4819_v49, %v4629_v63  ;;  %v4858_v22 = vmul.f32 %v4629_v63, %v4629_v63  ;;  %v4888_v32 = vadd.f32 %v4887_v62, %v4857_v39  ;;  %v4630_v21 = vmax.f32 %v4518_v31, 0.0 }
 0x1fe   : > { %v5679_v3 = vpack.c.bf16 %v4632_v51, %v4631_v5  ;;  %v8151_v27 = vadd.f32 %v6167_v36, %v8051_v50  ;;  %v4861_v58 = vmul.f32 %v4632_v51, %v4632_v51 }
 0x1ff   : > { %v4889_v12 = vadd.f32 %v4888_v32, %v4858_v22  ;;  %v5674_v56 = vpack.c.bf16 %v4630_v21, %v4629_v63  ;;  %v4821_v4 = vadd.f32 %v4820_v30, %v4630_v21  ;;  %v4859_v55 = vmul.f32 %v4630_v21, %v4630_v21 }
 0x200   : > { %5743 = vst [vmem:[%s8136_s25 + $0x18] sm:$0xff] %v5679_v3   ;;  %v6254_v29 = vpop.f32.mrb[120].mxu0 }
 0x201   : > { %5742 = vst [vmem:[%s8136_s25 + $0x10] sm:$0xff] %v5674_v56   ;;  %v4822_v28 = vadd.f32 %v4821_v4, %v4631_v5  ;;  %v4890_v17 = vadd.f32 %v4889_v12, %v4859_v55  ;;  %v6168_v33 = vpop.f32.mrb[120].mxu1  ;;  %v4539_v46 = vadd.f32 %v6254_v29, %v8090_v6  ;;  %v4530_v35 = vpop.f32.mrb[121].mxu0 }
 0x202   : > { %v6169_v13 = vpop.f32.mrb[121].mxu1  ;;  %v4531_v61 = vadd.f32 %v4530_v35, %v8078_v57  ;;  %v6255_v40 = vpop.f32.mrb[122].mxu0 }
 0x203   : > { %v4891_v2 = vadd.f32 %v4890_v17, %v4860_v48  ;;  %v4823_v8 = vadd.f32 %v4822_v28, %v4632_v51  ;;  %v6170_v50 = vadd.f32 %v6169_v13, %v6168_v33  ;;  %v6171_v7 = vpop.f32.mrb[122].mxu1  ;;  %v4542_v25 = vadd.f32 %v6255_v40, %v8093_v26  ;;  %v4533_v39 = vpop.f32.mrb[123].mxu0 }
 0x204   : > { %v6172_v44 = vpop.f32.mrb[123].mxu1  ;;  %v4633_v59 = vmax.f32 %v4531_v61, 0.0  ;;  %v4534_v1 = vadd.f32 %v4533_v39, %v8081_v10  ;;  %v4635_v9 = vmax.f32 %v4539_v46, 0.0 }
 0x205   : > { %v4892_v37 = vadd.f32 %v4891_v2, %v4861_v58  ;;  %v6173_v54 = vadd.f32 %v6172_v44, %v6171_v7  ;;  %v8160_v6 = vadd.f32 %v6170_v50, %v8060_v24  ;;  %v4636_v62 = vmax.f32 %v4542_v25, 0.0 }
 0x206   : > { %v4824_v63 = vadd.f32 %v4823_v8, %v4633_v59  ;;  %v4862_v57 = vmul.f32 %v4633_v59, %v4633_v59  ;;  %v4634_v49 = vmax.f32 %v4534_v1, 0.0  ;;  %v4864_v22 = vmul.f32 %v4635_v9, %v4635_v9 }
 0x207   : > { %v8163_v38 = vadd.f32 %v6173_v54, %v8063_v42  ;;  %v5689_v26 = vpack.c.bf16 %v4636_v62, %v4635_v9  ;;  %v4865_v56 = vmul.f32 %v4636_v62, %v4636_v62 }
 0x208   : > { %v4893_v31 = vadd.f32 %v4892_v37, %v4862_v57  ;;  %v5684_v5 = vpack.c.bf16 %v4634_v49, %v4633_v59  ;;  %v4825_v51 = vadd.f32 %v4824_v63, %v4634_v49  ;;  %v4863_v36 = vmul.f32 %v4634_v49, %v4634_v49 }
 0x209   : > { %v6258_v30 = vpop.f32.mrb[124].mxu0  ;;  %5745 = vst [vmem:[%s8136_s25 + $0x28] sm:$0xff] %v5689_v26  }
 0x20a   : > { %v4555_v10 = vadd.f32 %v6258_v30, %v8114_v53  ;;  %v4546_v24 = vpop.f32.mrb[125].mxu0  ;;  %5744 = vst [vmem:[%s8136_s25 + $0x20] sm:$0xff] %v5684_v5   ;;  %v4826_v32 = vadd.f32 %v4825_v51, %v4635_v9  ;;  %v4894_v21 = vadd.f32 %v4893_v31, %v4863_v36 }
 0x20b   : > { %v4547_v3 = vadd.f32 %v4546_v24, %v8102_v43  ;;  %v6259_v12 = vpop.f32.mrb[126].mxu0  ;;  %v6174_v42 = vpop.f32.mrb[124].mxu1 }
 0x20c   : > { %v4558_v4 = vadd.f32 %v6259_v12, %v8117_v14  ;;  %v4549_v55 = vpop.f32.mrb[127].mxu0  ;;  %v4895_v48 = vadd.f32 %v4894_v21, %v4864_v22  ;;  %v6175_v28 = vpop.f32.mrb[125].mxu1  ;;  %v4827_v33 = vadd.f32 %v4826_v32, %v4636_v62  ;;  %v4639_v53 = vmax.f32 %v4555_v10, 0.0 }
 0x20d   : > { %v4637_v17 = vmax.f32 %v4547_v3, 0.0  ;;  %v4550_v29 = vadd.f32 %v4549_v55, %v8105_v11  ;;  %v6176_v58 = vadd.f32 %v6175_v28, %v6174_v42  ;;  %v6177_v2 = vpop.f32.mrb[126].mxu1 }
 0x20e   : > { %v4640_v46 = vmax.f32 %v4558_v4, 0.0  ;;  %v4896_v35 = vadd.f32 %v4895_v48, %v4865_v56  ;;  %v6178_v8 = vpop.f32.mrb[127].mxu1  ;;  %v4868_v39 = vmul.f32 %v4639_v53, %v4639_v53 }
 0x20f   : > { %v4828_v13 = vadd.f32 %v4827_v33, %v4637_v17  ;;  %v4866_v43 = vmul.f32 %v4637_v17, %v4637_v17  ;;  %v4638_v50 = vmax.f32 %v4550_v29, 0.0  ;;  %v6179_v14 = vadd.f32 %v6178_v8, %v6177_v2 }
 0x210   : > { %v5699_v61 = vpack.c.bf16 %v4640_v46, %v4639_v53  ;;  %v4426_v7 = vadd.f32 %v6176_v58, %v8072_v41  ;;  %v4869_v63 = vmul.f32 %v4640_v46, %v4640_v46 }
 0x211   : > { %v4897_v40 = vadd.f32 %v4896_v35, %v4866_v43  ;;  %v5694_v37 = vpack.c.bf16 %v4638_v50, %v4637_v17  ;;  %v4829_v25 = vadd.f32 %v4828_v13, %v4638_v50  ;;  %v4867_v44 = vmul.f32 %v4638_v50, %v4638_v50 }
 0x212   : > { %5747 = vst [vmem:[%s8136_s25 + $0x38] sm:$0xff] %v5699_v61   ;;  %v4429_v11 = vadd.f32 %v6179_v14, %v8075_v45  ;;  %v6262_v1 = vpop.f32.mrb[128].mxu0 }
 0x213   : > { %5746 = vst [vmem:[%s8136_s25 + $0x30] sm:$0xff] %v5694_v37   ;;  %v4830_v59 = vadd.f32 %v4829_v25, %v4639_v53  ;;  %v4898_v54 = vadd.f32 %v4897_v40, %v4867_v44  ;;  %v4571_v9 = vadd.f32 %v6262_v1, %v8148_v47  ;;  %v4562_v62 = vpop.f32.mrb[129].mxu0 }
 0x214   : > { %v4563_v41 = vadd.f32 %v4562_v62, %v8131_v60  ;;  %v6263_v31 = vpop.f32.mrb[130].mxu0 }
 0x215   : > { %v4899_v57 = vadd.f32 %v4898_v54, %v4868_v39  ;;  %v6180_v49 = vpop.f32.mrb[128].mxu1  ;;  %v4831_v26 = vadd.f32 %v4830_v59, %v4640_v46  ;;  %v4574_v51 = vadd.f32 %v6263_v31, %v8151_v27  ;;  %v4565_v36 = vpop.f32.mrb[131].mxu0  ;;  %v4643_v47 = vmax.f32 %v4571_v9, 0.0 }
 0x216   : > { %v6181_v5 = vpop.f32.mrb[129].mxu1  ;;  %v4641_v30 = vmax.f32 %v4563_v41, 0.0  ;;  %v4566_v22 = vadd.f32 %v4565_v36, %v8139_v15 }
 0x217   : > { %v6182_v45 = vadd.f32 %v6181_v5, %v6180_v49  ;;  %v4900_v10 = vadd.f32 %v4899_v57, %v4869_v63  ;;  %v6183_v24 = vpop.f32.mrb[130].mxu1  ;;  %v4644_v32 = vmax.f32 %v4574_v51, 0.0  ;;  %v4872_v33 = vmul.f32 %v4643_v47, %v4643_v47 }
 0x218   : > { %v6184_v21 = vpop.f32.mrb[131].mxu1  ;;  %v4832_v3 = vadd.f32 %v4831_v26, %v4641_v30  ;;  %v4870_v12 = vmul.f32 %v4641_v30, %v4641_v30  ;;  %v4642_v56 = vmax.f32 %v4566_v22, 0.0 }
 0x219   : > { %v6185_v60 = vadd.f32 %v6184_v21, %v6183_v24  ;;  %v5709_v42 = vpack.c.bf16 %v4644_v32, %v4643_v47  ;;  %v4434_v4 = vadd.f32 %v6182_v45, %v8084_v19  ;;  %v4873_v46 = vmul.f32 %v4644_v32, %v4644_v32 }
 0x21a   : > { %v4901_v27 = vadd.f32 %v4900_v10, %v4870_v12  ;;  %v5704_v55 = vpack.c.bf16 %v4642_v56, %v4641_v30  ;;  %v4833_v48 = vadd.f32 %v4832_v3, %v4642_v56  ;;  %v4871_v28 = vmul.f32 %v4642_v56, %v4642_v56 }
 0x21b   : > { %5749 = vst [vmem:[%s8136_s25 + $0x48] sm:$0xff] %v5709_v42   ;;  %v4437_v17 = vadd.f32 %v6185_v60, %v8087_v0 }
 0x21c   : > { %5748 = vst [vmem:[%s8136_s25 + $0x40] sm:$0xff] %v5704_v55   ;;  %v4834_v15 = vadd.f32 %v4833_v48, %v4643_v47  ;;  %v4902_v29 = vadd.f32 %v4901_v27, %v4871_v28 }
 0x21d   : > { %v6266_v53 = vpop.f32.mrb[132].mxu0 }
 0x21e   : > { %v4587_v58 = vadd.f32 %v6266_v53, %v4426_v7  ;;  %v4578_v2 = vpop.f32.mrb[133].mxu0  ;;  %v4903_v13 = vadd.f32 %v4902_v29, %v4872_v33  ;;  %v6186_v43 = vpop.f32.mrb[132].mxu1  ;;  %v4835_v19 = vadd.f32 %v4834_v15, %v4644_v32 }
 0x21f   : > { %v4579_v35 = vadd.f32 %v4578_v2, %v8160_v6  ;;  %v6267_v8 = vpop.f32.mrb[134].mxu0  ;;  %v6187_v50 = vpop.f32.mrb[133].mxu1 }
 0x220   : > { %v4590_v61 = vadd.f32 %v6267_v8, %v4429_v11  ;;  %v4581_v14 = vpop.f32.mrb[135].mxu0  ;;  %v6188_v40 = vadd.f32 %v6187_v50, %v6186_v43  ;;  %v4904_v0 = vadd.f32 %v4903_v13, %v4873_v46  ;;  %v6189_v25 = vpop.f32.mrb[134].mxu1  ;;  %v4647_v39 = vmax.f32 %v4587_v58, 0.0 }
 0x221   : > { %v4645_v37 = vmax.f32 %v4579_v35, 0.0  ;;  %v4582_v44 = vadd.f32 %v4581_v14, %v8163_v38  ;;  %v6190_v59 = vpop.f32.mrb[135].mxu1 }
 0x222   : > { %v4648_v7 = vmax.f32 %v4590_v61, 0.0  ;;  %v6191_v9 = vadd.f32 %v6190_v59, %v6189_v25  ;;  %v4442_v63 = vadd.f32 %v6188_v40, %v8096_v52  ;;  %v4876_v31 = vmul.f32 %v4647_v39, %v4647_v39 }
 0x223   : > { %v4836_v54 = vadd.f32 %v4835_v19, %v4645_v37  ;;  %v4874_v1 = vmul.f32 %v4645_v37, %v4645_v37  ;;  %v4646_v6 = vmax.f32 %v4582_v44, 0.0 }
 0x224   : > { %v5719_v62 = vpack.c.bf16 %v4648_v7, %v4647_v39  ;;  %v4445_v26 = vadd.f32 %v6191_v9, %v8099_v20  ;;  %v4877_v30 = vmul.f32 %v4648_v7, %v4648_v7 }
 0x225   : > { %v4905_v11 = vadd.f32 %v4904_v0, %v4874_v1  ;;  %v5714_v57 = vpack.c.bf16 %v4646_v6, %v4645_v37  ;;  %v4837_v49 = vadd.f32 %v4836_v54, %v4646_v6  ;;  %v4875_v41 = vmul.f32 %v4646_v6, %v4646_v6 }
 0x226   : > { %5751 = vst [vmem:[%s8136_s25 + $0x58] sm:$0xff] %v5719_v62  }
 0x227   : > { %5750 = vst [vmem:[%s8136_s25 + $0x50] sm:$0xff] %v5714_v57   ;;  %v4838_v38 = vadd.f32 %v4837_v49, %v4647_v39  ;;  %v4906_v5 = vadd.f32 %v4905_v11, %v4875_v41  ;;  %v6270_v51 = vpop.f32.mrb[136].mxu0 }
 0x228   : > { %v4603_v36 = vadd.f32 %v6270_v51, %v4442_v63  ;;  %v4594_v45 = vpop.f32.mrb[137].mxu0  ;;  %v6192_v24 = vpop.f32.mrb[136].mxu1 }
 0x229   : > { %v4907_v10 = vadd.f32 %v4906_v5, %v4876_v31  ;;  %v4595_v22 = vadd.f32 %v4594_v45, %v4434_v4  ;;  %v4839_v47 = vadd.f32 %v4838_v38, %v4648_v7  ;;  %v6271_v52 = vpop.f32.mrb[138].mxu0  ;;  %v6193_v32 = vpop.f32.mrb[137].mxu1 }
 0x22a   : > { %v4606_v21 = vadd.f32 %v6271_v52, %v4445_v26  ;;  %v4597_v3 = vpop.f32.mrb[139].mxu0  ;;  %v6194_v12 = vadd.f32 %v6193_v32, %v6192_v24  ;;  %v6195_v20 = vpop.f32.mrb[138].mxu1  ;;  %v4651_v27 = vmax.f32 %v4603_v36, 0.0 }
 0x22b   : > { %v4649_v60 = vmax.f32 %v4595_v22, 0.0  ;;  %v4908_v56 = vadd.f32 %v4907_v10, %v4877_v30  ;;  %v4598_v42 = vadd.f32 %v4597_v3, %v4437_v17  ;;  %v6196_v48 = vpop.f32.mrb[139].mxu1 }
 0x22c   : > { %v4652_v55 = vmax.f32 %v4606_v21, 0.0  ;;  %v6197_v15 = vadd.f32 %v6196_v48, %v6195_v20  ;;  %v4450_v53 = vadd.f32 %v6194_v12, %v8108_v16  ;;  %v4880_v17 = vmul.f32 %v4651_v27, %v4651_v27 }
 0x22d   : > { %v4840_v28 = vadd.f32 %v4839_v47, %v4649_v60  ;;  %v4878_v33 = vmul.f32 %v4649_v60, %v4649_v60  ;;  %v4650_v29 = vmax.f32 %v4598_v42, 0.0 }
 0x22e   : > { %v5729_v4 = vpack.c.bf16 %v4652_v55, %v4651_v27  ;;  %v4453_v35 = vadd.f32 %v6197_v15, %v8111_v18  ;;  %v4881_v37 = vmul.f32 %v4652_v55, %v4652_v55 }
 0x22f   : > { %v4909_v58 = vadd.f32 %v4908_v56, %v4878_v33  ;;  %v5724_v2 = vpack.c.bf16 %v4650_v29, %v4649_v60  ;;  %v4841_v46 = vadd.f32 %v4840_v28, %v4650_v29  ;;  %v4879_v13 = vmul.f32 %v4650_v29, %v4650_v29 }
 0x230   : > { %5753 = vst [vmem:[%s8136_s25 + $0x68] sm:$0xff] %v5729_v4  }
 0x231   : > { %5752 = vst [vmem:[%s8136_s25 + $0x60] sm:$0xff] %v5724_v2   ;;  %v4842_v19 = vadd.f32 %v4841_v46, %v4651_v27  ;;  %v4910_v8 = vadd.f32 %v4909_v58, %v4879_v13 }
 0x233   : > { %v4911_v0 = vadd.f32 %v4910_v8, %v4880_v17  ;;  %v4843_v16 = vadd.f32 %v4842_v19, %v4652_v55 }
 0x235   : > { %v4912_v1 = vadd.f32 %v4911_v0, %v4881_v37 }
 0x23a   : > { %v6198_v61 = vpop.f32.mrb[140].mxu1 }
 0x23b   : > { %v6199_v25 = vpop.f32.mrb[141].mxu1 }
 0x23c   : > { %v6200_v39 = vadd.f32 %v6199_v25, %v6198_v61  ;;  %v6201_v59 = vpop.f32.mrb[142].mxu1 }
 0x23d   : > { %v6202_v18 = vpop.f32.mrb[143].mxu1 }
 0x23e   : > { %v6274_v43 = vpop.f32.mrb[140].mxu0  ;;  %v4458_v9 = vadd.f32 %v6200_v39, %v8120_v34  ;;  %v6203_v63 = vadd.f32 %v6202_v18, %v6201_v59 }
 0x23f   : > { %v4610_v50 = vpop.f32.mrb[141].mxu0 }
 0x240   : > { %v4611_v14 = vadd.f32 %v4610_v50, %v4450_v53  ;;  %v6275_v40 = vpop.f32.mrb[142].mxu0  ;;  %v4619_v57 = vadd.f32 %v6274_v43, %v4458_v9  ;;  %v4461_v41 = vadd.f32 %v6203_v63, %v8123_v23 }
 0x241   : > { %v4613_v44 = vpop.f32.mrb[143].mxu0 }
 0x242   : > { %v4653_v7 = vmax.f32 %v4611_v14, 0.0  ;;  %v4614_v54 = vadd.f32 %v4613_v44, %v4453_v35  ;;  %v4655_v5 = vmax.f32 %v4619_v57, 0.0  ;;  %v4622_v51 = vadd.f32 %v6275_v40, %v4461_v41 }
 0x244   : > { %v4844_v6 = vadd.f32 %v4843_v16, %v4653_v7  ;;  %v4882_v62 = vmul.f32 %v4653_v7, %v4653_v7  ;;  %v4654_v11 = vmax.f32 %v4614_v54, 0.0  ;;  %v4884_v45 = vmul.f32 %v4655_v5, %v4655_v5 }
 0x245   : > { %v4656_v30 = vmax.f32 %v4622_v51, 0.0 }
 0x246   : > { %v4913_v49 = vadd.f32 %v4912_v1, %v4882_v62  ;;  %v5734_v26 = vpack.c.bf16 %v4654_v11, %v4653_v7  ;;  %v4845_v31 = vadd.f32 %v4844_v6, %v4654_v11  ;;  %v4883_v38 = vmul.f32 %v4654_v11, %v4654_v11 }
 0x247   : > { %v5739_v34 = vpack.c.bf16 %v4656_v30, %v4655_v5  ;;  %v4885_v24 = vmul.f32 %v4656_v30, %v4656_v30 }
 0x248   : > { %5754 = vst [vmem:[%s8136_s25 + $0x70] sm:$0xff] %v5734_v26   ;;  %v4914_v36 = vadd.f32 %v4913_v49, %v4883_v38  ;;  %v4846_v10 = vadd.f32 %v4845_v31, %v4655_v5 }
 0x249   : > { %5755 = vst [vmem:[%s8136_s25 + $0x78] sm:$0xff] %v5739_v34  }
 0x24a   : > { %v4847_v22 = vadd.f32 %v4846_v10, %v4656_v30  ;;  %v4915_v47 = vadd.f32 %v4914_v36, %v4884_v45 }
 0x24c   : > { %v4848_v52 = vrot.slane %v4847_v22, 4  ;;  %v4916_v32 = vadd.f32 %v4915_v47, %v4885_v24 }
 0x24e   : > { %v4849_v21 = vadd.f32 %v4848_v52, %v4847_v22  ;;  %v4917_v23 = vrot.slane %v4916_v32, 4 }
 0x250   : > { %v4850_v3 = vrot.slane %v4849_v21, 2  ;;  %v4918_v12 = vadd.f32 %v4917_v23, %v4916_v32 }
 0x252   : > { %v4851_v60 = vadd.f32 %v4850_v3, %v4849_v21  ;;  %v4919_v56 = vrot.slane %v4918_v12, 2 }
 0x254   : > { %v4852_v20 = vrot.slane %v4851_v60, 1  ;;  %v4920_v42 = vadd.f32 %v4919_v56, %v4918_v12 }
 0x256   : > { %v4921_v27 = vrot.slane %v4920_v42, 1  ;;  %v4853_v55 = vadd.f32 %v4852_v20, %v4851_v60 }
 0x258   : > { %v4922_v48 = vadd.f32 %v4921_v27, %v4920_v42 }
 0x25a   : > { %v4924_v28 = vsel %vm4923_vm6, %v4853_v55, %v4922_v48 }
 0x25b   : > { %4925 = vst [vmem:[%s241_s29] sm:$0x3] %v4924_v28 }
 0x25c PF: > { %s15_s17 = sadd.s32 1, %s6460_s17   ;;  %s8261_s15 = smov %s6456_s16 }
 0x25d   : > { %p12_p5 = scmp.ge.s32.totalorder %s15_s17, 4   ;;  %s8262_s16 = smov %s8264_s18 }
 0x25f   :  { %14 = sbr.rel (!%p12_p5) target bundleno = 2 (0x2), region = 77 }

// kernel: double_conv.4
= control target key start
LH: loop header
LB: loop body
LE: loop exit
PB: predicated region body
PF: predicated region fallthrough
CT: control target
= control target key end

     0   :  { %s7398_s21 = smov 0   ;;  %s7400_s22 = smov 0   ;;  %s9067_s0 = inlined_call_operand.vmem [shape: bf16[2,18,18,128], index: 0, kind: input, shape index: {}]   ;;  %s9068_s1 = inlined_call_operand.vmem [shape: bf16[1152,128], index: 1, kind: input, shape index: {}]   ;;  %s9069_s2 = inlined_call_operand.vmem [shape: f32[1,128], index: 2, kind: input, shape index: {}]   ;;  %s9070_s3 = inlined_call_operand.vmem [shape: f32[1,128], index: 3, kind: input, shape index: {}]   ;;  %s9071_s4 = inlined_call_operand.vmem [shape: f32[1,128], index: 4, kind: input, shape index: {}]   ;;  %s9072_s5 = inlined_call_operand.vmem [shape: bf16[2,16,16,128], index: 5, kind: output, shape index: {0}]   ;;  %s9073_s6 = inlined_call_operand.vmem [shape: f32[2,1,2,128], index: 6, kind: output, shape index: {1}]  }
   0x1   :  { %s7402_s23 = smov 0  }
   0x2 LB: > { %s29_s24 = sadd.s32 1, %s7356_s22  ;;  %p5978_p0 = scmp.ge.s32.totalorder %s7360_s23, 1  ;;  %s7360_s23 = sphi %s7402_s23, %s17_s23   ;;  %s7356_s22 = sphi %s7400_s22, %s9113_s22   ;;  %s7352_s21 = sphi %s7398_s21, %s9112_s21  }
   0x3   : > { %p31_p1 = scmp.ge.s32.totalorder %s29_s24, 2  ;;  %p231_p2 = scmp.lt.s32.totalorder %s7360_s23, 3 }
   0x5   : > { %s9115_s24 = smov (%p31_p1, %s29_s24), 0  ;;  %p232_p3 = pnand %p5978_p0, %p231_p2 }
   0x7   : > { %235 = sbr.rel (%p232_p3) target bundleno = 643 (0x283), region = 40 }
   0xe   : > { %v7211_v0 = vld [vmem:[%s9068_s1 + $0x40] sm:$0xff]   ;;  %p273_p4 = scmp.lt.s32.totalorder %s7352_s21, 1  ;;  %v7213_v2 = vld [vmem:[%s9068_s1 + $0x48] sm:$0xff]   ;;  %v7215_v4 = vld [vmem:[%s9068_s1 + $0x50] sm:$0xff]   ;;  %v427_v5 = vlaneseq  ;;  %v7362_v22 = vmov 0.0   ;;  %vm1926_vm5 = vcmask 1042432  }
   0xf   : > { %v7212_v1 = vld [vmem:[%s9068_s1] sm:$0xff]   ;;  %6649 = vmatprep.subr.bf16.mxu0 %v7211_v0  ;;  %7169 = vmatprep.subr.bf16.mxu1 %v7211_v0  ;;  %v7214_v3 = vld [vmem:[%s9068_s1 + $0x8] sm:$0xff]   ;;  %v7216_v6 = vld [vmem:[%s9068_s1 + $0x10] sm:$0xff]   ;;  %vm1363_vm2 = vsmask.f32 3328  ;;  %vm1927_vm6 = vcmask 1046532  }
  0x10   : > { %6650 = vmatpush3.bf16.msra.mxu0 %v7212_v1  ;;  %7177 = vmatpush3.bf16.msra.mxu1 %v7212_v1  ;;  %s9117_s21 = smov (!%p273_p4, %s7352_s21), 1  ;;  %v7217_v7 = vld [vmem:[%s9068_s1 + $0x58] sm:$0xff]   ;;  %v428_v8 = vshrl.u32 %v427_v5, 7  ;;  %v7219_v11 = vld [vmem:[%s9068_s1 + $0x60] sm:$0xff]   ;;  %v7221_v13 = vld [vmem:[%s9068_s1 + $0x68] sm:$0xff]   ;;  %vm5841_vm8 = vcmask 1040384  }
  0x11   : > { %6651 = vmatprep.subr.bf16.mxu0 %v7213_v2  ;;  %7170 = vmatprep.subr.bf16.mxu1 %v7213_v2  ;;  %s7185_s15 = smul.u32 216, %s9117_s21  ;;  %v7218_v9 = vld [vmem:[%s9068_s1 + $0x18] sm:$0xff]   ;;  %v7220_v12 = vld [vmem:[%s9068_s1 + $0x20] sm:$0xff]   ;;  %v7222_v24 = vld [vmem:[%s9068_s1 + $0x28] sm:$0xff]   ;;  %vm1364_vm3 = vsmask.f32 7440 }
  0x12   : > { %v430_v10 = vadd.s32 16, %v428_v8  ;;  %vm485_vm0 = vcmp.ge.s32.totalorder %v428_v8, 1  ;;  %v7462_v16 = vld [vmem:[%s9070_s3] ss:$0 sm:$0xff]  ;;  %v7223_v30 = vld [vmem:[%s9068_s1 + $0x70] sm:$0xff]   ;;  %v7225_v48 = vld [vmem:[%s9068_s1 + $0x78] sm:$0xff]  }
  0x13   : > { %s7449_s26 = scalar_lea.vmem %s9067_s0, %s7185_s15  ;;  %v7467_v20 = vld [vmem:[%s9071_s4] ss:$0 sm:$0xff]  ;;  %v5983_v23 = vsel %vm485_vm0, 1.0, %v7362_v22  ;;  %v7224_v45 = vld [vmem:[%s9068_s1 + $0x30] sm:$0xff]   ;;  %v7226_v57 = vld [vmem:[%s9068_s1 + $0x38] sm:$0xff]   ;;  %s6370_s15 = sshll.u32 %s9117_s21, 7 }
  0x14   : > { %6652 = vmatpush3.bf16.msra.mxu0 %v7214_v3  ;;  %7178 = vmatpush3.bf16.msra.mxu1 %v7214_v3  ;;  %vm544_vm1 = vcmp.le.s32.totalorder %v430_v10, 16  ;;  %v6458_v14 = vld [vmem:[%s7449_s26] sm:$0xff]   ;;  %v303_v15 = vld [vmem:[%s7449_s26 + $0x8] sm:$0x1]  ;;  %v6623_v21 = vld [vmem:[%s7449_s26 + $0x90] sm:$0xff]   ;;  %v7475_v25 = vmul.f32 0.0, %v7467_v20  ;;  %v7488_v37 = vmul.f32 %v7467_v20, %v5983_v23  ;;  %s8996_s18 = scalar_lea.vmem %s9072_s5, %s6370_s15 }
  0x15   : > { %6653 = vmatprep.subr.bf16.mxu0 %v7215_v4  ;;  %7171 = vmatprep.subr.bf16.mxu1 %v7215_v4  ;;  %v6459_v17 = vunpack.c.l.bf16 %v6458_v14  ;;  %v6460_v18 = vunpack.c.h.bf16 %v6458_v14  ;;  %v357_v19 = vunpack.c.l.bf16 %v303_v15  ;;  %v6483_v26 = vunpack.c.l.bf16 %v6623_v21  ;;  %v339_v28 = vld [vmem:[%s7449_s26 + $0x98] sm:$0x1]  ;;  %v304_v51 = vld [vmem:[%s7449_s26 + $0xc] sm:$0xff]   ;;  %v306_v52 = vld [vmem:[%s7449_s26 + $0x14] sm:$0x1]  ;;  %s5982_s19 = sshll.u32 %s9117_s21, 1 }
  0x16   : > { %v6484_v27 = vunpack.c.h.bf16 %v6623_v21  ;;  %v5984_v29 = vsel %vm544_vm1, 1.0, %v7362_v22  ;;  %v393_v34 = vunpack.c.l.bf16 %v339_v28  ;;  %v358_v53 = vunpack.c.l.bf16 %v304_v51  ;;  %v340_v55 = vld [vmem:[%s7449_s26 + $0x9c] sm:$0xff]   ;;  %v342_v56 = vld [vmem:[%s7449_s26 + $0xa4] sm:$0x1]  ;;  %vm7533_vm4 = vmor %vm1363_vm2, %vm1364_vm3  ;;  %s295_s27 = scalar_lea.vmem %s9073_s6, %s5982_s19 }
  0x17   : > { %v714_v31 = vmul.f32 %v6459_v17, %v7462_v16  ;;  %v715_v32 = vmul.f32 %v6460_v18, %v7462_v16  ;;  %v716_v33 = vmul.f32 %v7462_v16, %v357_v19  ;;  %v750_v35 = vmul.f32 %v6483_v26, %v7462_v16  ;;  %v7227_v62 = vld [vmem:[%s9068_s1 + $0xc0] sm:$0xff]   ;;  %vm7681_vm7 = vmor %vm1926_vm5, %vm1927_vm6 }
  0x18   : > { %6654 = vmatpush3.bf16.msra.mxu0 %v7216_v6  ;;  %7179 = vmatpush3.bf16.msra.mxu1 %v7216_v6  ;;  %v751_v36 = vmul.f32 %v6484_v27, %v7462_v16  ;;  %v752_v41 = vmul.f32 %v7462_v16, %v393_v34  ;;  %v7495_v42 = vmul.f32 %v7467_v20, %v5984_v29  ;;  %v359_v54 = vunpack.c.h.bf16 %v304_v51  ;;  %v7228_v2 = vld [vmem:[%s9068_s1 + $0x140] sm:$0xff]  }
  0x19   : > { %6655 = vmatprep.subr.bf16.mxu0 %v7217_v7  ;;  %7172 = vmatprep.subr.bf16.mxu1 %v7217_v7  ;;  %v829_v38 = vadd.f32 %v7475_v25, %v714_v31  ;;  %v830_v39 = vadd.f32 %v7475_v25, %v715_v32  ;;  %v831_v40 = vadd.f32 %v7475_v25, %v716_v33  ;;  %v360_v59 = vunpack.c.l.bf16 %v306_v52  ;;  %v6618_v52 = vld [vmem:[%s7449_s26 + $0x18] sm:$0xff]  }
  0x1a   : > { %v865_v43 = vadd.f32 %v7488_v37, %v750_v35  ;;  %v866_v44 = vadd.f32 %v7467_v20, %v751_v36  ;;  %v867_v49 = vadd.f32 %v7495_v42, %v752_v41  ;;  %v394_v60 = vunpack.c.l.bf16 %v340_v55 }
  0x1b   : > { %v6373_v46 = vpack.c.bf16 %v831_v40, %v831_v40  ;;  %v6496_v47 = vpack.c.bf16 %v830_v39, %v829_v38  ;;  %v395_v61 = vunpack.c.h.bf16 %v340_v55  ;;  %v717_v63 = vmul.f32 %v7462_v16, %v358_v53 }
  0x1c   : > { %6656 = vmatpush3.bf16.msra.mxu0 %v7218_v9  ;;  %7180 = vmatpush3.bf16.msra.mxu1 %v7218_v9  ;;  %v6526_v50 = vpack.c.bf16 %v866_v44, %v865_v43  ;;  %v6409_v58 = vpack.c.bf16 %v867_v49, %v867_v49  ;;  %v718_v0 = vmul.f32 %v7462_v16, %v359_v54  ;;  %v396_v1 = vunpack.c.l.bf16 %v342_v56 }
  0x1d   : > { %6657 = vmatprep.subr.bf16.mxu0 %v7219_v11  ;;  %7173 = vmatprep.subr.bf16.mxu1 %v7219_v11  ;;  %6497 = vst [vmem:[#allocation3] sm:$0xff] %v6496_v47   ;;  %1119 = vst [vmem:[#allocation3 + $0x8] sm:$0x1] %v6373_v46  ;;  %v719_v3 = vmul.f32 %v7462_v16, %v360_v59  ;;  %v753_v4 = vmul.f32 %v7462_v16, %v394_v60  ;;  %v7232_v59 = vld [vmem:[%s9068_s1 + $0x100] sm:$0xff]  }
  0x1e   : > { %6631 = vst [vmem:[#allocation3 + $0x90] sm:$0xff] %v6526_v50   ;;  %1155 = vst [vmem:[#allocation3 + $0x98] sm:$0x1] %v6409_v58  ;;  %v754_v5 = vmul.f32 %v7462_v16, %v395_v61  ;;  %v832_v6 = vadd.f32 %v7488_v37, %v717_v63  ;;  %v833_v7 = vadd.f32 %v7467_v20, %v718_v0  ;;  %v6464_v63 = vunpack.c.h.bf16 %v6618_v52 }
  0x1f   : > { %v755_v8 = vmul.f32 %v7462_v16, %v396_v1  ;;  %v834_v9 = vadd.f32 %v7495_v42, %v719_v3  ;;  %v868_v10 = vadd.f32 %v7488_v37, %v753_v4 }
  0x20   : > { %6658 = vmatpush3.bf16.msra.mxu0 %v7220_v12  ;;  %7181 = vmatpush3.bf16.msra.mxu1 %v7220_v12  ;;  %v869_v11 = vadd.f32 %v7467_v20, %v754_v5  ;;  %v6374_v12 = vpack.c.bf16 %v832_v6, %v832_v6 }
  0x21   : > { %6659 = vmatprep.subr.bf16.mxu0 %v7221_v13  ;;  %7174 = vmatprep.subr.bf16.mxu1 %v7221_v13  ;;  %v6375_v13 = vpack.c.bf16 %v833_v7, %v833_v7  ;;  %v870_v14 = vadd.f32 %v7495_v42, %v755_v8  ;;  %v6376_v19 = vpack.c.bf16 %v834_v9, %v834_v9  ;;  %v7240_v8 = vld [vmem:[%s9068_s1 + $0x148] sm:$0xff]  }
  0x22   : > { %v6410_v21 = vpack.c.bf16 %v868_v10, %v868_v10  ;;  %v6411_v22 = vpack.c.bf16 %v869_v11, %v869_v11  ;;  %1120 = vst [vmem:[#allocation3 + $0xc] sm:$0xf] %v6374_v12 }
  0x23   : > { %1121 = vst [vmem:[#allocation3 + $0x10] sm:$0xf] %v6375_v13  ;;  %1122 = vst [vmem:[#allocation3 + $0x14] sm:$0x1] %v6376_v19  ;;  %v6412_v33 = vpack.c.bf16 %v870_v14, %v870_v14 }
  0x24   : > { %6660 = vmatpush3.bf16.msra.mxu0 %v7222_v24  ;;  %7182 = vmatpush3.bf16.msra.mxu1 %v7222_v24  ;;  %v1315_v15 = vld [vmem:[#allocation3] sm:$0xf]  ;;  %v1316_v17 = vld [vmem:[#allocation3 + $0x4] sm:$0xf]  ;;  %v1317_v18 = vld [vmem:[#allocation3 + $0x8] sm:$0x1] }
  0x25   : > { %6661 = vmatprep.subr.bf16.mxu0 %v7223_v30  ;;  %7175 = vmatprep.subr.bf16.mxu1 %v7223_v30  ;;  %v1367_v23 = vshrl.u32 %v1315_v15, 16  ;;  %v1370_v24 = vshll.u32 %v1315_v15, 16  ;;  %v1376_v26 = vshll.u32 %v1316_v17, 16  ;;  %v1380_v27 = vshrl.u32 %v1316_v17, 16  ;;  %v1351_v28 = vld [vmem:[#allocation3 + $0x90] sm:$0xf] }
  0x26   : > { %v1386_v29 = vshll.u32 %v1317_v18, 16  ;;  %v1352_v30 = vld [vmem:[#allocation3 + $0x94] sm:$0xf]  ;;  %v1655_v31 = vshrl.u32 %v1351_v28, 16  ;;  %v1658_v32 = vshll.u32 %v1351_v28, 16  ;;  %v7229_v4 = vld [vmem:[#allocation3] sm:$0xff]  }
  0x27   : > { %1156 = vst [vmem:[#allocation3 + $0x9c] sm:$0xf] %v6410_v21  ;;  %1157 = vst [vmem:[#allocation3 + $0xa0] sm:$0xf] %v6411_v22  ;;  %v1369_v34 = vrot.slane %v1367_v23, 4  ;;  %v1372_v35 = vrot.slane %v1370_v24, 5 }
  0x28   : > { %6662 = vmatpush3.bf16.msra.mxu0 %v7224_v45  ;;  %7183 = vmatpush3.bf16.msra.mxu1 %v7224_v45  ;;  %v1378_v36 = vrot.slane %v1376_v26, 5  ;;  %v1382_v38 = vrot.slane %v1380_v27, 4  ;;  %v1353_v39 = vld [vmem:[#allocation3 + $0x98] sm:$0x1]  ;;  %v1388_v40 = vrot.slane %v1386_v29, 5  ;;  %v1657_v41 = vrot.slane %v1655_v31, 4 }
  0x29   : > { %6663 = vmatprep.subr.bf16.mxu0 %v7225_v48  ;;  %7176 = vmatprep.subr.bf16.mxu1 %v7225_v48  ;;  %v1660_v43 = vrot.slane %v1658_v32, 5  ;;  %v1664_v44 = vshll.u32 %v1352_v30, 16  ;;  %1158 = vst [vmem:[#allocation3 + $0xa4] sm:$0x1] %v6412_v33  ;;  %v1373_v45 = vor.u32 %v1372_v35, %v1369_v34  ;;  %v1668_v47 = vshrl.u32 %v1352_v30, 16  ;;  %v7230_v27 = vld [vmem:[#allocation3 + $0x90] sm:$0xff]  }
  0x2a   : > { %v1383_v46 = vor.u32 %v1382_v38, %v1378_v36  ;;  %v1674_v48 = vshll.u32 %v1353_v39, 16  ;;  %v1318_v60 = vld [vmem:[#allocation3 + $0xc] sm:$0xf]  ;;  %v1319_v61 = vld [vmem:[#allocation3 + $0x10] sm:$0xf]  ;;  %v7231_v32 = vld [vmem:[%s9068_s1 + $0x80] sm:$0xff]  }
  0x2b   : > { %v1661_v50 = vor.u32 %v1660_v43, %v1657_v41  ;;  %v1666_v51 = vrot.slane %v1664_v44, 5  ;;  %v1374_v53 = vrot.slane %v1373_v45, 4  ;;  %v1670_v55 = vrot.slane %v1668_v47, 4  ;;  %v1320_v5 = vld [vmem:[#allocation3 + $0x14] sm:$0x1]  ;;  %v7233_v38 = vld [vmem:[%s9068_s1 + $0xc8] sm:$0xff]  }
  0x2c   : > { %6664 = vmatpush3.bf16.msra.mxu0 %v7226_v57  ;;  %7184 = vmatpush3.bf16.msra.mxu1 %v7226_v57  ;;  %v1384_v54 = vrot.slane %v1383_v46, 4  ;;  %v1676_v56 = vrot.slane %v1674_v48, 5  ;;  %v7539_v57 = vld [vmem:[%s7449_s26 + $0x20] sm:$0x1]  ;;  %v1391_v6 = vshrl.u32 %v1318_v60, 16  ;;  %v1394_v11 = vshll.u32 %v1318_v60, 16 }
  0x2d   : > { %6761 = vmatprep.subr.bf16.mxu1 %v7227_v62  ;;  %6873 = vmatprep.subr.bf16.mxu0 %v7228_v2  ;;  %v1662_v58 = vrot.slane %v1661_v50, 4  ;;  %v6463_v62 = vunpack.c.l.bf16 %v6618_v52  ;;  %v363_v0 = vunpack.c.l.bf16 %v7539_v57  ;;  %v1379_v1 = vsel %vm7533_vm4, %v1374_v53, %v1378_v36  ;;  %v7242_v36 = vld [vmem:[%s9068_s1 + $0x108] sm:$0xff]  }
  0x2e   : > { %v1389_v2 = vsel %vm7533_vm4, %v1384_v54, %v1388_v40  ;;  %v1671_v3 = vor.u32 %v1670_v55, %v1666_v51  ;;  %v1354_v7 = vld [vmem:[#allocation3 + $0x9c] sm:$0xf]  ;;  %v1400_v12 = vshll.u32 %v1319_v61, 16  ;;  %v1355_v13 = vld [vmem:[#allocation3 + $0xa0] sm:$0xf]  ;;  %v1393_v15 = vrot.slane %v1391_v6, 4 }
  0x2f   : > { %v6087_v9 = vcombine.low %v1379_v1, %v1389_v2  ;;  %v1667_v10 = vsel %vm7533_vm4, %v1662_v58, %v1666_v51  ;;  %v1404_v17 = vshrl.u32 %v1319_v61, 16  ;;  %v1410_v18 = vshll.u32 %v1320_v5, 16  ;;  %v7234_v44 = vld [vmem:[%s9068_s1 + $0x88] sm:$0xff]   ;;  %v345_v51 = vld [vmem:[%s7449_s26 + $0xb0] sm:$0x1] }
  0x30   : > { %v1672_v14 = vrot.slane %v1671_v3, 4  ;;  %v1356_v19 = vld [vmem:[#allocation3 + $0xa4] sm:$0x1]  ;;  %v1396_v21 = vrot.slane %v1394_v11, 5  ;;  %v1402_v22 = vrot.slane %v1400_v12, 5  ;;  %v1679_v23 = vshrl.u32 %v1354_v7, 16 }
  0x31   : > { %4770 = vmatprep.mubr.bf16.mxu0 %v6087_v9  ;;  %v1682_v24 = vshll.u32 %v1354_v7, 16  ;;  %v1406_v28 = vrot.slane %v1404_v17, 4  ;;  %v1412_v29 = vrot.slane %v1410_v18, 5  ;;  %v1688_v30 = vshll.u32 %v1355_v13, 16  ;;  %v6624_v50 = vld [vmem:[%s7449_s26 + $0xa8] sm:$0xff]   ;;  %v7235_v55 = vld [vmem:[%s9068_s1 + $0xd0] sm:$0xff]  }
  0x32   : > { %v1677_v26 = vsel %vm7533_vm4, %v1672_v14, %v1676_v56  ;;  %4771 = vmatmul.mubr.bf16.vlgmr.msra.gmra.mrb[0].mxu0 %v7229_v4  ;;  %v1397_v33 = vor.u32 %v1396_v21, %v1393_v15  ;;  %v1681_v34 = vrot.slane %v1679_v23, 4  ;;  %v1692_v41 = vshrl.u32 %v1355_v13, 16  ;;  %v310_v2 = vld [vmem:[%s7449_s26 + $0x24] sm:$0xff]   ;;  %v7238_v5 = vld [vmem:[%s9068_s1 + $0x90] sm:$0xff]   ;;  %v7239_v12 = vld [vmem:[%s9068_s1 + $0xd8] sm:$0xff]  }
  0x33   : > { %v6099_v31 = vcombine.low %v1667_v10, %v1677_v26  ;;  %6874 = vmatpush3.bf16.msra.mxu0 %v7232_v59  ;;  %v1684_v35 = vrot.slane %v1682_v24, 5  ;;  %v1407_v39 = vor.u32 %v1406_v28, %v1402_v22  ;;  %v1690_v40 = vrot.slane %v1688_v30, 5  ;;  %v7236_v59 = vld [vmem:[#allocation3 + $0xc] sm:$0xff]   ;;  %v346_v9 = vld [vmem:[%s7449_s26 + $0xb4] sm:$0xff]   ;;  %v348_v10 = vld [vmem:[%s7449_s26 + $0xbc] sm:$0x1] }
  0x34   : > { %v1698_v43 = vshll.u32 %v1356_v19, 16  ;;  %6875 = vmatprep.subr.bf16.mxu0 %v7240_v8  ;;  %v1398_v45 = vrot.slane %v1397_v33, 4  ;;  %v720_v47 = vmul.f32 %v6463_v62, %v7462_v16  ;;  %v721_v48 = vmul.f32 %v6464_v63, %v7462_v16  ;;  %v312_v8 = vld [vmem:[%s7449_s26 + $0x2c] sm:$0x1]  ;;  %v7237_v24 = vld [vmem:[#allocation3 + $0x9c] sm:$0xff]   ;;  %v7254_v33 = vld [vmem:[%s9068_s1 + $0x110] sm:$0xff]  }
  0x35   : > { %4866 = vmatprep.mubr.bf16.mxu1 %v6099_v31  ;;  %v1685_v46 = vor.u32 %v1684_v35, %v1681_v34  ;;  %v1408_v52 = vrot.slane %v1407_v39, 4  ;;  %v1694_v53 = vrot.slane %v1692_v41, 4  ;;  %v722_v56 = vmul.f32 %v7462_v16, %v363_v0  ;;  %v7241_v39 = vld [vmem:[%s9068_s1 + $0x98] sm:$0xff]  }
  0x36   : > { %4867 = vmatmul.mubr.bf16.vlgmr.msra.gmra.mrb[0].mxu1 %v7230_v27  ;;  %v1700_v54 = vrot.slane %v1698_v43, 5  ;;  %v1403_v57 = vsel %vm7533_vm4, %v1398_v45, %v1402_v22  ;;  %v835_v60 = vadd.f32 %v7488_v37, %v720_v47  ;;  %v836_v61 = vadd.f32 %v7467_v20, %v721_v48  ;;  %v7250_v22 = vld [vmem:[%s9068_s1 + $0x150] sm:$0xff]   ;;  %v7243_v45 = vld [vmem:[%s9068_s1 + $0xe0] sm:$0xff]  }
  0x37   : > { %6762 = vmatpush3.bf16.msra.mxu1 %v7231_v32  ;;  %v1686_v58 = vrot.slane %v1685_v46, 4  ;;  %6876 = vmatpush3.bf16.msra.mxu0 %v7242_v36  ;;  %v1413_v62 = vsel %vm7533_vm4, %v1408_v52, %v1412_v29  ;;  %v1695_v63 = vor.u32 %v1694_v53, %v1690_v40  ;;  %v837_v0 = vadd.f32 %v7495_v42, %v722_v56  ;;  %v6619_v48 = vld [vmem:[%s7449_s26 + $0x30] sm:$0xff]  }
  0x38   : > { %6763 = vmatprep.subr.bf16.mxu1 %v7233_v38  ;;  %v6487_v1 = vunpack.c.l.bf16 %v6624_v50  ;;  %v6088_v3 = vcombine.low %v1403_v57, %v1413_v62  ;;  %v6501_v6 = vpack.c.bf16 %v836_v61, %v835_v60  ;;  %v6488_v7 = vunpack.c.h.bf16 %v6624_v50  ;;  %6877 = vmatprep.subr.bf16.mxu0 %v7250_v22  ;;  %v7246_v50 = vld [vmem:[%s9068_s1 + $0xa0] sm:$0xff]   ;;  %v7249_v22 = vld [vmem:[%s9068_s1 + $0xf0] sm:$0xff]  }
  0x39   : > { %v1691_v4 = vsel %vm7533_vm4, %v1686_v58, %v1690_v40  ;;  %v1696_v11 = vrot.slane %v1695_v63, 4  ;;  %v6379_v13 = vpack.c.bf16 %v837_v0, %v837_v0  ;;  %v399_v14 = vunpack.c.l.bf16 %v345_v51 }
  0x3a   : > { %v756_v15 = vmul.f32 %v6487_v1, %v7462_v16  ;;  %4778 = vmatprep.mubr.bf16.mxu0 %v6088_v3  ;;  %6626 = vst [vmem:[#allocation3 + $0x18] sm:$0xff] %v6501_v6   ;;  %v757_v17 = vmul.f32 %v6488_v7, %v7462_v16  ;;  %v364_v18 = vunpack.c.l.bf16 %v310_v2  ;;  %v365_v19 = vunpack.c.h.bf16 %v310_v2 }
  0x3b   : > { %6764 = vmatpush3.bf16.msra.mxu1 %v7234_v44  ;;  %v366_v21 = vunpack.c.l.bf16 %v312_v8  ;;  %v1701_v23 = vsel %vm7533_vm4, %v1696_v11, %v1700_v54  ;;  %4779 = vmatmul.mubr.bf16.gmra.mrb[4].mxu0 %v7236_v59  ;;  %1125 = vst [vmem:[#allocation3 + $0x20] sm:$0x1] %v6379_v13  ;;  %v758_v26 = vmul.f32 %v7462_v16, %v399_v14  ;;  %v400_v28 = vunpack.c.l.bf16 %v346_v9 }
  0x3c   : > { %6765 = vmatprep.subr.bf16.mxu1 %v7235_v55  ;;  %v871_v27 = vadd.f32 %v7488_v37, %v756_v15  ;;  %v6100_v29 = vcombine.low %v1691_v4, %v1701_v23  ;;  %v872_v30 = vadd.f32 %v7467_v20, %v757_v17  ;;  %v723_v31 = vmul.f32 %v7462_v16, %v364_v18  ;;  %v315_v55 = vld [vmem:[%s7449_s26 + $0x38] sm:$0x1]  ;;  %v7247_v4 = vld [vmem:[%s9068_s1 + $0xe8] sm:$0xff]  }
  0x3d   : > { %v724_v32 = vmul.f32 %v7462_v16, %v365_v19  ;;  %v873_v34 = vadd.f32 %v7495_v42, %v758_v26  ;;  %v725_v35 = vmul.f32 %v7462_v16, %v366_v21  ;;  %v401_v36 = vunpack.c.h.bf16 %v346_v9  ;;  %6878 = vmatpush3.bf16.msra.mxu0 %v7254_v33  ;;  %v7261_v17 = vld [vmem:[%s9068_s1 + $0x158] sm:$0xff]  }
  0x3e   : > { %v402_v38 = vunpack.c.l.bf16 %v348_v10  ;;  %4874 = vmatprep.mubr.bf16.mxu1 %v6100_v29  ;;  %v6531_v40 = vpack.c.bf16 %v872_v30, %v871_v27  ;;  %v838_v41 = vadd.f32 %v7488_v37, %v723_v31  ;;  %v759_v47 = vmul.f32 %v7462_v16, %v400_v28  ;;  %6879 = vmatprep.subr.bf16.mxu0 %v7261_v17 }
  0x3f   : > { %6766 = vmatpush3.bf16.msra.mxu1 %v7238_v5  ;;  %v839_v43 = vadd.f32 %v7467_v20, %v724_v32  ;;  %v6415_v44 = vpack.c.bf16 %v873_v34, %v873_v34  ;;  %v840_v46 = vadd.f32 %v7495_v42, %v725_v35  ;;  %v760_v53 = vmul.f32 %v7462_v16, %v401_v36  ;;  %v7253_v34 = vld [vmem:[%s9068_s1 + $0xb0] sm:$0xff]  }
  0x40   : > { %4875 = vmatmul.mubr.bf16.gmra.mrb[4].mxu1 %v7237_v24  ;;  %6767 = vmatprep.subr.bf16.mxu1 %v7239_v12  ;;  %6632 = vst [vmem:[#allocation3 + $0xa8] sm:$0xff] %v6531_v40   ;;  %v6380_v51 = vpack.c.bf16 %v838_v41, %v838_v41  ;;  %v761_v54 = vmul.f32 %v7462_v16, %v402_v38  ;;  %v6467_v60 = vunpack.c.l.bf16 %v6619_v48  ;;  %v6468_v61 = vunpack.c.h.bf16 %v6619_v48  ;;  %v7248_v12 = vld [vmem:[%s9068_s1 + $0xa8] sm:$0xff]  }
  0x41   : > { %v6381_v52 = vpack.c.bf16 %v839_v43, %v839_v43  ;;  %v1321_v56 = vld [vmem:[#allocation3 + $0x18] sm:$0xf]  ;;  %v1322_v57 = vld [vmem:[#allocation3 + $0x1c] sm:$0xf]  ;;  %1161 = vst [vmem:[#allocation3 + $0xb0] sm:$0x1] %v6415_v44  ;;  %v6382_v58 = vpack.c.bf16 %v840_v46, %v840_v46  ;;  %v874_v59 = vadd.f32 %v7488_v37, %v759_v47  ;;  %v875_v5 = vadd.f32 %v7467_v20, %v760_v53 }
  0x42   : > { %v1323_v62 = vld [vmem:[#allocation3 + $0x20] sm:$0x1]  ;;  %v1415_v63 = vshrl.u32 %v1321_v56, 16  ;;  %v1418_v0 = vshll.u32 %v1321_v56, 16  ;;  %v1424_v1 = vshll.u32 %v1322_v57, 16  ;;  %v1428_v2 = vshrl.u32 %v1322_v57, 16 }
  0x43   : > { %6768 = vmatpush3.bf16.msra.mxu1 %v7241_v39  ;;  %1126 = vst [vmem:[#allocation3 + $0x24] sm:$0xf] %v6380_v51  ;;  %1127 = vst [vmem:[#allocation3 + $0x28] sm:$0xf] %v6381_v52  ;;  %v1434_v3 = vshll.u32 %v1323_v62, 16  ;;  %v876_v6 = vadd.f32 %v7495_v42, %v761_v54  ;;  %v6416_v7 = vpack.c.bf16 %v874_v59, %v874_v59  ;;  %v369_v15 = vunpack.c.l.bf16 %v315_v55  ;;  %v7244_v39 = vld [vmem:[#allocation3 + $0x18] sm:$0xff]  }
  0x44   : > { %6769 = vmatprep.subr.bf16.mxu1 %v7243_v45  ;;  %1128 = vst [vmem:[#allocation3 + $0x2c] sm:$0x1] %v6382_v58  ;;  %v1417_v8 = vrot.slane %v1415_v63, 4  ;;  %v1420_v9 = vrot.slane %v1418_v0, 5  ;;  %v1426_v10 = vrot.slane %v1424_v1, 5  ;;  %v1430_v11 = vrot.slane %v1428_v2, 4 }
  0x45   : > { %v6417_v13 = vpack.c.bf16 %v875_v5, %v875_v5  ;;  %v6418_v14 = vpack.c.bf16 %v876_v6, %v876_v6  ;;  %1162 = vst [vmem:[#allocation3 + $0xb4] sm:$0xf] %v6416_v7  ;;  %v1436_v21 = vrot.slane %v1434_v3, 5  ;;  %v726_v23 = vmul.f32 %v6467_v60, %v7462_v16  ;;  %v7255_v54 = vld [vmem:[%s9068_s1 + $0xf8] sm:$0xff]   ;;  %v7258_v2 = vld [vmem:[%s9068_s1 + $0x1c0] sm:$0xff]  }
  0x46   : > { %v1421_v18 = vor.u32 %v1420_v9, %v1417_v8  ;;  %v1431_v19 = vor.u32 %v1430_v11, %v1426_v10  ;;  %v7646_v27 = vmul.f32 %v6468_v61, %v7462_v16  ;;  %v7649_v28 = vmul.f32 %v7462_v16, %v369_v15  ;;  %v7256_v60 = vld [vmem:[%s9068_s1 + $0xb8] sm:$0xff]  }
  0x47   : > { %6770 = vmatpush3.bf16.msra.mxu1 %v7246_v50  ;;  %v1357_v24 = vld [vmem:[#allocation3 + $0xa8] sm:$0xf]  ;;  %v1358_v26 = vld [vmem:[#allocation3 + $0xac] sm:$0xf]  ;;  %1163 = vst [vmem:[#allocation3 + $0xb8] sm:$0xf] %v6417_v13  ;;  %v7655_v40 = vadd.f32 %v7488_v37, %v726_v23 }
  0x48   : > { %6771 = vmatprep.subr.bf16.mxu1 %v7247_v4  ;;  %1164 = vst [vmem:[#allocation3 + $0xbc] sm:$0x1] %v6418_v14  ;;  %v1422_v29 = vrot.slane %v1421_v18, 4  ;;  %v1432_v30 = vrot.slane %v1431_v19, 4  ;;  %v1359_v31 = vld [vmem:[#allocation3 + $0xb0] sm:$0x1] }
  0x49   : > { %v1703_v32 = vshrl.u32 %v1357_v24, 16  ;;  %v1706_v33 = vshll.u32 %v1357_v24, 16  ;;  %v1712_v35 = vshll.u32 %v1358_v26, 16  ;;  %v1716_v36 = vshrl.u32 %v1358_v26, 16  ;;  %v7262_v61 = vld [vmem:[%s9068_s1 + $0x118] sm:$0xff]  }
  0x4a   : > { %v1722_v38 = vshll.u32 %v1359_v31, 16  ;;  %v1427_v41 = vsel %vm7533_vm4, %v1422_v29, %v1426_v10  ;;  %v1437_v43 = vsel %vm7533_vm4, %v1432_v30, %v1436_v21  ;;  %v1324_v46 = vld [vmem:[#allocation3 + $0x24] sm:$0xf]  ;;  %v1325_v47 = vld [vmem:[#allocation3 + $0x28] sm:$0xf]  ;;  %6880 = vmatpush3.bf16.msra.mxu0 %v7262_v61 }
  0x4b   : > { %v1705_v44 = vrot.slane %v1703_v32, 4  ;;  %v1708_v45 = vrot.slane %v1706_v33, 5  ;;  %6772 = vmatpush3.bf16.msra.mxu1 %v7248_v12  ;;  %v6089_v48 = vcombine.low %v1427_v41, %v1437_v43  ;;  %v1714_v50 = vrot.slane %v1712_v35, 5  ;;  %v1326_v53 = vld [vmem:[#allocation3 + $0x2c] sm:$0x1]  ;;  %v316_v41 = vld [vmem:[%s7449_s26 + $0x3c] sm:$0xff]  }
  0x4c   : > { %v1718_v51 = vrot.slane %v1716_v36, 4  ;;  %v1724_v52 = vrot.slane %v1722_v38, 5  ;;  %6773 = vmatprep.subr.bf16.mxu1 %v7249_v22  ;;  %v1439_v56 = vshrl.u32 %v1324_v46, 16  ;;  %v1442_v57 = vshll.u32 %v1324_v46, 16  ;;  %v1360_v59 = vld [vmem:[#allocation3 + $0xb4] sm:$0xf] }
  0x4d   : > { %v1709_v55 = vor.u32 %v1708_v45, %v1705_v44  ;;  %v1448_v58 = vshll.u32 %v1325_v47, 16  ;;  %4786 = vmatprep.mubr.bf16.mxu0 %v6089_v48  ;;  %v1452_v63 = vshrl.u32 %v1325_v47, 16  ;;  %v1458_v0 = vshll.u32 %v1326_v53, 16  ;;  %v1830_v13 = vld [vmem:[#allocation3] sm:$0xe]  ;;  %v7245_v22 = vld [vmem:[#allocation3 + $0xa8] sm:$0xff]  }
  0x4e   : > { %v1719_v62 = vor.u32 %v1718_v51, %v1714_v50  ;;  %v1727_v1 = vshrl.u32 %v1360_v59, 16  ;;  %4787 = vmatmul.mubr.bf16.gmra.mrb[8].mxu0 %v7244_v39  ;;  %v1441_v4 = vrot.slane %v1439_v56, 4  ;;  %v1444_v5 = vrot.slane %v1442_v57, 5  ;;  %v1361_v7 = vld [vmem:[#allocation3 + $0xb8] sm:$0xf]  ;;  %v7251_v48 = vld [vmem:[#allocation3 + $0x24] sm:$0xff]  }
  0x4f   : > { %v1710_v3 = vrot.slane %v1709_v55, 4  ;;  %v1450_v6 = vrot.slane %v1448_v58, 5  ;;  %6774 = vmatpush3.bf16.msra.mxu1 %v7253_v34  ;;  %v1454_v9 = vrot.slane %v1452_v63, 4  ;;  %v1460_v10 = vrot.slane %v1458_v0, 5  ;;  %v1362_v11 = vld [vmem:[#allocation3 + $0xbc] sm:$0x1] }
  0x50   : > { %v1720_v8 = vrot.slane %v1719_v62, 4  ;;  %v1729_v12 = vrot.slane %v1727_v1, 4  ;;  %6775 = vmatprep.subr.bf16.mxu1 %v7255_v54  ;;  %v1445_v15 = vor.u32 %v1444_v5, %v1441_v4  ;;  %v1730_v17 = vshll.u32 %v1360_v59, 16  ;;  %v1831_v19 = vld [vmem:[#allocation3 + $0x4] sm:$0xf]  ;;  %v7252_v58 = vld [vmem:[#allocation3 + $0xb4] sm:$0xff]  }
  0x51   : > { %v1715_v14 = vsel %vm7533_vm4, %v1710_v3, %v1714_v50  ;;  %v1736_v18 = vshll.u32 %v1361_v7, 16  ;;  %v1455_v23 = vor.u32 %v1454_v9, %v1450_v6  ;;  %v1740_v24 = vshrl.u32 %v1361_v7, 16  ;;  %v1832_v29 = vld [vmem:[#allocation3 + $0x8] sm:$0x1]  ;;  %v1834_v62 = vld [vmem:[#allocation3 + $0x10] sm:$0xf] }
  0x52   : > { %v1725_v21 = vsel %vm7533_vm4, %v1720_v8, %v1724_v52  ;;  %v1746_v26 = vshll.u32 %v1362_v11, 16  ;;  %v1446_v31 = vrot.slane %v1445_v15, 4  ;;  %v1732_v32 = vrot.slane %v1730_v17, 5  ;;  %v318_v52 = vld [vmem:[%s7449_s26 + $0x44] sm:$0x1]  ;;  %v7257_v0 = vld [vmem:[#allocation3 + $0xc] sm:$0xff]  }
  0x53   : > { %v6101_v30 = vcombine.low %v1715_v14, %v1725_v21  ;;  %v1738_v33 = vrot.slane %v1736_v18, 5  ;;  %6776 = vmatpush3.bf16.msra.mxu1 %v7256_v60  ;;  %v1456_v34 = vrot.slane %v1455_v23, 4  ;;  %v1742_v35 = vrot.slane %v1740_v24, 4  ;;  %v321_v4 = vld [vmem:[%s7449_s26 + $0x50] sm:$0x1]  ;;  %v7269_v5 = vld [vmem:[%s9068_s1 + $0x120] sm:$0xff]  }
  0x54   : > { %v1748_v36 = vrot.slane %v1746_v26, 5  ;;  %v842_v38 = vadd.f32 %v7467_v20, %v7646_v27  ;;  %6985 = vmatprep.subr.bf16.mxu1 %v7258_v2  ;;  %v1451_v43 = vsel %vm7533_vm4, %v1446_v31, %v1450_v6  ;;  %v1733_v44 = vor.u32 %v1732_v32, %v1729_v12  ;;  %v7266_v20 = vld [vmem:[%s9068_s1 + $0x160] sm:$0xff]   ;;  %v1836_v21 = vld [vmem:[#allocation3 + $0x18] sm:$0xe]  ;;  %v1837_v32 = vld [vmem:[#allocation3 + $0x1c] sm:$0xf] }
  0x55   : > { %4882 = vmatprep.mubr.bf16.mxu1 %v6101_v30  ;;  %v843_v45 = vadd.f32 %v7495_v42, %v7649_v28  ;;  %v6103_v46 = vrot.slane %v1830_v13, 9  ;;  %v1461_v27 = vsel %vm7533_vm4, %v1456_v34, %v1460_v10  ;;  %v1743_v47 = vor.u32 %v1742_v35, %v1738_v33  ;;  %v1833_v28 = vld [vmem:[#allocation3 + $0xc] sm:$0xe]  ;;  %6881 = vmatprep.subr.bf16.mxu0 %v7266_v20 }
  0x56   : > { %4883 = vmatmul.mubr.bf16.gmra.mrb[8].mxu1 %v7245_v22  ;;  %v6506_v50 = vpack.c.bf16 %v842_v38, %v7655_v40  ;;  %v1931_v51 = vrot.slane %v1831_v19, 5  ;;  %v6090_v53 = vcombine.low %v1451_v43, %v1461_v27  ;;  %v1734_v54 = vrot.slane %v1733_v44, 4  ;;  %v1835_v40 = vld [vmem:[#allocation3 + $0x14] sm:$0x1]  ;;  %v6620_v10 = vld [vmem:[%s7449_s26 + $0x48] sm:$0xff]   ;;  %6882 = vmatpush3.bf16.msra.mxu0 %v7269_v5 }
  0x57   : > { %v6385_v55 = vpack.c.bf16 %v843_v45, %v843_v45  ;;  %v1934_v56 = vrot.slane %v1832_v29, 5  ;;  %v1744_v57 = vrot.slane %v1743_v47, 4  ;;  %v370_v61 = vunpack.c.l.bf16 %v316_v41  ;;  %v7727_v22 = vld [vmem:[%s9071_s4] ss:$0 sm:$0xff] }
  0x58   : > { %6627 = vst [vmem:[#allocation3 + $0x30] sm:$0xff] %v6506_v50   ;;  %v7699_v59 = vsel %vm7681_vm7, %v6103_v46, %v1931_v51  ;;  %v1933_v60 = vrot.slane %v1931_v51, 4  ;;  %4794 = vmatprep.mubr.bf16.mxu0 %v6090_v53  ;;  %v1739_v63 = vsel %vm7533_vm4, %v1734_v54, %v1738_v33  ;;  %v371_v1 = vunpack.c.h.bf16 %v316_v41  ;;  %v7740_v43 = vld [vmem:[%s9070_s3] ss:$0 sm:$0xff] }
  0x59   : > { %1131 = vst [vmem:[#allocation3 + $0x38] sm:$0x1] %v6385_v55  ;;  %v372_v2 = vunpack.c.l.bf16 %v318_v52  ;;  %v6104_v3 = vrot.slane %v1833_v28, 9  ;;  %v1749_v6 = vsel %vm7533_vm4, %v1744_v57, %v1748_v36  ;;  %4795 = vmatmul.mubr.bf16.gmra.mrb[12].mxu0 %v7251_v48  ;;  %v729_v8 = vmul.f32 %v7462_v16, %v370_v61  ;;  %v1838_v45 = vld [vmem:[#allocation3 + $0x20] sm:$0x1]  ;;  %v7263_v52 = vld [vmem:[#allocation3 + $0x18] sm:$0xff]  }
  0x5a   : > { %v7711_v7 = vsel %vm7681_vm7, %v1933_v60, %v1934_v56  ;;  %v1938_v9 = vrot.slane %v1834_v62, 5  ;;  %v6102_v11 = vcombine.low %v1739_v63, %v1749_v6  ;;  %v730_v13 = vmul.f32 %v7462_v16, %v371_v1  ;;  %v7260_v51 = vld [vmem:[%s9068_s1 + $0x180] sm:$0xff]   ;;  %v322_v56 = vld [vmem:[%s7449_s26 + $0x54] sm:$0xff]   ;;  %v7751_v28 = vld [vmem:[%s7449_s26 + $0x5c] sm:$0x1] }
  0x5b   : > { %v6119_v12 = vcombine.low %v7699_v59, %v7711_v7  ;;  %v731_v14 = vmul.f32 %v7462_v16, %v372_v2  ;;  %v844_v15 = vadd.f32 %v7488_v37, %v729_v8  ;;  %v1941_v19 = vrot.slane %v1835_v40, 5  ;;  %v7273_v2 = vld [vmem:[%s9068_s1 + $0x168] sm:$0xff]   ;;  %v1839_v8 = vld [vmem:[#allocation3 + $0x24] sm:$0xe] }
  0x5c   : > { %v7722_v17 = vsel %vm7681_vm7, %v6104_v3, %v1938_v9  ;;  %v1940_v18 = vrot.slane %v1938_v9, 4  ;;  %4890 = vmatprep.mubr.bf16.mxu1 %v6102_v11  ;;  %v845_v23 = vadd.f32 %v7727_v22, %v730_v13  ;;  %v6471_v24 = vunpack.c.l.bf16 %v6620_v10  ;;  %v1840_v9 = vld [vmem:[#allocation3 + $0x28] sm:$0xf]  ;;  %6883 = vmatprep.subr.bf16.mxu0 %v7273_v2 }
  0x5d   : > { %v846_v16 = vadd.f32 %v7495_v42, %v731_v14  ;;  %v6472_v26 = vunpack.c.h.bf16 %v6620_v10  ;;  %v6386_v29 = vpack.c.bf16 %v844_v15, %v844_v15  ;;  %v375_v31 = vunpack.c.l.bf16 %v321_v4  ;;  %v7274_v10 = vld [vmem:[%s9068_s1 + $0x128] sm:$0xff]  }
  0x5e   : > { %4891 = vmatmul.mubr.bf16.gmra.mrb[12].mxu1 %v7252_v58  ;;  %v7733_v30 = vsel %vm7681_vm7, %v1940_v18, %v1941_v19  ;;  %v6105_v33 = vrot.slane %v1836_v21, 9  ;;  %v6387_v36 = vpack.c.bf16 %v845_v23, %v845_v23  ;;  %v732_v44 = vmul.f32 %v7740_v43, %v6471_v24  ;;  %v7270_v18 = vld [vmem:[%s9068_s1 + $0x188] sm:$0xff]   ;;  %6884 = vmatpush3.bf16.msra.mxu0 %v7274_v10 }
  0x5f   : > { %v1327_v34 = vld [vmem:[#allocation3 + $0x30] sm:$0xf]  ;;  %v1328_v35 = vld [vmem:[#allocation3 + $0x34] sm:$0xf]  ;;  %4931 = vmatprep.mubr.bf16.mxu1 %v7257_v0  ;;  %v6388_v38 = vpack.c.bf16 %v846_v16, %v846_v16  ;;  %v6120_v41 = vcombine.low %v7722_v17, %v7733_v30  ;;  %1132 = vst [vmem:[#allocation3 + $0x3c] sm:$0xf] %v6386_v29  ;;  %v733_v53 = vmul.f32 %v7740_v43, %v6472_v26  ;;  %v376_v6 = vunpack.c.l.bf16 %v322_v56 }
  0x60   : > { %v1329_v46 = vld [vmem:[#allocation3 + $0x38] sm:$0x1]  ;;  %v1463_v20 = vshrl.u32 %v1327_v34, 16  ;;  %v1466_v27 = vshll.u32 %v1327_v34, 16  ;;  %v1472_v47 = vshll.u32 %v1328_v35, 16  ;;  %v1476_v48 = vshrl.u32 %v1328_v35, 16 }
  0x61   : > { %v1482_v50 = vshll.u32 %v1329_v46, 16  ;;  %1133 = vst [vmem:[#allocation3 + $0x40] sm:$0xf] %v6387_v36  ;;  %1134 = vst [vmem:[#allocation3 + $0x44] sm:$0x1] %v6388_v38  ;;  %v734_v54 = vmul.f32 %v7740_v43, %v375_v31  ;;  %v847_v55 = vadd.f32 %v7488_v37, %v732_v44  ;;  %v848_v40 = vadd.f32 %v7727_v22, %v733_v53  ;;  %v7267_v0 = vld [vmem:[%s9068_s1 + $0x1c8] sm:$0xff]  }
  0x62   : > { %v1465_v57 = vrot.slane %v1463_v20, 4  ;;  %v1468_v58 = vrot.slane %v1466_v27, 5  ;;  %v1474_v60 = vrot.slane %v1472_v47, 5  ;;  %v1478_v61 = vrot.slane %v1476_v48, 4  ;;  %v7259_v23 = vld [vmem:[#allocation3 + $0x30] sm:$0xff]   ;;  %v7265_v20 = vld [vmem:[#allocation3 + $0x24] sm:$0xff]  }
  0x63   : > { %v1484_v62 = vrot.slane %v1482_v50, 5  ;;  %v849_v63 = vadd.f32 %v7495_v42, %v734_v54  ;;  %v1945_v1 = vrot.slane %v1837_v32, 5  ;;  %v1948_v5 = vrot.slane %v1838_v45, 5 }
  0x64   : > { %v1469_v3 = vor.u32 %v1468_v58, %v1465_v57  ;;  %v1479_v4 = vor.u32 %v1478_v61, %v1474_v60  ;;  %v6511_v13 = vpack.c.bf16 %v848_v40, %v847_v55  ;;  %v377_v16 = vunpack.c.h.bf16 %v322_v56  ;;  %v6621_v56 = vld [vmem:[%s7449_s26 + $0x60] sm:$0xff]  }
  0x65   : > { %v6391_v11 = vpack.c.bf16 %v849_v63, %v849_v63  ;;  %v7766_v14 = vsel %vm7681_vm7, %v6105_v33, %v1945_v1  ;;  %v1947_v15 = vrot.slane %v1945_v1, 4  ;;  %v378_v24 = vunpack.c.l.bf16 %v7751_v28  ;;  %v7278_v1 = vld [vmem:[%s9068_s1 + $0x190] sm:$0xff]  }
  0x66   : > { %v1470_v19 = vrot.slane %v1469_v3, 4  ;;  %v1480_v21 = vrot.slane %v1479_v4, 4  ;;  %4932 = vmatmul.mubr.bf16.vlgmr.msra.gmra.mrb[16].mxu1 %v6119_v12  ;;  %v1330_v26 = vld [vmem:[#allocation3 + $0x3c] sm:$0xf]  ;;  %6628 = vst [vmem:[#allocation3 + $0x48] sm:$0xff] %v6511_v13   ;;  %v735_v31 = vmul.f32 %v7740_v43, %v376_v6  ;;  %v6106_v32 = vrot.slane %v1839_v8, 9 }
  0x67   : > { %6986 = vmatpush3.bf16.msra.mxu1 %v7260_v51  ;;  %4939 = vmatprep.mubr.bf16.mxu1 %v7263_v52  ;;  %1137 = vst [vmem:[#allocation3 + $0x50] sm:$0x1] %v6391_v11  ;;  %v7777_v29 = vsel %vm7681_vm7, %v1947_v15, %v1948_v5  ;;  %v1952_v33 = vrot.slane %v1840_v9, 5  ;;  %v1487_v35 = vshrl.u32 %v1330_v26, 16  ;;  %v1490_v36 = vshll.u32 %v1330_v26, 16 }
  0x68   : > { %v1475_v59 = vsel %vm7533_vm4, %v1470_v19, %v1474_v60  ;;  %v1485_v7 = vsel %vm7533_vm4, %v1480_v21, %v1484_v62  ;;  %v1331_v12 = vld [vmem:[#allocation3 + $0x40] sm:$0xf]  ;;  %v1332_v34 = vld [vmem:[#allocation3 + $0x44] sm:$0x1]  ;;  %6987 = vmatprep.subr.bf16.mxu1 %v7267_v0  ;;  %v6121_v48 = vcombine.low %v7766_v14, %v7777_v29  ;;  %v736_v50 = vmul.f32 %v7740_v43, %v377_v16  ;;  %v1841_v51 = vld [vmem:[#allocation3 + $0x2c] sm:$0x1] }
  0x69   : > { %v6091_v38 = vcombine.low %v1475_v59, %v1485_v7  ;;  %v1496_v44 = vshll.u32 %v1331_v12, 16  ;;  %v1500_v45 = vshrl.u32 %v1331_v12, 16  ;;  %v1506_v46 = vshll.u32 %v1332_v34, 16  ;;  %v7276_v0 = vld [vmem:[%s9068_s1 + $0x1d0] sm:$0xff]   ;;  %v327_v9 = vld [vmem:[%s7449_s26 + $0x68] sm:$0x1] }
  0x6a   : > { %v1489_v27 = vrot.slane %v1487_v35, 4  ;;  %v1492_v47 = vrot.slane %v1490_v36, 5  ;;  %v737_v55 = vmul.f32 %v7740_v43, %v378_v24  ;;  %v850_v57 = vadd.f32 %v7488_v37, %v735_v31  ;;  %v1842_v19 = vld [vmem:[#allocation3 + $0x30] sm:$0xe]  ;;  %v7264_v16 = vld [vmem:[#allocation3 + $0x3c] sm:$0xff]  }
  0x6b   : > { %4802 = vmatprep.mubr.bf16.mxu0 %v6091_v38  ;;  %v1498_v52 = vrot.slane %v1496_v44, 5  ;;  %v1502_v53 = vrot.slane %v1500_v45, 4  ;;  %v1508_v54 = vrot.slane %v1506_v46, 5  ;;  %6988 = vmatpush3.bf16.msra.mxu1 %v7270_v18  ;;  %v851_v58 = vadd.f32 %v7727_v22, %v736_v50  ;;  %v1844_v34 = vld [vmem:[#allocation3 + $0x38] sm:$0x1]  ;;  %v7271_v36 = vld [vmem:[#allocation3 + $0x30] sm:$0xff]  }
  0x6c   : > { %4803 = vmatmul.mubr.bf16.gmra.mrb[16].mxu0 %v7259_v23  ;;  %v1493_v28 = vor.u32 %v1492_v47, %v1489_v27  ;;  %v7793_v60 = vsel %vm7681_vm7, %v6106_v32, %v1952_v33  ;;  %v852_v62 = vadd.f32 %v7495_v42, %v737_v55  ;;  %v1954_v40 = vrot.slane %v1952_v33, 4  ;;  %6989 = vmatprep.subr.bf16.mxu1 %v7276_v0  ;;  %v1843_v32 = vld [vmem:[#allocation3 + $0x34] sm:$0xf]  ;;  %v328_v50 = vld [vmem:[%s7449_s26 + $0x6c] sm:$0xff]  }
  0x6d   : > { %v1503_v61 = vor.u32 %v1502_v53, %v1498_v52  ;;  %v1955_v63 = vrot.slane %v1841_v51, 5  ;;  %v1333_v3 = vld [vmem:[#allocation3 + $0x48] sm:$0xf]  ;;  %v1334_v4 = vld [vmem:[#allocation3 + $0x4c] sm:$0xf]  ;;  %v6392_v5 = vpack.c.bf16 %v850_v57, %v850_v57  ;;  %v6393_v6 = vpack.c.bf16 %v851_v58, %v851_v58  ;;  %v7280_v51 = vld [vmem:[%s9068_s1 + $0x170] sm:$0xff]  }
  0x6e   : > { %v1494_v2 = vrot.slane %v1493_v28, 4  ;;  %4940 = vmatmul.mubr.bf16.gmra.mrb[20].mxu1 %v6120_v41  ;;  %v6475_v8 = vunpack.c.l.bf16 %v6621_v56  ;;  %v1335_v11 = vld [vmem:[#allocation3 + $0x50] sm:$0x1]  ;;  %v1511_v13 = vshrl.u32 %v1333_v3, 16  ;;  %v1514_v15 = vshll.u32 %v1333_v3, 16  ;;  %6885 = vmatprep.subr.bf16.mxu0 %v7280_v51 }
  0x6f   : > { %v1504_v10 = vrot.slane %v1503_v61, 4  ;;  %v1520_v18 = vshll.u32 %v1334_v4, 16  ;;  %4947 = vmatprep.mubr.bf16.mxu1 %v7265_v20  ;;  %v1524_v23 = vshrl.u32 %v1334_v4, 16  ;;  %v1530_v17 = vshll.u32 %v1335_v11, 16  ;;  %1138 = vst [vmem:[#allocation3 + $0x54] sm:$0xf] %v6392_v5  ;;  %6990 = vmatpush3.bf16.msra.mxu1 %v7278_v1 }
  0x70   : > { %v1499_v21 = vsel %vm7533_vm4, %v1494_v2, %v1498_v52  ;;  %v6394_v30 = vpack.c.bf16 %v852_v62, %v852_v62  ;;  %1139 = vst [vmem:[#allocation3 + $0x58] sm:$0xf] %v6393_v6  ;;  %v1513_v24 = vrot.slane %v1511_v13, 4  ;;  %v1516_v26 = vrot.slane %v1514_v15, 5  ;;  %v330_v61 = vld [vmem:[%s7449_s26 + $0x74] sm:$0x1] }
  0x71   : > { %v1509_v41 = vsel %vm7533_vm4, %v1504_v10, %v1508_v54  ;;  %v1522_v31 = vrot.slane %v1520_v18, 5  ;;  %v1526_v59 = vrot.slane %v1524_v23, 4  ;;  %v1532_v7 = vrot.slane %v1530_v17, 5  ;;  %v7268_v1 = vld [vmem:[#allocation3 + $0x48] sm:$0xff]   ;;  %v1845_v5 = vld [vmem:[#allocation3 + $0x3c] sm:$0xe] }
  0x72   : > { %v6092_v33 = vcombine.low %v1499_v21, %v1509_v41  ;;  %1140 = vst [vmem:[#allocation3 + $0x5c] sm:$0x1] %v6394_v30  ;;  %v7812_v12 = vsel %vm7681_vm7, %v1954_v40, %v1955_v63  ;;  %v1517_v35 = vor.u32 %v1516_v26, %v1513_v24  ;;  %v6476_v44 = vunpack.c.h.bf16 %v6621_v56  ;;  %v1846_v13 = vld [vmem:[#allocation3 + $0x40] sm:$0xf]  ;;  %v7282_v15 = vld [vmem:[%s9068_s1 + $0x130] sm:$0xff]  }
  0x73   : > { %v6122_v38 = vcombine.low %v7793_v60, %v7812_v12  ;;  %v381_v45 = vunpack.c.l.bf16 %v327_v9  ;;  %v1527_v46 = vor.u32 %v1526_v59, %v1522_v31  ;;  %v738_v20 = vmul.f32 %v7740_v43, %v6475_v8  ;;  %v7275_v30 = vld [vmem:[#allocation3 + $0x3c] sm:$0xff]   ;;  %v1847_v26 = vld [vmem:[#allocation3 + $0x44] sm:$0x1]  ;;  %6886 = vmatpush3.bf16.msra.mxu0 %v7282_v15  ;;  %v7885_v15 = vld [vmem:[#allocation3 + $0x50] sm:$0x1] }
  0x74   : > { %4810 = vmatprep.mubr.bf16.mxu0 %v6092_v33  ;;  %v6107_v27 = vrot.slane %v1842_v19, 9  ;;  %v1959_v47 = vrot.slane %v1843_v32, 5  ;;  %v1518_v52 = vrot.slane %v1517_v35, 4  ;;  %v739_v53 = vmul.f32 %v7740_v43, %v6476_v44  ;;  %v7287_v60 = vld [vmem:[%s9068_s1 + $0x178] sm:$0xff]  }
  0x75   : > { %4811 = vmatmul.mubr.bf16.gmra.mrb[20].mxu0 %v7264_v16  ;;  %v740_v54 = vmul.f32 %v7740_v43, %v381_v45  ;;  %v1962_v55 = vrot.slane %v1844_v34, 5  ;;  %v1528_v56 = vrot.slane %v1527_v46, 4  ;;  %v853_v28 = vadd.f32 %v7488_v37, %v738_v20  ;;  %v7284_v45 = vld [vmem:[%s9068_s1 + $0x1d8] sm:$0xff]   ;;  %6887 = vmatprep.subr.bf16.mxu0 %v7287_v60 }
  0x76   : > { %4948 = vmatmul.mubr.bf16.gmra.mrb[24].mxu1 %v6121_v48  ;;  %v7829_v57 = vsel %vm7681_vm7, %v6107_v27, %v1959_v47  ;;  %v1961_v58 = vrot.slane %v1959_v47, 4  ;;  %v1523_v62 = vsel %vm7533_vm4, %v1518_v52, %v1522_v31  ;;  %v1336_v40 = vld [vmem:[#allocation3 + $0x54] sm:$0xf]  ;;  %v854_v0 = vadd.f32 %v7727_v22, %v739_v53  ;;  %6991 = vmatprep.subr.bf16.mxu1 %v7284_v45 }
  0x77   : > { %v1337_v63 = vld [vmem:[#allocation3 + $0x58] sm:$0xf]  ;;  %4955 = vmatprep.mubr.bf16.mxu1 %v7271_v36  ;;  %v855_v14 = vadd.f32 %v7495_v42, %v740_v54  ;;  %v382_v29 = vunpack.c.l.bf16 %v328_v50  ;;  %v1533_v48 = vsel %vm7533_vm4, %v1528_v56, %v1532_v7  ;;  %v1535_v2 = vshrl.u32 %v1336_v40, 16  ;;  %v333_v56 = vld [vmem:[%s7449_s26 + $0x80] sm:$0x1] }
  0x78   : > { %v1538_v3 = vshll.u32 %v1336_v40, 16  ;;  %v1544_v4 = vshll.u32 %v1337_v63, 16  ;;  %v6093_v6 = vcombine.low %v1523_v62, %v1533_v48  ;;  %v1548_v9 = vshrl.u32 %v1337_v63, 16  ;;  %v6622_v7 = vld [vmem:[%s7449_s26 + $0x78] sm:$0xff]  }
  0x79   : > { %v1338_v8 = vld [vmem:[#allocation3 + $0x5c] sm:$0x1]  ;;  %v6397_v10 = vpack.c.bf16 %v855_v14, %v855_v14  ;;  %v6516_v11 = vpack.c.bf16 %v854_v0, %v853_v28  ;;  %v1537_v18 = vrot.slane %v1535_v2, 4  ;;  %v7843_v41 = vsel %vm7681_vm7, %v1961_v58, %v1962_v55  ;;  %v7272_v52 = vld [vmem:[#allocation3 + $0x54] sm:$0xff]   ;;  %v7279_v0 = vld [vmem:[#allocation3 + $0x48] sm:$0xff]  }
  0x7a   : > { %v1540_v19 = vrot.slane %v1538_v3, 5  ;;  %v1546_v21 = vrot.slane %v1544_v4, 5  ;;  %v1554_v23 = vshll.u32 %v1338_v8, 16  ;;  %4818 = vmatprep.mubr.bf16.mxu0 %v6093_v6  ;;  %v1550_v17 = vrot.slane %v1548_v9, 4  ;;  %v1848_v6 = vld [vmem:[#allocation3 + $0x48] sm:$0xe] }
  0x7b   : > { %6629 = vst [vmem:[#allocation3 + $0x60] sm:$0xff] %v6516_v11   ;;  %1143 = vst [vmem:[#allocation3 + $0x68] sm:$0x1] %v6397_v10  ;;  %v383_v16 = vunpack.c.h.bf16 %v328_v50  ;;  %v384_v24 = vunpack.c.l.bf16 %v330_v61  ;;  %v6123_v33 = vcombine.low %v7829_v57, %v7843_v41  ;;  %v741_v59 = vmul.f32 %v7740_v43, %v382_v29  ;;  %v7286_v50 = vld [vmem:[%s9068_s1 + $0x198] sm:$0xff]   ;;  %v7883_v8 = vld [vmem:[#allocation3 + $0x4c] sm:$0xf] }
  0x7c   : > { %v1541_v31 = vor.u32 %v1540_v19, %v1537_v18  ;;  %v1556_v32 = vrot.slane %v1554_v23, 5  ;;  %v1551_v34 = vor.u32 %v1550_v17, %v1546_v21  ;;  %v6108_v44 = vrot.slane %v1845_v5, 9  ;;  %6992 = vmatpush3.bf16.msra.mxu1 %v7286_v50  ;;  %v7288_v61 = vld [vmem:[%s9068_s1 + $0x138] sm:$0xff]  }
  0x7d   : > { %4819 = vmatmul.mubr.bf16.gmra.mrb[24].mxu0 %v7268_v1  ;;  %v742_v35 = vmul.f32 %v7740_v43, %v383_v16  ;;  %v743_v36 = vmul.f32 %v7740_v43, %v384_v24  ;;  %v856_v20 = vadd.f32 %v7488_v37, %v741_v59  ;;  %v1966_v27 = vrot.slane %v1846_v13, 5 }
  0x7e   : > { %v1542_v46 = vrot.slane %v1541_v31, 4  ;;  %4956 = vmatmul.mubr.bf16.gmra.mrb[28].mxu1 %v6122_v38  ;;  %v1969_v47 = vrot.slane %v1847_v26, 5  ;;  %v1552_v51 = vrot.slane %v1551_v34, 4  ;;  %v6479_v55 = vunpack.c.l.bf16 %v6622_v7  ;;  %6888 = vmatpush3.bf16.msra.mxu0 %v7288_v61  ;;  %v334_v26 = vld [vmem:[%s7449_s26 + $0x84] sm:$0xff]  }
  0x7f   : > { %4963 = vmatprep.mubr.bf16.mxu1 %v7275_v30  ;;  %v857_v53 = vadd.f32 %v7727_v22, %v742_v35  ;;  %v858_v54 = vadd.f32 %v7495_v42, %v743_v36  ;;  %v6398_v38 = vpack.c.bf16 %v856_v20, %v856_v20  ;;  %v7871_v28 = vsel %vm7681_vm7, %v6108_v44, %v1966_v27  ;;  %v7292_v34 = vld [vmem:[%s9068_s1 + $0x1e0] sm:$0xff]  }
  0x80   : > { %v1547_v12 = vsel %vm7533_vm4, %v1542_v46, %v1546_v21  ;;  %v1968_v58 = vrot.slane %v1966_v27, 4  ;;  %v1557_v62 = vsel %vm7533_vm4, %v1552_v51, %v1556_v32  ;;  %v6480_v14 = vunpack.c.h.bf16 %v6622_v7  ;;  %v336_v46 = vld [vmem:[%s7449_s26 + $0x8c] sm:$0x1]  ;;  %6993 = vmatprep.subr.bf16.mxu1 %v7292_v34  ;;  %v7907_v27 = vld [vmem:[%s9068_s1 + $0x200] sm:$0xff]  }
  0x81   : > { %v6399_v40 = vpack.c.bf16 %v857_v53, %v857_v53  ;;  %v6400_v63 = vpack.c.bf16 %v858_v54, %v858_v54  ;;  %v6094_v29 = vcombine.low %v1547_v12, %v1557_v62  ;;  %1144 = vst [vmem:[#allocation3 + $0x6c] sm:$0xf] %v6398_v38  ;;  %v387_v4 = vunpack.c.l.bf16 %v333_v56  ;;  %7121 = vmatprep.subr.bf16.mxu0 %v7907_v27 }
  0x82   : > { %v1339_v48 = vld [vmem:[#allocation3 + $0x60] sm:$0xf]  ;;  %v1340_v1 = vld [vmem:[#allocation3 + $0x64] sm:$0xf]  ;;  %v1341_v2 = vld [vmem:[#allocation3 + $0x68] sm:$0x1]  ;;  %v7880_v3 = vsel %vm7681_vm7, %v1968_v58, %v1969_v47  ;;  %v744_v5 = vmul.f32 %v7740_v43, %v6479_v55  ;;  %v745_v21 = vmul.f32 %v7740_v43, %v6480_v14  ;;  %v389_v53 = vunpack.c.h.bf16 %v334_v26 }
  0x83   : > { %v1559_v9 = vshrl.u32 %v1339_v48, 16  ;;  %v1562_v10 = vshll.u32 %v1339_v48, 16  ;;  %v1568_v11 = vshll.u32 %v1340_v1, 16  ;;  %v1572_v13 = vshrl.u32 %v1340_v1, 16  ;;  %1145 = vst [vmem:[#allocation3 + $0x70] sm:$0xf] %v6399_v40  ;;  %4826 = vmatprep.mubr.bf16.mxu0 %v6094_v29 }
  0x84   : > { %1146 = vst [vmem:[#allocation3 + $0x74] sm:$0x1] %v6400_v63  ;;  %v1578_v18 = vshll.u32 %v1341_v2, 16  ;;  %v6124_v19 = vcombine.low %v7871_v28, %v7880_v3  ;;  %v746_v23 = vmul.f32 %v7740_v43, %v387_v4  ;;  %v859_v32 = vadd.f32 %v7488_v37, %v744_v5  ;;  %v7277_v61 = vld [vmem:[#allocation3 + $0x60] sm:$0xff]   ;;  %v7283_v63 = vld [vmem:[#allocation3 + $0x54] sm:$0xff]  }
  0x85   : > { %4827 = vmatmul.mubr.bf16.gmra.mrb[28].mxu0 %v7272_v52  ;;  %v1561_v17 = vrot.slane %v1559_v9, 4  ;;  %v1564_v30 = vrot.slane %v1562_v10, 5  ;;  %v1570_v16 = vrot.slane %v1568_v11, 5  ;;  %v1574_v24 = vrot.slane %v1572_v13, 4  ;;  %v7294_v1 = vld [vmem:[%s9068_s1 + $0x1a0] sm:$0xff]  }
  0x86   : > { %v1580_v31 = vrot.slane %v1578_v18, 5  ;;  %4964 = vmatmul.mubr.bf16.gmra.mrb[32].mxu1 %v6123_v33  ;;  %v860_v59 = vadd.f32 %v7727_v22, %v745_v21  ;;  %v861_v7 = vadd.f32 %v7495_v42, %v746_v23  ;;  %v6109_v44 = vrot.slane %v1848_v6, 9  ;;  %v7297_v6 = vld [vmem:[%s9068_s1 + $0x1e8] sm:$0xff]   ;;  %v1851_v11 = vld [vmem:[#allocation3 + $0x54] sm:$0xe] }
  0x87   : > { %v1565_v35 = vor.u32 %v1564_v30, %v1561_v17  ;;  %v1575_v36 = vor.u32 %v1574_v24, %v1570_v16  ;;  %4971 = vmatprep.mubr.bf16.mxu1 %v7279_v0  ;;  %v1973_v45 = vrot.slane %v7883_v8, 5  ;;  %v1976_v41 = vrot.slane %v7885_v15, 5  ;;  %6994 = vmatpush3.bf16.msra.mxu1 %v7294_v1  ;;  %v1856_v1 = vld [vmem:[#allocation3 + $0x68] sm:$0x1] }
  0x88   : > { %v6403_v20 = vpack.c.bf16 %v861_v7, %v861_v7  ;;  %v6521_v57 = vpack.c.bf16 %v860_v59, %v859_v32  ;;  %v388_v33 = vunpack.c.l.bf16 %v334_v26  ;;  %v1342_v51 = vld [vmem:[#allocation3 + $0x6c] sm:$0xf]  ;;  %v390_v12 = vunpack.c.l.bf16 %v336_v46  ;;  %v7289_v7 = vld [vmem:[#allocation3 + $0x60] sm:$0xff]   ;;  %6995 = vmatprep.subr.bf16.mxu1 %v7297_v6 }
  0x89   : > { %v1566_v47 = vrot.slane %v1565_v35, 4  ;;  %v1576_v50 = vrot.slane %v1575_v36, 4  ;;  %v7911_v52 = vsel %vm7681_vm7, %v6109_v44, %v1973_v45  ;;  %v1583_v56 = vshrl.u32 %v1342_v51, 16  ;;  %v2779_v35 = vld [vmem:[#allocation3 + $0x10] sm:$0xf] }
  0x8a   : > { %v1343_v54 = vld [vmem:[#allocation3 + $0x70] sm:$0xf]  ;;  %v1586_v60 = vshll.u32 %v1342_v51, 16  ;;  %6630 = vst [vmem:[#allocation3 + $0x78] sm:$0xff] %v6521_v57   ;;  %1149 = vst [vmem:[#allocation3 + $0x80] sm:$0x1] %v6403_v20  ;;  %v747_v38 = vmul.f32 %v7740_v43, %v388_v33  ;;  %v748_v5 = vmul.f32 %v7740_v43, %v389_v53  ;;  %v749_v9 = vmul.f32 %v7740_v43, %v390_v12 }
  0x8b   : > { %v1344_v55 = vld [vmem:[#allocation3 + $0x74] sm:$0x1]  ;;  %v1571_v28 = vsel %vm7533_vm4, %v1566_v47, %v1570_v16  ;;  %v1581_v58 = vsel %vm7533_vm4, %v1576_v50, %v1580_v31  ;;  %v1592_v62 = vshll.u32 %v1343_v54, 16  ;;  %v1596_v40 = vshrl.u32 %v1343_v54, 16  ;;  %v1852_v16 = vld [vmem:[#allocation3 + $0x58] sm:$0xf] }
  0x8c   : > { %v6095_v0 = vcombine.low %v1571_v28, %v1581_v58  ;;  %v1585_v14 = vrot.slane %v1583_v56, 4  ;;  %v1588_v29 = vrot.slane %v1586_v60, 5  ;;  %v1602_v48 = vshll.u32 %v1344_v55, 16  ;;  %v7299_v43 = vld [vmem:[%s9068_s1 + $0x1a8] sm:$0xff]  }
  0x8d   : > { %v1594_v2 = vrot.slane %v1592_v62, 5  ;;  %v1598_v3 = vrot.slane %v1596_v40, 4  ;;  %v1975_v4 = vrot.slane %v1973_v45, 4  ;;  %v862_v10 = vadd.f32 %v7488_v37, %v747_v38  ;;  %v7281_v44 = vld [vmem:[#allocation3 + $0x6c] sm:$0xff]   ;;  %6996 = vmatpush3.bf16.msra.mxu1 %v7299_v43  ;;  %v1854_v38 = vld [vmem:[#allocation3 + $0x60] sm:$0xe] }
  0x8e   : > { %4834 = vmatprep.mubr.bf16.mxu0 %v6095_v0  ;;  %v1589_v8 = vor.u32 %v1588_v29, %v1585_v14  ;;  %4972 = vmatmul.mubr.bf16.gmra.mrb[36].mxu1 %v6124_v19  ;;  %v1604_v15 = vrot.slane %v1602_v48, 5  ;;  %v863_v21 = vadd.f32 %v7727_v22, %v748_v5  ;;  %v864_v17 = vadd.f32 %v7495_v42, %v749_v9  ;;  %v1853_v19 = vld [vmem:[#allocation3 + $0x5c] sm:$0x1]  ;;  %v2778_v22 = vld [vmem:[#allocation3 + $0xc] sm:$0xe] }
  0x8f   : > { %4835 = vmatmul.mubr.bf16.gmra.mrb[32].mxu0 %v7277_v61  ;;  %v1599_v13 = vor.u32 %v1598_v3, %v1594_v2  ;;  %4979 = vmatprep.mubr.bf16.mxu1 %v7283_v63  ;;  %v1977_v18 = vsel %vm7681_vm7, %v1975_v4, %v1976_v41  ;;  %v6404_v30 = vpack.c.bf16 %v862_v10, %v862_v10  ;;  %v6110_v34 = vrot.slane %v1851_v11, 9  ;;  %v2780_v41 = vld [vmem:[#allocation3 + $0x14] sm:$0x1]  ;;  %v1855_v40 = vld [vmem:[#allocation3 + $0x64] sm:$0xf]  ;;  %v7291_v11 = vld [vmem:[#allocation3 + $0x6c] sm:$0xff]  }
  0x90   : > { %v1590_v23 = vrot.slane %v1589_v8, 4  ;;  %v6125_v32 = vcombine.low %v7911_v52, %v1977_v18  ;;  %v6405_v59 = vpack.c.bf16 %v863_v21, %v863_v21  ;;  %v6406_v51 = vpack.c.bf16 %v864_v17, %v864_v17  ;;  %v7302_v63 = vld [vmem:[%s9068_s1 + $0x1f0] sm:$0xff]  }
  0x91   : > { %v1600_v24 = vrot.slane %v1599_v13, 4  ;;  %v1345_v26 = vld [vmem:[#allocation3 + $0x78] sm:$0xf]  ;;  %v1346_v31 = vld [vmem:[#allocation3 + $0x7c] sm:$0xf]  ;;  %v1980_v60 = vrot.slane %v1852_v16, 5  ;;  %6997 = vmatprep.subr.bf16.mxu1 %v7302_v63 }
  0x92   : > { %v1595_v36 = vsel %vm7533_vm4, %v1590_v23, %v1594_v2  ;;  %v1347_v45 = vld [vmem:[#allocation3 + $0x80] sm:$0x1]  ;;  %v1607_v46 = vshrl.u32 %v1345_v26, 16  ;;  %v1610_v20 = vshll.u32 %v1345_v26, 16  ;;  %v1616_v57 = vshll.u32 %v1346_v31, 16  ;;  %v7285_v8 = vld [vmem:[#allocation3 + $0x78] sm:$0xff]  }
  0x93   : > { %1150 = vst [vmem:[#allocation3 + $0x84] sm:$0xf] %v6404_v30  ;;  %v1605_v33 = vsel %vm7533_vm4, %v1600_v24, %v1604_v15  ;;  %v1620_v47 = vshrl.u32 %v1346_v31, 16  ;;  %v1626_v50 = vshll.u32 %v1347_v45, 16  ;;  %1151 = vst [vmem:[#allocation3 + $0x88] sm:$0xf] %v6405_v59  ;;  %v1981_v14 = vsel %vm7681_vm7, %v6110_v34, %v1980_v60 }
  0x94   : > { %v6096_v52 = vcombine.low %v1595_v36, %v1605_v33  ;;  %v1609_v53 = vrot.slane %v1607_v46, 4  ;;  %v1612_v54 = vrot.slane %v1610_v20, 5  ;;  %v1618_v55 = vrot.slane %v1616_v57, 5  ;;  %1152 = vst [vmem:[#allocation3 + $0x8c] sm:$0x1] %v6406_v51  ;;  %v7304_v20 = vld [vmem:[%s9068_s1 + $0x1b0] sm:$0xff]  }
  0x95   : > { %v1622_v56 = vrot.slane %v1620_v47, 4  ;;  %v1983_v12 = vrot.slane %v1853_v19, 5  ;;  %v1628_v58 = vrot.slane %v1626_v50, 5  ;;  %v6167_v61 = vrot.slane %v2778_v22, 9  ;;  %v2266_v26 = vld [vmem:[#allocation3 + $0xc] sm:$0xf]  ;;  %6998 = vmatpush3.bf16.msra.mxu1 %v7304_v20 }
  0x96   : > { %4842 = vmatprep.mubr.bf16.mxu0 %v6096_v52  ;;  %v1613_v28 = vor.u32 %v1612_v54, %v1609_v53  ;;  %4980 = vmatmul.mubr.bf16.gmra.mrb[40].mxu1 %v6125_v32  ;;  %v2876_v62 = vrot.slane %v2779_v35, 5  ;;  %v1982_v29 = vrot.slane %v1980_v60, 4  ;;  %v2879_v48 = vrot.slane %v2780_v41, 5  ;;  %v2267_v31 = vld [vmem:[#allocation3 + $0x10] sm:$0xf]  ;;  %v7295_v63 = vld [vmem:[#allocation3 + $0x78] sm:$0xff]  }
  0x97   : > { %4843 = vmatmul.mubr.bf16.gmra.mrb[36].mxu0 %v7281_v44  ;;  %v1623_v0 = vor.u32 %v1622_v56, %v1618_v55  ;;  %4987 = vmatprep.mubr.bf16.mxu1 %v7289_v7  ;;  %v6111_v4 = vrot.slane %v1854_v38, 9  ;;  %v1987_v5 = vrot.slane %v1855_v40, 5  ;;  %v1990_v15 = vrot.slane %v1856_v1, 5  ;;  %v2268_v46 = vld [vmem:[#allocation3 + $0x14] sm:$0x1]  ;;  %v7307_v38 = vld [vmem:[%s9068_s1 + $0x1f8] sm:$0xff]  }
  0x98   : > { %v1614_v2 = vrot.slane %v1613_v28, 4  ;;  %v2878_v3 = vrot.slane %v2876_v62, 4  ;;  %v1984_v10 = vsel %vm7681_vm7, %v1982_v29, %v1983_v12  ;;  %v7949_v13 = vsel %vm7681_vm7, %v6167_v61, %v2876_v62  ;;  %v2781_v12 = vld [vmem:[#allocation3 + $0x18] sm:$0xe]  ;;  %v2783_v1 = vld [vmem:[#allocation3 + $0x20] sm:$0x1]  ;;  %6999 = vmatprep.subr.bf16.mxu1 %v7307_v38 }
  0x99   : > { %v1624_v6 = vrot.slane %v1623_v0, 4  ;;  %v6126_v30 = vcombine.low %v1981_v14, %v1984_v10  ;;  %v1988_v45 = vsel %vm7681_vm7, %v6111_v4, %v1987_v5  ;;  %v1989_v41 = vrot.slane %v1987_v5, 4  ;;  %v2782_v0 = vld [vmem:[#allocation3 + $0x1c] sm:$0xf]  ;;  %v1859_v10 = vld [vmem:[#allocation3 + $0x74] sm:$0x1] }
  0x9a   : > { %v1348_v9 = vld [vmem:[#allocation3 + $0x84] sm:$0xf]  ;;  %v1619_v18 = vsel %vm7533_vm4, %v1614_v2, %v1618_v55  ;;  %v1349_v21 = vld [vmem:[#allocation3 + $0x88] sm:$0xf]  ;;  %v7957_v24 = vsel %vm7681_vm7, %v2878_v3, %v2879_v48  ;;  %v2315_v33 = vshrl.u32 %v2266_v26, 16  ;;  %v2318_v47 = vshll.u32 %v2266_v26, 16 }
  0x9b   : > { %v1631_v23 = vshrl.u32 %v1348_v9, 16  ;;  %v1634_v17 = vshll.u32 %v1348_v9, 16  ;;  %v1629_v16 = vsel %vm7533_vm4, %v1624_v6, %v1628_v58  ;;  %v1640_v19 = vshll.u32 %v1349_v21, 16  ;;  %v1350_v59 = vld [vmem:[#allocation3 + $0x8c] sm:$0x1]  ;;  %v7290_v58 = vld [vmem:[#allocation3 + $0x84] sm:$0xff]  }
  0x9c   : > { %v1644_v43 = vshrl.u32 %v1349_v21, 16  ;;  %v6097_v32 = vcombine.low %v1619_v18, %v1629_v16  ;;  %v6183_v22 = vcombine.low %v7949_v13, %v7957_v24  ;;  %v1650_v44 = vshll.u32 %v1350_v59, 16  ;;  %v1857_v3 = vld [vmem:[#allocation3 + $0x6c] sm:$0xe]  ;;  %v1858_v9 = vld [vmem:[#allocation3 + $0x70] sm:$0xf] }
  0x9d   : > { %v1633_v7 = vrot.slane %v1631_v23, 4  ;;  %v1636_v34 = vrot.slane %v1634_v17, 5  ;;  %v1642_v35 = vrot.slane %v1640_v19, 5  ;;  %v2324_v52 = vshll.u32 %v2267_v31, 16  ;;  %v2269_v23 = vld [vmem:[#allocation3 + $0x18] sm:$0xf] }
  0x9e   : > { %v1646_v36 = vrot.slane %v1644_v43, 4  ;;  %4850 = vmatprep.mubr.bf16.mxu0 %v6097_v32  ;;  %4988 = vmatmul.mubr.bf16.gmra.mrb[44].mxu1 %v6126_v30  ;;  %v1652_v51 = vrot.slane %v1650_v44, 5  ;;  %v2328_v53 = vshrl.u32 %v2267_v31, 16  ;;  %v1991_v55 = vsel %vm7681_vm7, %v1989_v41, %v1990_v15  ;;  %v7309_v17 = vld [vmem:[%s9068_s1 + $0x1b8] sm:$0xff]   ;;  %v2271_v32 = vld [vmem:[#allocation3 + $0x20] sm:$0x1] }
  0x9f   : > { %v1637_v57 = vor.u32 %v1636_v34, %v1633_v7  ;;  %4851 = vmatmul.mubr.bf16.gmra.mrb[40].mxu0 %v7285_v8  ;;  %4995 = vmatprep.mubr.bf16.mxu1 %v7291_v11  ;;  %v2317_v56 = vrot.slane %v2315_v33, 4  ;;  %v2320_v60 = vrot.slane %v2318_v47, 5  ;;  %v6127_v61 = vcombine.low %v1988_v45, %v1991_v55  ;;  %v2270_v43 = vld [vmem:[#allocation3 + $0x1c] sm:$0xf]  ;;  %v2784_v41 = vld [vmem:[#allocation3 + $0x24] sm:$0xe] }
  0xa0   : > { %v1647_v50 = vor.u32 %v1646_v36, %v1642_v35  ;;  %v2326_v62 = vrot.slane %v2324_v52, 5  ;;  %v2330_v40 = vrot.slane %v2328_v53, 4  ;;  %v2334_v48 = vshll.u32 %v2268_v46, 16  ;;  %v2785_v33 = vld [vmem:[#allocation3 + $0x28] sm:$0xf]  ;;  %7000 = vmatpush3.bf16.msra.mxu1 %v7309_v17  ;;  %v7994_v55 = vld [vmem:[%s7449_s26 + $0xc0] sm:$0xff]  }
  0xa1   : > { %v1638_v54 = vrot.slane %v1637_v57, 4  ;;  %v2321_v29 = vor.u32 %v2320_v60, %v2317_v56  ;;  %v6168_v2 = vrot.slane %v2781_v12, 9  ;;  %v2883_v6 = vrot.slane %v2782_v0, 5  ;;  %v7296_v53 = vld [vmem:[#allocation3 + $0x84] sm:$0xff]  }
  0xa2   : > { %v1648_v28 = vrot.slane %v1647_v50, 4  ;;  %v2331_v5 = vor.u32 %v2330_v40, %v2326_v62  ;;  %v2886_v8 = vrot.slane %v2783_v1, 5  ;;  %v2336_v18 = vrot.slane %v2334_v48, 5  ;;  %v1862_v48 = vld [vmem:[#allocation3 + $0x80] sm:$0x1] }
  0xa3   : > { %v1643_v14 = vsel %vm7533_vm4, %v1638_v54, %v1642_v35  ;;  %v2322_v15 = vrot.slane %v2321_v29, 4  ;;  %v6112_v21 = vrot.slane %v1857_v3, 9  ;;  %v2885_v16 = vrot.slane %v2883_v6, 4  ;;  %v2786_v54 = vld [vmem:[#allocation3 + $0x2c] sm:$0x1] }
  0xa4   : > { %v1653_v4 = vsel %vm7533_vm4, %v1648_v28, %v1652_v51  ;;  %v2332_v30 = vrot.slane %v2331_v5, 4  ;;  %v1994_v19 = vrot.slane %v1858_v9, 5  ;;  %v1997_v31 = vrot.slane %v1859_v10, 5  ;;  %v1861_v29 = vld [vmem:[#allocation3 + $0x7c] sm:$0xf] }
  0xa5   : > { %v6098_v11 = vcombine.low %v1643_v14, %v1653_v4  ;;  %v2327_v26 = vsel %vm7533_vm4, %v2322_v15, %v2326_v62  ;;  %v2339_v59 = vshrl.u32 %v2269_v23, 16  ;;  %v2342_v7 = vshll.u32 %v2269_v23, 16  ;;  %v7298_v14 = vld [vmem:[%s9068_s1 + $0x208] sm:$0xff]   ;;  %v2272_v9 = vld [vmem:[#allocation3 + $0x24] sm:$0xf] }
  0xa6   : > { %4996 = vmatmul.mubr.bf16.gmra.mrb[48].mxu1 %v6127_v61  ;;  %v2337_v34 = vsel %vm7533_vm4, %v2332_v30, %v2336_v18  ;;  %v2884_v35 = vsel %vm7681_vm7, %v6168_v2, %v2883_v6  ;;  %v1995_v36 = vsel %vm7681_vm7, %v6112_v21, %v1994_v19  ;;  %v1996_v44 = vrot.slane %v1994_v19, 4  ;;  %v2273_v10 = vld [vmem:[#allocation3 + $0x28] sm:$0xf]  ;;  %v2274_v18 = vld [vmem:[#allocation3 + $0x2c] sm:$0x1] }
  0xa7   : > { %4858 = vmatprep.mubr.bf16.mxu0 %v6098_v11  ;;  %5003 = vmatprep.mubr.bf16.mxu1 %v7295_v63  ;;  %v6151_v45 = vcombine.low %v2327_v26, %v2337_v34  ;;  %v2887_v46 = vsel %vm7681_vm7, %v2885_v16, %v2886_v8  ;;  %v2341_v20 = vrot.slane %v2339_v59, 4  ;;  %v2344_v57 = vrot.slane %v2342_v7, 5  ;;  %v1860_v63 = vld [vmem:[#allocation3 + $0x78] sm:$0xe]  ;;  %v7300_v59 = vld [vmem:[#allocation3 + $0x90] sm:$0xff]  }
  0xa8   : > { %4859 = vmatmul.mubr.bf16.gmra.mrb[44].mxu0 %v7290_v58  ;;  %v1998_v47 = vsel %vm7681_vm7, %v1996_v44, %v1997_v31  ;;  %v2348_v50 = vshll.u32 %v2270_v43, 16  ;;  %v2352_v51 = vshrl.u32 %v2270_v43, 16  ;;  %v2358_v52 = vshll.u32 %v2271_v32, 16  ;;  %v7303_v7 = vld [vmem:[%s9068_s1 + $0x210] sm:$0xff]  }
  0xa9   : > { %5092 = vmatprep.mubr.bf16.mxu0 %v6183_v22  ;;  %v6128_v13 = vcombine.low %v1995_v36, %v1998_v47  ;;  %v2345_v24 = vor.u32 %v2344_v57, %v2341_v20  ;;  %v6169_v22 = vrot.slane %v2784_v41, 9  ;;  %v2890_v56 = vrot.slane %v2785_v33, 5  ;;  %v2787_v20 = vld [vmem:[#allocation3 + $0x30] sm:$0xe]  ;;  %v2788_v57 = vld [vmem:[#allocation3 + $0x34] sm:$0xf] }
  0xaa   : > { %v2350_v60 = vrot.slane %v2348_v50, 5  ;;  %v2354_v12 = vrot.slane %v2352_v51, 4  ;;  %v2360_v38 = vrot.slane %v2358_v52, 5  ;;  %v2893_v28 = vrot.slane %v2786_v54, 5  ;;  %v7308_v41 = vld [vmem:[%s9068_s1 + $0x218] sm:$0xff]  }
  0xab   : > { %v6184_v58 = vcombine.low %v2884_v35, %v2887_v46  ;;  %v2346_v61 = vrot.slane %v2345_v24, 4  ;;  %v7998_v62 = vsel %vm7681_vm7, %v6169_v22, %v2890_v56  ;;  %v2892_v40 = vrot.slane %v2890_v56, 4  ;;  %v7333_v33 = vld [vmem:[%s9070_s3] ss:$0 sm:$0xff]  ;;  %v2789_v51 = vld [vmem:[#allocation3 + $0x38] sm:$0x1] }
  0xac   : > { %v2355_v0 = vor.u32 %v2354_v12, %v2350_v60  ;;  %v6113_v1 = vrot.slane %v1860_v63, 9  ;;  %v6491_v2 = vunpack.c.l.bf16 %v7994_v55  ;;  %v6492_v3 = vunpack.c.h.bf16 %v7994_v55  ;;  %v1863_v54 = vld [vmem:[#allocation3 + $0x84] sm:$0xe]  ;;  %v1864_v22 = vld [vmem:[#allocation3 + $0x88] sm:$0xf] }
  0xad   : > { %v2351_v4 = vsel %vm7533_vm4, %v2346_v61, %v2350_v60  ;;  %v8009_v5 = vsel %vm7681_vm7, %v2892_v40, %v2893_v28  ;;  %v2001_v6 = vrot.slane %v1861_v29, 5  ;;  %v2004_v8 = vrot.slane %v1862_v48, 5  ;;  %v1865_v56 = vld [vmem:[#allocation3 + $0x8c] sm:$0x1]  ;;  %v2275_v61 = vld [vmem:[#allocation3 + $0x30] sm:$0xf] }
  0xae   : > { %5004 = vmatmul.mubr.bf16.gmra.mrb[52].mxu1 %v6128_v13  ;;  %v2356_v11 = vrot.slane %v2355_v0, 4  ;;  %v6185_v15 = vcombine.low %v7998_v62, %v8009_v5  ;;  %v2363_v21 = vshrl.u32 %v2272_v9, 16  ;;  %v2366_v23 = vshll.u32 %v2272_v9, 16  ;;  %v2276_v0 = vld [vmem:[#allocation3 + $0x34] sm:$0xf] }
  0xaf   : > { %5011 = vmatprep.mubr.bf16.mxu1 %v7296_v53  ;;  %v2002_v17 = vsel %vm7681_vm7, %v6113_v1, %v2001_v6  ;;  %v2003_v30 = vrot.slane %v2001_v6, 4  ;;  %v2372_v16 = vshll.u32 %v2273_v10, 16  ;;  %v2376_v19 = vshrl.u32 %v2273_v10, 16  ;;  %v2790_v9 = vld [vmem:[#allocation3 + $0x3c] sm:$0xe] }
  0xb0   : > { %5093 = vmatmul.mubr.bf16.vlgmr.msra.gmra.mrb[48].mxu0 %v6151_v45  ;;  %v2361_v43 = vsel %vm7533_vm4, %v2356_v11, %v2360_v38  ;;  %v2365_v26 = vrot.slane %v2363_v21, 4  ;;  %v2368_v31 = vrot.slane %v2366_v23, 5  ;;  %v2382_v32 = vshll.u32 %v2274_v18, 16  ;;  %v2791_v10 = vld [vmem:[#allocation3 + $0x40] sm:$0xf] }
  0xb1   : > { %7122 = vmatpush3.bf16.msra.mxu0 %v7907_v27  ;;  %5100 = vmatprep.mubr.bf16.mxu0 %v6184_v58  ;;  %v6152_v27 = vcombine.low %v2351_v4, %v2361_v43  ;;  %v2005_v34 = vsel %vm7681_vm7, %v2003_v30, %v2004_v8  ;;  %v2374_v35 = vrot.slane %v2372_v16, 5  ;;  %v2378_v36 = vrot.slane %v2376_v19, 4  ;;  %v7311_v11 = vld [vmem:[%s9068_s1 + $0x220] sm:$0xff]  }
  0xb2   : > { %7123 = vmatprep.subr.bf16.mxu0 %v7298_v14  ;;  %v6129_v44 = vcombine.low %v2002_v17, %v2005_v34  ;;  %v2369_v45 = vor.u32 %v2368_v31, %v2365_v26  ;;  %v2384_v46 = vrot.slane %v2382_v32, 5  ;;  %v762_v47 = vmul.f32 %v7333_v33, %v6491_v2  ;;  %v2792_v17 = vld [vmem:[#allocation3 + $0x44] sm:$0x1]  ;;  %v7301_v19 = vld [vmem:[#allocation3 + $0x9c] sm:$0xff]  }
  0xb3   : > { %v2379_v50 = vor.u32 %v2378_v36, %v2374_v35  ;;  %v6170_v52 = vrot.slane %v2787_v20, 9  ;;  %v2897_v53 = vrot.slane %v2788_v57, 5  ;;  %v763_v55 = vmul.f32 %v7333_v33, %v6492_v3  ;;  %v1867_v20 = vld [vmem:[#allocation3 + $0x94] sm:$0xf]  ;;  %v1868_v33 = vld [vmem:[#allocation3 + $0x98] sm:$0x1] }
  0xb4   : > { %v2370_v13 = vrot.slane %v2369_v45, 4  ;;  %v2900_v24 = vrot.slane %v2789_v51, 5  ;;  %v8030_v60 = vadd.f32 %v7488_v37, %v762_v47  ;;  %v6114_v58 = vrot.slane %v1863_v54, 9  ;;  %v7334_v37 = vld [vmem:[%s9071_s4] ss:$0 sm:$0xff] }
  0xb5   : > { %7124 = vmatpush3.bf16.msra.mxu0 %v7298_v14  ;;  %v2380_v12 = vrot.slane %v2379_v50, 4  ;;  %v2898_v38 = vsel %vm7681_vm7, %v6170_v52, %v2897_v53  ;;  %v2899_v28 = vrot.slane %v2897_v53, 4  ;;  %v2008_v40 = vrot.slane %v1864_v22, 5  ;;  %v2277_v14 = vld [vmem:[#allocation3 + $0x38] sm:$0x1] }
  0xb6   : > { %7125 = vmatprep.subr.bf16.mxu0 %v7303_v7  ;;  %5012 = vmatmul.mubr.bf16.gmra.mrb[56].mxu1 %v6129_v44  ;;  %v2375_v62 = vsel %vm7533_vm4, %v2370_v13, %v2374_v35  ;;  %v2011_v63 = vrot.slane %v1865_v56, 5  ;;  %v878_v29 = vadd.f32 %v7334_v37, %v763_v55  ;;  %v2387_v2 = vshrl.u32 %v2275_v61, 16  ;;  %v7314_v35 = vld [vmem:[%s9068_s1 + $0x228] sm:$0xff]   ;;  %v2278_v51 = vld [vmem:[#allocation3 + $0x3c] sm:$0xf] }
  0xb7   : > { %5019 = vmatprep.mubr.bf16.mxu1 %v7300_v59  ;;  %v2385_v48 = vsel %vm7533_vm4, %v2380_v12, %v2384_v46  ;;  %v2901_v1 = vsel %vm7681_vm7, %v2899_v28, %v2900_v24  ;;  %v2390_v3 = vshll.u32 %v2275_v61, 16  ;;  %v2009_v6 = vsel %vm7681_vm7, %v6114_v58, %v2008_v40  ;;  %v1866_v46 = vld [vmem:[#allocation3 + $0x90] sm:$0xe]  ;;  %v2279_v13 = vld [vmem:[#allocation3 + $0x40] sm:$0xf] }
  0xb8   : > { %5101 = vmatmul.mubr.bf16.gmra.mrb[52].mxu0 %v6152_v27  ;;  %v6153_v4 = vcombine.low %v2375_v62, %v2385_v48  ;;  %v6186_v5 = vcombine.low %v2898_v38, %v2901_v1  ;;  %v2010_v8 = vrot.slane %v2008_v40, 4  ;;  %v2396_v21 = vshll.u32 %v2276_v0, 16  ;;  %v2280_v24 = vld [vmem:[#allocation3 + $0x44] sm:$0x1]  ;;  %v7317_v38 = vld [vmem:[%s9068_s1 + $0x230] sm:$0xff]   ;;  %v7305_v40 = vld [vmem:[#allocation3 + $0xa8] sm:$0xff]  }
  0xb9   : > { %5108 = vmatprep.mubr.bf16.mxu0 %v6185_v15  ;;  %7126 = vmatpush3.bf16.msra.mxu0 %v7303_v7  ;;  %v2389_v15 = vrot.slane %v2387_v2, 4  ;;  %v2392_v18 = vrot.slane %v2390_v3, 5  ;;  %v2400_v23 = vshrl.u32 %v2276_v0, 16  ;;  %v2406_v16 = vshll.u32 %v2277_v14, 16  ;;  %v2793_v3 = vld [vmem:[#allocation3 + $0x48] sm:$0xe] }
  0xba   : > { %7127 = vmatprep.subr.bf16.mxu0 %v7308_v41  ;;  %v2012_v30 = vsel %vm7681_vm7, %v2010_v8, %v2011_v63  ;;  %v6171_v43 = vrot.slane %v2790_v9, 9  ;;  %v2904_v26 = vrot.slane %v2791_v10, 5  ;;  %v2398_v59 = vrot.slane %v2396_v21, 5  ;;  %v2794_v8 = vld [vmem:[#allocation3 + $0x4c] sm:$0xf] }
  0xbb   : > { %v6130_v31 = vcombine.low %v2009_v6, %v2012_v30  ;;  %v2393_v32 = vor.u32 %v2392_v18, %v2389_v15  ;;  %v2402_v7 = vrot.slane %v2400_v23, 4  ;;  %v2907_v34 = vrot.slane %v2792_v17, 5  ;;  %v2795_v9 = vld [vmem:[#allocation3 + $0x50] sm:$0x1]  ;;  %v1869_v21 = vld [vmem:[#allocation3 + $0x9c] sm:$0xe] }
  0xbc   : > { %v2906_v27 = vrot.slane %v2904_v26, 4  ;;  %v2408_v45 = vrot.slane %v2406_v16, 5  ;;  %v6536_v57 = vpack.c.bf16 %v878_v29, %v8030_v60  ;;  %v6115_v47 = vrot.slane %v1866_v46, 9  ;;  %v1870_v23 = vld [vmem:[#allocation3 + $0xa0] sm:$0xf] }
  0xbd   : > { %7128 = vmatpush3.bf16.msra.mxu0 %v7308_v41  ;;  %v2394_v36 = vrot.slane %v2393_v32, 4  ;;  %v2403_v44 = vor.u32 %v2402_v7, %v2398_v59  ;;  %v2905_v41 = vsel %vm7681_vm7, %v6171_v43, %v2904_v26  ;;  %v2015_v50 = vrot.slane %v1867_v20, 5  ;;  %v1871_v30 = vld [vmem:[#allocation3 + $0xa4] sm:$0x1] }
  0xbe   : > { %7129 = vmatprep.subr.bf16.mxu0 %v7311_v11  ;;  %5020 = vmatmul.mubr.bf16.gmra.mrb[60].mxu1 %v6130_v31  ;;  %v2908_v54 = vsel %vm7681_vm7, %v2906_v27, %v2907_v34  ;;  %v2018_v55 = vrot.slane %v1868_v33, 5  ;;  %6633 = vst [vmem:[#allocation3 + $0xc0] sm:$0xff] %v6536_v57   ;;  %v2411_v60 = vshrl.u32 %v2278_v51, 16  ;;  %v2414_v12 = vshll.u32 %v2278_v51, 16  ;;  %v7306_v51 = vld [vmem:[#allocation3 + $0xb4] sm:$0xff]  }
  0xbf   : > { %5027 = vmatprep.mubr.bf16.mxu1 %v7301_v19  ;;  %v2399_v52 = vsel %vm7533_vm4, %v2394_v36, %v2398_v59  ;;  %v2404_v53 = vrot.slane %v2403_v44, 4  ;;  %v2016_v22 = vsel %vm7681_vm7, %v6115_v47, %v2015_v50  ;;  %v2017_v56 = vrot.slane %v2015_v50, 4  ;;  %v2281_v59 = vld [vmem:[#allocation3 + $0x48] sm:$0xf]  ;;  %v2283_v36 = vld [vmem:[#allocation3 + $0x50] sm:$0x1] }
  0xc0   : > { %5109 = vmatmul.mubr.bf16.gmra.mrb[56].mxu0 %v6153_v4  ;;  %v2420_v58 = vshll.u32 %v2279_v13, 16  ;;  %v2424_v61 = vshrl.u32 %v2279_v13, 16  ;;  %v2430_v62 = vshll.u32 %v2280_v24, 16  ;;  %v2413_v14 = vrot.slane %v2411_v60, 4  ;;  %v7320_v4 = vld [vmem:[%s9068_s1 + $0x238] sm:$0xff]  }
  0xc1   : > { %5116 = vmatprep.mubr.bf16.mxu0 %v6186_v5  ;;  %7130 = vmatpush3.bf16.msra.mxu0 %v7311_v11  ;;  %v2409_v28 = vsel %vm7533_vm4, %v2404_v53, %v2408_v45  ;;  %v2019_v0 = vsel %vm7681_vm7, %v2017_v56, %v2018_v55  ;;  %v2416_v37 = vrot.slane %v2414_v12, 5  ;;  %v6187_v29 = vcombine.low %v2905_v41, %v2908_v54  ;;  %v2797_v53 = vld [vmem:[#allocation3 + $0x58] sm:$0xf] }
  0xc2   : > { %7131 = vmatprep.subr.bf16.mxu0 %v7314_v35  ;;  %v6154_v63 = vcombine.low %v2399_v52, %v2409_v28  ;;  %v6131_v48 = vcombine.low %v2016_v22, %v2019_v0  ;;  %v2422_v1 = vrot.slane %v2420_v58, 5  ;;  %v2426_v2 = vrot.slane %v2424_v61, 4  ;;  %v2796_v52 = vld [vmem:[#allocation3 + $0x54] sm:$0xe]  ;;  %v2798_v22 = vld [vmem:[#allocation3 + $0x5c] sm:$0x1] }
  0xc3   : > { %v2417_v5 = vor.u32 %v2416_v37, %v2413_v14  ;;  %v2432_v6 = vrot.slane %v2430_v62, 5  ;;  %v6172_v10 = vrot.slane %v2793_v3, 9  ;;  %v2911_v15 = vrot.slane %v2794_v8, 5  ;;  %v1873_v37 = vld [vmem:[#allocation3 + $0xac] sm:$0xf] }
  0xc4   : > { %v2427_v11 = vor.u32 %v2426_v2, %v2422_v1  ;;  %v2914_v18 = vrot.slane %v2795_v9, 5  ;;  %v6116_v16 = vrot.slane %v1869_v21, 9  ;;  %v2022_v19 = vrot.slane %v1870_v23, 5 }
  0xc5   : > { %7132 = vmatpush3.bf16.msra.mxu0 %v7314_v35  ;;  %v2418_v17 = vrot.slane %v2417_v5, 4  ;;  %v2912_v26 = vsel %vm7681_vm7, %v6172_v10, %v2911_v15  ;;  %v2913_v31 = vrot.slane %v2911_v15, 4  ;;  %v2025_v32 = vrot.slane %v1871_v30, 5  ;;  %v2282_v35 = vld [vmem:[#allocation3 + $0x4c] sm:$0xf] }
  0xc6   : > { %7133 = vmatprep.subr.bf16.mxu0 %v7317_v38  ;;  %5028 = vmatmul.mubr.bf16.gmra.mrb[64].mxu1 %v6131_v48  ;;  %v2428_v43 = vrot.slane %v2427_v11, 4  ;;  %v2023_v27 = vsel %vm7681_vm7, %v6116_v16, %v2022_v19  ;;  %v2024_v34 = vrot.slane %v2022_v19, 4  ;;  %v2435_v44 = vshrl.u32 %v2281_v59, 16  ;;  %v2285_v5 = vld [vmem:[#allocation3 + $0x58] sm:$0xf] }
  0xc7   : > { %5035 = vmatprep.mubr.bf16.mxu1 %v7305_v40  ;;  %v2423_v7 = vsel %vm7533_vm4, %v2418_v17, %v2422_v1  ;;  %v2915_v46 = vsel %vm7681_vm7, %v2913_v31, %v2914_v18  ;;  %v2438_v20 = vshll.u32 %v2281_v59, 16  ;;  %v2444_v57 = vshll.u32 %v2282_v35, 16  ;;  %v2286_v10 = vld [vmem:[#allocation3 + $0x5c] sm:$0x1] }
  0xc8   : > { %5117 = vmatmul.mubr.bf16.gmra.mrb[60].mxu0 %v6154_v63  ;;  %v2433_v45 = vsel %vm7533_vm4, %v2428_v43, %v2432_v6  ;;  %v6188_v33 = vcombine.low %v2912_v26, %v2915_v46  ;;  %v2026_v47 = vsel %vm7681_vm7, %v2024_v34, %v2025_v32  ;;  %v2437_v50 = vrot.slane %v2435_v44, 4  ;;  %v1872_v63 = vld [vmem:[#allocation3 + $0xa8] sm:$0xe]  ;;  %v7310_v43 = vld [vmem:[#allocation3 + $0xc0] sm:$0xff]  }
  0xc9   : > { %5124 = vmatprep.mubr.bf16.mxu0 %v6187_v29  ;;  %7134 = vmatpush3.bf16.msra.mxu0 %v7317_v38  ;;  %v6155_v41 = vcombine.low %v2423_v7, %v2433_v45  ;;  %v6132_v54 = vcombine.low %v2023_v27, %v2026_v47  ;;  %v2440_v55 = vrot.slane %v2438_v20, 5  ;;  %v2446_v13 = vrot.slane %v2444_v57, 5  ;;  %v1874_v29 = vld [vmem:[#allocation3 + $0xb0] sm:$0x1]  ;;  %v2799_v7 = vld [vmem:[#allocation3 + $0x60] sm:$0xe] }
  0xca   : > { %7135 = vmatprep.subr.bf16.mxu0 %v7320_v4  ;;  %v2448_v24 = vshrl.u32 %v2282_v35, 16  ;;  %v2454_v56 = vshll.u32 %v2283_v36, 16  ;;  %v6173_v60 = vrot.slane %v2796_v52, 9  ;;  %v2918_v12 = vrot.slane %v2797_v53, 5  ;;  %v2800_v35 = vld [vmem:[#allocation3 + $0x64] sm:$0xf] }
  0xcb   : > { %v2921_v38 = vrot.slane %v2798_v22, 5  ;;  %v2441_v28 = vor.u32 %v2440_v55, %v2437_v50  ;;  %v6117_v48 = vrot.slane %v1872_v63, 9  ;;  %v2029_v2 = vrot.slane %v1873_v37, 5  ;;  %v2801_v36 = vld [vmem:[#allocation3 + $0x68] sm:$0x1] }
  0xcc   : > { %v2450_v58 = vrot.slane %v2448_v24, 4  ;;  %v2456_v61 = vrot.slane %v2454_v56, 5  ;;  %v2919_v62 = vsel %vm7681_vm7, %v6173_v60, %v2918_v12  ;;  %v2920_v40 = vrot.slane %v2918_v12, 4  ;;  %v1875_v57 = vld [vmem:[#allocation3 + $0xb4] sm:$0xe] }
  0xcd   : > { %7136 = vmatpush3.bf16.msra.mxu0 %v7320_v4  ;;  %v2442_v0 = vrot.slane %v2441_v28, 4  ;;  %v2032_v3 = vrot.slane %v1874_v29, 5  ;;  %v2284_v4 = vld [vmem:[#allocation3 + $0x54] sm:$0xf]  ;;  %v2030_v15 = vsel %vm7681_vm7, %v6117_v48, %v2029_v2  ;;  %v2031_v18 = vrot.slane %v2029_v2, 4 }
  0xce   : > { %5036 = vmatmul.mubr.bf16.gmra.mrb[68].mxu1 %v6132_v54  ;;  %v2451_v14 = vor.u32 %v2450_v58, %v2446_v13  ;;  %v2922_v1 = vsel %vm7681_vm7, %v2920_v40, %v2921_v38  ;;  %v2459_v11 = vshrl.u32 %v2284_v4, 16  ;;  %v2462_v21 = vshll.u32 %v2284_v4, 16  ;;  %v1876_v47 = vld [vmem:[#allocation3 + $0xb8] sm:$0xf]  ;;  %v1877_v50 = vld [vmem:[#allocation3 + $0xbc] sm:$0x1] }
  0xcf   : > { %5043 = vmatprep.mubr.bf16.mxu1 %v7306_v51  ;;  %v2447_v6 = vsel %vm7533_vm4, %v2442_v0, %v2446_v13  ;;  %v6189_v9 = vcombine.low %v2919_v62, %v2922_v1  ;;  %v2468_v23 = vshll.u32 %v2285_v5, 16  ;;  %v2472_v16 = vshrl.u32 %v2285_v5, 16  ;;  %v2287_v13 = vld [vmem:[#allocation3 + $0x60] sm:$0xf]  ;;  %v2288_v56 = vld [vmem:[#allocation3 + $0x64] sm:$0xf] }
  0xd0   : > { %5125 = vmatmul.mubr.bf16.gmra.mrb[64].mxu0 %v6155_v41  ;;  %v2452_v8 = vrot.slane %v2451_v14, 4  ;;  %v2461_v30 = vrot.slane %v2459_v11, 4  ;;  %v2478_v19 = vshll.u32 %v2286_v10, 16  ;;  %v2033_v31 = vsel %vm7681_vm7, %v2031_v18, %v2032_v3  ;;  %v2289_v58 = vld [vmem:[#allocation3 + $0x68] sm:$0x1] }
  0xd1   : > { %5132 = vmatprep.mubr.bf16.mxu0 %v6188_v33  ;;  %v2464_v32 = vrot.slane %v2462_v21, 5  ;;  %v2470_v59 = vrot.slane %v2468_v23, 5  ;;  %v6133_v27 = vcombine.low %v2030_v15, %v2033_v31  ;;  %v2474_v34 = vrot.slane %v2472_v16, 4  ;;  %v2803_v14 = vld [vmem:[#allocation3 + $0x70] sm:$0xf] }
  0xd2   : > { %v2457_v17 = vsel %vm7533_vm4, %v2452_v8, %v2456_v61  ;;  %v6174_v45 = vrot.slane %v2799_v7, 9  ;;  %v2925_v46 = vrot.slane %v2800_v35, 5  ;;  %v2928_v20 = vrot.slane %v2801_v36, 5  ;;  %v2802_v61 = vld [vmem:[#allocation3 + $0x6c] sm:$0xe] }
  0xd3   : > { %v6156_v26 = vcombine.low %v2447_v6, %v2457_v17  ;;  %v2465_v44 = vor.u32 %v2464_v32, %v2461_v30  ;;  %v2475_v41 = vor.u32 %v2474_v34, %v2470_v59  ;;  %v2480_v33 = vrot.slane %v2478_v19, 5  ;;  %v2804_v37 = vld [vmem:[#allocation3 + $0x74] sm:$0x1]  ;;  %v3211_v3 = vld [vmem:[#allocation3 + $0x18] sm:$0xf] }
  0xd4   : > { %v6118_v51 = vrot.slane %v1875_v57, 9  ;;  %v2926_v53 = vsel %vm7681_vm7, %v6174_v45, %v2925_v46  ;;  %v2927_v54 = vrot.slane %v2925_v46, 4  ;;  %v2036_v55 = vrot.slane %v1876_v47, 5  ;;  %v3212_v4 = vld [vmem:[#allocation3 + $0x1c] sm:$0xf] }
  0xd5   : > { %v2466_v52 = vrot.slane %v2465_v44, 4  ;;  %v2476_v24 = vrot.slane %v2475_v41, 4  ;;  %v2039_v22 = vrot.slane %v1877_v50, 5  ;;  %v2483_v63 = vshrl.u32 %v2287_v13, 16  ;;  %v3213_v30 = vld [vmem:[#allocation3 + $0x20] sm:$0x1] }
  0xd6   : > { %5044 = vmatmul.mubr.bf16.gmra.mrb[72].mxu1 %v6133_v27  ;;  %v2929_v12 = vsel %vm7681_vm7, %v2927_v54, %v2928_v20  ;;  %v2037_v38 = vsel %vm7681_vm7, %v6118_v51, %v2036_v55  ;;  %v2038_v28 = vrot.slane %v2036_v55, 4  ;;  %v2486_v0 = vshll.u32 %v2287_v13, 16  ;;  %v2290_v32 = vld [vmem:[#allocation3 + $0x6c] sm:$0xf]  ;;  %v2292_v47 = vld [vmem:[#allocation3 + $0x74] sm:$0x1] }
  0xd7   : > { %5051 = vmatprep.mubr.bf16.mxu1 %v7310_v43  ;;  %v2471_v60 = vsel %vm7533_vm4, %v2466_v52, %v2470_v59  ;;  %v2481_v62 = vsel %vm7533_vm4, %v2476_v24, %v2480_v33  ;;  %v6190_v40 = vcombine.low %v2926_v53, %v2929_v12  ;;  %v2492_v1 = vshll.u32 %v2288_v56, 16  ;;  %v2291_v59 = vld [vmem:[#allocation3 + $0x70] sm:$0xf]  ;;  %v2805_v54 = vld [vmem:[#allocation3 + $0x78] sm:$0xe] }
  0xd8   : > { %5133 = vmatmul.mubr.bf16.gmra.mrb[68].mxu0 %v6156_v26  ;;  %v6157_v29 = vcombine.low %v2471_v60, %v2481_v62  ;;  %v2040_v48 = vsel %vm7681_vm7, %v2038_v28, %v2039_v22  ;;  %v2496_v2 = vshrl.u32 %v2288_v56, 16  ;;  %v2485_v6 = vrot.slane %v2483_v63, 4  ;;  %v2806_v56 = vld [vmem:[#allocation3 + $0x7c] sm:$0xf]  ;;  %v2807_v60 = vld [vmem:[#allocation3 + $0x80] sm:$0x1] }
  0xd9   : > { %5140 = vmatprep.mubr.bf16.mxu0 %v6189_v9  ;;  %v6134_v5 = vcombine.low %v2037_v38, %v2040_v48  ;;  %v2488_v8 = vrot.slane %v2486_v0, 5  ;;  %v2502_v9 = vshll.u32 %v2289_v58, 16  ;;  %v2494_v10 = vrot.slane %v2492_v1, 5  ;;  %v7312_v1 = vld [vmem:[#allocation3 + $0x18] sm:$0xff]  }
  0xda   : > { %v2498_v11 = vrot.slane %v2496_v2, 4  ;;  %v6175_v15 = vrot.slane %v2802_v61, 9  ;;  %v2932_v18 = vrot.slane %v2803_v14, 5  ;;  %v2935_v17 = vrot.slane %v2804_v37, 5  ;;  %v3214_v61 = vld [vmem:[#allocation3 + $0x24] sm:$0xf] }
  0xdb   : > { %v2489_v21 = vor.u32 %v2488_v8, %v2485_v6  ;;  %v2504_v23 = vrot.slane %v2502_v9, 5  ;;  %v3260_v16 = vshrl.u32 %v3211_v3, 16  ;;  %v3263_v31 = vshll.u32 %v3211_v3, 16  ;;  %v3215_v14 = vld [vmem:[#allocation3 + $0x28] sm:$0xf] }
  0xdc   : > { %v2499_v19 = vor.u32 %v2498_v11, %v2494_v10  ;;  %v2933_v43 = vsel %vm7681_vm7, %v6175_v15, %v2932_v18  ;;  %v2934_v26 = vrot.slane %v2932_v18, 4  ;;  %v3269_v34 = vshll.u32 %v3212_v4, 16  ;;  %v3216_v3 = vld [vmem:[#allocation3 + $0x2c] sm:$0x1]  ;;  %v2293_v18 = vld [vmem:[#allocation3 + $0x78] sm:$0xf] }
  0xdd   : > { %v2490_v7 = vrot.slane %v2489_v21, 4  ;;  %v3262_v27 = vrot.slane %v3260_v16, 4  ;;  %v3273_v35 = vshrl.u32 %v3212_v4, 16  ;;  %v3265_v45 = vrot.slane %v3263_v31, 5  ;;  %v2294_v16 = vld [vmem:[#allocation3 + $0x7c] sm:$0xf] }
  0xde   : > { %5052 = vmatmul.mubr.bf16.gmra.mrb[76].mxu1 %v6134_v5  ;;  %v2500_v36 = vrot.slane %v2499_v19, 4  ;;  %v2936_v44 = vsel %vm7681_vm7, %v2934_v26, %v2935_v17  ;;  %v3279_v46 = vshll.u32 %v3213_v30, 16  ;;  %v3271_v41 = vrot.slane %v3269_v34, 5 }
  0xdf   : > { %v2495_v20 = vsel %vm7533_vm4, %v2490_v7, %v2494_v10  ;;  %v6191_v57 = vcombine.low %v2933_v43, %v2936_v44  ;;  %v3275_v33 = vrot.slane %v3273_v35, 4  ;;  %v3266_v51 = vor.u32 %v3265_v45, %v3262_v27  ;;  %v2808_v35 = vld [vmem:[#allocation3 + $0x84] sm:$0xe] }
  0xe0   : > { %5141 = vmatmul.mubr.bf16.gmra.mrb[72].mxu0 %v6157_v29  ;;  %v2505_v50 = vsel %vm7533_vm4, %v2500_v36, %v2504_v23  ;;  %v3281_v52 = vrot.slane %v3279_v46, 5  ;;  %v2507_v53 = vshrl.u32 %v2290_v32, 16  ;;  %v2510_v24 = vshll.u32 %v2290_v32, 16  ;;  %v2295_v32 = vld [vmem:[#allocation3 + $0x80] sm:$0x1] }
  0xe1   : > { %5148 = vmatprep.mubr.bf16.mxu0 %v6190_v40  ;;  %v6158_v55 = vcombine.low %v2495_v20, %v2505_v50  ;;  %v3276_v13 = vor.u32 %v3275_v33, %v3271_v41  ;;  %v2516_v22 = vshll.u32 %v2291_v59, 16  ;;  %v3267_v12 = vrot.slane %v3266_v51, 4  ;;  %v2809_v36 = vld [vmem:[#allocation3 + $0x88] sm:$0xf]  ;;  %v2810_v50 = vld [vmem:[#allocation3 + $0x8c] sm:$0x1] }
  0xe2   : > { %v2509_v38 = vrot.slane %v2507_v53, 4  ;;  %v2520_v28 = vshrl.u32 %v2291_v59, 16  ;;  %v2526_v58 = vshll.u32 %v2292_v47, 16  ;;  %v2512_v40 = vrot.slane %v2510_v24, 5 }
  0xe3   : > { %v3277_v62 = vrot.slane %v3276_v13, 4  ;;  %v2518_v63 = vrot.slane %v2516_v22, 5  ;;  %v6176_v0 = vrot.slane %v2805_v54, 9  ;;  %v3272_v37 = vsel %vm7533_vm4, %v3267_v12, %v3271_v41 }
  0xe4   : > { %v2522_v29 = vrot.slane %v2520_v28, 4  ;;  %v2528_v48 = vrot.slane %v2526_v58, 5  ;;  %v2939_v2 = vrot.slane %v2806_v56, 5  ;;  %v2513_v5 = vor.u32 %v2512_v40, %v2509_v38  ;;  %v3218_v40 = vld [vmem:[#allocation3 + $0x34] sm:$0xf] }
  0xe5   : > { %v3282_v4 = vsel %vm7533_vm4, %v3277_v62, %v3281_v52  ;;  %v2942_v6 = vrot.slane %v2807_v60, 5  ;;  %v3284_v8 = vshrl.u32 %v3214_v61, 16  ;;  %v3287_v17 = vshll.u32 %v3214_v61, 16 }
  0xe6   : > { %v6215_v9 = vcombine.low %v3272_v37, %v3282_v4  ;;  %v2523_v10 = vor.u32 %v2522_v29, %v2518_v63  ;;  %v2940_v11 = vsel %vm7681_vm7, %v6176_v0, %v2939_v2  ;;  %v2941_v15 = vrot.slane %v2939_v2, 4  ;;  %v7313_v37 = vld [vmem:[#allocation3 + $0x24] sm:$0xff]  }
  0xe7   : > { %v2514_v21 = vrot.slane %v2513_v5, 4  ;;  %v3286_v23 = vrot.slane %v3284_v8, 4  ;;  %v3293_v30 = vshll.u32 %v3215_v14, 16  ;;  %v3297_v26 = vshrl.u32 %v3215_v14, 16 }
  0xe8   : > { %5149 = vmatmul.mubr.bf16.gmra.mrb[76].mxu0 %v6158_v55  ;;  %5253 = vmatprep.mubr.bf16.mxu1 %v6215_v9  ;;  %v2524_v19 = vrot.slane %v2523_v10, 4  ;;  %v2943_v43 = vsel %vm7681_vm7, %v2941_v15, %v2942_v6  ;;  %v3303_v31 = vshll.u32 %v3216_v3, 16  ;;  %v3289_v27 = vrot.slane %v3287_v17, 5  ;;  %v3217_v55 = vld [vmem:[#allocation3 + $0x30] sm:$0xf] }
  0xe9   : > { %5156 = vmatprep.mubr.bf16.mxu0 %v6191_v57  ;;  %v2519_v59 = vsel %vm7533_vm4, %v2514_v21, %v2518_v63  ;;  %5254 = vmatmul.mubr.bf16.vlgmr.msra.gmra.mrb[80].mxu1 %v7312_v1  ;;  %v6192_v7 = vcombine.low %v2940_v11, %v2943_v43  ;;  %v3295_v34 = vrot.slane %v3293_v30, 5  ;;  %v3299_v45 = vrot.slane %v3297_v26, 4  ;;  %v3219_v1 = vld [vmem:[#allocation3 + $0x38] sm:$0x1]  ;;  %v2296_v6 = vld [vmem:[#allocation3 + $0x84] sm:$0xf] }
  0xea   : > { %v2529_v44 = vsel %vm7533_vm4, %v2524_v19, %v2528_v48  ;;  %v3305_v46 = vrot.slane %v3303_v31, 5  ;;  %v2531_v20 = vshrl.u32 %v2293_v18, 16  ;;  %v3290_v41 = vor.u32 %v3289_v27, %v3286_v23  ;;  %v2297_v15 = vld [vmem:[#allocation3 + $0x88] sm:$0xf]  ;;  %v2298_v30 = vld [vmem:[#allocation3 + $0x8c] sm:$0x1] }
  0xeb   : > { %v6159_v57 = vcombine.low %v2519_v59, %v2529_v44  ;;  %v2534_v33 = vshll.u32 %v2293_v18, 16  ;;  %v2540_v47 = vshll.u32 %v2294_v16, 16  ;;  %v3300_v51 = vor.u32 %v3299_v45, %v3295_v34 }
  0xec   : > { %v2533_v52 = vrot.slane %v2531_v20, 4  ;;  %v2544_v53 = vshrl.u32 %v2294_v16, 16  ;;  %v2550_v54 = vshll.u32 %v2295_v32, 16  ;;  %v3291_v13 = vrot.slane %v3290_v41, 4  ;;  %v2811_v16 = vld [vmem:[#allocation3 + $0x90] sm:$0xe] }
  0xed   : > { %v2536_v24 = vrot.slane %v2534_v33, 5  ;;  %v2542_v22 = vrot.slane %v2540_v47, 5  ;;  %v6177_v56 = vrot.slane %v2808_v35, 9  ;;  %v3301_v60 = vrot.slane %v3300_v51, 4  ;;  %v2812_v32 = vld [vmem:[#allocation3 + $0x94] sm:$0xf] }
  0xee   : > { %v2546_v12 = vrot.slane %v2544_v53, 4  ;;  %v2552_v38 = vrot.slane %v2550_v54, 5  ;;  %v2946_v28 = vrot.slane %v2809_v36, 5  ;;  %v3296_v58 = vsel %vm7533_vm4, %v3291_v13, %v3295_v34  ;;  %v2813_v35 = vld [vmem:[#allocation3 + $0x98] sm:$0x1] }
  0xef   : > { %v2537_v61 = vor.u32 %v2536_v24, %v2533_v52  ;;  %v2949_v62 = vrot.slane %v2810_v50, 5  ;;  %v3308_v63 = vshrl.u32 %v3217_v55, 16  ;;  %v3306_v0 = vsel %vm7533_vm4, %v3301_v60, %v3305_v46  ;;  %v3220_v53 = vld [vmem:[#allocation3 + $0x3c] sm:$0xf] }
  0xf0   : > { %5157 = vmatmul.mubr.bf16.gmra.mrb[80].mxu0 %v6159_v57  ;;  %v2547_v14 = vor.u32 %v2546_v12, %v2542_v22  ;;  %v2947_v29 = vsel %vm7681_vm7, %v6177_v56, %v2946_v28  ;;  %v2948_v48 = vrot.slane %v2946_v28, 4  ;;  %v6216_v2 = vcombine.low %v3296_v58, %v3306_v0  ;;  %v7315_v12 = vld [vmem:[#allocation3 + $0x30] sm:$0xff]   ;;  %v3222_v58 = vld [vmem:[#allocation3 + $0x44] sm:$0x1] }
  0xf1   : > { %5164 = vmatprep.mubr.bf16.mxu0 %v6192_v7  ;;  %v2538_v3 = vrot.slane %v2537_v61, 4  ;;  %v3310_v4 = vrot.slane %v3308_v63, 4  ;;  %v3311_v5 = vshll.u32 %v3217_v55, 16  ;;  %v3317_v10 = vshll.u32 %v3218_v40, 16  ;;  %v2299_v61 = vld [vmem:[#allocation3 + $0x90] sm:$0xf] }
  0xf2   : > { %v2548_v8 = vrot.slane %v2547_v14, 4  ;;  %v2950_v9 = vsel %vm7681_vm7, %v2948_v48, %v2949_v62  ;;  %v3321_v11 = vshrl.u32 %v3218_v40, 16  ;;  %5261 = vmatprep.mubr.bf16.mxu1 %v6216_v2  ;;  %v3327_v17 = vshll.u32 %v3219_v1, 16  ;;  %v2300_v14 = vld [vmem:[#allocation3 + $0x94] sm:$0xf] }
  0xf3   : > { %v2543_v18 = vsel %vm7533_vm4, %v2538_v3, %v2542_v22  ;;  %v6193_v21 = vcombine.low %v2947_v29, %v2950_v9  ;;  %v3313_v23 = vrot.slane %v3311_v5, 5  ;;  %5262 = vmatmul.mubr.bf16.gmra.mrb[84].mxu1 %v7313_v37  ;;  %v3319_v43 = vrot.slane %v3317_v10, 5  ;;  %v3221_v22 = vld [vmem:[#allocation3 + $0x40] sm:$0xf] }
  0xf4   : > { %v2553_v19 = vsel %vm7533_vm4, %v2548_v8, %v2552_v38  ;;  %v3323_v26 = vrot.slane %v3321_v11, 4  ;;  %v2555_v31 = vshrl.u32 %v2296_v6, 16  ;;  %v3329_v27 = vrot.slane %v3327_v17, 5  ;;  %v2814_v8 = vld [vmem:[#allocation3 + $0x9c] sm:$0xe] }
  0xf5   : > { %v6160_v59 = vcombine.low %v2543_v18, %v2553_v19  ;;  %v3314_v7 = vor.u32 %v3313_v23, %v3310_v4  ;;  %v2558_v34 = vshll.u32 %v2296_v6, 16  ;;  %v2564_v45 = vshll.u32 %v2297_v15, 16  ;;  %v2301_v6 = vld [vmem:[#allocation3 + $0x98] sm:$0x1]  ;;  %v2815_v18 = vld [vmem:[#allocation3 + $0xa0] sm:$0xf] }
  0xf6   : > { %v3324_v36 = vor.u32 %v3323_v26, %v3319_v43  ;;  %v2557_v44 = vrot.slane %v2555_v31, 4  ;;  %v2568_v46 = vshrl.u32 %v2297_v15, 16  ;;  %v2574_v41 = vshll.u32 %v2298_v30, 16  ;;  %v2816_v31 = vld [vmem:[#allocation3 + $0xa4] sm:$0x1] }
  0xf7   : > { %v3315_v20 = vrot.slane %v3314_v7, 4  ;;  %v2560_v57 = vrot.slane %v2558_v34, 5  ;;  %v6178_v33 = vrot.slane %v2811_v16, 9  ;;  %v2566_v50 = vrot.slane %v2564_v45, 5 }
  0xf8   : > { %5165 = vmatmul.mubr.bf16.gmra.mrb[84].mxu0 %v6160_v59  ;;  %v3325_v47 = vrot.slane %v3324_v36, 4  ;;  %v2570_v51 = vrot.slane %v2568_v46, 4  ;;  %v2953_v52 = vrot.slane %v2812_v32, 5  ;;  %v2576_v13 = vrot.slane %v2574_v41, 5 }
  0xf9   : > { %5172 = vmatprep.mubr.bf16.mxu0 %v6193_v21  ;;  %v3320_v54 = vsel %vm7533_vm4, %v3315_v20, %v3319_v43  ;;  %v2561_v55 = vor.u32 %v2560_v57, %v2557_v44  ;;  %v2956_v24 = vrot.slane %v2813_v35, 5  ;;  %v3332_v63 = vshrl.u32 %v3220_v53, 16  ;;  %v3223_v35 = vld [vmem:[#allocation3 + $0x48] sm:$0xf] }
  0xfa   : > { %v3330_v56 = vsel %vm7533_vm4, %v3325_v47, %v3329_v27  ;;  %v2571_v60 = vor.u32 %v2570_v51, %v2566_v50  ;;  %v2954_v38 = vsel %vm7681_vm7, %v6178_v33, %v2953_v52  ;;  %v2955_v28 = vrot.slane %v2953_v52, 4  ;;  %v3224_v47 = vld [vmem:[#allocation3 + $0x4c] sm:$0xf]  ;;  %v7316_v52 = vld [vmem:[#allocation3 + $0x3c] sm:$0xff]  }
  0xfb   : > { %v6217_v62 = vcombine.low %v3320_v54, %v3330_v56  ;;  %v2562_v40 = vrot.slane %v2561_v55, 4  ;;  %v3335_v0 = vshll.u32 %v3220_v53, 16  ;;  %v3341_v48 = vshll.u32 %v3221_v22, 16  ;;  %v3225_v54 = vld [vmem:[#allocation3 + $0x50] sm:$0x1] }
  0xfc   : > { %v2572_v37 = vrot.slane %v2571_v60, 4  ;;  %v2957_v29 = vsel %vm7681_vm7, %v2955_v28, %v2956_v24  ;;  %v3345_v1 = vshrl.u32 %v3221_v22, 16  ;;  %v3334_v4 = vrot.slane %v3332_v63, 4  ;;  %v2302_v60 = vld [vmem:[#allocation3 + $0x9c] sm:$0xf] }
  0xfd   : > { %5269 = vmatprep.mubr.bf16.mxu1 %v6217_v62  ;;  %v2567_v2 = vsel %vm7533_vm4, %v2562_v40, %v2566_v50  ;;  %v6194_v3 = vcombine.low %v2954_v38, %v2957_v29  ;;  %v3337_v5 = vrot.slane %v3335_v0, 5  ;;  %v3343_v10 = vrot.slane %v3341_v48, 5  ;;  %v2303_v0 = vld [vmem:[#allocation3 + $0xa0] sm:$0xf] }
  0xfe   : > { %v2577_v9 = vsel %vm7533_vm4, %v2572_v37, %v2576_v13  ;;  %5270 = vmatmul.mubr.bf16.gmra.mrb[88].mxu1 %v7315_v12  ;;  %v3347_v11 = vrot.slane %v3345_v1, 4  ;;  %v3351_v15 = vshll.u32 %v3222_v58, 16  ;;  %v2579_v17 = vshrl.u32 %v2299_v61, 16  ;;  %v2304_v1 = vld [vmem:[#allocation3 + $0xa4] sm:$0x1] }
  0xff   : > { %v6161_v21 = vcombine.low %v2567_v2, %v2577_v9  ;;  %v3338_v23 = vor.u32 %v3337_v5, %v3334_v4  ;;  %v2582_v30 = vshll.u32 %v2299_v61, 16  ;;  %v2588_v43 = vshll.u32 %v2300_v14, 16  ;;  %v2817_v2 = vld [vmem:[#allocation3 + $0xa8] sm:$0xe] }
 0x100   : > { %v3348_v16 = vor.u32 %v3347_v11, %v3343_v10  ;;  %v3353_v19 = vrot.slane %v3351_v15, 5  ;;  %v2592_v26 = vshrl.u32 %v2300_v14, 16  ;;  %v2581_v7 = vrot.slane %v2579_v17, 4 }
 0x101   : > { %5173 = vmatmul.mubr.bf16.gmra.mrb[88].mxu0 %v6161_v21  ;;  %v3339_v59 = vrot.slane %v3338_v23, 4  ;;  %v2584_v27 = vrot.slane %v2582_v30, 5  ;;  %v2598_v34 = vshll.u32 %v2301_v6, 16  ;;  %v2590_v44 = vrot.slane %v2588_v43, 5  ;;  %v2819_v21 = vld [vmem:[#allocation3 + $0xb0] sm:$0x1] }
 0x102   : > { %5180 = vmatprep.mubr.bf16.mxu0 %v6194_v3  ;;  %v3349_v36 = vrot.slane %v3348_v16, 4  ;;  %v2594_v45 = vrot.slane %v2592_v26, 4  ;;  %v6179_v46 = vrot.slane %v2814_v8, 9  ;;  %v2960_v33 = vrot.slane %v2815_v18, 5  ;;  %v2818_v8 = vld [vmem:[#allocation3 + $0xac] sm:$0xf] }
 0x103   : > { %v3344_v20 = vsel %vm7533_vm4, %v3339_v59, %v3343_v10  ;;  %v2585_v57 = vor.u32 %v2584_v27, %v2581_v7  ;;  %v2600_v41 = vrot.slane %v2598_v34, 5  ;;  %v2963_v53 = vrot.slane %v2816_v31, 5  ;;  %v3226_v43 = vld [vmem:[#allocation3 + $0x54] sm:$0xf] }
 0x104   : > { %v3354_v50 = vsel %vm7533_vm4, %v3349_v36, %v3353_v19  ;;  %v2595_v51 = vor.u32 %v2594_v45, %v2590_v44  ;;  %v3356_v55 = vshrl.u32 %v3223_v35, 16  ;;  %v2961_v22 = vsel %vm7681_vm7, %v6179_v46, %v2960_v33  ;;  %v7318_v36 = vld [vmem:[#allocation3 + $0x48] sm:$0xff]  }
 0x105   : > { %v8152_v32 = vpop.f32.mrb[0].mxu0  ;;  %v6218_v13 = vcombine.low %v3344_v20, %v3354_v50  ;;  %v2586_v24 = vrot.slane %v2585_v57, 4  ;;  %v2962_v56 = vrot.slane %v2960_v33, 4  ;;  %v3359_v28 = vshll.u32 %v3223_v35, 16  ;;  %v3228_v33 = vld [vmem:[#allocation3 + $0x5c] sm:$0x1] }
 0x106   : > { %v2596_v12 = vrot.slane %v2595_v51, 4  ;;  %v3358_v38 = vrot.slane %v3356_v55, 4  ;;  %v3365_v58 = vshll.u32 %v3224_v47, 16  ;;  %v3369_v40 = vshrl.u32 %v3224_v47, 16  ;;  %v8168_v23 = vpop.f32.mrb[1].mxu0 }
 0x107   : > { %5277 = vmatprep.mubr.bf16.mxu1 %v6218_v13  ;;  %v2591_v61 = vsel %vm7533_vm4, %v2586_v24, %v2590_v44  ;;  %v2964_v62 = vsel %vm7681_vm7, %v2962_v56, %v2963_v53  ;;  %v3375_v63 = vshll.u32 %v3225_v54, 16  ;;  %v3361_v29 = vrot.slane %v3359_v28, 5  ;;  %v8174_v50 = vpop.f32.mrb[2].mxu0  ;;  %v2305_v55 = vld [vmem:[#allocation3 + $0xa8] sm:$0xf] }
 0x108   : > { %v2601_v14 = vsel %vm7533_vm4, %v2596_v12, %v2600_v41  ;;  %5278 = vmatmul.mubr.bf16.gmra.mrb[92].mxu1 %v7316_v52  ;;  %v6195_v37 = vcombine.low %v2961_v22, %v2964_v62  ;;  %v3367_v48 = vrot.slane %v3365_v58, 5  ;;  %v3371_v4 = vrot.slane %v3369_v40, 4  ;;  %v3227_v41 = vld [vmem:[#allocation3 + $0x58] sm:$0xf]  ;;  %v8184_v62 = vpop.f32.mrb[3].mxu0 }
 0x109   : > { %v6162_v3 = vcombine.low %v2591_v61, %v2601_v14  ;;  %v3377_v5 = vrot.slane %v3375_v63, 5  ;;  %v2603_v6 = vshrl.u32 %v2302_v60, 16  ;;  %v8166_v9 = vpop.f32.mrb[0].mxu1  ;;  %v3362_v10 = vor.u32 %v3361_v29, %v3358_v38  ;;  %v2306_v61 = vld [vmem:[#allocation3 + $0xac] sm:$0xf] }
 0x10a   : > { %v2606_v11 = vshll.u32 %v2302_v60, 16  ;;  %v2612_v15 = vshll.u32 %v2303_v0, 16  ;;  %v2616_v18 = vshrl.u32 %v2303_v0, 16  ;;  %v3372_v17 = vor.u32 %v3371_v4, %v3367_v48  ;;  %v8170_v26 = vpop.f32.mrb[1].mxu1  ;;  %v2820_v4 = vld [vmem:[#allocation3 + $0xb4] sm:$0xe] }
 0x10b   : > { %5181 = vmatmul.mubr.bf16.gmra.mrb[92].mxu0 %v6162_v3  ;;  %v2605_v30 = vrot.slane %v2603_v6, 4  ;;  %v2622_v16 = vshll.u32 %v2304_v1, 16  ;;  %v6180_v19 = vrot.slane %v2817_v2, 9  ;;  %v3363_v31 = vrot.slane %v3362_v10, 4  ;;  %v8180_v60 = vpop.f32.mrb[2].mxu1 }
 0x10c   : > { %5188 = vmatprep.mubr.bf16.mxu0 %v6195_v37  ;;  %v2608_v59 = vrot.slane %v2606_v11, 5  ;;  %v2614_v7 = vrot.slane %v2612_v15, 5  ;;  %v2618_v27 = vrot.slane %v2616_v18, 4  ;;  %v3373_v34 = vrot.slane %v3372_v17, 4  ;;  %v2307_v37 = vld [vmem:[#allocation3 + $0xb0] sm:$0x1] }
 0x10d   : > { %v2624_v35 = vrot.slane %v2622_v16, 5  ;;  %v2967_v44 = vrot.slane %v2818_v8, 5  ;;  %v2970_v45 = vrot.slane %v2819_v21, 5  ;;  %v3368_v46 = vsel %vm7533_vm4, %v3363_v31, %v3367_v48  ;;  %v8190_v29 = vpop.f32.mrb[3].mxu1  ;;  %v2822_v15 = vld [vmem:[#allocation3 + $0xbc] sm:$0x1] }
 0x10e   : > { %v2609_v20 = vor.u32 %v2608_v59, %v2605_v30  ;;  %v2619_v57 = vor.u32 %v2618_v27, %v2614_v7  ;;  %v3380_v47 = vshrl.u32 %v3226_v43, 16  ;;  %v3378_v51 = vsel %vm7533_vm4, %v3373_v34, %v3377_v5  ;;  %v2821_v5 = vld [vmem:[#allocation3 + $0xb8] sm:$0xf]  ;;  %v3229_v16 = vld [vmem:[#allocation3 + $0x60] sm:$0xf] }
 0x10f   : > { %v2968_v52 = vsel %vm7681_vm7, %v6180_v19, %v2967_v44  ;;  %v2969_v53 = vrot.slane %v2967_v44, 4  ;;  %v3383_v54 = vshll.u32 %v3226_v43, 16  ;;  %v6219_v13 = vcombine.low %v3368_v46, %v3378_v51  ;;  %v8192_v19 = vpop.f32.mrb[4].mxu0  ;;  %v3230_v27 = vld [vmem:[#allocation3 + $0x64] sm:$0xf] }
 0x110   : > { %v2610_v24 = vrot.slane %v2609_v20, 4  ;;  %v2620_v22 = vrot.slane %v2619_v57, 4  ;;  %v3382_v56 = vrot.slane %v3380_v47, 4  ;;  %v3389_v28 = vshll.u32 %v3227_v41, 16  ;;  %v3231_v46 = vld [vmem:[#allocation3 + $0x68] sm:$0x1] }
 0x111   : > { %v2971_v12 = vsel %vm7681_vm7, %v2969_v53, %v2970_v45  ;;  %v3385_v38 = vrot.slane %v3383_v54, 5  ;;  %v3393_v58 = vshrl.u32 %v3227_v41, 16  ;;  %5285 = vmatprep.mubr.bf16.mxu1 %v6219_v13  ;;  %v3399_v14 = vshll.u32 %v3228_v33, 16  ;;  %v7319_v45 = vld [vmem:[#allocation3 + $0x54] sm:$0xff]   ;;  %v8198_v51 = vpop.f32.mrb[5].mxu0 }
 0x112   : > { %v2615_v40 = vsel %vm7533_vm4, %v2610_v24, %v2614_v7  ;;  %v2625_v63 = vsel %vm7533_vm4, %v2620_v22, %v2624_v35  ;;  %v6196_v0 = vcombine.low %v2968_v52, %v2971_v12  ;;  %5286 = vmatmul.mubr.bf16.gmra.mrb[96].mxu1 %v7318_v36  ;;  %v3391_v2 = vrot.slane %v3389_v28, 5  ;;  %v8204_v24 = vpop.f32.mrb[6].mxu0  ;;  %v2308_v28 = vld [vmem:[#allocation3 + $0xb4] sm:$0xf] }
 0x113   : > { %v6163_v48 = vcombine.low %v2615_v40, %v2625_v63  ;;  %v3386_v1 = vor.u32 %v3385_v38, %v3382_v56  ;;  %v3395_v3 = vrot.slane %v3393_v58, 4  ;;  %v3401_v6 = vrot.slane %v3399_v14, 5  ;;  %v8196_v20 = vpop.f32.mrb[4].mxu1 }
 0x114   : > { %v2627_v8 = vshrl.u32 %v2305_v55, 16  ;;  %v2630_v10 = vshll.u32 %v2305_v55, 16  ;;  %v2636_v11 = vshll.u32 %v2306_v61, 16  ;;  %v2640_v17 = vshrl.u32 %v2306_v61, 16  ;;  %v8202_v13 = vpop.f32.mrb[5].mxu1  ;;  %v8210_v61 = vpop.f32.mrb[7].mxu0 }
 0x115   : > { %5189 = vmatmul.mubr.bf16.gmra.mrb[96].mxu0 %v6163_v48  ;;  %v3387_v18 = vrot.slane %v3386_v1, 4  ;;  %v3396_v21 = vor.u32 %v3395_v3, %v3391_v2  ;;  %v2646_v30 = vshll.u32 %v2307_v37, 16  ;;  %v6181_v7 = vrot.slane %v2820_v4, 9  ;;  %v8208_v58 = vpop.f32.mrb[6].mxu1  ;;  %v2309_v4 = vld [vmem:[#allocation3 + $0xb8] sm:$0xf] }
 0x116   : > { %5196 = vmatprep.mubr.bf16.mxu0 %v6196_v0  ;;  %v2629_v43 = vrot.slane %v2627_v8, 4  ;;  %v2632_v31 = vrot.slane %v2630_v10, 5  ;;  %v2638_v59 = vrot.slane %v2636_v11, 5  ;;  %v2642_v36 = vrot.slane %v2640_v17, 4  ;;  %v8212_v37 = vpop.f32.mrb[7].mxu1 }
 0x117   : > { %v3392_v34 = vsel %vm7533_vm4, %v3387_v18, %v3391_v2  ;;  %v3397_v35 = vrot.slane %v3396_v21, 4  ;;  %v2648_v44 = vrot.slane %v2646_v30, 5  ;;  %v2974_v41 = vrot.slane %v2821_v5, 5  ;;  %v2310_v10 = vld [vmem:[#allocation3 + $0xbc] sm:$0x1] }
 0x118   : > { %v2633_v57 = vor.u32 %v2632_v31, %v2629_v43  ;;  %v2977_v33 = vrot.slane %v2822_v15, 5  ;;  %v3404_v47 = vshrl.u32 %v3229_v16, 16  ;;  %v2643_v53 = vor.u32 %v2642_v36, %v2638_v59 }
 0x119   : > { %v3402_v52 = vsel %vm7533_vm4, %v3397_v35, %v3401_v6  ;;  %v3407_v54 = vshll.u32 %v3229_v16, 16  ;;  %v3413_v55 = vshll.u32 %v3230_v27, 16  ;;  %v2975_v12 = vsel %vm7681_vm7, %v6181_v7, %v2974_v41 }
 0x11a   : > { %v6220_v22 = vcombine.low %v3392_v34, %v3402_v52  ;;  %v2634_v56 = vrot.slane %v2633_v57, 4  ;;  %v2976_v38 = vrot.slane %v2974_v41, 4  ;;  %v2644_v40 = vrot.slane %v2643_v53, 4  ;;  %v351_v57 = vld [vmem:[%s7449_s26 + $0xc8] sm:$0x1] }
 0x11b   : > { %v3406_v63 = vrot.slane %v3404_v47, 4  ;;  %v3409_v0 = vrot.slane %v3407_v54, 5  ;;  %v3415_v14 = vrot.slane %v3413_v55, 5  ;;  %v3417_v2 = vshrl.u32 %v3230_v27, 16  ;;  %v7321_v55 = vld [vmem:[#allocation3 + $0x60] sm:$0xff]  }
 0x11c   : > { %5293 = vmatprep.mubr.bf16.mxu1 %v6220_v22  ;;  %v2639_v48 = vsel %vm7533_vm4, %v2634_v56, %v2638_v59  ;;  %v2978_v1 = vsel %vm7681_vm7, %v2976_v38, %v2977_v33  ;;  %v3423_v3 = vshll.u32 %v3231_v46, 16  ;;  %v2649_v5 = vsel %vm7533_vm4, %v2644_v40, %v2648_v44  ;;  %v8249_v38 = vld [vmem:[#allocation3 + $0xc0] sm:$0xe] }
 0x11d   : > { %5294 = vmatmul.mubr.bf16.gmra.mrb[100].mxu1 %v7319_v45  ;;  %v6197_v6 = vcombine.low %v2975_v12, %v2978_v1  ;;  %v3410_v8 = vor.u32 %v3409_v0, %v3406_v63  ;;  %v2651_v11 = vshrl.u32 %v2308_v28, 16  ;;  %v6164_v18 = vcombine.low %v2639_v48, %v2649_v5  ;;  %v3234_v0 = vld [vmem:[#allocation3 + $0x74] sm:$0x1] }
 0x11e   : > { %v3419_v21 = vrot.slane %v3417_v2, 4  ;;  %v3425_v17 = vrot.slane %v3423_v3, 5  ;;  %v2654_v30 = vshll.u32 %v2308_v28, 16  ;;  %v2660_v59 = vshll.u32 %v2309_v4, 16  ;;  %v3233_v28 = vld [vmem:[#allocation3 + $0x70] sm:$0xf] }
 0x11f   : > { %v3411_v43 = vrot.slane %v3410_v8, 4  ;;  %v2653_v31 = vrot.slane %v2651_v11, 4  ;;  %v2664_v7 = vshrl.u32 %v2309_v4, 16  ;;  %5197 = vmatmul.mubr.bf16.gmra.mrb[100].mxu0 %v6164_v18  ;;  %v2670_v35 = vshll.u32 %v2310_v10, 16  ;;  %v2311_v2 = vld [vmem:[#allocation3 + $0xc0] sm:$0xf] }
 0x120   : > { %v3420_v27 = vor.u32 %v3419_v21, %v3415_v14  ;;  %v2656_v34 = vrot.slane %v2654_v30, 5  ;;  %v8226_v36 = vadd.f32 %v8168_v23, %v8152_v32  ;;  %5204 = vmatprep.mubr.bf16.mxu0 %v6197_v6  ;;  %v2662_v44 = vrot.slane %v2660_v59, 5  ;;  %v2312_v30 = vld [vmem:[#allocation3 + $0xc4] sm:$0xf] }
 0x121   : > { %v8220_v15 = vpop.f32.mrb[8].mxu0  ;;  %v2666_v45 = vrot.slane %v2664_v7, 4  ;;  %v8230_v46 = vadd.f32 %v8170_v26, %v8166_v9  ;;  %v3416_v41 = vsel %vm7533_vm4, %v3411_v43, %v3415_v14  ;;  %v2672_v54 = vrot.slane %v2670_v35, 5  ;;  %v3232_v9 = vld [vmem:[#allocation3 + $0x6c] sm:$0xf] }
 0x122   : > { %v8222_v16 = vpop.f32.mrb[9].mxu0  ;;  %v3421_v33 = vrot.slane %v3420_v27, 4  ;;  %v2657_v47 = vor.u32 %v2656_v34, %v2653_v31  ;;  %v8239_v32 = vadd.f32 %v8184_v62, %v8174_v50  ;;  %v8243_v23 = vadd.f32 %v8190_v29, %v8180_v60  ;;  %v8253_v62 = vld [vmem:[#allocation3 + $0xc4] sm:$0xf]  ;;  %v7335_v14 = vld [vmem:[%s9070_s3] ss:$0 sm:$0xff] }
 0x123   : > { %9078 = vst [vmem:[#allocation4_spill] sm:$0xff] %v8230_v46  ;;  %v8235_v52 = vpop.f32.mrb[10].mxu0  ;;  %v2667_v53 = vor.u32 %v2666_v45, %v2662_v44  ;;  %v405_v12 = vunpack.c.l.bf16 %v351_v57  ;;  %v3428_v1 = vshrl.u32 %v3232_v9, 16  ;;  %v3431_v5 = vshll.u32 %v3232_v9, 16  ;;  %v3752_v46 = vld [vmem:[#allocation3 + $0x8c] sm:$0x1] }
 0x124   : > { %9079 = vst [vmem:[#allocation5_spill] sm:$0xff] %v8243_v23  ;;  %v8245_v26 = vpop.f32.mrb[11].mxu0  ;;  %v3426_v22 = vsel %vm7533_vm4, %v3421_v33, %v3425_v17  ;;  %v2658_v56 = vrot.slane %v2657_v47, 4  ;;  %v3437_v6 = vshll.u32 %v3233_v28, 16  ;;  %v3441_v8 = vshrl.u32 %v3233_v28, 16 }
 0x125   : > { %v6221_v63 = vcombine.low %v3416_v41, %v3426_v22  ;;  %v2668_v50 = vrot.slane %v2667_v53, 4  ;;  %v764_v48 = vmul.f32 %v7335_v14, %v405_v12  ;;  %v6182_v21 = vrot.slane %v8249_v38, 9 }
 0x126   : > { %v2663_v29 = vsel %vm7533_vm4, %v2658_v56, %v2662_v44  ;;  %v2981_v17 = vrot.slane %v8253_v62, 5  ;;  %v3430_v31 = vrot.slane %v3428_v1, 4  ;;  %v3433_v59 = vrot.slane %v3431_v5, 5  ;;  %v3237_v5 = vld [vmem:[#allocation3 + $0x80] sm:$0x1] }
 0x127   : > { %5301 = vmatprep.mubr.bf16.mxu1 %v6221_v63  ;;  %v2673_v4 = vsel %vm7533_vm4, %v2668_v50, %v2672_v54  ;;  %v879_v18 = vadd.f32 %v7495_v42, %v764_v48  ;;  %v3439_v7 = vrot.slane %v3437_v6, 5  ;;  %v3443_v27 = vrot.slane %v3441_v8, 4 }
 0x128   : > { %v6165_v11 = vcombine.low %v2663_v29, %v2673_v4  ;;  %5302 = vmatmul.mubr.bf16.gmra.mrb[104].mxu1 %v7321_v55  ;;  %v3447_v35 = vshll.u32 %v3234_v0, 16  ;;  %v2675_v44 = vshrl.u32 %v2311_v2, 16  ;;  %v2678_v45 = vshll.u32 %v2311_v2, 16  ;;  %v7322_v4 = vld [vmem:[#allocation3 + $0x6c] sm:$0xff]  }
 0x129   : > { %v8251_v40 = vpop.f32.mrb[8].mxu1  ;;  %v6421_v34 = vpack.c.bf16 %v879_v18, %v879_v18  ;;  %v3434_v41 = vor.u32 %v3433_v59, %v3430_v31  ;;  %v3444_v42 = vor.u32 %v3443_v27, %v3439_v7  ;;  %v2684_v33 = vshll.u32 %v2312_v30, 16 }
 0x12a   : > { %v8255_v60 = vpop.f32.mrb[9].mxu1  ;;  %5205 = vmatmul.mubr.bf16.gmra.mrb[104].mxu0 %v6165_v11  ;;  %v2688_v47 = vshrl.u32 %v2312_v30, 16  ;;  %v3449_v54 = vrot.slane %v3447_v35, 5  ;;  %v2677_v55 = vrot.slane %v2675_v44, 4  ;;  %v2680_v9 = vrot.slane %v2678_v45, 5 }
 0x12b   : > { %v8262_v3 = vpop.f32.mrb[10].mxu1  ;;  %1167 = vst [vmem:[#allocation3 + $0xc8] sm:$0x1] %v6421_v34  ;;  %v8279_v22 = vadd.f32 %v8198_v51, %v8192_v19  ;;  %v3435_v38 = vrot.slane %v3434_v41, 4  ;;  %v3445_v28 = vrot.slane %v3444_v42, 4  ;;  %v8285_v63 = vrot.slane %v2684_v33, 5 }
 0x12c   : > { %v8266_v10 = vpop.f32.mrb[11].mxu1  ;;  %v8271_v43 = vpop.f32.mrb[12].mxu0  ;;  %v2690_v50 = vrot.slane %v2688_v47, 4  ;;  %v2681_v0 = vor.u32 %v2680_v9, %v2677_v55  ;;  %v8291_v29 = vadd.f32 %v8202_v13, %v8196_v20  ;;  %v8295_v19 = vadd.f32 %v8210_v61, %v8204_v24  ;;  %v3235_v51 = vld [vmem:[#allocation3 + $0x78] sm:$0xf] }
 0x12d   : > { %v8273_v57 = vpop.f32.mrb[13].mxu0  ;;  %v3440_v48 = vsel %vm7533_vm4, %v3435_v38, %v3439_v7  ;;  %v3450_v1 = vsel %vm7533_vm4, %v3445_v28, %v3449_v54  ;;  %v8306_v20 = vadd.f32 %v8212_v37, %v8208_v58  ;;  %v3236_v13 = vld [vmem:[#allocation3 + $0x7c] sm:$0xf]  ;;  %v2982_v61 = vsel %vm7681_vm7, %v6182_v21, %v2981_v17  ;;  %v3723_v11 = vld [vmem:[#allocation3 + $0x18] sm:$0xe] }
 0x12e   : > { %v8275_v53 = vpop.f32.mrb[14].mxu0  ;;  %9080 = vst [vmem:[#allocation6_spill] sm:$0xff] %v8291_v29  ;;  %v2691_v2 = vor.u32 %v2690_v50, %v8285_v63  ;;  %v6222_v6 = vcombine.low %v3440_v48, %v3450_v1  ;;  %v2682_v8 = vrot.slane %v2681_v0, 4  ;;  %v2983_v18 = vrot.slane %v2981_v17, 4  ;;  %v3724_v7 = vld [vmem:[#allocation3 + $0x1c] sm:$0xf] }
 0x12f   : > { %v8283_v12 = vpop.f32.mrb[15].mxu0  ;;  %9081 = vst [vmem:[#allocation7_spill] sm:$0xff] %v8306_v20  ;;  %v3452_v31 = vshrl.u32 %v3235_v51, 16  ;;  %v3455_v59 = vshll.u32 %v3235_v51, 16  ;;  %v3461_v37 = vshll.u32 %v3236_v13, 16  ;;  %v3465_v27 = vshrl.u32 %v3236_v13, 16 }
 0x130   : > { %v2692_v30 = vrot.slane %v2691_v2, 4  ;;  %5309 = vmatprep.mubr.bf16.mxu1 %v6222_v6  ;;  %v2687_v58 = vsel %vm7533_vm4, %v2682_v8, %v8285_v63  ;;  %v3471_v34 = vshll.u32 %v3237_v5, 16  ;;  %v3725_v35 = vld [vmem:[#allocation3 + $0x20] sm:$0x1]  ;;  %v8317_v17 = vadd.f32 %v8222_v16, %v8220_v15  ;;  %v3726_v9 = vld [vmem:[#allocation3 + $0x24] sm:$0xe] }
 0x131   : > { %v8281_v56 = vpop.f32.mrb[12].mxu1  ;;  %5310 = vmatmul.mubr.bf16.gmra.mrb[108].mxu1 %v7322_v4  ;;  %v3454_v21 = vrot.slane %v3452_v31, 4  ;;  %v3457_v41 = vrot.slane %v3455_v59, 5  ;;  %v8321_v42 = vadd.f32 %v8255_v60, %v8251_v40  ;;  %v3463_v54 = vrot.slane %v3461_v37, 5  ;;  %v3727_v0 = vld [vmem:[#allocation3 + $0x28] sm:$0xf] }
 0x132   : > { %v8287_v62 = vpop.f32.mrb[13].mxu1  ;;  %v2825_v44 = vld [vmem:[#allocation3 + $0xc8] sm:$0x1]  ;;  %v3467_v55 = vrot.slane %v3465_v27, 4  ;;  %v3473_v28 = vrot.slane %v3471_v34, 5  ;;  %v6231_v63 = vrot.slane %v3723_v11, 9 }
 0x133   : > { %v8297_v14 = vpop.f32.mrb[14].mxu1  ;;  %v2313_v45 = vld [vmem:[#allocation3 + $0xc8] sm:$0x1]  ;;  %9082 = vst [vmem:[#allocation8_spill] sm:$0xff] %v8321_v42  ;;  %v2984_v33 = vrot.slane %v2825_v44, 5  ;;  %v3458_v38 = vor.u32 %v3457_v41, %v3454_v21  ;;  %v3821_v50 = vrot.slane %v3724_v7, 5 }
 0x134   : > { %v8308_v24 = vpop.f32.mrb[15].mxu1  ;;  %v2694_v47 = vshll.u32 %v2313_v45, 16  ;;  %v3468_v48 = vor.u32 %v3467_v55, %v3463_v54  ;;  %v3824_v1 = vrot.slane %v3725_v35, 5  ;;  %v3728_v40 = vld [vmem:[#allocation3 + $0x2c] sm:$0x1]  ;;  %v6232_v31 = vrot.slane %v3726_v9, 9 }
 0x135   : > { %v2985_v15 = vsel %vm7681_vm7, %v2983_v18, %v2984_v33  ;;  %v3459_v4 = vrot.slane %v3458_v38, 4  ;;  %v3822_v13 = vsel %vm7681_vm7, %v6231_v63, %v3821_v50  ;;  %v3823_v5 = vrot.slane %v3821_v50, 4  ;;  %v3238_v59 = vld [vmem:[#allocation3 + $0x84] sm:$0xf]  ;;  %v7323_v34 = vld [vmem:[#allocation3 + $0x78] sm:$0xff]  }
 0x136   : > { %v2696_v16 = vrot.slane %v2694_v47, 5  ;;  %v6198_v2 = vcombine.low %v2982_v61, %v2985_v15  ;;  %v3469_v11 = vrot.slane %v3468_v48, 4  ;;  %v3828_v18 = vrot.slane %v3727_v0, 5  ;;  %v3239_v44 = vld [vmem:[#allocation3 + $0x88] sm:$0xf] }
 0x137   : > { %v3464_v61 = vsel %vm7533_vm4, %v3459_v4, %v3463_v54  ;;  %v3825_v27 = vsel %vm7681_vm7, %v3823_v5, %v3824_v1  ;;  %v3831_v35 = vrot.slane %v3728_v40, 5  ;;  %v3240_v45 = vld [vmem:[#allocation3 + $0x8c] sm:$0x1]  ;;  %v3729_v33 = vld [vmem:[#allocation3 + $0x30] sm:$0xe]  ;;  %v8349_v55 = vadd.f32 %v8245_v26, %v8235_v52 }
 0x138   : > { %v2697_v8 = vsel %vm7533_vm4, %v2692_v30, %v2696_v16  ;;  %5212 = vmatprep.mubr.bf16.mxu0 %v6198_v2  ;;  %v3474_v30 = vsel %vm7533_vm4, %v3469_v11, %v3473_v28  ;;  %v6247_v21 = vcombine.low %v3822_v13, %v3825_v27  ;;  %v3830_v41 = vrot.slane %v3828_v18, 4  ;;  %v3730_v9 = vld [vmem:[#allocation3 + $0x34] sm:$0xf]  ;;  %v3731_v38 = vld [vmem:[#allocation3 + $0x38] sm:$0x1] }
 0x139   : > { %v8323_v51 = vpop.f32.mrb[16].mxu1  ;;  %v6166_v37 = vcombine.low %v2687_v58, %v2697_v8  ;;  %v6223_v58 = vcombine.low %v3464_v61, %v3474_v30  ;;  %v3829_v54 = vsel %vm7681_vm7, %v6232_v31, %v3828_v18  ;;  %v8357_v50 = vadd.f32 %v8266_v10, %v8262_v3  ;;  %v3732_v16 = vld [vmem:[#allocation3 + $0x3c] sm:$0xe]  ;;  %v3733_v40 = vld [vmem:[#allocation3 + $0x40] sm:$0xf] }
 0x13a   : > { %v8327_v60 = vpop.f32.mrb[17].mxu1  ;;  %v3832_v28 = vsel %vm7681_vm7, %v3830_v41, %v3831_v35  ;;  %v3476_v0 = vshrl.u32 %v3238_v59, 16  ;;  %v3479_v15 = vshll.u32 %v3238_v59, 16  ;;  %v3485_v52 = vshll.u32 %v3239_v44, 16  ;;  %v3734_v8 = vld [vmem:[#allocation3 + $0x44] sm:$0x1] }
 0x13b   : > { %v8331_v6 = vpop.f32.mrb[18].mxu1  ;;  %5213 = vmatmul.mubr.bf16.gmra.mrb[108].mxu0 %v6166_v37  ;;  %9083 = vst [vmem:[#allocation9_spill] sm:$0xff] %v8357_v50  ;;  %5317 = vmatprep.mubr.bf16.mxu1 %v6223_v58  ;;  %v3489_v26 = vshrl.u32 %v3239_v44, 16  ;;  %v6248_v13 = vcombine.low %v3829_v54, %v3832_v28  ;;  %v3495_v10 = vshll.u32 %v3240_v45, 16  ;;  %v6233_v59 = vrot.slane %v3729_v33, 9 }
 0x13c   : > { %v8335_v7 = vpop.f32.mrb[19].mxu1  ;;  %7137 = vmatprep.mubr.bf16.mxu0 %v6247_v21  ;;  %5318 = vmatmul.mubr.bf16.gmra.mrb[112].mxu1 %v7323_v34  ;;  %v3478_v5 = vrot.slane %v3476_v0, 4  ;;  %v3481_v3 = vrot.slane %v3479_v15, 5  ;;  %v3487_v31 = vrot.slane %v3485_v52, 5  ;;  %v3835_v37 = vrot.slane %v3730_v9, 5 }
 0x13d   : > { %v3491_v18 = vrot.slane %v3489_v26, 4  ;;  %v8374_v27 = vld [vmem:[%s9069_s2] ss:$0 sm:$0xff]  ;;  %v3497_v34 = vrot.slane %v3495_v10, 5  ;;  %v3838_v44 = vrot.slane %v3731_v38, 5  ;;  %v6234_v30 = vrot.slane %v3732_v16, 9 }
 0x13e   : > { %v3482_v35 = vor.u32 %v3481_v3, %v3478_v5  ;;  %v3836_v45 = vsel %vm7681_vm7, %v6233_v59, %v3835_v37  ;;  %v3837_v41 = vrot.slane %v3835_v37, 4  ;;  %v3842_v58 = vrot.slane %v3733_v40, 5  ;;  %v3241_v54 = vld [vmem:[#allocation3 + $0x90] sm:$0xf]  ;;  %v3242_v15 = vld [vmem:[#allocation3 + $0x94] sm:$0xf] }
 0x13f   : > { %v8343_v47 = vpop.f32.mrb[16].mxu0  ;;  %v3492_v21 = vor.u32 %v3491_v18, %v3487_v31  ;;  %v3845_v9 = vrot.slane %v3734_v8, 5  ;;  %v8380_v28 = vadd.f32 %v8273_v57, %v8271_v43  ;;  %v8384_v0 = vadd.f32 %v8287_v62, %v8281_v56  ;;  %v7324_v26 = vld [vmem:[#allocation3 + $0x84] sm:$0xff]   ;;  %v3243_v62 = vld [vmem:[#allocation3 + $0x98] sm:$0x1] }
 0x140   : > { %v8351_v63 = vpop.f32.mrb[17].mxu0  ;;  %v3483_v33 = vrot.slane %v3482_v35, 4  ;;  %v8388_v38 = vadd.f32 %v8226_v36, %v8374_v27  ;;  %v3839_v52 = vsel %vm7681_vm7, %v3837_v41, %v3838_v44  ;;  %v3844_v40 = vrot.slane %v3842_v58, 4  ;;  %v3736_v59 = vld [vmem:[#allocation3 + $0x4c] sm:$0xf] }
 0x141   : > { %v8359_v48 = vpop.f32.mrb[18].mxu0  ;;  %v8361_v1 = vpop.f32.mrb[20].mxu1  ;;  %9084 = vst [vmem:[#allocation10_spill] sm:$0xff] %v8384_v0  ;;  %v3493_v16 = vrot.slane %v3492_v21, 4  ;;  %v8396_v43 = vadd.f32 %v8239_v32, %v8374_v27  ;;  %v6249_v56 = vcombine.low %v3836_v45, %v3839_v52  ;;  %v3843_v36 = vsel %vm7681_vm7, %v6234_v30, %v3842_v58  ;;  %v3737_v37 = vld [vmem:[#allocation3 + $0x50] sm:$0x1] }
 0x142   : > { %v8363_v2 = vpop.f32.mrb[19].mxu0  ;;  %v8365_v4 = vpop.f32.mrb[21].mxu1  ;;  %v3488_v57 = vsel %vm7533_vm4, %v3483_v33, %v3487_v31  ;;  %v3846_v32 = vsel %vm7681_vm7, %v3844_v40, %v3845_v9  ;;  %v8412_v18 = vadd.f32 %v8283_v12, %v8275_v53  ;;  %v8416_v31 = vadd.f32 %v8308_v24, %v8297_v14  ;;  %v3738_v53 = vld [vmem:[#allocation3 + $0x54] sm:$0xe]  ;;  %v3739_v9 = vld [vmem:[#allocation3 + $0x58] sm:$0xf] }
 0x143   : > { %v8367_v11 = vpop.f32.mrb[22].mxu1  ;;  %7138 = vmatmul.mubr.bf16.vlgmr.msra.gmra.mrb[112].mxu0 %v6248_v13  ;;  %v3735_v13 = vld [vmem:[#allocation3 + $0x48] sm:$0xe]  ;;  %v3498_v8 = vsel %vm7533_vm4, %v3493_v16, %v3497_v34  ;;  %v8424_v34 = vadd.f32 %v8279_v22, %v8374_v27  ;;  %v3500_v21 = vshrl.u32 %v3241_v54, 16  ;;  %v3503_v45 = vshll.u32 %v3241_v54, 16 }
 0x144   : > { %v8369_v61 = vpop.f32.mrb[23].mxu1  ;;  %9085 = vst [vmem:[#allocation11_spill] sm:$0xff] %v8416_v31  ;;  %v6224_v30 = vcombine.low %v3488_v57, %v3498_v8  ;;  %7141 = vmatprep.mubr.bf16.mxu0 %v6249_v56  ;;  %v8432_v14 = vadd.f32 %v8295_v19, %v8374_v27  ;;  %v6250_v24 = vcombine.low %v3843_v36, %v3846_v32  ;;  %v3509_v58 = vshll.u32 %v3242_v15, 16  ;;  %v3740_v57 = vld [vmem:[#allocation3 + $0x5c] sm:$0x1] }
 0x145   : > { %v3513_v33 = vshrl.u32 %v3242_v15, 16  ;;  %v3502_v22 = vrot.slane %v3500_v21, 4  ;;  %v3505_v52 = vrot.slane %v3503_v45, 5  ;;  %v3519_v40 = vshll.u32 %v3243_v62, 16  ;;  %v3751_v29 = vld [vmem:[#allocation3 + $0x88] sm:$0xf] }
 0x146   : > { %5325 = vmatprep.mubr.bf16.mxu1 %v6224_v30  ;;  %v6235_v54 = vrot.slane %v3735_v13, 9  ;;  %v3511_v56 = vrot.slane %v3509_v58, 5  ;;  %v3849_v31 = vrot.slane %v3736_v59, 5  ;;  %v3852_v0 = vrot.slane %v3737_v37, 5 }
 0x147   : > { %5326 = vmatmul.mubr.bf16.gmra.mrb[116].mxu1 %v7324_v26  ;;  %v3515_v8 = vrot.slane %v3513_v33, 4  ;;  %v3506_v50 = vor.u32 %v3505_v52, %v3502_v22  ;;  %v3521_v19 = vrot.slane %v3519_v40, 5  ;;  %v6236_v42 = vrot.slane %v3738_v53, 9  ;;  %v3245_v33 = vld [vmem:[#allocation3 + $0xa0] sm:$0xf]  ;;  %v7325_v40 = vld [vmem:[#allocation3 + $0x90] sm:$0xff]  }
 0x148   : > { %v8392_v5 = vpop.f32.mrb[20].mxu0  ;;  %v3856_v36 = vrot.slane %v3739_v9, 5  ;;  %v3850_v32 = vsel %vm7681_vm7, %v6235_v54, %v3849_v31  ;;  %v3851_v30 = vrot.slane %v3849_v31, 4  ;;  %v3859_v21 = vrot.slane %v3740_v57, 5 }
 0x149   : > { %v8402_v3 = vpop.f32.mrb[21].mxu0  ;;  %v8404_v10 = vpop.f32.mrb[24].mxu1  ;;  %v3516_v15 = vor.u32 %v3515_v8, %v3511_v56  ;;  %v3507_v62 = vrot.slane %v3506_v50, 4  ;;  %v8444_v59 = vadd.f32 %v8351_v63, %v8343_v47  ;;  %v6779_v58 = vadd.f32 %v8327_v60, %v8323_v51  ;;  %v3246_v51 = vld [vmem:[#allocation3 + $0xa4] sm:$0x1] }
 0x14a   : > { %v8418_v35 = vpop.f32.mrb[22].mxu0  ;;  %v8420_v44 = vpop.f32.mrb[25].mxu1  ;;  %v3857_v26 = vsel %vm7681_vm7, %v6236_v42, %v3856_v36  ;;  %v3858_v13 = vrot.slane %v3856_v36, 4  ;;  %v3853_v31 = vsel %vm7681_vm7, %v3851_v30, %v3852_v0  ;;  %v8456_v50 = vadd.f32 %v8363_v2, %v8359_v48  ;;  %v3244_v42 = vld [vmem:[#allocation3 + $0x9c] sm:$0xf] }
 0x14b   : > { %v8426_v12 = vpop.f32.mrb[23].mxu0  ;;  %v8428_v41 = vpop.f32.mrb[26].mxu1  ;;  %7142 = vmatmul.mubr.bf16.gmra.mrb[116].mxu0 %v6250_v24  ;;  %v3517_v24 = vrot.slane %v3516_v15, 4  ;;  %v8462_v47 = vadd.f32 %v8317_v17, %v8374_v27  ;;  %v3512_v63 = vsel %vm7533_vm4, %v3507_v62, %v3511_v56  ;;  %v6251_v22 = vcombine.low %v3850_v32, %v3853_v31  ;;  %v3741_v60 = vld [vmem:[#allocation3 + $0x60] sm:$0xe] }
 0x14c   : > { %v8434_v16 = vpop.f32.mrb[27].mxu1  ;;  %v3860_v0 = vsel %vm7681_vm7, %v3858_v13, %v3859_v21  ;;  %v8474_v2 = vadd.f32 %v8349_v55, %v8374_v27  ;;  %v8479_v57 = vadd.f32 %v6779_v58, %v8388_v38  ;;  %v3742_v56 = vld [vmem:[#allocation3 + $0x64] sm:$0xf]  ;;  %v3743_v8 = vld [vmem:[#allocation3 + $0x68] sm:$0x1]  ;;  %v6782_v32 = vadd.f32 %v8335_v7, %v8331_v6 }
 0x14d   : > { %v3522_v17 = vsel %vm7533_vm4, %v3517_v24, %v3521_v19  ;;  %v6252_v54 = vcombine.low %v3857_v26, %v3860_v0  ;;  %7145 = vmatprep.mubr.bf16.mxu0 %v6251_v22  ;;  %v3524_v30 = vshrl.u32 %v3244_v42, 16  ;;  %v3527_v55 = vshll.u32 %v3244_v42, 16  ;;  %v3744_v21 = vld [vmem:[#allocation3 + $0x6c] sm:$0xe]  ;;  %v3745_v38 = vld [vmem:[#allocation3 + $0x70] sm:$0xf] }
 0x14e   : > { %9086 = vst [vmem:[#allocation12_spill] sm:$0xff] %v8479_v57  ;;  %v6225_v15 = vcombine.low %v3512_v63, %v3522_v17  ;;  %v3533_v19 = vshll.u32 %v3245_v33, 16  ;;  %v3537_v13 = vshrl.u32 %v3245_v33, 16  ;;  %v3543_v26 = vshll.u32 %v3246_v51, 16  ;;  %v3746_v0 = vld [vmem:[#allocation3 + $0x74] sm:$0x1] }
 0x14f   : > { %v6237_v24 = vrot.slane %v3741_v60, 9  ;;  %v8488_v31 = vadd.f32 %v6782_v32, %v8396_v43  ;;  %v3526_v58 = vrot.slane %v3524_v30, 4  ;;  %v3529_v63 = vrot.slane %v3527_v55, 5 }
 0x150   : > { %v8438_v45 = vpop.f32.mrb[24].mxu0  ;;  %5333 = vmatprep.mubr.bf16.mxu1 %v6225_v15  ;;  %v3863_v22 = vrot.slane %v3742_v56, 5  ;;  %v3535_v6 = vrot.slane %v3533_v19, 5  ;;  %v3539_v7 = vrot.slane %v3537_v13, 4  ;;  %v3545_v42 = vrot.slane %v3543_v26, 5 }
 0x151   : > { %v8446_v37 = vpop.f32.mrb[25].mxu0  ;;  %v8448_v53 = vpop.f32.mrb[28].mxu1  ;;  %9087 = vst [vmem:[#allocation13_spill] sm:$0xff] %v8488_v31  ;;  %5334 = vmatmul.mubr.bf16.gmra.mrb[120].mxu1 %v7325_v40  ;;  %v3866_v17 = vrot.slane %v3743_v8, 5  ;;  %v3530_v33 = vor.u32 %v3529_v63, %v3526_v58  ;;  %v6238_v15 = vrot.slane %v3744_v21, 9  ;;  %v3870_v30 = vrot.slane %v3745_v38, 5 }
 0x152   : > { %v8458_v9 = vpop.f32.mrb[26].mxu0  ;;  %v8470_v48 = vpop.f32.mrb[29].mxu1  ;;  %v3864_v51 = vsel %vm7681_vm7, %v6237_v24, %v3863_v22  ;;  %v3865_v60 = vrot.slane %v3863_v22, 4  ;;  %v3540_v56 = vor.u32 %v3539_v7, %v3535_v6  ;;  %v3873_v40 = vrot.slane %v3746_v0, 5  ;;  %v3247_v24 = vld [vmem:[#allocation3 + $0xa8] sm:$0xf] }
 0x153   : > { %v8468_v52 = vpop.f32.mrb[27].mxu0  ;;  %v8481_v36 = vpop.f32.mrb[30].mxu1  ;;  %7146 = vmatmul.mubr.bf16.gmra.mrb[120].mxu0 %v6252_v54  ;;  %v8500_v54 = vadd.f32 %v8402_v3, %v8392_v5  ;;  %v3531_v19 = vrot.slane %v3530_v33, 4  ;;  %v6785_v21 = vadd.f32 %v8365_v4, %v8361_v1  ;;  %v8512_v26 = vadd.f32 %v8426_v12, %v8418_v35  ;;  %v3248_v22 = vld [vmem:[#allocation3 + $0xac] sm:$0xf] }
 0x154   : > { %v8485_v62 = vpop.f32.mrb[31].mxu1  ;;  %v3867_v13 = vsel %vm7681_vm7, %v3865_v60, %v3866_v17  ;;  %v3541_v5 = vrot.slane %v3540_v56, 4  ;;  %v3871_v58 = vsel %vm7681_vm7, %v6238_v15, %v3870_v30  ;;  %v3872_v63 = vrot.slane %v3870_v30, 4  ;;  %v3249_v12 = vld [vmem:[#allocation3 + $0xb0] sm:$0x1] }
 0x155   : > { %v6253_v3 = vcombine.low %v3864_v51, %v3867_v13  ;;  %v8522_v7 = vadd.f32 %v8380_v28, %v8374_v27  ;;  %v8526_v1 = vadd.f32 %v8412_v18, %v8374_v27  ;;  %v3536_v4 = vsel %vm7533_vm4, %v3531_v19, %v3535_v6  ;;  %v3747_v17 = vld [vmem:[#allocation3 + $0x78] sm:$0xe]  ;;  %v7326_v28 = vld [vmem:[#allocation3 + $0x9c] sm:$0xff]  }
 0x156   : > { %v8531_v35 = vadd.f32 %v6785_v21, %v8424_v34  ;;  %v3546_v51 = vsel %vm7533_vm4, %v3541_v5, %v3545_v42  ;;  %v3874_v60 = vsel %vm7681_vm7, %v3872_v63, %v3873_v40  ;;  %v6788_v18 = vadd.f32 %v8369_v61, %v8367_v11  ;;  %v3748_v6 = vld [vmem:[#allocation3 + $0x7c] sm:$0xf]  ;;  %v3749_v56 = vld [vmem:[#allocation3 + $0x80] sm:$0x1]  ;;  %v3750_v21 = vld [vmem:[#allocation3 + $0x84] sm:$0xe] }
 0x157   : > { %7149 = vmatprep.mubr.bf16.mxu0 %v6253_v3  ;;  %v3548_v15 = vshrl.u32 %v3247_v24, 16  ;;  %v6226_v34 = vcombine.low %v3536_v4, %v3546_v51  ;;  %v6254_v30 = vcombine.low %v3871_v58, %v3874_v60  ;;  %v3551_v19 = vshll.u32 %v3247_v24, 16 }
 0x158   : > { %v8490_v20 = vpop.f32.mrb[28].mxu0  ;;  %9088 = vst [vmem:[#allocation14_spill] sm:$0xff] %v8531_v35  ;;  %v3557_v13 = vshll.u32 %v3248_v22, 16  ;;  %v8542_v23 = vadd.f32 %v6788_v18, %v8432_v14  ;;  %v3561_v5 = vshrl.u32 %v3248_v22, 16  ;;  %v3567_v3 = vshll.u32 %v3249_v12, 16 }
 0x159   : > { %v8494_v43 = vpop.f32.mrb[29].mxu0  ;;  %v8496_v32 = vpop.f32.mrb[32].mxu1  ;;  %v3550_v42 = vrot.slane %v3548_v15, 4  ;;  %5341 = vmatprep.mubr.bf16.mxu1 %v6226_v34  ;;  %v3553_v40 = vrot.slane %v3551_v19, 5  ;;  %v6239_v61 = vrot.slane %v3747_v17, 9  ;;  %v3877_v63 = vrot.slane %v3748_v6, 5 }
 0x15a   : > { %v8502_v8 = vpop.f32.mrb[30].mxu0  ;;  %v8504_v55 = vpop.f32.mrb[33].mxu1  ;;  %9089 = vst [vmem:[#allocation15_spill] sm:$0xff] %v8542_v23  ;;  %v3559_v11 = vrot.slane %v3557_v13, 5  ;;  %5342 = vmatmul.mubr.bf16.gmra.mrb[124].mxu1 %v7326_v28  ;;  %v3563_v24 = vrot.slane %v3561_v5, 4  ;;  %v3569_v58 = vrot.slane %v3567_v3, 5 }
 0x15b   : > { %v8514_v38 = vpop.f32.mrb[31].mxu0  ;;  %v8518_v0 = vpop.f32.mrb[34].mxu1  ;;  %7150 = vmatmul.mubr.bf16.gmra.mrb[124].mxu0 %v6254_v30  ;;  %v3880_v4 = vrot.slane %v3749_v56, 5  ;;  %v6240_v51 = vrot.slane %v3750_v21, 9  ;;  %v3554_v22 = vor.u32 %v3553_v40, %v3550_v42  ;;  %v3878_v12 = vsel %vm7681_vm7, %v6239_v61, %v3877_v63  ;;  %v3251_v61 = vld [vmem:[#allocation3 + $0xb8] sm:$0xf] }
 0x15c   : > { %v8533_v33 = vpop.f32.mrb[35].mxu1  ;;  %v3879_v18 = vrot.slane %v3877_v63, 4  ;;  %v3884_v15 = vrot.slane %v3751_v29, 5  ;;  %v3564_v6 = vor.u32 %v3563_v24, %v3559_v11  ;;  %v3887_v28 = vrot.slane %v3752_v46, 5  ;;  %v3250_v46 = vld [vmem:[#allocation3 + $0xb4] sm:$0xf] }
 0x15d   : > { %v8558_v56 = vadd.f32 %v8446_v37, %v8438_v45  ;;  %v6791_v30 = vadd.f32 %v8420_v44, %v8404_v10  ;;  %v3555_v21 = vrot.slane %v3554_v22, 4  ;;  %v8574_v45 = vadd.f32 %v8444_v59, %v8374_v27  ;;  %v7327_v37 = vld [vmem:[#allocation3 + $0xa8] sm:$0xff]   ;;  %v3753_v22 = vld [vmem:[#allocation3 + $0x90] sm:$0xe] }
 0x15e   : > { %v3881_v29 = vsel %vm7681_vm7, %v3879_v18, %v3880_v4  ;;  %v3885_v42 = vsel %vm7681_vm7, %v6240_v51, %v3884_v15  ;;  %v3886_v5 = vrot.slane %v3884_v15, 4  ;;  %v3565_v10 = vrot.slane %v3564_v6, 4  ;;  %v3252_v51 = vld [vmem:[#allocation3 + $0xbc] sm:$0x1]  ;;  %v3755_v6 = vld [vmem:[#allocation3 + $0x98] sm:$0x1] }
 0x15f   : > { %v6255_v44 = vcombine.low %v3878_v12, %v3881_v29  ;;  %v8577_v40 = vadd.f32 %v6791_v30, %v8462_v47  ;;  %v3560_v63 = vsel %vm7533_vm4, %v3555_v21, %v3559_v11  ;;  %v8585_v4 = vadd.f32 %v8468_v52, %v8458_v9  ;;  %v3754_v12 = vld [vmem:[#allocation3 + $0x94] sm:$0xf]  ;;  %v3756_v30 = vld [vmem:[#allocation3 + $0x9c] sm:$0xe]  ;;  %v3758_v21 = vld [vmem:[#allocation3 + $0xa4] sm:$0x1] }
 0x160   : > { %v3888_v24 = vsel %vm7681_vm7, %v3886_v5, %v3887_v28  ;;  %v6794_v59 = vadd.f32 %v8434_v16, %v8428_v41  ;;  %v3570_v47 = vsel %vm7533_vm4, %v3565_v10, %v3569_v58  ;;  %v3572_v15 = vshrl.u32 %v3250_v46, 16  ;;  %v3757_v16 = vld [vmem:[#allocation3 + $0xa0] sm:$0xf] }
 0x161   : > { %v8544_v35 = vpop.f32.mrb[36].mxu1  ;;  %9090 = vst [vmem:[#allocation16_spill] sm:$0xff] %v8577_v40  ;;  %7153 = vmatprep.mubr.bf16.mxu0 %v6255_v44  ;;  %v6256_v18 = vcombine.low %v3885_v42, %v3888_v24  ;;  %v3575_v11 = vshll.u32 %v3250_v46, 16  ;;  %v8593_v28 = vadd.f32 %v8456_v50, %v8374_v27  ;;  %v6227_v9 = vcombine.low %v3560_v63, %v3570_v47 }
 0x162   : > { %v8546_v60 = vpop.f32.mrb[32].mxu0  ;;  %v8548_v14 = vpop.f32.mrb[37].mxu1  ;;  %v8596_v52 = vadd.f32 %v6794_v59, %v8474_v2  ;;  %v3581_v41 = vshll.u32 %v3251_v61, 16  ;;  %v3574_v58 = vrot.slane %v3572_v15, 4  ;;  %v3585_v5 = vshrl.u32 %v3251_v61, 16 }
 0x163   : > { %v8552_v34 = vpop.f32.mrb[33].mxu0  ;;  %v8554_v17 = vpop.f32.mrb[38].mxu1  ;;  %7154 = vmatmul.mubr.bf16.gmra.mrb[128].mxu0 %v6256_v18  ;;  %v3577_v42 = vrot.slane %v3575_v11, 5  ;;  %v3591_v46 = vshll.u32 %v3252_v51, 16  ;;  %5349 = vmatprep.mubr.bf16.mxu1 %v6227_v9  ;;  %v6241_v63 = vrot.slane %v3753_v22, 9  ;;  %v3891_v24 = vrot.slane %v3754_v12, 5 }
 0x164   : > { %v8562_v19 = vpop.f32.mrb[34].mxu0  ;;  %v8564_v13 = vpop.f32.mrb[39].mxu1  ;;  %9091 = vst [vmem:[#allocation17_spill] sm:$0xff] %v8596_v52  ;;  %v3583_v50 = vrot.slane %v3581_v41, 5  ;;  %v3894_v2 = vrot.slane %v3755_v6, 5  ;;  %5350 = vmatmul.mubr.bf16.gmra.mrb[128].mxu1 %v7327_v37  ;;  %v3587_v18 = vrot.slane %v3585_v5, 4  ;;  %v8618_v37 = vadd.f32 %v8494_v43, %v8490_v20 }
 0x165   : > { %v8570_v3 = vpop.f32.mrb[35].mxu0  ;;  %v3578_v52 = vor.u32 %v3577_v42, %v3574_v58  ;;  %v3593_v15 = vrot.slane %v3591_v46, 5  ;;  %v6242_v11 = vrot.slane %v3756_v30, 9  ;;  %v3892_v9 = vsel %vm7681_vm7, %v6241_v63, %v3891_v24  ;;  %v3253_v58 = vld [vmem:[#allocation3 + $0xc0] sm:$0xf] }
 0x166   : > { %v3893_v41 = vrot.slane %v3891_v24, 4  ;;  %v3898_v22 = vrot.slane %v3757_v16, 5  ;;  %v3901_v12 = vrot.slane %v3758_v21, 5  ;;  %v3588_v23 = vor.u32 %v3587_v18, %v3583_v50  ;;  %v3255_v46 = vld [vmem:[#allocation3 + $0xc8] sm:$0x1]  ;;  %v7328_v18 = vld [vmem:[#allocation3 + $0xb4] sm:$0xff]  }
 0x167   : > { %v3579_v40 = vrot.slane %v3578_v52, 4  ;;  %v6797_v30 = vadd.f32 %v8470_v48, %v8448_v53  ;;  %v8628_v21 = vadd.f32 %v8514_v38, %v8502_v8  ;;  %v3254_v52 = vld [vmem:[#allocation3 + $0xc4] sm:$0xf]  ;;  %v8632_v20 = vadd.f32 %v8500_v54, %v8374_v27  ;;  %v3759_v63 = vld [vmem:[#allocation3 + $0xa8] sm:$0xe] }
 0x168   : > { %v3895_v42 = vsel %vm7681_vm7, %v3893_v41, %v3894_v2  ;;  %v3899_v5 = vsel %vm7681_vm7, %v6242_v11, %v3898_v22  ;;  %v3900_v16 = vrot.slane %v3898_v22, 4  ;;  %v3589_v48 = vrot.slane %v3588_v23, 4  ;;  %v3760_v24 = vld [vmem:[#allocation3 + $0xac] sm:$0xf]  ;;  %v3761_v11 = vld [vmem:[#allocation3 + $0xb0] sm:$0x1] }
 0x169   : > { %v8598_v29 = vpop.f32.mrb[40].mxu1  ;;  %v3584_v53 = vsel %vm7533_vm4, %v3579_v40, %v3583_v50  ;;  %v6257_v43 = vcombine.low %v3892_v9, %v3895_v42  ;;  %v8638_v2 = vadd.f32 %v8512_v26, %v8374_v27  ;;  %v8643_v38 = vadd.f32 %v6797_v30, %v8522_v7  ;;  %v3762_v40 = vld [vmem:[#allocation3 + $0xb4] sm:$0xe]  ;;  %v3763_v22 = vld [vmem:[#allocation3 + $0xb8] sm:$0xf] }
 0x16a   : > { %v8600_v10 = vpop.f32.mrb[36].mxu0  ;;  %v8602_v44 = vpop.f32.mrb[41].mxu1  ;;  %v3902_v8 = vsel %vm7681_vm7, %v3900_v16, %v3901_v12  ;;  %v6800_v54 = vadd.f32 %v8485_v62, %v8481_v36  ;;  %v3594_v50 = vsel %vm7533_vm4, %v3589_v48, %v3593_v15  ;;  %v3596_v9 = vshrl.u32 %v3253_v58, 16  ;;  %v3764_v16 = vld [vmem:[#allocation3 + $0xbc] sm:$0x1] }
 0x16b   : > { %v8604_v59 = vpop.f32.mrb[37].mxu0  ;;  %v8606_v47 = vpop.f32.mrb[42].mxu1  ;;  %9092 = vst [vmem:[#allocation18_spill] sm:$0xff] %v8643_v38  ;;  %7157 = vmatprep.mubr.bf16.mxu0 %v6257_v43  ;;  %v6258_v26 = vcombine.low %v3899_v5, %v3902_v8  ;;  %v3599_v41 = vshll.u32 %v3253_v58, 16  ;;  %v6228_v7 = vcombine.low %v3584_v53, %v3594_v50  ;;  %v3605_v36 = vshll.u32 %v3254_v52, 16 }
 0x16c   : > { %v8608_v61 = vpop.f32.mrb[38].mxu0  ;;  %v8610_v51 = vpop.f32.mrb[43].mxu1  ;;  %v8656_v30 = vadd.f32 %v6800_v54, %v8526_v1  ;;  %v3609_v62 = vshrl.u32 %v3254_v52, 16  ;;  %v3598_v15 = vrot.slane %v3596_v9, 4  ;;  %v3615_v58 = vshll.u32 %v3255_v46, 16 }
 0x16d   : > { %v8614_v6 = vpop.f32.mrb[39].mxu0  ;;  %7158 = vmatmul.mubr.bf16.gmra.mrb[132].mxu0 %v6258_v26  ;;  %v3601_v5 = vrot.slane %v3599_v41, 5  ;;  %v6243_v48 = vrot.slane %v3759_v63, 9  ;;  %5357 = vmatprep.mubr.bf16.mxu1 %v6228_v7  ;;  %v3607_v53 = vrot.slane %v3605_v36, 5  ;;  %v3905_v54 = vrot.slane %v3760_v24, 5 }
 0x16e   : > { %9093 = vst [vmem:[#allocation19_spill] sm:$0xff] %v8656_v30  ;;  %v3611_v1 = vrot.slane %v3609_v62, 4  ;;  %v3908_v52 = vrot.slane %v3761_v11, 5  ;;  %5358 = vmatmul.mubr.bf16.gmra.mrb[132].mxu1 %v7328_v18  ;;  %v3617_v57 = vrot.slane %v3615_v58, 5  ;;  %v6244_v26 = vrot.slane %v3762_v40, 9  ;;  %v352_v18 = vld [vmem:[%s7449_s26 + $0xcc] sm:$0xff]  }
 0x16f   : > { %v3602_v30 = vor.u32 %v3601_v5, %v3598_v15  ;;  %v3912_v9 = vrot.slane %v3763_v22, 5  ;;  %v3906_v63 = vsel %vm7681_vm7, %v6243_v48, %v3905_v54  ;;  %v3907_v41 = vrot.slane %v3905_v54, 4  ;;  %v3765_v15 = vld [vmem:[#allocation3 + $0xc0] sm:$0xe] }
 0x170   : > { %v3612_v46 = vor.u32 %v3611_v1, %v3607_v53  ;;  %v8674_v11 = vadd.f32 %v8552_v34, %v8546_v60  ;;  %v6803_v22 = vadd.f32 %v8504_v55, %v8496_v32  ;;  %v8690_v60 = vadd.f32 %v8558_v56, %v8374_v27  ;;  %v3766_v32 = vld [vmem:[#allocation3 + $0xc4] sm:$0xf]  ;;  %v3767_v55 = vld [vmem:[#allocation3 + $0xc8] sm:$0x1] }
 0x171   : > { %v8647_v23 = vpop.f32.mrb[44].mxu1  ;;  %v3603_v7 = vrot.slane %v3602_v30, 4  ;;  %v3913_v24 = vsel %vm7681_vm7, %v6244_v26, %v3912_v9  ;;  %v3914_v36 = vrot.slane %v3912_v9, 4  ;;  %v3909_v40 = vsel %vm7681_vm7, %v3907_v41, %v3908_v52  ;;  %v354_v30 = vld [vmem:[%s7449_s26 + $0xd4] sm:$0x1]  ;;  %v7329_v54 = vld [vmem:[#allocation3 + $0xc0] sm:$0xff]  }
 0x172   : > { %v8651_v42 = vpop.f32.mrb[40].mxu0  ;;  %v8653_v12 = vpop.f32.mrb[45].mxu1  ;;  %v3613_v62 = vrot.slane %v3612_v46, 4  ;;  %v6259_v58 = vcombine.low %v3906_v63, %v3909_v40  ;;  %v6806_v46 = vadd.f32 %v8533_v33, %v8518_v0  ;;  %v406_v63 = vunpack.c.l.bf16 %v352_v18 }
 0x173   : > { %v8658_v38 = vpop.f32.mrb[41].mxu0  ;;  %v8660_v31 = vpop.f32.mrb[46].mxu1  ;;  %v3608_v34 = vsel %vm7533_vm4, %v3603_v7, %v3607_v53  ;;  %v8705_v53 = vadd.f32 %v6803_v22, %v8574_v45  ;;  %v407_v41 = vunpack.c.h.bf16 %v352_v18  ;;  %v7336_v22 = vld [vmem:[%s9070_s3] ss:$0 sm:$0xff]  ;;  %v6721_v33 = vadd.f32 %v8604_v59, %v8600_v10 }
 0x174   : > { %v8662_v43 = vpop.f32.mrb[42].mxu0  ;;  %v8664_v8 = vpop.f32.mrb[47].mxu1  ;;  %v3618_v56 = vsel %vm7533_vm4, %v3613_v62, %v3617_v57  ;;  %7161 = vmatprep.mubr.bf16.mxu0 %v6259_v58  ;;  %v6245_v57 = vrot.slane %v3765_v15, 9  ;;  %v3919_v62 = vrot.slane %v3766_v32, 5  ;;  %v8712_v45 = vadd.f32 %v6806_v46, %v8593_v28 }
 0x175   : > { %9094 = vst [vmem:[#allocation20_spill] sm:$0xff] %v8664_v8  ;;  %v8666_v50 = vpop.f32.mrb[43].mxu0  ;;  %v3915_v8 = vrot.slane %v3764_v16, 5  ;;  %v8683_v16 = vadd.f32 %v8570_v3, %v8562_v19  ;;  %v8700_v3 = vadd.f32 %v8585_v4, %v8374_v27  ;;  %v766_v0 = vmul.f32 %v7336_v22, %v407_v41 }
 0x176   : > { %v3921_v15 = vrot.slane %v3919_v62, 4  ;;  %v6809_v58 = vadd.f32 %v8548_v14, %v8544_v35  ;;  %v4829_v28 = vadd.f32 %v8618_v37, %v8374_v27  ;;  %v6812_v35 = vadd.f32 %v8564_v13, %v8554_v17 }
 0x177   : > { %v3916_v48 = vsel %vm7681_vm7, %v3914_v36, %v3915_v8  ;;  %v6229_v8 = vcombine.low %v3608_v34, %v3618_v56  ;;  %v408_v36 = vunpack.c.l.bf16 %v354_v30  ;;  %v765_v34 = vmul.f32 %v7336_v22, %v406_v63 }
 0x178   : > { %v6260_v52 = vcombine.low %v3913_v24, %v3916_v48  ;;  %v3922_v24 = vrot.slane %v3767_v55, 5  ;;  %v3920_v30 = vsel %vm7681_vm7, %v6245_v57, %v3919_v62  ;;  %v881_v32 = vadd.f32 %v7475_v25, %v766_v0 }
 0x179   : > { %v8686_v5 = vpop.f32.mrb[48].mxu1  ;;  %5365 = vmatprep.mubr.bf16.mxu1 %v6229_v8  ;;  %v767_v18 = vmul.f32 %v7336_v22, %v408_v36  ;;  %v880_v48 = vadd.f32 %v7475_v25, %v765_v34  ;;  %v6724_v55 = vadd.f32 %v8614_v6, %v8608_v61  ;;  %v8733_v56 = vadd.f32 %v6809_v58, %v8632_v20  ;;  %v9096_v22 = vld [vmem:[#allocation12_spill] sm:$0xff] }
 0x17a   : > { %v8696_v19 = vpop.f32.mrb[49].mxu1  ;;  %7162 = vmatmul.mubr.bf16.gmra.mrb[136].mxu0 %v6260_v52  ;;  %5366 = vmatmul.mubr.bf16.gmra.mrb[136].mxu1 %v7329_v54  ;;  %v3923_v59 = vsel %vm7681_vm7, %v3921_v15, %v3922_v24  ;;  %v4832_v37 = vadd.f32 %v8628_v21, %v8374_v27  ;;  %v6423_v52 = vpack.c.bf16 %v881_v32, %v881_v32 }
 0x17b   : > { %v6731_v1 = vpop.f32.mrb[44].mxu0  ;;  %v8707_v9 = vpop.f32.mrb[50].mxu1  ;;  %v882_v10 = vadd.f32 %v7475_v25, %v767_v18  ;;  %v6422_v54 = vpack.c.bf16 %v880_v48, %v880_v48  ;;  %v6261_v8 = vcombine.low %v3920_v30, %v3923_v59  ;;  %v8740_v25 = vadd.f32 %v6812_v35, %v8638_v2 }
 0x17c   : > { %v6732_v26 = vpop.f32.mrb[45].mxu0  ;;  %v6829_v7 = vpop.f32.mrb[51].mxu1  ;;  %v6727_v20 = vadd.f32 %v8658_v38, %v8651_v42  ;;  %v6815_v63 = vadd.f32 %v8602_v44, %v8598_v29  ;;  %1169 = vst [vmem:[#allocation3 + $0xd0] sm:$0xf] %v6423_v52  ;;  %v8748_v21 = vadd.f32 %v8666_v50, %v8662_v43  ;;  %v6818_v41 = vadd.f32 %v8610_v51, %v8606_v47  ;;  %v9095_v43 = vld [vmem:[#allocation20_spill] sm:$0xff] }
 0x17d   : > { %v6734_v4 = vpop.f32.mrb[46].mxu0  ;;  %v6424_v6 = vpack.c.bf16 %v882_v10, %v882_v10  ;;  %1168 = vst [vmem:[#allocation3 + $0xcc] sm:$0xf] %v6422_v54  ;;  %7165 = vmatprep.mubr.bf16.mxu0 %v6261_v8  ;;  %v8752_v2 = vadd.f32 %v6732_v26, %v6731_v1  ;;  %v6821_v38 = vadd.f32 %v8653_v12, %v8647_v23 }
 0x17e   : > { %v6735_v40 = vpop.f32.mrb[47].mxu0  ;;  %v4837_v29 = vadd.f32 %v8674_v11, %v8374_v27  ;;  %v8759_v44 = vadd.f32 %v6815_v63, %v8690_v60  ;;  %v6824_v50 = vadd.f32 %v9095_v43, %v8660_v31  ;;  %v4840_v51 = vadd.f32 %v8683_v16, %v8374_v27 }
 0x17f   : > { %1170 = vst [vmem:[#allocation3 + $0xd4] sm:$0x1] %v6424_v6  ;;  %v8761_v57 = vadd.f32 %v6735_v40, %v6734_v4  ;;  %v4845_v23 = vadd.f32 %v6721_v33, %v8374_v27  ;;  %v8769_v12 = vadd.f32 %v6818_v41, %v8700_v3  ;;  %v8771_v1 = vadd.f32 %v6821_v38, %v4829_v28  ;;  %v9097_v33 = vld [vmem:[#allocation13_spill] sm:$0xff] }
 0x180   : > { %v4848_v11 = vadd.f32 %v6724_v55, %v8374_v27  ;;  %v8774_v60 = vadd.f32 %v6824_v50, %v4832_v37  ;;  %v6827_v26 = vadd.f32 %v8696_v19, %v8686_v5  ;;  %v6830_v31 = vadd.f32 %v6829_v7, %v8707_v9 }
 0x181   : > { %v6831_v14 = vpop.f32.mrb[52].mxu1  ;;  %v4853_v58 = vadd.f32 %v6727_v20, %v8374_v27 }
 0x182   : > { %v6832_v61 = vpop.f32.mrb[53].mxu1  ;;  %v8779_v40 = vadd.f32 %v6827_v26, %v4837_v29  ;;  %v8784_v0 = vadd.f32 %v6830_v31, %v4840_v51 }
 0x183   : > { %v6889_v46 = vpop.f32.mrb[48].mxu0  ;;  %v6834_v13 = vpop.f32.mrb[54].mxu1  ;;  %v6833_v24 = vadd.f32 %v6832_v61, %v6831_v14  ;;  %v3257_v7 = vld [vmem:[#allocation3 + $0xd0] sm:$0xf] }
 0x184   : > { %v6890_v17 = vpop.f32.mrb[49].mxu0  ;;  %v6835_v36 = vpop.f32.mrb[55].mxu1  ;;  %v3256_v9 = vld [vmem:[#allocation3 + $0xcc] sm:$0xf]  ;;  %v3629_v10 = vshll.u32 %v3257_v7, 16  ;;  %v3633_v59 = vshrl.u32 %v3257_v7, 16 }
 0x185   : > { %v6892_v42 = vpop.f32.mrb[50].mxu0  ;;  %v6891_v4 = vadd.f32 %v6890_v17, %v6889_v46  ;;  %v6836_v16 = vadd.f32 %v6835_v36, %v6834_v13  ;;  %v8789_v15 = vadd.f32 %v6833_v24, %v4845_v23  ;;  %v3620_v32 = vshrl.u32 %v3256_v9, 16  ;;  %v3768_v14 = vld [vmem:[#allocation3 + $0xcc] sm:$0xe]  ;;  %v3769_v61 = vld [vmem:[#allocation3 + $0xd0] sm:$0xf] }
 0x186   : > { %v6893_v47 = vpop.f32.mrb[51].mxu0  ;;  %v3258_v48 = vld [vmem:[#allocation3 + $0xd4] sm:$0x1]  ;;  %v3623_v55 = vshll.u32 %v3256_v9, 16  ;;  %v3631_v8 = vrot.slane %v3629_v10, 5  ;;  %v3635_v46 = vrot.slane %v3633_v59, 4 }
 0x187   : > { %v6894_v62 = vadd.f32 %v6893_v47, %v6892_v42  ;;  %v8782_v3 = vadd.f32 %v6891_v4, %v9096_v22  ;;  %v8791_v5 = vadd.f32 %v6836_v16, %v4848_v11  ;;  %v3639_v35 = vshll.u32 %v3258_v48, 16  ;;  %v3770_v63 = vld [vmem:[#allocation3 + $0xd4] sm:$0x1]  ;;  %v9098_v4 = vld [vmem:[#allocation14_spill] sm:$0xff] }
 0x188   : > { %v3622_v54 = vrot.slane %v3620_v32, 4  ;;  %v3625_v52 = vrot.slane %v3623_v55, 5  ;;  %v6246_v17 = vrot.slane %v3768_v14, 9  ;;  %v3926_v13 = vrot.slane %v3769_v61, 5  ;;  %v9099_v32 = vld [vmem:[#allocation15_spill] sm:$0xff] }
 0x189   : > { %v6837_v34 = vpop.f32.mrb[56].mxu1  ;;  %v8787_v18 = vadd.f32 %v6894_v62, %v9097_v33  ;;  %v3641_v6 = vrot.slane %v3639_v35, 5  ;;  %v3636_v38 = vor.u32 %v3635_v46, %v3631_v8  ;;  %v3929_v42 = vrot.slane %v3770_v63, 5  ;;  %v9100_v46 = vld [vmem:[#allocation16_spill] sm:$0xff]  ;;  %v9101_v63 = vld [vmem:[#allocation17_spill] sm:$0xff] }
 0x18a   : > { %v6838_v19 = vpop.f32.mrb[57].mxu1  ;;  %v3626_v41 = vor.u32 %v3625_v52, %v3622_v54  ;;  %v3927_v50 = vsel %vm7681_vm7, %v6246_v17, %v3926_v13  ;;  %v3928_v47 = vrot.slane %v3926_v13, 4  ;;  %v4861_v33 = vadd.f32 %v8752_v2, %v8374_v27 }
 0x18b   : > { %v6895_v30 = vpop.f32.mrb[52].mxu0  ;;  %v6839_v28 = vadd.f32 %v6838_v19, %v6837_v34  ;;  %v6840_v43 = vpop.f32.mrb[58].mxu1  ;;  %v3637_v26 = vrot.slane %v3636_v38, 4  ;;  %v4856_v34 = vadd.f32 %v8748_v21, %v8374_v27  ;;  %v4864_v52 = vadd.f32 %v8761_v57, %v8374_v27 }
 0x18c   : > { %v6896_v20 = vpop.f32.mrb[53].mxu0  ;;  %v6841_v23 = vpop.f32.mrb[59].mxu1  ;;  %v3627_v11 = vrot.slane %v3626_v41, 4  ;;  %v3930_v22 = vsel %vm7681_vm7, %v3928_v47, %v3929_v42  ;;  %v9102_v42 = vld [vmem:[#allocation4_spill] sm:$0xff] }
 0x18d   : > { %v8794_v37 = vadd.f32 %v6839_v28, %v4853_v58  ;;  %v6897_v36 = vadd.f32 %v6896_v20, %v6895_v30  ;;  %v6898_v29 = vpop.f32.mrb[54].mxu0  ;;  %v6842_v19 = vadd.f32 %v6841_v23, %v6840_v43  ;;  %v3642_v58 = vsel %vm7533_vm4, %v3637_v26, %v3641_v6  ;;  %v7330_v28 = vld [vmem:[#allocation3 + $0xcc] sm:$0xff]   ;;  %v7337_v23 = vld [vmem:[%s9069_s2] ss:$0 sm:$0xff] }
 0x18e   : > { %v6899_v51 = vpop.f32.mrb[55].mxu0  ;;  %v3632_v7 = vsel %vm7533_vm4, %v3627_v11, %v3631_v8  ;;  %v6262_v48 = vcombine.low %v3927_v50, %v3930_v22  ;;  %v4869_v57 = vadd.f32 %v9102_v42, %v8374_v27  ;;  %v9103_v11 = vld [vmem:[#allocation5_spill] sm:$0xff] }
 0x18f   : > { %v8799_v31 = vadd.f32 %v6897_v36, %v9098_v4  ;;  %v6900_v62 = vadd.f32 %v6899_v51, %v6898_v29  ;;  %v6230_v21 = vcombine.low %v3632_v7, %v3642_v58  ;;  %v8814_v35 = vadd.f32 %v6842_v19, %v4856_v34  ;;  %v9106_v58 = vld [vmem:[#allocation6_spill] sm:$0xff] }
 0x190   : > { %7166 = vmatmul.mubr.bf16.gmra.mrb[140].mxu0 %v6262_v48  ;;  %v4872_v26 = vadd.f32 %v7337_v23, %v9103_v11 }
 0x191   : > { %v6843_v16 = vpop.f32.mrb[60].mxu1  ;;  %v8812_v39 = vadd.f32 %v6900_v62, %v9099_v32  ;;  %5373 = vmatprep.mubr.bf16.mxu1 %v6230_v21 }
 0x192   : > { %v6844_v9 = vpop.f32.mrb[61].mxu1  ;;  %5374 = vmatmul.mubr.bf16.gmra.mrb[140].mxu1 %v7330_v28  ;;  %v4877_v28 = vadd.f32 %v7337_v23, %v9106_v58 }
 0x193   : > { %v6901_v24 = vpop.f32.mrb[56].mxu0  ;;  %v6846_v10 = vpop.f32.mrb[62].mxu1  ;;  %v6845_v14 = vadd.f32 %v6844_v9, %v6843_v16  ;;  %v9104_v16 = vld [vmem:[#allocation18_spill] sm:$0xff] }
 0x194   : > { %v6902_v30 = vpop.f32.mrb[57].mxu0  ;;  %v6847_v54 = vpop.f32.mrb[63].mxu1 }
 0x195   : > { %v6904_v55 = vpop.f32.mrb[58].mxu0  ;;  %v6903_v59 = vadd.f32 %v6902_v30, %v6901_v24  ;;  %v6848_v8 = vadd.f32 %v6847_v54, %v6846_v10  ;;  %v8821_v6 = vadd.f32 %v6845_v14, %v4861_v33  ;;  %v9105_v33 = vld [vmem:[#allocation19_spill] sm:$0xff] }
 0x196   : > { %v6905_v2 = vpop.f32.mrb[59].mxu0 }
 0x197   : > { %v6906_v49 = vadd.f32 %v6905_v2, %v6904_v55  ;;  %v8819_v61 = vadd.f32 %v6903_v59, %v9100_v46  ;;  %v8826_v13 = vadd.f32 %v6848_v8, %v4864_v52  ;;  %v9107_v2 = vld [vmem:[#allocation7_spill] sm:$0xff] }
 0x198   : > { %v4880_v14 = vadd.f32 %v7337_v23, %v9107_v2 }
 0x199   : > { %v8824_v17 = vadd.f32 %v6906_v49, %v9101_v63  ;;  %v6849_v20 = vpop.f32.mrb[64].mxu1 }
 0x19a   : > { %v6850_v38 = vpop.f32.mrb[65].mxu1 }
 0x19b   : > { %v6907_v41 = vpop.f32.mrb[60].mxu0  ;;  %v6851_v29 = vadd.f32 %v6850_v38, %v6849_v20  ;;  %v6852_v43 = vpop.f32.mrb[66].mxu1 }
 0x19c   : > { %v6908_v36 = vpop.f32.mrb[61].mxu0  ;;  %v6853_v51 = vpop.f32.mrb[67].mxu1 }
 0x19d   : > { %v6909_v50 = vadd.f32 %v6908_v36, %v6907_v41  ;;  %v6910_v47 = vpop.f32.mrb[62].mxu0  ;;  %v8834_v62 = vadd.f32 %v6851_v29, %v4869_v57  ;;  %v6854_v24 = vadd.f32 %v6853_v51, %v6852_v43  ;;  %v9108_v43 = vld [vmem:[#allocation8_spill] sm:$0xff] }
 0x19e   : > { %v6911_v4 = vpop.f32.mrb[63].mxu0 }
 0x19f   : > { %v8837_v22 = vadd.f32 %v6909_v50, %v9104_v16  ;;  %v6912_v27 = vadd.f32 %v6911_v4, %v6910_v47  ;;  %v8839_v34 = vadd.f32 %v6854_v24, %v4872_v26  ;;  %v4885_v50 = vadd.f32 %v7337_v23, %v9108_v43  ;;  %v9109_v24 = vld [vmem:[#allocation9_spill] sm:$0xff] }
 0x1a0   : > { %v4888_v16 = vadd.f32 %v7337_v23, %v9109_v24 }
 0x1a1   : > { %v8842_v30 = vadd.f32 %v6912_v27, %v9105_v33  ;;  %v6855_v19 = vpop.f32.mrb[68].mxu1 }
 0x1a2   : > { %v6856_v7 = vpop.f32.mrb[69].mxu1 }
 0x1a3   : > { %v6913_v9 = vpop.f32.mrb[64].mxu0  ;;  %v6857_v32 = vadd.f32 %v6856_v7, %v6855_v19  ;;  %v6858_v55 = vpop.f32.mrb[70].mxu1 }
 0x1a4   : > { %v6914_v48 = vpop.f32.mrb[65].mxu0  ;;  %v6859_v59 = vpop.f32.mrb[71].mxu1 }
 0x1a5   : > { %v6915_v10 = vadd.f32 %v6914_v48, %v6913_v9  ;;  %v6916_v21 = vpop.f32.mrb[66].mxu0  ;;  %v8846_v52 = vadd.f32 %v6857_v32, %v4877_v28  ;;  %v6860_v49 = vadd.f32 %v6859_v59, %v6858_v55 }
 0x1a6   : > { %v6917_v54 = vpop.f32.mrb[67].mxu0 }
 0x1a7   : > { %v8849_v8 = vadd.f32 %v6915_v10, %v8705_v53  ;;  %v6918_v46 = vadd.f32 %v6917_v54, %v6916_v21  ;;  %v8851_v63 = vadd.f32 %v6860_v49, %v4880_v14 }
 0x1a9   : > { %v8854_v20 = vadd.f32 %v6918_v46, %v8712_v45  ;;  %v6861_v42 = vpop.f32.mrb[72].mxu1 }
 0x1aa   : > { %v6862_v29 = vpop.f32.mrb[73].mxu1 }
 0x1ab   : > { %v6919_v41 = vpop.f32.mrb[68].mxu0  ;;  %v6863_v51 = vadd.f32 %v6862_v29, %v6861_v42  ;;  %v6864_v11 = vpop.f32.mrb[74].mxu1 }
 0x1ac   : > { %v6920_v38 = vpop.f32.mrb[69].mxu0  ;;  %v6865_v4 = vpop.f32.mrb[75].mxu1 }
 0x1ad   : > { %v6921_v57 = vadd.f32 %v6920_v38, %v6919_v41  ;;  %v6922_v36 = vpop.f32.mrb[70].mxu0  ;;  %v8861_v45 = vadd.f32 %v6863_v51, %v4885_v50  ;;  %v6866_v27 = vadd.f32 %v6865_v4, %v6864_v11 }
 0x1ae   : > { %v6923_v47 = vpop.f32.mrb[71].mxu0 }
 0x1af   : > { %v8858_v53 = vadd.f32 %v6921_v57, %v8733_v56  ;;  %v6924_v26 = vadd.f32 %v6923_v47, %v6922_v36  ;;  %v8866_v19 = vadd.f32 %v6866_v27, %v4888_v16  ;;  %v9110_v56 = vld [vmem:[#allocation10_spill] sm:$0xff] }
 0x1b0   : > { %v4893_v55 = vadd.f32 %v7337_v23, %v9110_v56 }
 0x1b1   : > { %v8864_v33 = vadd.f32 %v6924_v26, %v8740_v25  ;;  %v6867_v58 = vpop.f32.mrb[76].mxu1  ;;  %v9111_v25 = vld [vmem:[#allocation11_spill] sm:$0xff] }
 0x1b2   : > { %v6868_v32 = vpop.f32.mrb[77].mxu1  ;;  %v4896_v49 = vadd.f32 %v7337_v23, %v9111_v25 }
 0x1b3   : > { %v6925_v9 = vpop.f32.mrb[72].mxu0  ;;  %v6869_v21 = vadd.f32 %v6868_v32, %v6867_v58  ;;  %v6870_v59 = vpop.f32.mrb[78].mxu1 }
 0x1b4   : > { %v6926_v7 = vpop.f32.mrb[73].mxu0  ;;  %v6871_v54 = vpop.f32.mrb[79].mxu1 }
 0x1b5   : > { %v6927_v28 = vadd.f32 %v6926_v7, %v6925_v9  ;;  %v6928_v48 = vpop.f32.mrb[74].mxu0  ;;  %v8873_v46 = vadd.f32 %v6869_v21, %v4893_v55  ;;  %v6872_v41 = vadd.f32 %v6871_v54, %v6870_v59 }
 0x1b6   : > { %v6929_v10 = vpop.f32.mrb[75].mxu0 }
 0x1b7   : > { %v8870_v2 = vadd.f32 %v6927_v28, %v8759_v44  ;;  %v6930_v14 = vadd.f32 %v6929_v10, %v6928_v48  ;;  %v8878_v42 = vadd.f32 %v6872_v41, %v4896_v49 }
 0x1b9   : > { %v8876_v38 = vadd.f32 %v6930_v14, %v8769_v12 }
 0x1bb   : > { %v6931_v57 = vpop.f32.mrb[76].mxu0 }
 0x1bc   : > { %v6932_v36 = vpop.f32.mrb[77].mxu0  ;;  %v7001_v23 = vpop.f32.mrb[80].mxu1 }
 0x1bd   : > { %v6933_v29 = vadd.f32 %v6932_v36, %v6931_v57  ;;  %v6934_v43 = vpop.f32.mrb[78].mxu0  ;;  %v7002_v11 = vpop.f32.mrb[81].mxu1 }
 0x1be   : > { %v6935_v50 = vpop.f32.mrb[79].mxu0  ;;  %v7003_v26 = vadd.f32 %v7002_v11, %v7001_v23  ;;  %v7004_v4 = vpop.f32.mrb[82].mxu1 }
 0x1bf   : > { %v8881_v44 = vadd.f32 %v6933_v29, %v8771_v1  ;;  %v6936_v47 = vadd.f32 %v6935_v50, %v6934_v43  ;;  %v7005_v12 = vpop.f32.mrb[83].mxu1 }
 0x1c0   : > { %v7006_v16 = vadd.f32 %v7005_v12, %v7004_v4  ;;  %v8887_v27 = vadd.f32 %v7003_v26, %v8782_v3 }
 0x1c1   : > { %v8884_v51 = vadd.f32 %v6936_v47, %v8774_v60 }
 0x1c2   : > { %v8890_v1 = vadd.f32 %v7006_v16, %v8787_v18 }
 0x1c3   : > { %v6937_v24 = vpop.f32.mrb[80].mxu0 }
 0x1c4   : > { %v6938_v9 = vpop.f32.mrb[81].mxu0 }
 0x1c5   : > { %v6939_v7 = vadd.f32 %v6938_v9, %v6937_v24  ;;  %v6940_v58 = vpop.f32.mrb[82].mxu0 }
 0x1c6   : > { %v6941_v28 = vpop.f32.mrb[83].mxu0  ;;  %v7007_v56 = vpop.f32.mrb[84].mxu1 }
 0x1c7   : > { %v8893_v60 = vadd.f32 %v6939_v7, %v8779_v40  ;;  %v6942_v48 = vadd.f32 %v6941_v28, %v6940_v58  ;;  %v7008_v55 = vpop.f32.mrb[85].mxu1 }
 0x1c8   : > { %v7009_v10 = vadd.f32 %v7008_v55, %v7007_v56  ;;  %v7010_v21 = vpop.f32.mrb[86].mxu1 }
 0x1c9   : > { %v8896_v32 = vadd.f32 %v6942_v48, %v8784_v0  ;;  %v7011_v59 = vpop.f32.mrb[87].mxu1 }
 0x1ca   : > { %v7012_v54 = vadd.f32 %v7011_v59, %v7010_v21  ;;  %v8899_v25 = vadd.f32 %v7009_v10, %v8799_v31 }
 0x1cb   : > { %v6943_v3 = vpop.f32.mrb[84].mxu0 }
 0x1cc   : > { %v6944_v14 = vpop.f32.mrb[85].mxu0  ;;  %v8902_v40 = vadd.f32 %v7012_v54, %v8812_v39 }
 0x1cd   : > { %v6945_v18 = vadd.f32 %v6944_v14, %v6943_v3  ;;  %v6946_v49 = vpop.f32.mrb[86].mxu0 }
 0x1ce   : > { %v6947_v41 = vpop.f32.mrb[87].mxu0 }
 0x1cf   : > { %v8905_v0 = vadd.f32 %v6945_v18, %v8789_v15  ;;  %v6948_v57 = vadd.f32 %v6947_v41, %v6946_v49 }
 0x1d1   : > { %v8908_v36 = vadd.f32 %v6948_v57, %v8791_v5  ;;  %v7013_v29 = vpop.f32.mrb[88].mxu1 }
 0x1d2   : > { %v7014_v43 = vpop.f32.mrb[89].mxu1 }
 0x1d3   : > { %v7015_v50 = vadd.f32 %v7014_v43, %v7013_v29  ;;  %v7016_v47 = vpop.f32.mrb[90].mxu1 }
 0x1d4   : > { %v6949_v23 = vpop.f32.mrb[88].mxu0  ;;  %v7017_v31 = vpop.f32.mrb[91].mxu1 }
 0x1d5   : > { %v6950_v11 = vpop.f32.mrb[89].mxu0  ;;  %v7018_v26 = vadd.f32 %v7017_v31, %v7016_v47  ;;  %v8911_v4 = vadd.f32 %v7015_v50, %v8819_v61 }
 0x1d6   : > { %v6951_v39 = vadd.f32 %v6950_v11, %v6949_v23  ;;  %v6952_v12 = vpop.f32.mrb[90].mxu0 }
 0x1d7   : > { %v6953_v24 = vpop.f32.mrb[91].mxu0  ;;  %v8914_v15 = vadd.f32 %v7018_v26, %v8824_v17 }
 0x1d8   : > { %v8917_v5 = vadd.f32 %v6951_v39, %v8794_v37  ;;  %v6954_v16 = vadd.f32 %v6953_v24, %v6952_v12 }
 0x1da   : > { %v8920_v9 = vadd.f32 %v6954_v16, %v8814_v35 }
 0x1db   : > { %v7019_v7 = vpop.f32.mrb[92].mxu1 }
 0x1dc   : > { %v7020_v58 = vpop.f32.mrb[93].mxu1 }
 0x1dd   : > { %v7021_v28 = vadd.f32 %v7020_v58, %v7019_v7  ;;  %v7022_v48 = vpop.f32.mrb[94].mxu1 }
 0x1de   : > { %v6955_v56 = vpop.f32.mrb[92].mxu0  ;;  %v7023_v61 = vpop.f32.mrb[95].mxu1 }
 0x1df   : > { %v6956_v55 = vpop.f32.mrb[93].mxu0  ;;  %v7024_v10 = vadd.f32 %v7023_v61, %v7022_v48  ;;  %v8923_v21 = vadd.f32 %v7021_v28, %v8837_v22 }
 0x1e0   : > { %v6957_v17 = vadd.f32 %v6956_v55, %v6955_v56  ;;  %v6958_v3 = vpop.f32.mrb[94].mxu0 }
 0x1e1   : > { %v6959_v59 = vpop.f32.mrb[95].mxu0  ;;  %v8926_v37 = vadd.f32 %v7024_v10, %v8842_v30 }
 0x1e2   : > { %v8929_v35 = vadd.f32 %v6957_v17, %v8821_v6  ;;  %v6960_v14 = vadd.f32 %v6959_v59, %v6958_v3 }
 0x1e4   : > { %v8932_v54 = vadd.f32 %v6960_v14, %v8826_v13 }
 0x1e5   : > { %v7025_v18 = vpop.f32.mrb[96].mxu1 }
 0x1e6   : > { %v7026_v49 = vpop.f32.mrb[97].mxu1 }
 0x1e7   : > { %v7027_v57 = vadd.f32 %v7026_v49, %v7025_v18  ;;  %v7028_v29 = vpop.f32.mrb[98].mxu1 }
 0x1e8   : > { %v6961_v41 = vpop.f32.mrb[96].mxu0  ;;  %v7029_v43 = vpop.f32.mrb[99].mxu1 }
 0x1e9   : > { %v6962_v22 = vpop.f32.mrb[97].mxu0  ;;  %v7030_v23 = vadd.f32 %v7029_v43, %v7028_v29  ;;  %v8935_v30 = vadd.f32 %v7027_v57, %v8849_v8 }
 0x1ea   : > { %v6963_v50 = vadd.f32 %v6962_v22, %v6961_v41  ;;  %v6964_v47 = vpop.f32.mrb[98].mxu0 }
 0x1eb   : > { %v6965_v31 = vpop.f32.mrb[99].mxu0  ;;  %v8941_v13 = vadd.f32 %v7030_v23, %v8854_v20 }
 0x1ec   : > { %v8938_v6 = vadd.f32 %v6963_v50, %v8834_v62  ;;  %v6966_v11 = vadd.f32 %v6965_v31, %v6964_v47 }
 0x1ee   : > { %v8944_v26 = vadd.f32 %v6966_v11, %v8839_v34 }
 0x1f0   : > { %v7031_v39 = vpop.f32.mrb[100].mxu1 }
 0x1f1   : > { %v7032_v12 = vpop.f32.mrb[101].mxu1 }
 0x1f2   : > { %v7033_v24 = vadd.f32 %v7032_v12, %v7031_v39  ;;  %v7034_v16 = vpop.f32.mrb[102].mxu1  ;;  %v6967_v7 = vpop.f32.mrb[100].mxu0 }
 0x1f3   : > { %v7035_v58 = vpop.f32.mrb[103].mxu1  ;;  %v6968_v28 = vpop.f32.mrb[101].mxu0 }
 0x1f4   : > { %v7036_v8 = vadd.f32 %v7035_v58, %v7034_v16  ;;  %v8947_v48 = vadd.f32 %v7033_v24, %v8858_v53  ;;  %v6969_v62 = vadd.f32 %v6968_v28, %v6967_v7  ;;  %v6970_v56 = vpop.f32.mrb[102].mxu0 }
 0x1f5   : > { %v6971_v61 = vpop.f32.mrb[103].mxu0 }
 0x1f6   : > { %v8950_v20 = vadd.f32 %v7036_v8, %v8864_v33  ;;  %v8953_v34 = vadd.f32 %v6969_v62, %v8846_v52  ;;  %v6972_v55 = vadd.f32 %v6971_v61, %v6970_v56 }
 0x1f8   : > { %v8956_v10 = vadd.f32 %v6972_v55, %v8851_v63 }
 0x1fb   : > { %v7037_v17 = vpop.f32.mrb[104].mxu1 }
 0x1fc   : > { %v7038_v3 = vpop.f32.mrb[105].mxu1 }
 0x1fd   : > { %v6973_v59 = vpop.f32.mrb[104].mxu0  ;;  %v7039_v14 = vadd.f32 %v7038_v3, %v7037_v17  ;;  %v7040_v18 = vpop.f32.mrb[106].mxu1 }
 0x1fe   : > { %v6974_v53 = vpop.f32.mrb[105].mxu0  ;;  %v7041_v49 = vpop.f32.mrb[107].mxu1 }
 0x1ff   : > { %v6975_v41 = vadd.f32 %v6974_v53, %v6973_v59  ;;  %v6976_v57 = vpop.f32.mrb[106].mxu0  ;;  %v7042_v29 = vadd.f32 %v7041_v49, %v7040_v18  ;;  %v8959_v33 = vadd.f32 %v7039_v14, %v8870_v2 }
 0x200   : > { %v6977_v22 = vpop.f32.mrb[107].mxu0 }
 0x201   : > { %v8962_v52 = vadd.f32 %v6975_v41, %v8861_v45  ;;  %v6978_v43 = vadd.f32 %v6977_v22, %v6976_v57  ;;  %v8965_v63 = vadd.f32 %v7042_v29, %v8876_v38 }
 0x203   : > { %v8968_v50 = vadd.f32 %v6978_v43, %v8866_v19 }
 0x204   : > { %v7043_v47 = vpop.f32.mrb[108].mxu1 }
 0x205   : > { %v7044_v23 = vpop.f32.mrb[109].mxu1 }
 0x206   : > { %v7045_v31 = vadd.f32 %v7044_v23, %v7043_v47  ;;  %v7046_v11 = vpop.f32.mrb[110].mxu1 }
 0x207   : > { %v7047_v39 = vpop.f32.mrb[111].mxu1 }
 0x208   : > { %v7048_v12 = vadd.f32 %v7047_v39, %v7046_v11  ;;  %v8971_v2 = vadd.f32 %v7045_v31, %v8881_v44 }
 0x20a   : > { %v8974_v24 = vadd.f32 %v7048_v12, %v8884_v51 }
 0x20e   : > { %v6979_v45 = vpop.f32.mrb[108].mxu0 }
 0x20f   : > { %v6980_v16 = vpop.f32.mrb[109].mxu0  ;;  %v7049_v28 = vpop.f32.mrb[112].mxu1 }
 0x210   : > { %v6981_v7 = vadd.f32 %v6980_v16, %v6979_v45  ;;  %v6982_v38 = vpop.f32.mrb[110].mxu0  ;;  %v7050_v62 = vpop.f32.mrb[113].mxu1 }
 0x211   : > { %v6983_v58 = vpop.f32.mrb[111].mxu0  ;;  %v7051_v56 = vadd.f32 %v7050_v62, %v7049_v28  ;;  %v7052_v61 = vpop.f32.mrb[114].mxu1 }
 0x212   : > { %v8977_v19 = vadd.f32 %v6981_v7, %v8873_v46  ;;  %v6984_v8 = vadd.f32 %v6983_v58, %v6982_v38  ;;  %v7053_v55 = vpop.f32.mrb[115].mxu1 }
 0x213   : > { %v7054_v51 = vadd.f32 %v7053_v55, %v7052_v61  ;;  %v8983_v17 = vadd.f32 %v7051_v56, %v8893_v60 }
 0x214   : > { %v8980_v44 = vadd.f32 %v6984_v8, %v8878_v42 }
 0x215   : > { %v8987_v18 = vadd.f32 %v7054_v51, %v8896_v32 }
 0x216   : > { %v7139_v3 = vpop.f32.mrb[112].mxu0 }
 0x217   : > { %v5425_v59 = vadd.f32 %v7139_v3, %v8899_v25  ;;  %v5416_v14 = vpop.f32.mrb[113].mxu0 }
 0x218   : > { %v5417_v46 = vadd.f32 %v5416_v14, %v8887_v27  ;;  %v7140_v53 = vpop.f32.mrb[114].mxu0 }
 0x219   : > { %v5428_v49 = vadd.f32 %v7140_v53, %v8902_v40  ;;  %v5419_v42 = vpop.f32.mrb[115].mxu0  ;;  %v5545_v29 = vmax.f32 %v5425_v59, 0.0 }
 0x21a   : > { %v5543_v41 = vmax.f32 %v5417_v46, 0.0  ;;  %v5420_v57 = vadd.f32 %v5419_v42, %v8890_v1  ;;  %v7055_v25 = vpop.f32.mrb[116].mxu1 }
 0x21b   : > { %v5546_v60 = vmax.f32 %v5428_v49, 0.0  ;;  %v7056_v43 = vpop.f32.mrb[117].mxu1  ;;  %v5774_v39 = vmul.f32 %v5545_v29, %v5545_v29 }
 0x21c   : > { %v5544_v32 = vmax.f32 %v5420_v57, 0.0  ;;  %v5772_v27 = vmul.f32 %v5543_v41, %v5543_v41  ;;  %v7057_v11 = vadd.f32 %v7056_v43, %v7055_v25  ;;  %v7058_v1 = vpop.f32.mrb[118].mxu1 }
 0x21d   : > { %v6546_v22 = vpack.c.bf16 %v5546_v60, %v5545_v29  ;;  %v7059_v16 = vpop.f32.mrb[119].mxu1  ;;  %v5775_v62 = vmul.f32 %v5546_v60, %v5546_v60 }
 0x21e   : > { %v6541_v47 = vpack.c.bf16 %v5544_v32, %v5543_v41  ;;  %v5735_v40 = vadd.f32 %v5544_v32, %v5543_v41  ;;  %v5773_v23 = vmul.f32 %v5544_v32, %v5544_v32  ;;  %v7143_v31 = vpop.f32.mrb[116].mxu0  ;;  %v7060_v8 = vadd.f32 %v7059_v16, %v7058_v1 }
 0x21f   : > { %6634 = vst [vmem:[%s8996_s18 + $0x8] sm:$0xff] %v6546_v22   ;;  %v5441_v12 = vadd.f32 %v7143_v31, %v8923_v21  ;;  %v5432_v45 = vpop.f32.mrb[117].mxu0  ;;  %v9004_v55 = vadd.f32 %v7057_v11, %v8905_v0 }
 0x220   : > { %6542 = vst [vmem:[%s8996_s18] sm:$0xff] %v6541_v47   ;;  %v5736_v7 = vadd.f32 %v5735_v40, %v5545_v29  ;;  %v5804_v38 = vadd.f32 %v5773_v23, %v5772_v27  ;;  %v5433_v58 = vadd.f32 %v5432_v45, %v8911_v4  ;;  %v7144_v28 = vpop.f32.mrb[118].mxu0  ;;  %v9008_v53 = vadd.f32 %v7060_v8, %v8908_v36 }
 0x221   : > { %v5444_v56 = vadd.f32 %v7144_v28, %v8926_v37  ;;  %v5435_v61 = vpop.f32.mrb[119].mxu0  ;;  %v5549_v14 = vmax.f32 %v5441_v12, 0.0 }
 0x222   : > { %v5805_v51 = vadd.f32 %v5804_v38, %v5774_v39  ;;  %v5547_v3 = vmax.f32 %v5433_v58, 0.0  ;;  %v5737_v59 = vadd.f32 %v5736_v7, %v5546_v60  ;;  %v5436_v21 = vadd.f32 %v5435_v61, %v8914_v15 }
 0x223   : > { %v5550_v46 = vmax.f32 %v5444_v56, 0.0  ;;  %v5778_v27 = vmul.f32 %v5549_v14, %v5549_v14 }
 0x224   : > { %v5738_v4 = vadd.f32 %v5737_v59, %v5547_v3  ;;  %v5776_v49 = vmul.f32 %v5547_v3, %v5547_v3  ;;  %v5806_v42 = vadd.f32 %v5805_v51, %v5775_v62  ;;  %v5548_v37 = vmax.f32 %v5436_v21, 0.0  ;;  %v7061_v25 = vpop.f32.mrb[120].mxu1 }
 0x225   : > { %v6556_v41 = vpack.c.bf16 %v5550_v46, %v5549_v14  ;;  %v7062_v22 = vpop.f32.mrb[121].mxu1  ;;  %v5779_v1 = vmul.f32 %v5550_v46, %v5550_v46 }
 0x226   : > { %v5807_v57 = vadd.f32 %v5806_v42, %v5776_v49  ;;  %v6551_v0 = vpack.c.bf16 %v5548_v37, %v5547_v3  ;;  %v5739_v29 = vadd.f32 %v5738_v4, %v5548_v37  ;;  %v5777_v32 = vmul.f32 %v5548_v37, %v5548_v37  ;;  %v7147_v60 = vpop.f32.mrb[120].mxu0  ;;  %v7064_v31 = vpop.f32.mrb[122].mxu1 }
 0x227   : > { %6636 = vst [vmem:[%s8996_s18 + $0x18] sm:$0xff] %v6556_v41   ;;  %v5457_v15 = vadd.f32 %v7147_v60, %v8947_v48  ;;  %v5448_v43 = vpop.f32.mrb[121].mxu0  ;;  %v7063_v40 = vadd.f32 %v7062_v22, %v7061_v25  ;;  %v7065_v12 = vpop.f32.mrb[123].mxu1 }
 0x228   : > { %6635 = vst [vmem:[%s8996_s18 + $0x10] sm:$0xff] %v6551_v0   ;;  %v5740_v36 = vadd.f32 %v5739_v29, %v5549_v14  ;;  %v5808_v47 = vadd.f32 %v5807_v57, %v5777_v32  ;;  %v5449_v23 = vadd.f32 %v5448_v43, %v8935_v30  ;;  %v7148_v11 = vpop.f32.mrb[122].mxu0  ;;  %v7066_v48 = vadd.f32 %v7065_v12, %v7064_v31 }
 0x229   : > { %v5460_v39 = vadd.f32 %v7148_v11, %v8950_v20  ;;  %v5451_v45 = vpop.f32.mrb[123].mxu0  ;;  %v5553_v58 = vmax.f32 %v5457_v15, 0.0  ;;  %v9017_v62 = vadd.f32 %v7063_v40, %v8917_v5 }
 0x22a   : > { %v5809_v16 = vadd.f32 %v5808_v47, %v5778_v27  ;;  %v5551_v7 = vmax.f32 %v5449_v23, 0.0  ;;  %v5741_v38 = vadd.f32 %v5740_v36, %v5550_v46  ;;  %v5452_v8 = vadd.f32 %v5451_v45, %v8941_v13 }
 0x22b   : > { %v5554_v28 = vmax.f32 %v5460_v39, 0.0  ;;  %v9020_v20 = vadd.f32 %v7066_v48, %v8920_v9  ;;  %v5782_v42 = vmul.f32 %v5553_v58, %v5553_v58 }
 0x22c   : > { %v5742_v30 = vadd.f32 %v5741_v38, %v5551_v7  ;;  %v5780_v56 = vmul.f32 %v5551_v7, %v5551_v7  ;;  %v5810_v61 = vadd.f32 %v5809_v16, %v5779_v1  ;;  %v5552_v3 = vmax.f32 %v5452_v8, 0.0 }
 0x22d   : > { %v6566_v51 = vpack.c.bf16 %v5554_v28, %v5553_v58  ;;  %v7067_v49 = vpop.f32.mrb[124].mxu1  ;;  %v5783_v29 = vmul.f32 %v5554_v28, %v5554_v28 }
 0x22e   : > { %v5811_v59 = vadd.f32 %v5810_v61, %v5780_v56  ;;  %v6561_v21 = vpack.c.bf16 %v5552_v3, %v5551_v7  ;;  %v5743_v14 = vadd.f32 %v5742_v30, %v5552_v3  ;;  %v5781_v46 = vmul.f32 %v5552_v3, %v5552_v3  ;;  %v7151_v4 = vpop.f32.mrb[124].mxu0  ;;  %v7068_v57 = vpop.f32.mrb[125].mxu1 }
 0x22f   : > { %6638 = vst [vmem:[%s8996_s18 + $0x28] sm:$0xff] %v6566_v51   ;;  %v5473_v13 = vadd.f32 %v7151_v4, %v8971_v2  ;;  %v5464_v5 = vpop.f32.mrb[125].mxu0  ;;  %v7069_v32 = vadd.f32 %v7068_v57, %v7067_v49  ;;  %v7070_v25 = vpop.f32.mrb[126].mxu1 }
 0x230   : > { %6637 = vst [vmem:[%s8996_s18 + $0x20] sm:$0xff] %v6561_v21   ;;  %v5744_v37 = vadd.f32 %v5743_v14, %v5553_v58  ;;  %v5812_v41 = vadd.f32 %v5811_v59, %v5781_v46  ;;  %v5465_v9 = vadd.f32 %v5464_v5, %v8959_v33  ;;  %v7152_v0 = vpop.f32.mrb[126].mxu0  ;;  %v7071_v36 = vpop.f32.mrb[127].mxu1 }
 0x231   : > { %v5476_v60 = vadd.f32 %v7152_v0, %v8974_v24  ;;  %v5467_v27 = vpop.f32.mrb[127].mxu0  ;;  %v5557_v47 = vmax.f32 %v5473_v13, 0.0  ;;  %v7072_v23 = vadd.f32 %v7071_v36, %v7070_v25  ;;  %v5344_v33 = vadd.f32 %v7069_v32, %v8929_v35 }
 0x232   : > { %v5813_v15 = vadd.f32 %v5812_v41, %v5782_v42  ;;  %v5555_v22 = vmax.f32 %v5465_v9, 0.0  ;;  %v5745_v43 = vadd.f32 %v5744_v37, %v5554_v28  ;;  %v5468_v2 = vadd.f32 %v5467_v27, %v8965_v63 }
 0x233   : > { %v5558_v40 = vmax.f32 %v5476_v60, 0.0  ;;  %v5347_v24 = vadd.f32 %v7072_v23, %v8932_v54  ;;  %v5786_v63 = vmul.f32 %v5557_v47, %v5557_v47 }
 0x234   : > { %v5746_v31 = vadd.f32 %v5745_v43, %v5555_v22  ;;  %v5784_v11 = vmul.f32 %v5555_v22, %v5555_v22  ;;  %v5814_v1 = vadd.f32 %v5813_v15, %v5783_v29  ;;  %v5556_v39 = vmax.f32 %v5468_v2, 0.0 }
 0x235   : > { %v6576_v12 = vpack.c.bf16 %v5558_v40, %v5557_v47  ;;  %v5787_v51 = vmul.f32 %v5558_v40, %v5558_v40 }
 0x236   : > { %v5815_v45 = vadd.f32 %v5814_v1, %v5784_v11  ;;  %v6571_v16 = vpack.c.bf16 %v5556_v39, %v5555_v22  ;;  %v5747_v7 = vadd.f32 %v5746_v31, %v5556_v39  ;;  %v5785_v38 = vmul.f32 %v5556_v39, %v5556_v39  ;;  %v7155_v48 = vpop.f32.mrb[128].mxu0 }
 0x237   : > { %6640 = vst [vmem:[%s8996_s18 + $0x38] sm:$0xff] %v6576_v12   ;;  %v5489_v8 = vadd.f32 %v7155_v48, %v9004_v55  ;;  %v5480_v35 = vpop.f32.mrb[129].mxu0  ;;  %v7073_v30 = vpop.f32.mrb[128].mxu1 }
 0x238   : > { %6639 = vst [vmem:[%s8996_s18 + $0x30] sm:$0xff] %v6571_v16   ;;  %v5748_v58 = vadd.f32 %v5747_v7, %v5557_v47  ;;  %v5816_v28 = vadd.f32 %v5815_v45, %v5785_v38  ;;  %v5481_v56 = vadd.f32 %v5480_v35, %v8983_v17  ;;  %v7156_v61 = vpop.f32.mrb[130].mxu0  ;;  %v7074_v54 = vpop.f32.mrb[129].mxu1 }
 0x239   : > { %v5492_v21 = vadd.f32 %v7156_v61, %v9008_v53  ;;  %v5483_v14 = vpop.f32.mrb[131].mxu0  ;;  %v7075_v46 = vadd.f32 %v7074_v54, %v7073_v30  ;;  %v7076_v49 = vpop.f32.mrb[130].mxu1  ;;  %v5561_v5 = vmax.f32 %v5489_v8, 0.0 }
 0x23a   : > { %v5817_v3 = vadd.f32 %v5816_v28, %v5786_v63  ;;  %v5749_v59 = vadd.f32 %v5748_v58, %v5558_v40  ;;  %v5559_v4 = vmax.f32 %v5481_v56, 0.0  ;;  %v5484_v13 = vadd.f32 %v5483_v14, %v8987_v18  ;;  %v7077_v37 = vpop.f32.mrb[131].mxu1 }
 0x23b   : > { %v5562_v42 = vmax.f32 %v5492_v21, 0.0  ;;  %v7078_v57 = vadd.f32 %v7077_v37, %v7076_v49  ;;  %v5352_v29 = vadd.f32 %v7075_v46, %v8938_v6  ;;  %v5790_v18 = vmul.f32 %v5561_v5, %v5561_v5 }
 0x23c   : > { %v5818_v55 = vadd.f32 %v5817_v3, %v5787_v51  ;;  %v5750_v17 = vadd.f32 %v5749_v59, %v5559_v4  ;;  %v5788_v41 = vmul.f32 %v5559_v4, %v5559_v4  ;;  %v5560_v9 = vmax.f32 %v5484_v13, 0.0 }
 0x23d   : > { %v6586_v0 = vpack.c.bf16 %v5562_v42, %v5561_v5  ;;  %v5355_v27 = vadd.f32 %v7078_v57, %v8944_v26  ;;  %v5791_v47 = vmul.f32 %v5562_v42, %v5562_v42 }
 0x23e   : > { %v5819_v53 = vadd.f32 %v5818_v55, %v5788_v41  ;;  %v6581_v32 = vpack.c.bf16 %v5560_v9, %v5559_v4  ;;  %v5751_v25 = vadd.f32 %v5750_v17, %v5560_v9  ;;  %v5789_v60 = vmul.f32 %v5560_v9, %v5560_v9 }
 0x23f   : > { %6642 = vst [vmem:[%s8996_s18 + $0x48] sm:$0xff] %v6586_v0  }
 0x240   : > { %6641 = vst [vmem:[%s8996_s18 + $0x40] sm:$0xff] %v6581_v32   ;;  %v5752_v15 = vadd.f32 %v5751_v25, %v5561_v5  ;;  %v5820_v22 = vadd.f32 %v5819_v53, %v5789_v60  ;;  %v7159_v43 = vpop.f32.mrb[132].mxu0 }
 0x241   : > { %v5505_v36 = vadd.f32 %v7159_v43, %v5344_v33  ;;  %v5496_v2 = vpop.f32.mrb[133].mxu0  ;;  %v7079_v23 = vpop.f32.mrb[132].mxu1 }
 0x242   : > { %v5821_v40 = vadd.f32 %v5820_v22, %v5790_v18  ;;  %v5497_v31 = vadd.f32 %v5496_v2, %v9017_v62  ;;  %v5753_v6 = vadd.f32 %v5752_v15, %v5562_v42  ;;  %v7160_v11 = vpop.f32.mrb[134].mxu0  ;;  %v7080_v1 = vpop.f32.mrb[133].mxu1 }
 0x243   : > { %v5508_v39 = vadd.f32 %v7160_v11, %v5347_v24  ;;  %v5499_v12 = vpop.f32.mrb[135].mxu0  ;;  %v7081_v45 = vadd.f32 %v7080_v1, %v7079_v23  ;;  %v7082_v7 = vpop.f32.mrb[134].mxu1  ;;  %v5565_v48 = vmax.f32 %v5505_v36, 0.0 }
 0x244   : > { %v5563_v16 = vmax.f32 %v5497_v31, 0.0  ;;  %v5822_v26 = vadd.f32 %v5821_v40, %v5791_v47  ;;  %v5500_v38 = vadd.f32 %v5499_v12, %v9020_v20  ;;  %v7083_v63 = vpop.f32.mrb[135].mxu1 }
 0x245   : > { %v5566_v33 = vmax.f32 %v5508_v39, 0.0  ;;  %v7084_v8 = vadd.f32 %v7083_v63, %v7082_v7  ;;  %v5360_v30 = vadd.f32 %v7081_v45, %v8953_v34  ;;  %v5794_v20 = vmul.f32 %v5565_v48, %v5565_v48 }
 0x246   : > { %v5754_v58 = vadd.f32 %v5753_v6, %v5563_v16  ;;  %v5792_v28 = vmul.f32 %v5563_v16, %v5563_v16  ;;  %v5564_v62 = vmax.f32 %v5500_v38, 0.0 }
 0x247   : > { %v6596_v35 = vpack.c.bf16 %v5566_v33, %v5565_v48  ;;  %v5363_v54 = vadd.f32 %v7084_v8, %v8956_v10  ;;  %v5795_v5 = vmul.f32 %v5566_v33, %v5566_v33 }
 0x248   : > { %v5823_v24 = vadd.f32 %v5822_v26, %v5792_v28  ;;  %v6591_v56 = vpack.c.bf16 %v5564_v62, %v5563_v16  ;;  %v5755_v61 = vadd.f32 %v5754_v58, %v5564_v62  ;;  %v5793_v51 = vmul.f32 %v5564_v62, %v5564_v62 }
 0x249   : > { %6644 = vst [vmem:[%s8996_s18 + $0x58] sm:$0xff] %v6596_v35  }
 0x24a   : > { %6643 = vst [vmem:[%s8996_s18 + $0x50] sm:$0xff] %v6591_v56   ;;  %v5756_v59 = vadd.f32 %v5755_v61, %v5565_v48  ;;  %v5824_v21 = vadd.f32 %v5823_v24, %v5793_v51 }
 0x24c   : > { %v5825_v55 = vadd.f32 %v5824_v21, %v5794_v20  ;;  %v5757_v42 = vadd.f32 %v5756_v59, %v5566_v33 }
 0x24d   : > { %v7163_v3 = vpop.f32.mrb[136].mxu0  ;;  %v7085_v4 = vpop.f32.mrb[136].mxu1 }
 0x24e   : > { %v5521_v14 = vadd.f32 %v7163_v3, %v5360_v30  ;;  %v5512_v46 = vpop.f32.mrb[137].mxu0  ;;  %v7086_v34 = vpop.f32.mrb[137].mxu1  ;;  %v5826_v53 = vadd.f32 %v5825_v55, %v5795_v5 }
 0x24f   : > { %v5513_v49 = vadd.f32 %v5512_v46, %v5352_v29  ;;  %v7164_v13 = vpop.f32.mrb[138].mxu0  ;;  %v7087_v41 = vadd.f32 %v7086_v34, %v7085_v4  ;;  %v7088_v9 = vpop.f32.mrb[138].mxu1 }
 0x250   : > { %v5524_v37 = vadd.f32 %v7164_v13, %v5363_v54  ;;  %v5515_v17 = vpop.f32.mrb[139].mxu0  ;;  %v5569_v0 = vmax.f32 %v5521_v14, 0.0  ;;  %v7089_v25 = vpop.f32.mrb[139].mxu1 }
 0x251   : > { %v5567_v57 = vmax.f32 %v5513_v49, 0.0  ;;  %v5516_v10 = vadd.f32 %v5515_v17, %v5355_v27  ;;  %v7090_v29 = vadd.f32 %v7089_v25, %v7088_v9  ;;  %v5368_v43 = vadd.f32 %v7087_v41, %v8962_v52 }
 0x252   : > { %v5570_v32 = vmax.f32 %v5524_v37, 0.0  ;;  %v5798_v27 = vmul.f32 %v5569_v0, %v5569_v0 }
 0x253   : > { %v5758_v60 = vadd.f32 %v5757_v42, %v5567_v57  ;;  %v5796_v18 = vmul.f32 %v5567_v57, %v5567_v57  ;;  %v5568_v15 = vmax.f32 %v5516_v10, 0.0  ;;  %v5371_v23 = vadd.f32 %v7090_v29, %v8968_v50 }
 0x254   : > { %v6606_v22 = vpack.c.bf16 %v5570_v32, %v5569_v0  ;;  %v5799_v11 = vmul.f32 %v5570_v32, %v5570_v32 }
 0x255   : > { %v5827_v36 = vadd.f32 %v5826_v53, %v5796_v18  ;;  %v6601_v2 = vpack.c.bf16 %v5568_v15, %v5567_v57  ;;  %v5759_v47 = vadd.f32 %v5758_v60, %v5568_v15  ;;  %v5797_v40 = vmul.f32 %v5568_v15, %v5568_v15 }
 0x256   : > { %6646 = vst [vmem:[%s8996_s18 + $0x68] sm:$0xff] %v6606_v22  }
 0x257   : > { %6645 = vst [vmem:[%s8996_s18 + $0x60] sm:$0xff] %v6601_v2   ;;  %v5760_v31 = vadd.f32 %v5759_v47, %v5569_v0  ;;  %v5828_v6 = vadd.f32 %v5827_v36, %v5797_v40 }
 0x259   : > { %v5829_v1 = vadd.f32 %v5828_v6, %v5798_v27  ;;  %v5761_v39 = vadd.f32 %v5760_v31, %v5570_v32 }
 0x25b   : > { %v5830_v12 = vadd.f32 %v5829_v1, %v5799_v11 }
 0x263   : > { %v7167_v45 = vpop.f32.mrb[140].mxu0 }
 0x264   : > { %v5528_v16 = vpop.f32.mrb[141].mxu0 }
 0x265   : > { %v7091_v26 = vpop.f32.mrb[140].mxu1  ;;  %v5529_v7 = vadd.f32 %v5528_v16, %v5368_v43  ;;  %v7168_v52 = vpop.f32.mrb[142].mxu0 }
 0x266   : > { %v7092_v38 = vpop.f32.mrb[141].mxu1  ;;  %v5531_v48 = vpop.f32.mrb[143].mxu0 }
 0x267   : > { %v7093_v33 = vadd.f32 %v7092_v38, %v7091_v26  ;;  %v5571_v63 = vmax.f32 %v5529_v7, 0.0  ;;  %v7094_v58 = vpop.f32.mrb[142].mxu1  ;;  %v5532_v50 = vadd.f32 %v5531_v48, %v5371_v23 }
 0x268   : > { %v7095_v28 = vpop.f32.mrb[143].mxu1 }
 0x269   : > { %v5376_v8 = vadd.f32 %v7093_v33, %v8977_v19  ;;  %v5762_v62 = vadd.f32 %v5761_v39, %v5571_v63  ;;  %v5800_v35 = vmul.f32 %v5571_v63, %v5571_v63  ;;  %v7096_v30 = vadd.f32 %v7095_v28, %v7094_v58 }
 0x26a   : > { %v5572_v24 = vmax.f32 %v5532_v50, 0.0 }
 0x26b   : > { %v5537_v56 = vadd.f32 %v7167_v45, %v5376_v8  ;;  %v5831_v61 = vadd.f32 %v5830_v12, %v5800_v35  ;;  %v5379_v51 = vadd.f32 %v7096_v30, %v8980_v44 }
 0x26c   : > { %v6611_v3 = vpack.c.bf16 %v5572_v24, %v5571_v63  ;;  %v5763_v54 = vadd.f32 %v5762_v62, %v5572_v24  ;;  %v5801_v20 = vmul.f32 %v5572_v24, %v5572_v24 }
 0x26d   : > { %v5573_v59 = vmax.f32 %v5537_v56, 0.0  ;;  %v5540_v21 = vadd.f32 %v7168_v52, %v5379_v51 }
 0x26e   : > { %6647 = vst [vmem:[%s8996_s18 + $0x70] sm:$0xff] %v6611_v3   ;;  %v5832_v14 = vadd.f32 %v5831_v61, %v5801_v20 }
 0x26f   : > { %v5802_v46 = vmul.f32 %v5573_v59, %v5573_v59  ;;  %v5574_v4 = vmax.f32 %v5540_v21, 0.0  ;;  %v5764_v49 = vadd.f32 %v5763_v54, %v5573_v59 }
 0x271   : > { %v6616_v19 = vpack.c.bf16 %v5574_v4, %v5573_v59  ;;  %v5803_v13 = vmul.f32 %v5574_v4, %v5574_v4  ;;  %v5765_v5 = vadd.f32 %v5764_v49, %v5574_v4  ;;  %v5833_v55 = vadd.f32 %v5832_v14, %v5802_v46 }
 0x273   : > { %6648 = vst [vmem:[%s8996_s18 + $0x78] sm:$0xff] %v6616_v19   ;;  %v5766_v34 = vrot.slane %v5765_v5, 4  ;;  %v5834_v42 = vadd.f32 %v5833_v55, %v5803_v13 }
 0x275   : > { %v5767_v37 = vadd.f32 %v5766_v34, %v5765_v5  ;;  %v5835_v44 = vrot.slane %v5834_v42, 4 }
 0x277   : > { %v5768_v17 = vrot.slane %v5767_v37, 2  ;;  %v5836_v41 = vadd.f32 %v5835_v44, %v5834_v42 }
 0x279   : > { %v5769_v57 = vadd.f32 %v5768_v17, %v5767_v37  ;;  %v5837_v9 = vrot.slane %v5836_v41, 2 }
 0x27b   : > { %v5770_v10 = vrot.slane %v5769_v57, 1  ;;  %v5838_v0 = vadd.f32 %v5837_v9, %v5836_v41 }
 0x27d   : > { %v5839_v53 = vrot.slane %v5838_v0, 1  ;;  %v5771_v32 = vadd.f32 %v5770_v10, %v5769_v57 }
 0x27f   : > { %v5840_v25 = vadd.f32 %v5839_v53, %v5838_v0 }
 0x281   : > { %v5842_v60 = vsel %vm5841_vm8, %v5771_v32, %v5840_v25 }
 0x282   : > { %5843 = vst [vmem:[%s295_s27] sm:$0x3] %v5842_v60 }
 0x283 PF: > { %s17_s23 = sadd.s32 1, %s7360_s23   ;;  %s9112_s21 = smov %s7356_s22 }
 0x284   : > { %p14_p5 = scmp.ge.s32.totalorder %s17_s23, 4   ;;  %s9113_s22 = smov %s9115_s24 }
 0x286   :  { %16 = sbr.rel (!%p14_p5) target bundleno = 2 (0x2), region = 85 }

</bundles_post_ra>
